<compile_context>
chip_gen: v6e
topology: v6e:2x2x1
jax: 0.10.0
libtpu: 0.0.40
codegen_flags: <defaults>
</compile_context>

<pallas_src>
import functools
import math

import jax
import jax.numpy as jnp
from jax.experimental import pallas as pl
from jax.experimental.pallas import tpu as pltpu

NEG_INF = -1e30


# ----------------------------------------------------------------------------
# In-kernel helpers (plain jnp; traced inside kernel bodies)
# ----------------------------------------------------------------------------

def _bf16_dot(a, b):
    # a @ b with bf16 MXU inputs and f32 accumulation.
    return jnp.dot(a.astype(jnp.bfloat16), b.astype(jnp.bfloat16),
                   preferred_element_type=jnp.float32)


def _bf16_dot_nt(a, b):
    # a @ b.T with bf16 MXU inputs and f32 accumulation.
    return jax.lax.dot_general(a.astype(jnp.bfloat16), b.astype(jnp.bfloat16),
                               (((1,), (1,)), ((), ())),
                               preferred_element_type=jnp.float32)


def _layernorm(x, g, b):
    mu = jnp.mean(x, axis=-1, keepdims=True)
    var = jnp.mean((x - mu) ** 2, axis=-1, keepdims=True)
    return (x - mu) * jax.lax.rsqrt(var + 1e-5) * g + b   # torch LayerNorm eps


# ----------------------------------------------------------------------------
# Pallas kernels
# ----------------------------------------------------------------------------

def _encoder_block_kernel(m_ref, x_ref, pe_ref,
                          cg_ref, cb_ref, dw_ref, pww_ref, pwb_ref,
                          lng_ref, lnb_ref, kvq_ref, ffw_ref, ffb_ref,
                          o_ref, dwbuf_ref, *, conv_num, K, heads):
    # One full EncoderBlock for one batch element; (L, D) stays in VMEM.
    _, L, D = x_ref.shape
    pad = K // 2
    off = ((pad + 7) // 8) * 8            # sublane-aligned halo offset
    dh = D // heads

    # TODO(synk): PositionalEncoding source not provided; additive sinusoidal
    # encoding over the sequence dim assumed.
    out = x_ref[0] + pe_ref[...]

    # --- conv_num x (LayerNorm -> depthwise conv -> pointwise conv+ReLU -> +res)
    dwbuf_ref[...] = jnp.zeros_like(dwbuf_ref)   # zero halo once; middle overwritten
    for i in range(conv_num):
        res = out
        y = _layernorm(out, cg_ref[i:i + 1, :], cb_ref[i:i + 1, :])
        dwbuf_ref[off:off + L, :] = y            # "same" padding entirely in VMEM
        dw_i = dw_ref[i]                         # (K, D)
        acc = jnp.zeros((L, D), jnp.float32)
        for k in range(K):
            acc = acc + dwbuf_ref[pl.ds(off - pad + k, L), :] * dw_i[k:k + 1, :]
        y = jnp.maximum(_bf16_dot(acc, pww_ref[i]) + pwb_ref[i:i + 1, :], 0.0)
        out = y + res                            # layer_dropout (eval)

    # --- LayerNorm -> merged K/V/Q projection -> masked attention -> +res
    # TODO(synk): SelfAttention source not provided; bias-free key/value/query
    # projections + key-masked scaled dot-product (no output projection) assumed.
    res = out
    y = _layernorm(out, lng_ref[0:1, :], lnb_ref[0:1, :])
    kk = _bf16_dot(y, kvq_ref[0])
    vv = _bf16_dot(y, kvq_ref[1])
    qq = _bf16_dot(y, kvq_ref[2]) * (dh ** -0.5)
    key_mask = m_ref[0]                          # (1, L); 1.0 = keep
    if heads == 1:
        logits = _bf16_dot_nt(qq, kk)            # (L, L)
        logits = jnp.where(key_mask > 0, logits, NEG_INF)
        logits = logits - jnp.max(logits, axis=-1, keepdims=True)
        p = jnp.exp(logits)
        p = p * pl.reciprocal(jnp.sum(p, axis=-1, keepdims=True), approx=True)
        att = _bf16_dot(p, vv)
    else:
        q3 = qq.reshape(L, heads, dh)
        k3 = kk.reshape(L, heads, dh)
        v3 = vv.reshape(L, heads, dh)
        logits = jnp.einsum('qhd,khd->hqk', q3.astype(jnp.bfloat16),
                            k3.astype(jnp.bfloat16),
                            preferred_element_type=jnp.float32)
        logits = jnp.where(key_mask[None, :, :] > 0, logits, NEG_INF)
        logits = logits - jnp.max(logits, axis=-1, keepdims=True)
        p = jnp.exp(logits)
        p = p * pl.reciprocal(jnp.sum(p, axis=-1, keepdims=True), approx=True)
        att = jnp.einsum('hqk,khd->qhd', p.astype(jnp.bfloat16),
                         v3.astype(jnp.bfloat16),
                         preferred_element_type=jnp.float32).reshape(L, D)
    out = att + res

    # --- LayerNorm -> FFN1(+ReLU) -> FFN2 -> +res
    res = out
    y = _layernorm(out, lng_ref[1:2, :], lnb_ref[1:2, :])
    y = jnp.maximum(_bf16_dot(y, ffw_ref[0]) + ffb_ref[0:1, :], 0.0)
    y = _bf16_dot(y, ffw_ref[1]) + ffb_ref[1:2, :]
    o_ref[0] = y + res


def _cqatt_kernel(c_ref, q_ref, w4c_ref, w4q_ref, w4m_ref, bias_ref,
                  mc_ref, mq_ref, rw_ref, o_ref):
    # Trilinear context-query attention + fused cq_resizer, per batch element.
    C = c_ref[0]                                       # (Lc, D)
    Q = q_ref[0]                                       # (Lq, D)
    w4c = w4c_ref[...]                                 # (1, D)
    w4q = w4q_ref[...]                                 # (1, D)
    w4m = w4m_ref[...]                                 # (1, D)
    s0 = jnp.sum(C * w4c, axis=1, keepdims=True)       # (Lc, 1)
    s1 = _bf16_dot_nt(w4q, Q)                          # (1, Lq)
    s2 = _bf16_dot_nt(C * w4m, Q)                      # (Lc, Lq)
    S = s2 + s0 + s1 + bias_ref[...]
    mc = mc_ref[0]                                     # (Lc, 1)
    mq = mq_ref[0]                                     # (1, Lq)
    # S1 = softmax over Lq of mask_logits(S, maskQ)   (f32 softmax math)
    S1m = jnp.where(mq > 0, S, NEG_INF)
    S1m = S1m - jnp.max(S1m, axis=1, keepdims=True)
    e1 = jnp.exp(S1m)
    S1 = e1 * pl.reciprocal(jnp.sum(e1, axis=1, keepdims=True), approx=True)
    # S2 = softmax over Lc of mask_logits(S, maskC)
    S2m = jnp.where(mc > 0, S, NEG_INF)
    S2m = S2m - jnp.max(S2m, axis=0, keepdims=True)
    e2 = jnp.exp(S2m)
    S2 = e2 * pl.reciprocal(jnp.sum(e2, axis=0, keepdims=True), approx=True)
    A = _bf16_dot(S1, Q)                               # (Lc, D)
    T = _bf16_dot_nt(S1, S2)                           # (Lc, Lc)
    Bm = _bf16_dot(T, C)                               # (Lc, D)
    # Fused cq_resizer (no bias): [C, A, C*A, C*B] @ W == sum of 4 (D,D) dots.
    o_ref[0] = (_bf16_dot(C, rw_ref[0]) + _bf16_dot(A, rw_ref[1])
                + _bf16_dot(C * A, rw_ref[2]) + _bf16_dot(C * Bm, rw_ref[3]))


def _matmul_kernel(x_ref, w_ref, b_ref, o_ref, *, activation):
    # Flattened (rows, Cin) x (Cin, Cout) matmul + bias (+activation).
    y = _bf16_dot(x_ref[...], w_ref[...]) + b_ref[...]
    if activation == "relu":
        y = jnp.maximum(y, 0.0)
    o_ref[...] = y


def _highway_kernel(x_ref, w_ref, b_ref, o_ref):
    # One Highway layer: gate & linear projections fused with the combine.
    x = x_ref[...]                                     # (tm, D)
    gate = jax.nn.sigmoid(_bf16_dot(x, w_ref[0]) + b_ref[0:1, :])
    lin = _bf16_dot(x, w_ref[1]) + b_ref[1:2, :]
    o_ref[...] = gate * lin + (1.0 - gate) * x


# ----------------------------------------------------------------------------
# pallas_call wrappers
# ----------------------------------------------------------------------------

_PAR = pltpu.CompilerParams(dimension_semantics=("parallel",))


def _pick_row_tile(m):
    for t in (512, 256, 128, 64, 32, 16, 8):
        if m % t == 0:
            return t
    return m


def matmul_bias(x2, w, b=None, activation="none"):
    M, Cin = x2.shape
    Cout = w.shape[1]
    if b is None:
        b = jnp.zeros((Cout,), jnp.float32)
    b2 = jnp.reshape(b, (1, Cout))
    tm = _pick_row_tile(M)
    kern = functools.partial(_matmul_kernel, activation=activation)
    return pl.pallas_call(
        kern,
        out_shape=jax.ShapeDtypeStruct((M, Cout), jnp.float32),
        grid=(M // tm,),
        in_specs=[pl.BlockSpec((tm, Cin), lambda i: (i, 0)),
                  pl.BlockSpec((Cin, Cout), lambda i: (0, 0)),
                  pl.BlockSpec((1, Cout), lambda i: (0, 0))],
        out_specs=pl.BlockSpec((tm, Cout), lambda i: (i, 0)),
        compiler_params=_PAR,
    )(x2, w, b2)


def highway_forward(layers, x):
    B, L, D = x.shape
    x2 = x.reshape(B * L, D)
    tm = _pick_row_tile(B * L)
    for layer in layers:
        x2 = pl.pallas_call(
            _highway_kernel,
            out_shape=jax.ShapeDtypeStruct((B * L, D), jnp.float32),
            grid=((B * L) // tm,),
            in_specs=[pl.BlockSpec((tm, D), lambda i: (i, 0)),
                      pl.BlockSpec((2, D, D), lambda i: (0, 0, 0)),
                      pl.BlockSpec((2, D), lambda i: (0, 0))],
            out_specs=pl.BlockSpec((tm, D), lambda i: (i, 0)),
            compiler_params=_PAR,
        )(x2, layer['w'], layer['b'])
    return x2.reshape(B, L, D)


def encoder_block_forward(blk, x, mask3, pe, heads):
    B, L, D = x.shape
    conv_num, K, _ = blk['dw'].shape
    off = ((K // 2 + 7) // 8) * 8
    kern = functools.partial(_encoder_block_kernel,
                             conv_num=conv_num, K=K, heads=heads)
    return pl.pallas_call(
        kern,
        out_shape=jax.ShapeDtypeStruct((B, L, D), jnp.float32),
        grid=(B,),
        in_specs=[pl.BlockSpec((1, 1, L), lambda i: (i, 0, 0)),          # key mask
                  pl.BlockSpec((1, L, D), lambda i: (i, 0, 0)),          # x
                  pl.BlockSpec((L, D), lambda i: (0, 0)),                # pos. enc.
                  pl.BlockSpec((conv_num, D), lambda i: (0, 0)),         # conv LN gamma
                  pl.BlockSpec((conv_num, D), lambda i: (0, 0)),         # conv LN beta
                  pl.BlockSpec((conv_num, K, D), lambda i: (0, 0, 0)),   # depthwise w
                  pl.BlockSpec((conv_num, D, D), lambda i: (0, 0, 0)),   # pointwise w
                  pl.BlockSpec((conv_num, D), lambda i: (0, 0)),         # pointwise b
                  pl.BlockSpec((2, D), lambda i: (0, 0)),                # LN1/LN2 gamma
                  pl.BlockSpec((2, D), lambda i: (0, 0)),                # LN1/LN2 beta
                  pl.BlockSpec((3, D, D), lambda i: (0, 0, 0)),          # K/V/Q proj
                  pl.BlockSpec((2, D, D), lambda i: (0, 0, 0)),          # FFN weights
                  pl.BlockSpec((2, D), lambda i: (0, 0))],               # FFN biases
        out_specs=pl.BlockSpec((1, L, D), lambda i: (i, 0, 0)),
        scratch_shapes=[pltpu.VMEM((L + 2 * off, D), jnp.float32)],
        compiler_params=_PAR,
    )(mask3, x, pe,
      blk['ln_c_g'], blk['ln_c_b'], blk['dw'], blk['pw_w'], blk['pw_b'],
      blk['ln_ab_g'], blk['ln_ab_b'], blk['kvq_w'], blk['ffn_w'], blk['ffn_b'])


def cq_attention_forward(cq, Ce, Qe, maskC, maskQ):
    B, Lc, D = Ce.shape
    Lq = Qe.shape[1]
    mc = maskC.reshape(B, Lc, 1)
    mq = maskQ.reshape(B, 1, Lq)
    return pl.pallas_call(
        _cqatt_kernel,
        out_shape=jax.ShapeDtypeStruct((B, Lc, D), jnp.float32),
        grid=(B,),
        in_specs=[pl.BlockSpec((1, Lc, D), lambda i: (i, 0, 0)),
                  pl.BlockSpec((1, Lq, D), lambda i: (i, 0, 0)),
                  pl.BlockSpec((1, D), lambda i: (0, 0)),
                  pl.BlockSpec((1, D), lambda i: (0, 0)),
                  pl.BlockSpec((1, D), lambda i: (0, 0)),
                  pl.BlockSpec((1, 1), lambda i: (0, 0)),
                  pl.BlockSpec((1, Lc, 1), lambda i: (i, 0, 0)),
                  pl.BlockSpec((1, 1, Lq), lambda i: (i, 0, 0)),
                  pl.BlockSpec((4, D, D), lambda i: (0, 0, 0))],
        out_specs=pl.BlockSpec((1, Lc, D), lambda i: (i, 0, 0)),
        compiler_params=_PAR,
    )(Ce, Qe, cq['w4C'], cq['w4Q'], cq['w4mlu'], cq['bias'], mc, mq,
      cq['resizer_w'])


# ----------------------------------------------------------------------------
# Model forward (glue in plain JAX; heavy math in the kernels above)
# ----------------------------------------------------------------------------

def input_embedding_forward(emb, token_ids, char_ids):
    # Char path: embedding lookup, then the (1, K) char CNN folded into one
    # matmul over sliding windows of ALL tokens at once, then max + ReLU.
    # TODO(synk): RegularConv source not provided; Conv2d defaults assumed
    # (padding=0, bias=True, no internal activation).
    ch = jnp.take(emb['char_emb'], char_ids, axis=0)          # (B, TOK, CHAR, Cd)
    B, TOK, CHAR, Cd = ch.shape
    K, _, D = emb['char_w'].shape
    P = CHAR - K + 1
    win = jnp.concatenate([ch[:, :, k:k + P, :] for k in range(K)], axis=-1)
    y = matmul_bias(win.reshape(B * TOK * P, K * Cd),
                    emb['char_w'].reshape(K * Cd, D), emb['char_b'])
    y = jnp.max(y.reshape(B, TOK, P, D), axis=2)              # max over char positions
    ch_emb = jnp.maximum(y, 0.0)                              # InputEmbedding ReLU
    # Word path + projection + highway.
    wd = jnp.take(emb['word_emb'], token_ids, axis=0)         # (B, TOK, word_D)
    x = jnp.concatenate([wd, ch_emb], axis=-1)                # (B, TOK, word_D + D)
    x = matmul_bias(x.reshape(B * TOK, x.shape[-1]), emb['proj_w'], emb['proj_b'])
    x = x.reshape(B, TOK, D)
    return highway_forward(emb['highway'], x)


def pointer_forward(out_p, M1, M2, M3, maskC):
    # Pointer heads are Cout=1 (lane-degenerate for Pallas stores/MXU) => XLA.
    D = M1.shape[-1]
    w1 = out_p['w1'][:, 0]
    w2 = out_p['w2'][:, 0]
    Y1 = jnp.einsum('bld,d->bl', M1, w1[:D]) + jnp.einsum('bld,d->bl', M2, w1[D:])
    Y2 = jnp.einsum('bld,d->bl', M1, w2[:D]) + jnp.einsum('bld,d->bl', M3, w2[D:])
    Y1 = Y1 * maskC + (1.0 - maskC) * NEG_INF                 # mask_logits
    Y2 = Y2 * maskC + (1.0 - maskC) * NEG_INF
    return Y1, Y2


def qanet_forward(params, Cwid, Ccid, Qwid, Qcid, pad=0, heads=1):
    maskC = (Cwid != pad).astype(jnp.float32)
    maskQ = (Qwid != pad).astype(jnp.float32)
    C = input_embedding_forward(params['emb'], Cwid, Ccid)
    Q = input_embedding_forward(params['emb'], Qwid, Qcid)
    B, Lc, _ = C.shape
    Lq = Q.shape[1]
    mC3 = maskC.reshape(B, 1, Lc)
    mQ3 = maskQ.reshape(B, 1, Lq)
    peC = params['pe'][:Lc]
    peQ = params['pe'][:Lq]
    Ce = encoder_block_forward(params['emb_enc'], C, mC3, peC, heads)
    Qe = encoder_block_forward(params['emb_enc'], Q, mQ3, peQ, heads)
    M0 = cq_attention_forward(params['cq'], Ce, Qe, maskC, maskQ)  # incl. cq_resizer
    for blk in params['model_blks']:
        M0 = encoder_block_forward(blk, M0, mC3, peC, heads)
    M1 = M0
    for blk in params['model_blks']:
        M0 = encoder_block_forward(blk, M0, mC3, peC, heads)
    M2 = M0
    for blk in params['model_blks']:
        M0 = encoder_block_forward(blk, M0, mC3, peC, heads)
    M3 = M0
    return pointer_forward(params['out'], M1, M2, M3, maskC)


# ----------------------------------------------------------------------------
# Deterministic parameter initialization
# ----------------------------------------------------------------------------

class KeyGen:
    def __init__(self, seed):
        self.key = jax.random.PRNGKey(seed)

    def __call__(self):
        self.key, sub = jax.random.split(self.key)
        return sub


def _normal(kg, shape, scale=0.1):
    return (scale * jax.random.normal(kg(), shape)).astype(jnp.float32)


def sinusoidal_pe(max_len, D):
    pos = jnp.arange(max_len, dtype=jnp.float32)[:, None]
    div = jnp.exp(jnp.arange(0, D, 2, dtype=jnp.float32) * (-math.log(10000.0) / D))
    pe = jnp.zeros((max_len, D), jnp.float32)
    pe = pe.at[:, 0::2].set(jnp.sin(pos * div))
    pe = pe.at[:, 1::2].set(jnp.cos(pos * div))
    return pe


def init_encoder_block(kg, D, conv_num, k):
    return {
        'ln_c_g': jnp.ones((conv_num, D), jnp.float32),
        'ln_c_b': jnp.zeros((conv_num, D), jnp.float32),
        'dw': _normal(kg, (conv_num, k, D)),          # depthwise Conv1d weights
        'pw_w': _normal(kg, (conv_num, D, D)),        # pointwise Conv1d weights
        'pw_b': jnp.zeros((conv_num, D), jnp.float32),
        'ln_ab_g': jnp.ones((2, D), jnp.float32),     # [norm_1; norm_2] gamma
        'ln_ab_b': jnp.zeros((2, D), jnp.float32),
        'kvq_w': _normal(kg, (3, D, D)),              # [key; value; query] projections
        'ffn_w': _normal(kg, (2, D, D)),              # [FFN_1; FFN_2]
        'ffn_b': jnp.zeros((2, D), jnp.float32),
    }


def init_qanet(seed, Vw, Vc, word_D, char_D, D, c_max_len):
    kg = KeyGen(seed)
    emb = {
        'word_emb': _normal(kg, (Vw, word_D), 0.5),
        'char_emb': _normal(kg, (Vc, char_D), 0.5),
        'char_w': _normal(kg, (5, char_D, D)),        # Conv2d (D, char_D, 1, 5)
        'char_b': jnp.zeros((D,), jnp.float32),
        'proj_w': _normal(kg, (word_D + D, D)),
        'proj_b': jnp.zeros((D,), jnp.float32),
        'highway': [{'w': _normal(kg, (2, D, D)),     # [gate; linear]
                     'b': jnp.zeros((2, D), jnp.float32)} for _ in range(2)],
    }
    return {
        'pe': sinusoidal_pe(c_max_len, D),
        'emb': emb,
        'emb_enc': init_encoder_block(kg, D, conv_num=4, k=7),
        'cq': {'w4C': _normal(kg, (1, D)), 'w4Q': _normal(kg, (1, D)),
               'w4mlu': _normal(kg, (1, D)),
               'bias': jnp.zeros((1, 1), jnp.float32),
               'resizer_w': _normal(kg, (4, D, D))},  # cq_resizer split per block
        'model_blks': [init_encoder_block(kg, D, conv_num=2, k=5) for _ in range(7)],
        'out': {'w1': _normal(kg, (2 * D, 1)), 'w2': _normal(kg, (2 * D, 1))},
    }


# ----------------------------------------------------------------------------

if __name__ == "__main__":
    B, Lc, Lq, CHAR_LIM = 2, 16, 8, 8
    D, heads = 32, 1
    Vw, Vc, word_D, char_D = 50, 30, 48, 16
    PAD = 0

    params = init_qanet(42, Vw, Vc, word_D, char_D, D, c_max_len=Lc)

    key = jax.random.PRNGKey(0)
    k1, k2, k3, k4 = jax.random.split(key, 4)
    Cwid = jax.random.randint(k1, (B, Lc), 1, Vw)
    Qwid = jax.random.randint(k3, (B, Lq), 1, Vw)
    Cwid = Cwid.at[:, -3:].set(PAD)      # trailing PAD tokens in the context
    Qwid = Qwid.at[:, -2:].set(PAD)      # trailing PAD tokens in the query
    Ccid = jax.random.randint(k2, (B, Lc, CHAR_LIM), 0, Vc)
    Qcid = jax.random.randint(k4, (B, Lq, CHAR_LIM), 0, Vc)

    fwd = jax.jit(qanet_forward, static_argnames=("pad", "heads"))
    p1, p2 = fwd(params, Cwid, Ccid, Qwid, Qcid, pad=PAD, heads=heads)
    (p1, p2) = jax.block_until_ready((p1, p2))

    assert p1.shape == (B, Lc) and p2.shape == (B, Lc)
    assert bool(jnp.all(jnp.isfinite(p1))) and bool(jnp.all(jnp.isfinite(p2)))
    print("KERNEL_OK")
</pallas_src>

<mosaic_0001>
module attributes {stable_mosaic.version = 11 : i64} {
  func.func @_matmul_kernel(%arg0: i32, %arg1: memref<128x80xf32, #tpu.memory_space<vmem>>, %arg2: memref<80x32xf32, #tpu.memory_space<vmem>>, %arg3: memref<1x32xf32, #tpu.memory_space<vmem>>, %arg4: memref<128x32xf32, #tpu.memory_space<vmem>>) attributes {dimension_semantics = [#tpu.dimension_semantics<parallel>], iteration_bounds = array<i64: 1>, scalar_prefetch = 0 : i64, scratch_operands = 0 : i64, tpu.core_type = #tpu.core_type<tc>, window_params = [{transform_indices = @transform_0, window_bounds = array<i64: 128, 80>}, {pipeline_mode = #tpu.pipeline_mode<synchronous>, transform_indices = @transform_1, window_bounds = array<i64: 80, 32>}, {pipeline_mode = #tpu.pipeline_mode<synchronous>, transform_indices = @transform_2, window_bounds = array<i64: 1, 32>}, {transform_indices = @transform_3, window_bounds = array<i64: 128, 32>}]} {
    %c0 = arith.constant 0 : index
    %c0_0 = arith.constant 0 : index
    %0 = vector.load %arg1[%c0, %c0_0] : memref<128x80xf32, #tpu.memory_space<vmem>>, vector<128x80xf32>
    %c0_1 = arith.constant 0 : index
    %c0_2 = arith.constant 0 : index
    %1 = vector.load %arg2[%c0_1, %c0_2] : memref<80x32xf32, #tpu.memory_space<vmem>>, vector<80x32xf32>
    %2 = arith.truncf %0 : vector<128x80xf32> to vector<128x80xbf16>
    %3 = arith.truncf %1 : vector<80x32xf32> to vector<80x32xbf16>
    %cst = arith.constant dense<0.000000e+00> : vector<128x32xf32>
    %4 = tpu.matmul %2, %3, %cst {dimension_numbers = #tpu.dot_dimension_numbers<[1], [0], [0], [1], [0, 0, 1, 1], [], []>} : vector<128x80xbf16>, vector<80x32xbf16>, vector<128x32xf32> -> vector<128x32xf32>
    %c0_3 = arith.constant 0 : index
    %c0_4 = arith.constant 0 : index
    %5 = vector.load %arg3[%c0_3, %c0_4] : memref<1x32xf32, #tpu.memory_space<vmem>>, vector<1x32xf32>
    %6 = vector.broadcast %5 : vector<1x32xf32> to vector<128x32xf32>
    %7 = arith.addf %4, %6 : vector<128x32xf32>
    %c0_5 = arith.constant 0 : index
    %c0_6 = arith.constant 0 : index
    %8 = vector.load %arg4[%c0_5, %c0_6] : memref<128x32xf32, #tpu.memory_space<vmem>>, vector<128x32xf32>
    tpu.vector_store %arg4[%c0_5, %c0_6], %7 {strides = array<i32>} : memref<128x32xf32, #tpu.memory_space<vmem>>, vector<128x32xf32>,
    return
  }
  func.func @transform_0(%arg0: i32) -> (i32, i32) {
    %c0_i32 = arith.constant 0 : i32
    %c0_i32_0 = arith.constant 0 : i32
    return %arg0, %c0_i32 : i32, i32
  }
  func.func @transform_1(%arg0: i32) -> (i32, i32) {
    %c0_i32 = arith.constant 0 : i32
    %c0_i32_0 = arith.constant 0 : i32
    %c0_i32_1 = arith.constant 0 : i32
    return %c0_i32, %c0_i32_0 : i32, i32
  }
  func.func @transform_2(%arg0: i32) -> (i32, i32) {
    %c0_i32 = arith.constant 0 : i32
    %c0_i32_0 = arith.constant 0 : i32
    %c0_i32_1 = arith.constant 0 : i32
    return %c0_i32, %c0_i32_0 : i32, i32
  }
  func.func @transform_3(%arg0: i32) -> (i32, i32) {
    %c0_i32 = arith.constant 0 : i32
    %c0_i32_0 = arith.constant 0 : i32
    return %arg0, %c0_i32 : i32, i32
  }
}

module attributes {stable_mosaic.version = 11 : i64} {
  func.func @_matmul_kernel(%arg0: i32, %arg1: memref<32x80xf32, #tpu.memory_space<vmem>>, %arg2: memref<80x32xf32, #tpu.memory_space<vmem>>, %arg3: memref<1x32xf32, #tpu.memory_space<vmem>>, %arg4: memref<32x32xf32, #tpu.memory_space<vmem>>) attributes {dimension_semantics = [#tpu.dimension_semantics<parallel>], iteration_bounds = array<i64: 1>, scalar_prefetch = 0 : i64, scratch_operands = 0 : i64, tpu.core_type = #tpu.core_type<tc>, window_params = [{transform_indices = @transform_0, window_bounds = array<i64: 32, 80>}, {pipeline_mode = #tpu.pipeline_mode<synchronous>, transform_indices = @transform_1, window_bounds = array<i64: 80, 32>}, {pipeline_mode = #tpu.pipeline_mode<synchronous>, transform_indices = @transform_2, window_bounds = array<i64: 1, 32>}, {transform_indices = @transform_3, window_bounds = array<i64: 32, 32>}]} {
    %c0 = arith.constant 0 : index
    %c0_0 = arith.constant 0 : index
    %0 = vector.load %arg1[%c0, %c0_0] : memref<32x80xf32, #tpu.memory_space<vmem>>, vector<32x80xf32>
    %c0_1 = arith.constant 0 : index
    %c0_2 = arith.constant 0 : index
    %1 = vector.load %arg2[%c0_1, %c0_2] : memref<80x32xf32, #tpu.memory_space<vmem>>, vector<80x32xf32>
    %2 = arith.truncf %0 : vector<32x80xf32> to vector<32x80xbf16>
    %3 = arith.truncf %1 : vector<80x32xf32> to vector<80x32xbf16>
    %cst = arith.constant dense<0.000000e+00> : vector<32x32xf32>
    %4 = tpu.matmul %2, %3, %cst {dimension_numbers = #tpu.dot_dimension_numbers<[1], [0], [0], [1], [0, 0, 1, 1], [], []>} : vector<32x80xbf16>, vector<80x32xbf16>, vector<32x32xf32> -> vector<32x32xf32>
    %c0_3 = arith.constant 0 : index
    %c0_4 = arith.constant 0 : index
    %5 = vector.load %arg3[%c0_3, %c0_4] : memref<1x32xf32, #tpu.memory_space<vmem>>, vector<1x32xf32>
    %6 = vector.broadcast %5 : vector<1x32xf32> to vector<32x32xf32>
    %7 = arith.addf %4, %6 : vector<32x32xf32>
    %c0_5 = arith.constant 0 : index
    %c0_6 = arith.constant 0 : index
    %8 = vector.load %arg4[%c0_5, %c0_6] : memref<32x32xf32, #tpu.memory_space<vmem>>, vector<32x32xf32>
    tpu.vector_store %arg4[%c0_5, %c0_6], %7 {strides = array<i32>} : memref<32x32xf32, #tpu.memory_space<vmem>>, vector<32x32xf32>,
    return
  }
  func.func @transform_0(%arg0: i32) -> (i32, i32) {
    %c0_i32 = arith.constant 0 : i32
    %c0_i32_0 = arith.constant 0 : i32
    return %arg0, %c0_i32 : i32, i32
  }
  func.func @transform_1(%arg0: i32) -> (i32, i32) {
    %c0_i32 = arith.constant 0 : i32
    %c0_i32_0 = arith.constant 0 : i32
    %c0_i32_1 = arith.constant 0 : i32
    return %c0_i32, %c0_i32_0 : i32, i32
  }
  func.func @transform_2(%arg0: i32) -> (i32, i32) {
    %c0_i32 = arith.constant 0 : i32
    %c0_i32_0 = arith.constant 0 : i32
    %c0_i32_1 = arith.constant 0 : i32
    return %c0_i32, %c0_i32_0 : i32, i32
  }
  func.func @transform_3(%arg0: i32) -> (i32, i32) {
    %c0_i32 = arith.constant 0 : i32
    %c0_i32_0 = arith.constant 0 : i32
    return %arg0, %c0_i32 : i32, i32
  }
}

module attributes {stable_mosaic.version = 11 : i64} {
  func.func @_highway_kernel(%arg0: i32, %arg1: memref<32x32xf32, #tpu.memory_space<vmem>>, %arg2: memref<2x32x32xf32, #tpu.memory_space<vmem>>, %arg3: memref<2x32xf32, #tpu.memory_space<vmem>>, %arg4: memref<32x32xf32, #tpu.memory_space<vmem>>) attributes {dimension_semantics = [#tpu.dimension_semantics<parallel>], iteration_bounds = array<i64: 1>, scalar_prefetch = 0 : i64, scratch_operands = 0 : i64, tpu.core_type = #tpu.core_type<tc>, window_params = [{transform_indices = @transform_0, window_bounds = array<i64: 32, 32>}, {pipeline_mode = #tpu.pipeline_mode<synchronous>, transform_indices = @transform_1, window_bounds = array<i64: 2, 32, 32>}, {pipeline_mode = #tpu.pipeline_mode<synchronous>, transform_indices = @transform_2, window_bounds = array<i64: 2, 32>}, {transform_indices = @transform_3, window_bounds = array<i64: 32, 32>}]} {
    %c0 = arith.constant 0 : index
    %c0_0 = arith.constant 0 : index
    %0 = vector.load %arg1[%c0, %c0_0] : memref<32x32xf32, #tpu.memory_space<vmem>>, vector<32x32xf32>
    %c0_1 = arith.constant 0 : index
    %c0_2 = arith.constant 0 : index
    %c0_3 = arith.constant 0 : index
    %1 = vector.load %arg2[%c0_1, %c0_2, %c0_3] : memref<2x32x32xf32, #tpu.memory_space<vmem>>, vector<1x32x32xf32>
    %2 = vector.shape_cast %1 : vector<1x32x32xf32> to vector<32x32xf32>
    %3 = arith.truncf %0 : vector<32x32xf32> to vector<32x32xbf16>
    %4 = arith.truncf %2 : vector<32x32xf32> to vector<32x32xbf16>
    %cst = arith.constant dense<0.000000e+00> : vector<32x32xf32>
    %5 = tpu.matmul %3, %4, %cst {dimension_numbers = #tpu.dot_dimension_numbers<[1], [0], [0], [1], [0, 0, 1, 1], [], []>} : vector<32x32xbf16>, vector<32x32xbf16>, vector<32x32xf32> -> vector<32x32xf32>
    %c0_4 = arith.constant 0 : index
    %c0_5 = arith.constant 0 : index
    %6 = vector.load %arg3[%c0_4, %c0_5] : memref<2x32xf32, #tpu.memory_space<vmem>>, vector<1x32xf32>
    %7 = vector.broadcast %6 : vector<1x32xf32> to vector<32x32xf32>
    %8 = arith.addf %5, %7 : vector<32x32xf32>
    %9 = arith.negf %8 : vector<32x32xf32>
    %10 = math.exp %9 : vector<32x32xf32>
    %cst_6 = arith.constant 1.000000e+00 : f32
    %11 = vector.broadcast %cst_6 : f32 to vector<32x32xf32>
    %12 = arith.addf %11, %10 : vector<32x32xf32>
    %13 = arith.divf %11, %12 : vector<32x32xf32>
    %c1 = arith.constant 1 : index
    %c0_7 = arith.constant 0 : index
    %c0_8 = arith.constant 0 : index
    %14 = vector.load %arg2[%c1, %c0_7, %c0_8] : memref<2x32x32xf32, #tpu.memory_space<vmem>>, vector<1x32x32xf32>
    %15 = vector.shape_cast %14 : vector<1x32x32xf32> to vector<32x32xf32>
    %16 = arith.truncf %0 : vector<32x32xf32> to vector<32x32xbf16>
    %17 = arith.truncf %15 : vector<32x32xf32> to vector<32x32xbf16>
    %cst_9 = arith.constant dense<0.000000e+00> : vector<32x32xf32>
    %18 = tpu.matmul %16, %17, %cst_9 {dimension_numbers = #tpu.dot_dimension_numbers<[1], [0], [0], [1], [0, 0, 1, 1], [], []>} : vector<32x32xbf16>, vector<32x32xbf16>, vector<32x32xf32> -> vector<32x32xf32>
    %c1_10 = arith.constant 1 : index
    %c0_11 = arith.constant 0 : index
    %19 = vector.load %arg3[%c1_10, %c0_11] : memref<2x32xf32, #tpu.memory_space<vmem>>, vector<1x32xf32>
    %20 = vector.broadcast %19 : vector<1x32xf32> to vector<32x32xf32>
    %21 = arith.addf %18, %20 : vector<32x32xf32>
    %22 = arith.mulf %13, %21 : vector<32x32xf32>
    %cst_12 = arith.constant 1.000000e+00 : f32
    %23 = vector.broadcast %cst_12 : f32 to vector<32x32xf32>
    %24 = arith.subf %23, %13 : vector<32x32xf32>
    %25 = arith.mulf %24, %0 : vector<32x32xf32>
    %26 = arith.addf %22, %25 : vector<32x32xf32>
    %c0_13 = arith.constant 0 : index
    %c0_14 = arith.constant 0 : index
    %27 = vector.load %arg4[%c0_13, %c0_14] : memref<32x32xf32, #tpu.memory_space<vmem>>, vector<32x32xf32>
    tpu.vector_store %arg4[%c0_13, %c0_14], %26 {strides = array<i32>} : memref<32x32xf32, #tpu.memory_space<vmem>>, vector<32x32xf32>,
    return
  }
  func.func @transform_0(%arg0: i32) -> (i32, i32) {
    %c0_i32 = arith.constant 0 : i32
    %c0_i32_0 = arith.constant 0 : i32
    return %arg0, %c0_i32 : i32, i32
  }
  func.func @transform_1(%arg0: i32) -> (i32, i32, i32) {
    %c0_i32 = arith.constant 0 : i32
    %c0_i32_0 = arith.constant 0 : i32
    %c0_i32_1 = arith.constant 0 : i32
    %c0_i32_2 = arith.constant 0 : i32
    return %c0_i32, %c0_i32_0, %c0_i32_1 : i32, i32, i32
  }
  func.func @transform_2(%arg0: i32) -> (i32, i32) {
    %c0_i32 = arith.constant 0 : i32
    %c0_i32_0 = arith.constant 0 : i32
    %c0_i32_1 = arith.constant 0 : i32
    return %c0_i32, %c0_i32_0 : i32, i32
  }
  func.func @transform_3(%arg0: i32) -> (i32, i32) {
    %c0_i32 = arith.constant 0 : i32
    %c0_i32_0 = arith.constant 0 : i32
    return %arg0, %c0_i32 : i32, i32
  }
}

module attributes {stable_mosaic.version = 11 : i64} {
  func.func @_encoder_block_kernel(%arg0: i32, %arg1: memref<1x1x16xf32, #tpu.memory_space<vmem>>, %arg2: memref<1x16x32xf32, #tpu.memory_space<vmem>>, %arg3: memref<16x32xf32, #tpu.memory_space<vmem>>, %arg4: memref<4x32xf32, #tpu.memory_space<vmem>>, %arg5: memref<4x32xf32, #tpu.memory_space<vmem>>, %arg6: memref<4x7x32xf32, #tpu.memory_space<vmem>>, %arg7: memref<4x32x32xf32, #tpu.memory_space<vmem>>, %arg8: memref<4x32xf32, #tpu.memory_space<vmem>>, %arg9: memref<2x32xf32, #tpu.memory_space<vmem>>, %arg10: memref<2x32xf32, #tpu.memory_space<vmem>>, %arg11: memref<3x32x32xf32, #tpu.memory_space<vmem>>, %arg12: memref<2x32x32xf32, #tpu.memory_space<vmem>>, %arg13: memref<2x32xf32, #tpu.memory_space<vmem>>, %arg14: memref<1x16x32xf32, #tpu.memory_space<vmem>>, %arg15: memref<32x32xf32, #tpu.memory_space<vmem>>) attributes {dimension_semantics = [#tpu.dimension_semantics<parallel>], iteration_bounds = array<i64: 2>, scalar_prefetch = 0 : i64, scratch_operands = 1 : i64, tpu.core_type = #tpu.core_type<tc>, window_params = [{transform_indices = @transform_0, window_bounds = array<i64: 1, 1, 16>}, {transform_indices = @transform_1, window_bounds = array<i64: 1, 16, 32>}, {pipeline_mode = #tpu.pipeline_mode<synchronous>, transform_indices = @transform_2, window_bounds = array<i64: 16, 32>}, {pipeline_mode = #tpu.pipeline_mode<synchronous>, transform_indices = @transform_3, window_bounds = array<i64: 4, 32>}, {pipeline_mode = #tpu.pipeline_mode<synchronous>, transform_indices = @transform_4, window_bounds = array<i64: 4, 32>}, {pipeline_mode = #tpu.pipeline_mode<synchronous>, transform_indices = @transform_5, window_bounds = array<i64: 4, 7, 32>}, {pipeline_mode = #tpu.pipeline_mode<synchronous>, transform_indices = @transform_6, window_bounds = array<i64: 4, 32, 32>}, {pipeline_mode = #tpu.pipeline_mode<synchronous>, transform_indices = @transform_7, window_bounds = array<i64: 4, 32>}, {pipeline_mode = #tpu.pipeline_mode<synchronous>, transform_indices = @transform_8, window_bounds = array<i64: 2, 32>}, {pipeline_mode = #tpu.pipeline_mode<synchronous>, transform_indices = @transform_9, window_bounds = array<i64: 2, 32>}, {pipeline_mode = #tpu.pipeline_mode<synchronous>, transform_indices = @transform_10, window_bounds = array<i64: 3, 32, 32>}, {pipeline_mode = #tpu.pipeline_mode<synchronous>, transform_indices = @transform_11, window_bounds = array<i64: 2, 32, 32>}, {pipeline_mode = #tpu.pipeline_mode<synchronous>, transform_indices = @transform_12, window_bounds = array<i64: 2, 32>}, {transform_indices = @transform_13, window_bounds = array<i64: 1, 16, 32>}]} {
    %c0 = arith.constant 0 : index
    %c0_0 = arith.constant 0 : index
    %c0_1 = arith.constant 0 : index
    %0 = vector.load %arg2[%c0, %c0_0, %c0_1] : memref<1x16x32xf32, #tpu.memory_space<vmem>>, vector<1x16x32xf32>
    %1 = vector.shape_cast %0 : vector<1x16x32xf32> to vector<16x32xf32>
    %c0_2 = arith.constant 0 : index
    %c0_3 = arith.constant 0 : index
    %2 = vector.load %arg3[%c0_2, %c0_3] : memref<16x32xf32, #tpu.memory_space<vmem>>, vector<16x32xf32>
    %3 = arith.addf %1, %2 : vector<16x32xf32>
    %cst = arith.constant 0.000000e+00 : f32
    %4 = vector.broadcast %cst : f32 to vector<32x32xf32>
    %c0_4 = arith.constant 0 : index
    %c0_5 = arith.constant 0 : index
    %5 = vector.load %arg15[%c0_4, %c0_5] : memref<32x32xf32, #tpu.memory_space<vmem>>, vector<32x32xf32>
    tpu.vector_store %arg15[%c0_4, %c0_5], %4 {strides = array<i32>} : memref<32x32xf32, #tpu.memory_space<vmem>>, vector<32x32xf32>,
    %c0_6 = arith.constant 0 : index
    %c0_7 = arith.constant 0 : index
    %6 = vector.load %arg4[%c0_6, %c0_7] : memref<4x32xf32, #tpu.memory_space<vmem>>, vector<1x32xf32>
    %c0_8 = arith.constant 0 : index
    %c0_9 = arith.constant 0 : index
    %7 = vector.load %arg5[%c0_8, %c0_9] : memref<4x32xf32, #tpu.memory_space<vmem>>, vector<1x32xf32>
    %cst_10 = arith.constant dense<0.000000e+00> : vector<16xf32>
    %8 = vector.multi_reduction <add>, %3, %cst_10 [1] : vector<16x32xf32> to vector<16xf32>
    %9 = vector.shape_cast %8 : vector<16xf32> to vector<16x1xf32>
    %cst_11 = arith.constant 3.200000e+01 : f32
    %10 = vector.broadcast %cst_11 : f32 to vector<16x1xf32>
    %11 = arith.divf %9, %10 : vector<16x1xf32>
    %12 = vector.broadcast %11 : vector<16x1xf32> to vector<16x32xf32>
    %13 = arith.subf %3, %12 : vector<16x32xf32>
    %14 = arith.mulf %13, %13 : vector<16x32xf32>
    %cst_12 = arith.constant dense<0.000000e+00> : vector<16xf32>
    %15 = vector.multi_reduction <add>, %14, %cst_12 [1] : vector<16x32xf32> to vector<16xf32>
    %16 = vector.shape_cast %15 : vector<16xf32> to vector<16x1xf32>
    %cst_13 = arith.constant 3.200000e+01 : f32
    %17 = vector.broadcast %cst_13 : f32 to vector<16x1xf32>
    %18 = arith.divf %16, %17 : vector<16x1xf32>
    %19 = vector.broadcast %11 : vector<16x1xf32> to vector<16x32xf32>
    %20 = arith.subf %3, %19 : vector<16x32xf32>
    %cst_14 = arith.constant 9.99999974E-6 : f32
    %21 = vector.broadcast %cst_14 : f32 to vector<16x1xf32>
    %22 = arith.addf %18, %21 : vector<16x1xf32>
    %23 = math.rsqrt %22 : vector<16x1xf32>
    %24 = vector.broadcast %23 : vector<16x1xf32> to vector<16x32xf32>
    %25 = arith.mulf %20, %24 : vector<16x32xf32>
    %26 = vector.broadcast %6 : vector<1x32xf32> to vector<16x32xf32>
    %27 = arith.mulf %25, %26 : vector<16x32xf32>
    %28 = vector.broadcast %7 : vector<1x32xf32> to vector<16x32xf32>
    %29 = arith.addf %27, %28 : vector<16x32xf32>
    %c8 = arith.constant 8 : index
    %c0_15 = arith.constant 0 : index
    %30 = vector.load %arg15[%c8, %c0_15] : memref<32x32xf32, #tpu.memory_space<vmem>>, vector<16x32xf32>
    tpu.vector_store %arg15[%c8, %c0_15], %29 {strides = array<i32>} : memref<32x32xf32, #tpu.memory_space<vmem>>, vector<16x32xf32>,
    %c0_16 = arith.constant 0 : index
    %c0_17 = arith.constant 0 : index
    %c0_18 = arith.constant 0 : index
    %31 = vector.load %arg6[%c0_16, %c0_17, %c0_18] : memref<4x7x32xf32, #tpu.memory_space<vmem>>, vector<1x7x32xf32>
    %32 = vector.shape_cast %31 : vector<1x7x32xf32> to vector<7x32xf32>
    %cst_19 = arith.constant 0.000000e+00 : f32
    %33 = vector.broadcast %cst_19 : f32 to vector<16x32xf32>
    %c5 = arith.constant 5 : index
    %c0_20 = arith.constant 0 : index
    %34 = vector.load %arg15[%c5, %c0_20] : memref<32x32xf32, #tpu.memory_space<vmem>>, vector<16x32xf32>
    %35 = vector.extract_strided_slice %32 {offsets = [0, 0], sizes = [1, 32], strides = [1, 1]} : vector<7x32xf32> to vector<1x32xf32>
    %36 = vector.broadcast %35 : vector<1x32xf32> to vector<16x32xf32>
    %37 = arith.mulf %34, %36 : vector<16x32xf32>
    %38 = arith.addf %33, %37 : vector<16x32xf32>
    %c6 = arith.constant 6 : index
    %c0_21 = arith.constant 0 : index
    %39 = vector.load %arg15[%c6, %c0_21] : memref<32x32xf32, #tpu.memory_space<vmem>>, vector<16x32xf32>
    %40 = vector.extract_strided_slice %32 {offsets = [1, 0], sizes = [1, 32], strides = [1, 1]} : vector<7x32xf32> to vector<1x32xf32>
    %41 = vector.broadcast %40 : vector<1x32xf32> to vector<16x32xf32>
    %42 = arith.mulf %39, %41 : vector<16x32xf32>
    %43 = arith.addf %38, %42 : vector<16x32xf32>
    %c7 = arith.constant 7 : index
    %c0_22 = arith.constant 0 : index
    %44 = vector.load %arg15[%c7, %c0_22] : memref<32x32xf32, #tpu.memory_space<vmem>>, vector<16x32xf32>
    %45 = vector.extract_strided_slice %32 {offsets = [2, 0], sizes = [1, 32], strides = [1, 1]} : vector<7x32xf32> to vector<1x32xf32>
    %46 = vector.broadcast %45 : vector<1x32xf32> to vector<16x32xf32>
    %47 = arith.mulf %44, %46 : vector<16x32xf32>
    %48 = arith.addf %43, %47 : vector<16x32xf32>
    %c8_23 = arith.constant 8 : index
    %c0_24 = arith.constant 0 : index
    %49 = vector.load %arg15[%c8_23, %c0_24] : memref<32x32xf32, #tpu.memory_space<vmem>>, vector<16x32xf32>
    %50 = vector.extract_strided_slice %32 {offsets = [3, 0], sizes = [1, 32], strides = [1, 1]} : vector<7x32xf32> to vector<1x32xf32>
    %51 = vector.broadcast %50 : vector<1x32xf32> to vector<16x32xf32>
    %52 = arith.mulf %49, %51 : vector<16x32xf32>
    %53 = arith.addf %48, %52 : vector<16x32xf32>
    %c9 = arith.constant 9 : index
    %c0_25 = arith.constant 0 : index
    %54 = vector.load %arg15[%c9, %c0_25] : memref<32x32xf32, #tpu.memory_space<vmem>>, vector<16x32xf32>
    %55 = vector.extract_strided_slice %32 {offsets = [4, 0], sizes = [1, 32], strides = [1, 1]} : vector<7x32xf32> to vector<1x32xf32>
    %56 = vector.broadcast %55 : vector<1x32xf32> to vector<16x32xf32>
    %57 = arith.mulf %54, %56 : vector<16x32xf32>
    %58 = arith.addf %53, %57 : vector<16x32xf32>
    %c10 = arith.constant 10 : index
    %c0_26 = arith.constant 0 : index
    %59 = vector.load %arg15[%c10, %c0_26] : memref<32x32xf32, #tpu.memory_space<vmem>>, vector<16x32xf32>
    %60 = vector.extract_strided_slice %32 {offsets = [5, 0], sizes = [1, 32], strides = [1, 1]} : vector<7x32xf32> to vector<1x32xf32>
    %61 = vector.broadcast %60 : vector<1x32xf32> to vector<16x32xf32>
    %62 = arith.mulf %59, %61 : vector<16x32xf32>
    %63 = arith.addf %58, %62 : vector<16x32xf32>
    %c11 = arith.constant 11 : index
    %c0_27 = arith.constant 0 : index
    %64 = vector.load %arg15[%c11, %c0_27] : memref<32x32xf32, #tpu.memory_space<vmem>>, vector<16x32xf32>
    %65 = vector.extract_strided_slice %32 {offsets = [6, 0], sizes = [1, 32], strides = [1, 1]} : vector<7x32xf32> to vector<1x32xf32>
    %66 = vector.broadcast %65 : vector<1x32xf32> to vector<16x32xf32>
    %67 = arith.mulf %64, %66 : vector<16x32xf32>
    %68 = arith.addf %63, %67 : vector<16x32xf32>
    %c0_28 = arith.constant 0 : index
    %c0_29 = arith.constant 0 : index
    %c0_30 = arith.constant 0 : index
    %69 = vector.load %arg7[%c0_28, %c0_29, %c0_30] : memref<4x32x32xf32, #tpu.memory_space<vmem>>, vector<1x32x32xf32>
    %70 = vector.shape_cast %69 : vector<1x32x32xf32> to vector<32x32xf32>
    %71 = arith.truncf %68 : vector<16x32xf32> to vector<16x32xbf16>
    %72 = arith.truncf %70 : vector<32x32xf32> to vector<32x32xbf16>
    %cst_31 = arith.constant dense<0.000000e+00> : vector<16x32xf32>
    %73 = tpu.matmul %71, %72, %cst_31 {dimension_numbers = #tpu.dot_dimension_numbers<[1], [0], [0], [1], [0, 0, 1, 1], [], []>} : vector<16x32xbf16>, vector<32x32xbf16>, vector<16x32xf32> -> vector<16x32xf32>
    %c0_32 = arith.constant 0 : index
    %c0_33 = arith.constant 0 : index
    %74 = vector.load %arg8[%c0_32, %c0_33] : memref<4x32xf32, #tpu.memory_space<vmem>>, vector<1x32xf32>
    %75 = vector.broadcast %74 : vector<1x32xf32> to vector<16x32xf32>
    %76 = arith.addf %73, %75 : vector<16x32xf32>
    %cst_34 = arith.constant 0.000000e+00 : f32
    %77 = vector.broadcast %cst_34 : f32 to vector<16x32xf32>
    %78 = arith.maximumf %76, %77 : vector<16x32xf32>
    %79 = arith.addf %78, %3 : vector<16x32xf32>
    %c1 = arith.constant 1 : index
    %c0_35 = arith.constant 0 : index
    %80 = vector.load %arg4[%c1, %c0_35] : memref<4x32xf32, #tpu.memory_space<vmem>>, vector<1x32xf32>
    %c1_36 = arith.constant 1 : index
    %c0_37 = arith.constant 0 : index
    %81 = vector.load %arg5[%c1_36, %c0_37] : memref<4x32xf32, #tpu.memory_space<vmem>>, vector<1x32xf32>
    %cst_38 = arith.constant dense<0.000000e+00> : vector<16xf32>
    %82 = vector.multi_reduction <add>, %79, %cst_38 [1] : vector<16x32xf32> to vector<16xf32>
    %83 = vector.shape_cast %82 : vector<16xf32> to vector<16x1xf32>
    %cst_39 = arith.constant 3.200000e+01 : f32
    %84 = vector.broadcast %cst_39 : f32 to vector<16x1xf32>
    %85 = arith.divf %83, %84 : vector<16x1xf32>
    %86 = vector.broadcast %85 : vector<16x1xf32> to vector<16x32xf32>
    %87 = arith.subf %79, %86 : vector<16x32xf32>
    %88 = arith.mulf %87, %87 : vector<16x32xf32>
    %cst_40 = arith.constant dense<0.000000e+00> : vector<16xf32>
    %89 = vector.multi_reduction <add>, %88, %cst_40 [1] : vector<16x32xf32> to vector<16xf32>
    %90 = vector.shape_cast %89 : vector<16xf32> to vector<16x1xf32>
    %cst_41 = arith.constant 3.200000e+01 : f32
    %91 = vector.broadcast %cst_41 : f32 to vector<16x1xf32>
    %92 = arith.divf %90, %91 : vector<16x1xf32>
    %93 = vector.broadcast %85 : vector<16x1xf32> to vector<16x32xf32>
    %94 = arith.subf %79, %93 : vector<16x32xf32>
    %cst_42 = arith.constant 9.99999974E-6 : f32
    %95 = vector.broadcast %cst_42 : f32 to vector<16x1xf32>
    %96 = arith.addf %92, %95 : vector<16x1xf32>
    %97 = math.rsqrt %96 : vector<16x1xf32>
    %98 = vector.broadcast %97 : vector<16x1xf32> to vector<16x32xf32>
    %99 = arith.mulf %94, %98 : vector<16x32xf32>
    %100 = vector.broadcast %80 : vector<1x32xf32> to vector<16x32xf32>
    %101 = arith.mulf %99, %100 : vector<16x32xf32>
    %102 = vector.broadcast %81 : vector<1x32xf32> to vector<16x32xf32>
    %103 = arith.addf %101, %102 : vector<16x32xf32>
    %c8_43 = arith.constant 8 : index
    %c0_44 = arith.constant 0 : index
    %104 = vector.load %arg15[%c8_43, %c0_44] : memref<32x32xf32, #tpu.memory_space<vmem>>, vector<16x32xf32>
    tpu.vector_store %arg15[%c8_43, %c0_44], %103 {strides = array<i32>} : memref<32x32xf32, #tpu.memory_space<vmem>>, vector<16x32xf32>,
    %c1_45 = arith.constant 1 : index
    %c0_46 = arith.constant 0 : index
    %c0_47 = arith.constant 0 : index
    %105 = vector.load %arg6[%c1_45, %c0_46, %c0_47] : memref<4x7x32xf32, #tpu.memory_space<vmem>>, vector<1x7x32xf32>
    %106 = vector.shape_cast %105 : vector<1x7x32xf32> to vector<7x32xf32>
    %cst_48 = arith.constant 0.000000e+00 : f32
    %107 = vector.broadcast %cst_48 : f32 to vector<16x32xf32>
    %c5_49 = arith.constant 5 : index
    %c0_50 = arith.constant 0 : index
    %108 = vector.load %arg15[%c5_49, %c0_50] : memref<32x32xf32, #tpu.memory_space<vmem>>, vector<16x32xf32>
    %109 = vector.extract_strided_slice %106 {offsets = [0, 0], sizes = [1, 32], strides = [1, 1]} : vector<7x32xf32> to vector<1x32xf32>
    %110 = vector.broadcast %109 : vector<1x32xf32> to vector<16x32xf32>
    %111 = arith.mulf %108, %110 : vector<16x32xf32>
    %112 = arith.addf %107, %111 : vector<16x32xf32>
    %c6_51 = arith.constant 6 : index
    %c0_52 = arith.constant 0 : index
    %113 = vector.load %arg15[%c6_51, %c0_52] : memref<32x32xf32, #tpu.memory_space<vmem>>, vector<16x32xf32>
    %114 = vector.extract_strided_slice %106 {offsets = [1, 0], sizes = [1, 32], strides = [1, 1]} : vector<7x32xf32> to vector<1x32xf32>
    %115 = vector.broadcast %114 : vector<1x32xf32> to vector<16x32xf32>
    %116 = arith.mulf %113, %115 : vector<16x32xf32>
    %117 = arith.addf %112, %116 : vector<16x32xf32>
    %c7_53 = arith.constant 7 : index
    %c0_54 = arith.constant 0 : index
    %118 = vector.load %arg15[%c7_53, %c0_54] : memref<32x32xf32, #tpu.memory_space<vmem>>, vector<16x32xf32>
    %119 = vector.extract_strided_slice %106 {offsets = [2, 0], sizes = [1, 32], strides = [1, 1]} : vector<7x32xf32> to vector<1x32xf32>
    %120 = vector.broadcast %119 : vector<1x32xf32> to vector<16x32xf32>
    %121 = arith.mulf %118, %120 : vector<16x32xf32>
    %122 = arith.addf %117, %121 : vector<16x32xf32>
    %c8_55 = arith.constant 8 : index
    %c0_56 = arith.constant 0 : index
    %123 = vector.load %arg15[%c8_55, %c0_56] : memref<32x32xf32, #tpu.memory_space<vmem>>, vector<16x32xf32>
    %124 = vector.extract_strided_slice %106 {offsets = [3, 0], sizes = [1, 32], strides = [1, 1]} : vector<7x32xf32> to vector<1x32xf32>
    %125 = vector.broadcast %124 : vector<1x32xf32> to vector<16x32xf32>
    %126 = arith.mulf %123, %125 : vector<16x32xf32>
    %127 = arith.addf %122, %126 : vector<16x32xf32>
    %c9_57 = arith.constant 9 : index
    %c0_58 = arith.constant 0 : index
    %128 = vector.load %arg15[%c9_57, %c0_58] : memref<32x32xf32, #tpu.memory_space<vmem>>, vector<16x32xf32>
    %129 = vector.extract_strided_slice %106 {offsets = [4, 0], sizes = [1, 32], strides = [1, 1]} : vector<7x32xf32> to vector<1x32xf32>
    %130 = vector.broadcast %129 : vector<1x32xf32> to vector<16x32xf32>
    %131 = arith.mulf %128, %130 : vector<16x32xf32>
    %132 = arith.addf %127, %131 : vector<16x32xf32>
    %c10_59 = arith.constant 10 : index
    %c0_60 = arith.constant 0 : index
    %133 = vector.load %arg15[%c10_59, %c0_60] : memref<32x32xf32, #tpu.memory_space<vmem>>, vector<16x32xf32>
    %134 = vector.extract_strided_slice %106 {offsets = [5, 0], sizes = [1, 32], strides = [1, 1]} : vector<7x32xf32> to vector<1x32xf32>
    %135 = vector.broadcast %134 : vector<1x32xf32> to vector<16x32xf32>
    %136 = arith.mulf %133, %135 : vector<16x32xf32>
    %137 = arith.addf %132, %136 : vector<16x32xf32>
    %c11_61 = arith.constant 11 : index
    %c0_62 = arith.constant 0 : index
    %138 = vector.load %arg15[%c11_61, %c0_62] : memref<32x32xf32, #tpu.memory_space<vmem>>, vector<16x32xf32>
    %139 = vector.extract_strided_slice %106 {offsets = [6, 0], sizes = [1, 32], strides = [1, 1]} : vector<7x32xf32> to vector<1x32xf32>
    %140 = vector.broadcast %139 : vector<1x32xf32> to vector<16x32xf32>
    %141 = arith.mulf %138, %140 : vector<16x32xf32>
    %142 = arith.addf %137, %141 : vector<16x32xf32>
    %c1_63 = arith.constant 1 : index
    %c0_64 = arith.constant 0 : index
    %c0_65 = arith.constant 0 : index
    %143 = vector.load %arg7[%c1_63, %c0_64, %c0_65] : memref<4x32x32xf32, #tpu.memory_space<vmem>>, vector<1x32x32xf32>
    %144 = vector.shape_cast %143 : vector<1x32x32xf32> to vector<32x32xf32>
    %145 = arith.truncf %142 : vector<16x32xf32> to vector<16x32xbf16>
    %146 = arith.truncf %144 : vector<32x32xf32> to vector<32x32xbf16>
    %cst_66 = arith.constant dense<0.000000e+00> : vector<16x32xf32>
    %147 = tpu.matmul %145, %146, %cst_66 {dimension_numbers = #tpu.dot_dimension_numbers<[1], [0], [0], [1], [0, 0, 1, 1], [], []>} : vector<16x32xbf16>, vector<32x32xbf16>, vector<16x32xf32> -> vector<16x32xf32>
    %c1_67 = arith.constant 1 : index
    %c0_68 = arith.constant 0 : index
    %148 = vector.load %arg8[%c1_67, %c0_68] : memref<4x32xf32, #tpu.memory_space<vmem>>, vector<1x32xf32>
    %149 = vector.broadcast %148 : vector<1x32xf32> to vector<16x32xf32>
    %150 = arith.addf %147, %149 : vector<16x32xf32>
    %cst_69 = arith.constant 0.000000e+00 : f32
    %151 = vector.broadcast %cst_69 : f32 to vector<16x32xf32>
    %152 = arith.maximumf %150, %151 : vector<16x32xf32>
    %153 = arith.addf %152, %79 : vector<16x32xf32>
    %c2 = arith.constant 2 : index
    %c0_70 = arith.constant 0 : index
    %154 = vector.load %arg4[%c2, %c0_70] : memref<4x32xf32, #tpu.memory_space<vmem>>, vector<1x32xf32>
    %c2_71 = arith.constant 2 : index
    %c0_72 = arith.constant 0 : index
    %155 = vector.load %arg5[%c2_71, %c0_72] : memref<4x32xf32, #tpu.memory_space<vmem>>, vector<1x32xf32>
    %cst_73 = arith.constant dense<0.000000e+00> : vector<16xf32>
    %156 = vector.multi_reduction <add>, %153, %cst_73 [1] : vector<16x32xf32> to vector<16xf32>
    %157 = vector.shape_cast %156 : vector<16xf32> to vector<16x1xf32>
    %cst_74 = arith.constant 3.200000e+01 : f32
    %158 = vector.broadcast %cst_74 : f32 to vector<16x1xf32>
    %159 = arith.divf %157, %158 : vector<16x1xf32>
    %160 = vector.broadcast %159 : vector<16x1xf32> to vector<16x32xf32>
    %161 = arith.subf %153, %160 : vector<16x32xf32>
    %162 = arith.mulf %161, %161 : vector<16x32xf32>
    %cst_75 = arith.constant dense<0.000000e+00> : vector<16xf32>
    %163 = vector.multi_reduction <add>, %162, %cst_75 [1] : vector<16x32xf32> to vector<16xf32>
    %164 = vector.shape_cast %163 : vector<16xf32> to vector<16x1xf32>
    %cst_76 = arith.constant 3.200000e+01 : f32
    %165 = vector.broadcast %cst_76 : f32 to vector<16x1xf32>
    %166 = arith.divf %164, %165 : vector<16x1xf32>
    %167 = vector.broadcast %159 : vector<16x1xf32> to vector<16x32xf32>
    %168 = arith.subf %153, %167 : vector<16x32xf32>
    %cst_77 = arith.constant 9.99999974E-6 : f32
    %169 = vector.broadcast %cst_77 : f32 to vector<16x1xf32>
    %170 = arith.addf %166, %169 : vector<16x1xf32>
    %171 = math.rsqrt %170 : vector<16x1xf32>
    %172 = vector.broadcast %171 : vector<16x1xf32> to vector<16x32xf32>
    %173 = arith.mulf %168, %172 : vector<16x32xf32>
    %174 = vector.broadcast %154 : vector<1x32xf32> to vector<16x32xf32>
    %175 = arith.mulf %173, %174 : vector<16x32xf32>
    %176 = vector.broadcast %155 : vector<1x32xf32> to vector<16x32xf32>
    %177 = arith.addf %175, %176 : vector<16x32xf32>
    %c8_78 = arith.constant 8 : index
    %c0_79 = arith.constant 0 : index
    %178 = vector.load %arg15[%c8_78, %c0_79] : memref<32x32xf32, #tpu.memory_space<vmem>>, vector<16x32xf32>
    tpu.vector_store %arg15[%c8_78, %c0_79], %177 {strides = array<i32>} : memref<32x32xf32, #tpu.memory_space<vmem>>, vector<16x32xf32>,
    %c2_80 = arith.constant 2 : index
    %c0_81 = arith.constant 0 : index
    %c0_82 = arith.constant 0 : index
    %179 = vector.load %arg6[%c2_80, %c0_81, %c0_82] : memref<4x7x32xf32, #tpu.memory_space<vmem>>, vector<1x7x32xf32>
    %180 = vector.shape_cast %179 : vector<1x7x32xf32> to vector<7x32xf32>
    %cst_83 = arith.constant 0.000000e+00 : f32
    %181 = vector.broadcast %cst_83 : f32 to vector<16x32xf32>
    %c5_84 = arith.constant 5 : index
    %c0_85 = arith.constant 0 : index
    %182 = vector.load %arg15[%c5_84, %c0_85] : memref<32x32xf32, #tpu.memory_space<vmem>>, vector<16x32xf32>
    %183 = vector.extract_strided_slice %180 {offsets = [0, 0], sizes = [1, 32], strides = [1, 1]} : vector<7x32xf32> to vector<1x32xf32>
    %184 = vector.broadcast %183 : vector<1x32xf32> to vector<16x32xf32>
    %185 = arith.mulf %182, %184 : vector<16x32xf32>
    %186 = arith.addf %181, %185 : vector<16x32xf32>
    %c6_86 = arith.constant 6 : index
    %c0_87 = arith.constant 0 : index
    %187 = vector.load %arg15[%c6_86, %c0_87] : memref<32x32xf32, #tpu.memory_space<vmem>>, vector<16x32xf32>
    %188 = vector.extract_strided_slice %180 {offsets = [1, 0], sizes = [1, 32], strides = [1, 1]} : vector<7x32xf32> to vector<1x32xf32>
    %189 = vector.broadcast %188 : vector<1x32xf32> to vector<16x32xf32>
    %190 = arith.mulf %187, %189 : vector<16x32xf32>
    %191 = arith.addf %186, %190 : vector<16x32xf32>
    %c7_88 = arith.constant 7 : index
    %c0_89 = arith.constant 0 : index
    %192 = vector.load %arg15[%c7_88, %c0_89] : memref<32x32xf32, #tpu.memory_space<vmem>>, vector<16x32xf32>
    %193 = vector.extract_strided_slice %180 {offsets = [2, 0], sizes = [1, 32], strides = [1, 1]} : vector<7x32xf32> to vector<1x32xf32>
    %194 = vector.broadcast %193 : vector<1x32xf32> to vector<16x32xf32>
    %195 = arith.mulf %192, %194 : vector<16x32xf32>
    %196 = arith.addf %191, %195 : vector<16x32xf32>
    %c8_90 = arith.constant 8 : index
    %c0_91 = arith.constant 0 : index
    %197 = vector.load %arg15[%c8_90, %c0_91] : memref<32x32xf32, #tpu.memory_space<vmem>>, vector<16x32xf32>
    %198 = vector.extract_strided_slice %180 {offsets = [3, 0], sizes = [1, 32], strides = [1, 1]} : vector<7x32xf32> to vector<1x32xf32>
    %199 = vector.broadcast %198 : vector<1x32xf32> to vector<16x32xf32>
    %200 = arith.mulf %197, %199 : vector<16x32xf32>
    %201 = arith.addf %196, %200 : vector<16x32xf32>
    %c9_92 = arith.constant 9 : index
    %c0_93 = arith.constant 0 : index
    %202 = vector.load %arg15[%c9_92, %c0_93] : memref<32x32xf32, #tpu.memory_space<vmem>>, vector<16x32xf32>
    %203 = vector.extract_strided_slice %180 {offsets = [4, 0], sizes = [1, 32], strides = [1, 1]} : vector<7x32xf32> to vector<1x32xf32>
    %204 = vector.broadcast %203 : vector<1x32xf32> to vector<16x32xf32>
    %205 = arith.mulf %202, %204 : vector<16x32xf32>
    %206 = arith.addf %201, %205 : vector<16x32xf32>
    %c10_94 = arith.constant 10 : index
    %c0_95 = arith.constant 0 : index
    %207 = vector.load %arg15[%c10_94, %c0_95] : memref<32x32xf32, #tpu.memory_space<vmem>>, vector<16x32xf32>
    %208 = vector.extract_strided_slice %180 {offsets = [5, 0], sizes = [1, 32], strides = [1, 1]} : vector<7x32xf32> to vector<1x32xf32>
    %209 = vector.broadcast %208 : vector<1x32xf32> to vector<16x32xf32>
    %210 = arith.mulf %207, %209 : vector<16x32xf32>
    %211 = arith.addf %206, %210 : vector<16x32xf32>
    %c11_96 = arith.constant 11 : index
    %c0_97 = arith.constant 0 : index
    %212 = vector.load %arg15[%c11_96, %c0_97] : memref<32x32xf32, #tpu.memory_space<vmem>>, vector<16x32xf32>
    %213 = vector.extract_strided_slice %180 {offsets = [6, 0], sizes = [1, 32], strides = [1, 1]} : vector<7x32xf32> to vector<1x32xf32>
    %214 = vector.broadcast %213 : vector<1x32xf32> to vector<16x32xf32>
    %215 = arith.mulf %212, %214 : vector<16x32xf32>
    %216 = arith.addf %211, %215 : vector<16x32xf32>
    %c2_98 = arith.constant 2 : index
    %c0_99 = arith.constant 0 : index
    %c0_100 = arith.constant 0 : index
    %217 = vector.load %arg7[%c2_98, %c0_99, %c0_100] : memref<4x32x32xf32, #tpu.memory_space<vmem>>, vector<1x32x32xf32>
    %218 = vector.shape_cast %217 : vector<1x32x32xf32> to vector<32x32xf32>
    %219 = arith.truncf %216 : vector<16x32xf32> to vector<16x32xbf16>
    %220 = arith.truncf %218 : vector<32x32xf32> to vector<32x32xbf16>
    %cst_101 = arith.constant dense<0.000000e+00> : vector<16x32xf32>
    %221 = tpu.matmul %219, %220, %cst_101 {dimension_numbers = #tpu.dot_dimension_numbers<[1], [0], [0], [1], [0, 0, 1, 1], [], []>} : vector<16x32xbf16>, vector<32x32xbf16>, vector<16x32xf32> -> vector<16x32xf32>
    %c2_102 = arith.constant 2 : index
    %c0_103 = arith.constant 0 : index
    %222 = vector.load %arg8[%c2_102, %c0_103] : memref<4x32xf32, #tpu.memory_space<vmem>>, vector<1x32xf32>
    %223 = vector.broadcast %222 : vector<1x32xf32> to vector<16x32xf32>
    %224 = arith.addf %221, %223 : vector<16x32xf32>
    %cst_104 = arith.constant 0.000000e+00 : f32
    %225 = vector.broadcast %cst_104 : f32 to vector<16x32xf32>
    %226 = arith.maximumf %224, %225 : vector<16x32xf32>
    %227 = arith.addf %226, %153 : vector<16x32xf32>
    %c3 = arith.constant 3 : index
    %c0_105 = arith.constant 0 : index
    %228 = vector.load %arg4[%c3, %c0_105] : memref<4x32xf32, #tpu.memory_space<vmem>>, vector<1x32xf32>
    %c3_106 = arith.constant 3 : index
    %c0_107 = arith.constant 0 : index
    %229 = vector.load %arg5[%c3_106, %c0_107] : memref<4x32xf32, #tpu.memory_space<vmem>>, vector<1x32xf32>
    %cst_108 = arith.constant dense<0.000000e+00> : vector<16xf32>
    %230 = vector.multi_reduction <add>, %227, %cst_108 [1] : vector<16x32xf32> to vector<16xf32>
    %231 = vector.shape_cast %230 : vector<16xf32> to vector<16x1xf32>
    %cst_109 = arith.constant 3.200000e+01 : f32
    %232 = vector.broadcast %cst_109 : f32 to vector<16x1xf32>
    %233 = arith.divf %231, %232 : vector<16x1xf32>
    %234 = vector.broadcast %233 : vector<16x1xf32> to vector<16x32xf32>
    %235 = arith.subf %227, %234 : vector<16x32xf32>
    %236 = arith.mulf %235, %235 : vector<16x32xf32>
    %cst_110 = arith.constant dense<0.000000e+00> : vector<16xf32>
    %237 = vector.multi_reduction <add>, %236, %cst_110 [1] : vector<16x32xf32> to vector<16xf32>
    %238 = vector.shape_cast %237 : vector<16xf32> to vector<16x1xf32>
    %cst_111 = arith.constant 3.200000e+01 : f32
    %239 = vector.broadcast %cst_111 : f32 to vector<16x1xf32>
    %240 = arith.divf %238, %239 : vector<16x1xf32>
    %241 = vector.broadcast %233 : vector<16x1xf32> to vector<16x32xf32>
    %242 = arith.subf %227, %241 : vector<16x32xf32>
    %cst_112 = arith.constant 9.99999974E-6 : f32
    %243 = vector.broadcast %cst_112 : f32 to vector<16x1xf32>
    %244 = arith.addf %240, %243 : vector<16x1xf32>
    %245 = math.rsqrt %244 : vector<16x1xf32>
    %246 = vector.broadcast %245 : vector<16x1xf32> to vector<16x32xf32>
    %247 = arith.mulf %242, %246 : vector<16x32xf32>
    %248 = vector.broadcast %228 : vector<1x32xf32> to vector<16x32xf32>
    %249 = arith.mulf %247, %248 : vector<16x32xf32>
    %250 = vector.broadcast %229 : vector<1x32xf32> to vector<16x32xf32>
    %251 = arith.addf %249, %250 : vector<16x32xf32>
    %c8_113 = arith.constant 8 : index
    %c0_114 = arith.constant 0 : index
    %252 = vector.load %arg15[%c8_113, %c0_114] : memref<32x32xf32, #tpu.memory_space<vmem>>, vector<16x32xf32>
    tpu.vector_store %arg15[%c8_113, %c0_114], %251 {strides = array<i32>} : memref<32x32xf32, #tpu.memory_space<vmem>>, vector<16x32xf32>,
    %c3_115 = arith.constant 3 : index
    %c0_116 = arith.constant 0 : index
    %c0_117 = arith.constant 0 : index
    %253 = vector.load %arg6[%c3_115, %c0_116, %c0_117] : memref<4x7x32xf32, #tpu.memory_space<vmem>>, vector<1x7x32xf32>
    %254 = vector.shape_cast %253 : vector<1x7x32xf32> to vector<7x32xf32>
    %cst_118 = arith.constant 0.000000e+00 : f32
    %255 = vector.broadcast %cst_118 : f32 to vector<16x32xf32>
    %c5_119 = arith.constant 5 : index
    %c0_120 = arith.constant 0 : index
    %256 = vector.load %arg15[%c5_119, %c0_120] : memref<32x32xf32, #tpu.memory_space<vmem>>, vector<16x32xf32>
    %257 = vector.extract_strided_slice %254 {offsets = [0, 0], sizes = [1, 32], strides = [1, 1]} : vector<7x32xf32> to vector<1x32xf32>
    %258 = vector.broadcast %257 : vector<1x32xf32> to vector<16x32xf32>
    %259 = arith.mulf %256, %258 : vector<16x32xf32>
    %260 = arith.addf %255, %259 : vector<16x32xf32>
    %c6_121 = arith.constant 6 : index
    %c0_122 = arith.constant 0 : index
    %261 = vector.load %arg15[%c6_121, %c0_122] : memref<32x32xf32, #tpu.memory_space<vmem>>, vector<16x32xf32>
    %262 = vector.extract_strided_slice %254 {offsets = [1, 0], sizes = [1, 32], strides = [1, 1]} : vector<7x32xf32> to vector<1x32xf32>
    %263 = vector.broadcast %262 : vector<1x32xf32> to vector<16x32xf32>
    %264 = arith.mulf %261, %263 : vector<16x32xf32>
    %265 = arith.addf %260, %264 : vector<16x32xf32>
    %c7_123 = arith.constant 7 : index
    %c0_124 = arith.constant 0 : index
    %266 = vector.load %arg15[%c7_123, %c0_124] : memref<32x32xf32, #tpu.memory_space<vmem>>, vector<16x32xf32>
    %267 = vector.extract_strided_slice %254 {offsets = [2, 0], sizes = [1, 32], strides = [1, 1]} : vector<7x32xf32> to vector<1x32xf32>
    %268 = vector.broadcast %267 : vector<1x32xf32> to vector<16x32xf32>
    %269 = arith.mulf %266, %268 : vector<16x32xf32>
    %270 = arith.addf %265, %269 : vector<16x32xf32>
    %c8_125 = arith.constant 8 : index
    %c0_126 = arith.constant 0 : index
    %271 = vector.load %arg15[%c8_125, %c0_126] : memref<32x32xf32, #tpu.memory_space<vmem>>, vector<16x32xf32>
    %272 = vector.extract_strided_slice %254 {offsets = [3, 0], sizes = [1, 32], strides = [1, 1]} : vector<7x32xf32> to vector<1x32xf32>
    %273 = vector.broadcast %272 : vector<1x32xf32> to vector<16x32xf32>
    %274 = arith.mulf %271, %273 : vector<16x32xf32>
    %275 = arith.addf %270, %274 : vector<16x32xf32>
    %c9_127 = arith.constant 9 : index
    %c0_128 = arith.constant 0 : index
    %276 = vector.load %arg15[%c9_127, %c0_128] : memref<32x32xf32, #tpu.memory_space<vmem>>, vector<16x32xf32>
    %277 = vector.extract_strided_slice %254 {offsets = [4, 0], sizes = [1, 32], strides = [1, 1]} : vector<7x32xf32> to vector<1x32xf32>
    %278 = vector.broadcast %277 : vector<1x32xf32> to vector<16x32xf32>
    %279 = arith.mulf %276, %278 : vector<16x32xf32>
    %280 = arith.addf %275, %279 : vector<16x32xf32>
    %c10_129 = arith.constant 10 : index
    %c0_130 = arith.constant 0 : index
    %281 = vector.load %arg15[%c10_129, %c0_130] : memref<32x32xf32, #tpu.memory_space<vmem>>, vector<16x32xf32>
    %282 = vector.extract_strided_slice %254 {offsets = [5, 0], sizes = [1, 32], strides = [1, 1]} : vector<7x32xf32> to vector<1x32xf32>
    %283 = vector.broadcast %282 : vector<1x32xf32> to vector<16x32xf32>
    %284 = arith.mulf %281, %283 : vector<16x32xf32>
    %285 = arith.addf %280, %284 : vector<16x32xf32>
    %c11_131 = arith.constant 11 : index
    %c0_132 = arith.constant 0 : index
    %286 = vector.load %arg15[%c11_131, %c0_132] : memref<32x32xf32, #tpu.memory_space<vmem>>, vector<16x32xf32>
    %287 = vector.extract_strided_slice %254 {offsets = [6, 0], sizes = [1, 32], strides = [1, 1]} : vector<7x32xf32> to vector<1x32xf32>
    %288 = vector.broadcast %287 : vector<1x32xf32> to vector<16x32xf32>
    %289 = arith.mulf %286, %288 : vector<16x32xf32>
    %290 = arith.addf %285, %289 : vector<16x32xf32>
    %c3_133 = arith.constant 3 : index
    %c0_134 = arith.constant 0 : index
    %c0_135 = arith.constant 0 : index
    %291 = vector.load %arg7[%c3_133, %c0_134, %c0_135] : memref<4x32x32xf32, #tpu.memory_space<vmem>>, vector<1x32x32xf32>
    %292 = vector.shape_cast %291 : vector<1x32x32xf32> to vector<32x32xf32>
    %293 = arith.truncf %290 : vector<16x32xf32> to vector<16x32xbf16>
    %294 = arith.truncf %292 : vector<32x32xf32> to vector<32x32xbf16>
    %cst_136 = arith.constant dense<0.000000e+00> : vector<16x32xf32>
    %295 = tpu.matmul %293, %294, %cst_136 {dimension_numbers = #tpu.dot_dimension_numbers<[1], [0], [0], [1], [0, 0, 1, 1], [], []>} : vector<16x32xbf16>, vector<32x32xbf16>, vector<16x32xf32> -> vector<16x32xf32>
    %c3_137 = arith.constant 3 : index
    %c0_138 = arith.constant 0 : index
    %296 = vector.load %arg8[%c3_137, %c0_138] : memref<4x32xf32, #tpu.memory_space<vmem>>, vector<1x32xf32>
    %297 = vector.broadcast %296 : vector<1x32xf32> to vector<16x32xf32>
    %298 = arith.addf %295, %297 : vector<16x32xf32>
    %cst_139 = arith.constant 0.000000e+00 : f32
    %299 = vector.broadcast %cst_139 : f32 to vector<16x32xf32>
    %300 = arith.maximumf %298, %299 : vector<16x32xf32>
    %301 = arith.addf %300, %227 : vector<16x32xf32>
    %c0_140 = arith.constant 0 : index
    %c0_141 = arith.constant 0 : index
    %302 = vector.load %arg9[%c0_140, %c0_141] : memref<2x32xf32, #tpu.memory_space<vmem>>, vector<1x32xf32>
    %c0_142 = arith.constant 0 : index
    %c0_143 = arith.constant 0 : index
    %303 = vector.load %arg10[%c0_142, %c0_143] : memref<2x32xf32, #tpu.memory_space<vmem>>, vector<1x32xf32>
    %cst_144 = arith.constant dense<0.000000e+00> : vector<16xf32>
    %304 = vector.multi_reduction <add>, %301, %cst_144 [1] : vector<16x32xf32> to vector<16xf32>
    %305 = vector.shape_cast %304 : vector<16xf32> to vector<16x1xf32>
    %cst_145 = arith.constant 3.200000e+01 : f32
    %306 = vector.broadcast %cst_145 : f32 to vector<16x1xf32>
    %307 = arith.divf %305, %306 : vector<16x1xf32>
    %308 = vector.broadcast %307 : vector<16x1xf32> to vector<16x32xf32>
    %309 = arith.subf %301, %308 : vector<16x32xf32>
    %310 = arith.mulf %309, %309 : vector<16x32xf32>
    %cst_146 = arith.constant dense<0.000000e+00> : vector<16xf32>
    %311 = vector.multi_reduction <add>, %310, %cst_146 [1] : vector<16x32xf32> to vector<16xf32>
    %312 = vector.shape_cast %311 : vector<16xf32> to vector<16x1xf32>
    %cst_147 = arith.constant 3.200000e+01 : f32
    %313 = vector.broadcast %cst_147 : f32 to vector<16x1xf32>
    %314 = arith.divf %312, %313 : vector<16x1xf32>
    %315 = vector.broadcast %307 : vector<16x1xf32> to vector<16x32xf32>
    %316 = arith.subf %301, %315 : vector<16x32xf32>
    %cst_148 = arith.constant 9.99999974E-6 : f32
    %317 = vector.broadcast %cst_148 : f32 to vector<16x1xf32>
    %318 = arith.addf %314, %317 : vector<16x1xf32>
    %319 = math.rsqrt %318 : vector<16x1xf32>
    %320 = vector.broadcast %319 : vector<16x1xf32> to vector<16x32xf32>
    %321 = arith.mulf %316, %320 : vector<16x32xf32>
    %322 = vector.broadcast %302 : vector<1x32xf32> to vector<16x32xf32>
    %323 = arith.mulf %321, %322 : vector<16x32xf32>
    %324 = vector.broadcast %303 : vector<1x32xf32> to vector<16x32xf32>
    %325 = arith.addf %323, %324 : vector<16x32xf32>
    %c0_149 = arith.constant 0 : index
    %c0_150 = arith.constant 0 : index
    %c0_151 = arith.constant 0 : index
    %326 = vector.load %arg11[%c0_149, %c0_150, %c0_151] : memref<3x32x32xf32, #tpu.memory_space<vmem>>, vector<1x32x32xf32>
    %327 = vector.shape_cast %326 : vector<1x32x32xf32> to vector<32x32xf32>
    %328 = arith.truncf %325 : vector<16x32xf32> to vector<16x32xbf16>
    %329 = arith.truncf %327 : vector<32x32xf32> to vector<32x32xbf16>
    %cst_152 = arith.constant dense<0.000000e+00> : vector<16x32xf32>
    %330 = tpu.matmul %328, %329, %cst_152 {dimension_numbers = #tpu.dot_dimension_numbers<[1], [0], [0], [1], [0, 0, 1, 1], [], []>} : vector<16x32xbf16>, vector<32x32xbf16>, vector<16x32xf32> -> vector<16x32xf32>
    %c1_153 = arith.constant 1 : index
    %c0_154 = arith.constant 0 : index
    %c0_155 = arith.constant 0 : index
    %331 = vector.load %arg11[%c1_153, %c0_154, %c0_155] : memref<3x32x32xf32, #tpu.memory_space<vmem>>, vector<1x32x32xf32>
    %332 = vector.shape_cast %331 : vector<1x32x32xf32> to vector<32x32xf32>
    %333 = arith.truncf %325 : vector<16x32xf32> to vector<16x32xbf16>
    %334 = arith.truncf %332 : vector<32x32xf32> to vector<32x32xbf16>
    %cst_156 = arith.constant dense<0.000000e+00> : vector<16x32xf32>
    %335 = tpu.matmul %333, %334, %cst_156 {dimension_numbers = #tpu.dot_dimension_numbers<[1], [0], [0], [1], [0, 0, 1, 1], [], []>} : vector<16x32xbf16>, vector<32x32xbf16>, vector<16x32xf32> -> vector<16x32xf32>
    %c2_157 = arith.constant 2 : index
    %c0_158 = arith.constant 0 : index
    %c0_159 = arith.constant 0 : index
    %336 = vector.load %arg11[%c2_157, %c0_158, %c0_159] : memref<3x32x32xf32, #tpu.memory_space<vmem>>, vector<1x32x32xf32>
    %337 = vector.shape_cast %336 : vector<1x32x32xf32> to vector<32x32xf32>
    %338 = arith.truncf %325 : vector<16x32xf32> to vector<16x32xbf16>
    %339 = arith.truncf %337 : vector<32x32xf32> to vector<32x32xbf16>
    %cst_160 = arith.constant dense<0.000000e+00> : vector<16x32xf32>
    %340 = tpu.matmul %338, %339, %cst_160 {dimension_numbers = #tpu.dot_dimension_numbers<[1], [0], [0], [1], [0, 0, 1, 1], [], []>} : vector<16x32xbf16>, vector<32x32xbf16>, vector<16x32xf32> -> vector<16x32xf32>
    %cst_161 = arith.constant 0.176776692 : f32
    %341 = vector.broadcast %cst_161 : f32 to vector<16x32xf32>
    %342 = arith.mulf %340, %341 : vector<16x32xf32>
    %c0_162 = arith.constant 0 : index
    %c0_163 = arith.constant 0 : index
    %c0_164 = arith.constant 0 : index
    %343 = vector.load %arg1[%c0_162, %c0_163, %c0_164] : memref<1x1x16xf32, #tpu.memory_space<vmem>>, vector<1x1x16xf32>
    %344 = vector.shape_cast %343 : vector<1x1x16xf32> to vector<1x16xf32>
    %345 = arith.truncf %342 : vector<16x32xf32> to vector<16x32xbf16>
    %346 = arith.truncf %330 : vector<16x32xf32> to vector<16x32xbf16>
    %cst_165 = arith.constant dense<0.000000e+00> : vector<16x16xf32>
    %347 = tpu.matmul %345, %346, %cst_165 {dimension_numbers = #tpu.dot_dimension_numbers<[1], [1], [0], [0], [0, 0, 1, 0], [], []>} : vector<16x32xbf16>, vector<16x32xbf16>, vector<16x16xf32> -> vector<16x16xf32>
    %cst_166 = arith.constant 0.000000e+00 : f32
    %348 = vector.broadcast %cst_166 : f32 to vector<1x16xf32>
    %349 = arith.cmpf ogt, %344, %348 : vector<1x16xf32>
    %cst_167 = arith.constant -1.000000e+30 : f32
    %350 = vector.shape_cast %349 : vector<1x16xi1> to vector<1x16xi1>
    %351 = vector.broadcast %350 : vector<1x16xi1> to vector<16x16xi1>
    %352 = vector.broadcast %cst_167 : f32 to vector<16x16xf32>
    %353 = arith.select %351, %347, %352 : vector<16x16xi1>, vector<16x16xf32>
    %cst_168 = arith.constant dense<0xFF800000> : vector<16xf32>
    %354 = vector.multi_reduction <maximumf>, %353, %cst_168 [1] : vector<16x16xf32> to vector<16xf32>
    %355 = vector.shape_cast %354 : vector<16xf32> to vector<16x1xf32>
    %356 = vector.broadcast %355 : vector<16x1xf32> to vector<16x16xf32>
    %357 = arith.subf %353, %356 : vector<16x16xf32>
    %358 = math.exp %357 : vector<16x16xf32>
    %cst_169 = arith.constant dense<0.000000e+00> : vector<16xf32>
    %359 = vector.multi_reduction <add>, %358, %cst_169 [1] : vector<16x16xf32> to vector<16xf32>
    %360 = vector.shape_cast %359 : vector<16xf32> to vector<16x1xf32>
    %361 = tpu.reciprocal %360 {approx = true} : vector<16x1xf32> -> vector<16x1xf32>
    %362 = vector.broadcast %361 : vector<16x1xf32> to vector<16x16xf32>
    %363 = arith.mulf %358, %362 : vector<16x16xf32>
    %364 = arith.truncf %363 : vector<16x16xf32> to vector<16x16xbf16>
    %365 = arith.truncf %335 : vector<16x32xf32> to vector<16x32xbf16>
    %cst_170 = arith.constant dense<0.000000e+00> : vector<16x32xf32>
    %366 = tpu.matmul %364, %365, %cst_170 {dimension_numbers = #tpu.dot_dimension_numbers<[1], [0], [0], [1], [0, 0, 1, 1], [], []>} : vector<16x16xbf16>, vector<16x32xbf16>, vector<16x32xf32> -> vector<16x32xf32>
    %367 = arith.addf %366, %301 : vector<16x32xf32>
    %c1_171 = arith.constant 1 : index
    %c0_172 = arith.constant 0 : index
    %368 = vector.load %arg9[%c1_171, %c0_172] : memref<2x32xf32, #tpu.memory_space<vmem>>, vector<1x32xf32>
    %c1_173 = arith.constant 1 : index
    %c0_174 = arith.constant 0 : index
    %369 = vector.load %arg10[%c1_173, %c0_174] : memref<2x32xf32, #tpu.memory_space<vmem>>, vector<1x32xf32>
    %cst_175 = arith.constant dense<0.000000e+00> : vector<16xf32>
    %370 = vector.multi_reduction <add>, %367, %cst_175 [1] : vector<16x32xf32> to vector<16xf32>
    %371 = vector.shape_cast %370 : vector<16xf32> to vector<16x1xf32>
    %cst_176 = arith.constant 3.200000e+01 : f32
    %372 = vector.broadcast %cst_176 : f32 to vector<16x1xf32>
    %373 = arith.divf %371, %372 : vector<16x1xf32>
    %374 = vector.broadcast %373 : vector<16x1xf32> to vector<16x32xf32>
    %375 = arith.subf %367, %374 : vector<16x32xf32>
    %376 = arith.mulf %375, %375 : vector<16x32xf32>
    %cst_177 = arith.constant dense<0.000000e+00> : vector<16xf32>
    %377 = vector.multi_reduction <add>, %376, %cst_177 [1] : vector<16x32xf32> to vector<16xf32>
    %378 = vector.shape_cast %377 : vector<16xf32> to vector<16x1xf32>
    %cst_178 = arith.constant 3.200000e+01 : f32
    %379 = vector.broadcast %cst_178 : f32 to vector<16x1xf32>
    %380 = arith.divf %378, %379 : vector<16x1xf32>
    %381 = vector.broadcast %373 : vector<16x1xf32> to vector<16x32xf32>
    %382 = arith.subf %367, %381 : vector<16x32xf32>
    %cst_179 = arith.constant 9.99999974E-6 : f32
    %383 = vector.broadcast %cst_179 : f32 to vector<16x1xf32>
    %384 = arith.addf %380, %383 : vector<16x1xf32>
    %385 = math.rsqrt %384 : vector<16x1xf32>
    %386 = vector.broadcast %385 : vector<16x1xf32> to vector<16x32xf32>
    %387 = arith.mulf %382, %386 : vector<16x32xf32>
    %388 = vector.broadcast %368 : vector<1x32xf32> to vector<16x32xf32>
    %389 = arith.mulf %387, %388 : vector<16x32xf32>
    %390 = vector.broadcast %369 : vector<1x32xf32> to vector<16x32xf32>
    %391 = arith.addf %389, %390 : vector<16x32xf32>
    %c0_180 = arith.constant 0 : index
    %c0_181 = arith.constant 0 : index
    %c0_182 = arith.constant 0 : index
    %392 = vector.load %arg12[%c0_180, %c0_181, %c0_182] : memref<2x32x32xf32, #tpu.memory_space<vmem>>, vector<1x32x32xf32>
    %393 = vector.shape_cast %392 : vector<1x32x32xf32> to vector<32x32xf32>
    %394 = arith.truncf %391 : vector<16x32xf32> to vector<16x32xbf16>
    %395 = arith.truncf %393 : vector<32x32xf32> to vector<32x32xbf16>
    %cst_183 = arith.constant dense<0.000000e+00> : vector<16x32xf32>
    %396 = tpu.matmul %394, %395, %cst_183 {dimension_numbers = #tpu.dot_dimension_numbers<[1], [0], [0], [1], [0, 0, 1, 1], [], []>} : vector<16x32xbf16>, vector<32x32xbf16>, vector<16x32xf32> -> vector<16x32xf32>
    %c0_184 = arith.constant 0 : index
    %c0_185 = arith.constant 0 : index
    %397 = vector.load %arg13[%c0_184, %c0_185] : memref<2x32xf32, #tpu.memory_space<vmem>>, vector<1x32xf32>
    %398 = vector.broadcast %397 : vector<1x32xf32> to vector<16x32xf32>
    %399 = arith.addf %396, %398 : vector<16x32xf32>
    %cst_186 = arith.constant 0.000000e+00 : f32
    %400 = vector.broadcast %cst_186 : f32 to vector<16x32xf32>
    %401 = arith.maximumf %399, %400 : vector<16x32xf32>
    %c1_187 = arith.constant 1 : index
    %c0_188 = arith.constant 0 : index
    %c0_189 = arith.constant 0 : index
    %402 = vector.load %arg12[%c1_187, %c0_188, %c0_189] : memref<2x32x32xf32, #tpu.memory_space<vmem>>, vector<1x32x32xf32>
    %403 = vector.shape_cast %402 : vector<1x32x32xf32> to vector<32x32xf32>
    %404 = arith.truncf %401 : vector<16x32xf32> to vector<16x32xbf16>
    %405 = arith.truncf %403 : vector<32x32xf32> to vector<32x32xbf16>
    %cst_190 = arith.constant dense<0.000000e+00> : vector<16x32xf32>
    %406 = tpu.matmul %404, %405, %cst_190 {dimension_numbers = #tpu.dot_dimension_numbers<[1], [0], [0], [1], [0, 0, 1, 1], [], []>} : vector<16x32xbf16>, vector<32x32xbf16>, vector<16x32xf32> -> vector<16x32xf32>
    %c1_191 = arith.constant 1 : index
    %c0_192 = arith.constant 0 : index
    %407 = vector.load %arg13[%c1_191, %c0_192] : memref<2x32xf32, #tpu.memory_space<vmem>>, vector<1x32xf32>
    %408 = vector.broadcast %407 : vector<1x32xf32> to vector<16x32xf32>
    %409 = arith.addf %406, %408 : vector<16x32xf32>
    %410 = arith.addf %409, %367 : vector<16x32xf32>
    %c0_193 = arith.constant 0 : index
    %c0_194 = arith.constant 0 : index
    %c0_195 = arith.constant 0 : index
    %411 = vector.load %arg14[%c0_193, %c0_194, %c0_195] : memref<1x16x32xf32, #tpu.memory_space<vmem>>, vector<1x16x32xf32>
    %412 = vector.shape_cast %411 : vector<1x16x32xf32> to vector<16x32xf32>
    %413 = vector.shape_cast %410 : vector<16x32xf32> to vector<1x16x32xf32>
    tpu.vector_store %arg14[%c0_193, %c0_194, %c0_195], %413 {strides = array<i32>} : memref<1x16x32xf32, #tpu.memory_space<vmem>>, vector<1x16x32xf32>,
    return
  }
  func.func @transform_0(%arg0: i32) -> (i32, i32, i32) {
    %c0_i32 = arith.constant 0 : i32
    %c0_i32_0 = arith.constant 0 : i32
    %c0_i32_1 = arith.constant 0 : i32
    return %arg0, %c0_i32, %c0_i32_0 : i32, i32, i32
  }
  func.func @transform_1(%arg0: i32) -> (i32, i32, i32) {
    %c0_i32 = arith.constant 0 : i32
    %c0_i32_0 = arith.constant 0 : i32
    %c0_i32_1 = arith.constant 0 : i32
    return %arg0, %c0_i32, %c0_i32_0 : i32, i32, i32
  }
  func.func @transform_2(%arg0: i32) -> (i32, i32) {
    %c0_i32 = arith.constant 0 : i32
    %c0_i32_0 = arith.constant 0 : i32
    %c0_i32_1 = arith.constant 0 : i32
    return %c0_i32, %c0_i32_0 : i32, i32
  }
  func.func @transform_3(%arg0: i32) -> (i32, i32) {
    %c0_i32 = arith.constant 0 : i32
    %c0_i32_0 = arith.constant 0 : i32
    %c0_i32_1 = arith.constant 0 : i32
    return %c0_i32, %c0_i32_0 : i32, i32
  }
  func.func @transform_4(%arg0: i32) -> (i32, i32) {
    %c0_i32 = arith.constant 0 : i32
    %c0_i32_0 = arith.constant 0 : i32
    %c0_i32_1 = arith.constant 0 : i32
    return %c0_i32, %c0_i32_0 : i32, i32
  }
  func.func @transform_5(%arg0: i32) -> (i32, i32, i32) {
    %c0_i32 = arith.constant 0 : i32
    %c0_i32_0 = arith.constant 0 : i32
    %c0_i32_1 = arith.constant 0 : i32
    %c0_i32_2 = arith.constant 0 : i32
    return %c0_i32, %c0_i32_0, %c0_i32_1 : i32, i32, i32
  }
  func.func @transform_6(%arg0: i32) -> (i32, i32, i32) {
    %c0_i32 = arith.constant 0 : i32
    %c0_i32_0 = arith.constant 0 : i32
    %c0_i32_1 = arith.constant 0 : i32
    %c0_i32_2 = arith.constant 0 : i32
    return %c0_i32, %c0_i32_0, %c0_i32_1 : i32, i32, i32
  }
  func.func @transform_7(%arg0: i32) -> (i32, i32) {
    %c0_i32 = arith.constant 0 : i32
    %c0_i32_0 = arith.constant 0 : i32
    %c0_i32_1 = arith.constant 0 : i32
    return %c0_i32, %c0_i32_0 : i32, i32
  }
  func.func @transform_8(%arg0: i32) -> (i32, i32) {
    %c0_i32 = arith.constant 0 : i32
    %c0_i32_0 = arith.constant 0 : i32
    %c0_i32_1 = arith.constant 0 : i32
    return %c0_i32, %c0_i32_0 : i32, i32
  }
  func.func @transform_9(%arg0: i32) -> (i32, i32) {
    %c0_i32 = arith.constant 0 : i32
    %c0_i32_0 = arith.constant 0 : i32
    %c0_i32_1 = arith.constant 0 : i32
    return %c0_i32, %c0_i32_0 : i32, i32
  }
  func.func @transform_10(%arg0: i32) -> (i32, i32, i32) {
    %c0_i32 = arith.constant 0 : i32
    %c0_i32_0 = arith.constant 0 : i32
    %c0_i32_1 = arith.constant 0 : i32
    %c0_i32_2 = arith.constant 0 : i32
    return %c0_i32, %c0_i32_0, %c0_i32_1 : i32, i32, i32
  }
  func.func @transform_11(%arg0: i32) -> (i32, i32, i32) {
    %c0_i32 = arith.constant 0 : i32
    %c0_i32_0 = arith.constant 0 : i32
    %c0_i32_1 = arith.constant 0 : i32
    %c0_i32_2 = arith.constant 0 : i32
    return %c0_i32, %c0_i32_0, %c0_i32_1 : i32, i32, i32
  }
  func.func @transform_12(%arg0: i32) -> (i32, i32) {
    %c0_i32 = arith.constant 0 : i32
    %c0_i32_0 = arith.constant 0 : i32
    %c0_i32_1 = arith.constant 0 : i32
    return %c0_i32, %c0_i32_0 : i32, i32
  }
  func.func @transform_13(%arg0: i32) -> (i32, i32, i32) {
    %c0_i32 = arith.constant 0 : i32
    %c0_i32_0 = arith.constant 0 : i32
    %c0_i32_1 = arith.constant 0 : i32
    return %arg0, %c0_i32, %c0_i32_0 : i32, i32, i32
  }
}

module attributes {stable_mosaic.version = 11 : i64} {
  func.func @_matmul_kernel(%arg0: i32, %arg1: memref<64x80xf32, #tpu.memory_space<vmem>>, %arg2: memref<80x32xf32, #tpu.memory_space<vmem>>, %arg3: memref<1x32xf32, #tpu.memory_space<vmem>>, %arg4: memref<64x32xf32, #tpu.memory_space<vmem>>) attributes {dimension_semantics = [#tpu.dimension_semantics<parallel>], iteration_bounds = array<i64: 1>, scalar_prefetch = 0 : i64, scratch_operands = 0 : i64, tpu.core_type = #tpu.core_type<tc>, window_params = [{transform_indices = @transform_0, window_bounds = array<i64: 64, 80>}, {pipeline_mode = #tpu.pipeline_mode<synchronous>, transform_indices = @transform_1, window_bounds = array<i64: 80, 32>}, {pipeline_mode = #tpu.pipeline_mode<synchronous>, transform_indices = @transform_2, window_bounds = array<i64: 1, 32>}, {transform_indices = @transform_3, window_bounds = array<i64: 64, 32>}]} {
    %c0 = arith.constant 0 : index
    %c0_0 = arith.constant 0 : index
    %0 = vector.load %arg1[%c0, %c0_0] : memref<64x80xf32, #tpu.memory_space<vmem>>, vector<64x80xf32>
    %c0_1 = arith.constant 0 : index
    %c0_2 = arith.constant 0 : index
    %1 = vector.load %arg2[%c0_1, %c0_2] : memref<80x32xf32, #tpu.memory_space<vmem>>, vector<80x32xf32>
    %2 = arith.truncf %0 : vector<64x80xf32> to vector<64x80xbf16>
    %3 = arith.truncf %1 : vector<80x32xf32> to vector<80x32xbf16>
    %cst = arith.constant dense<0.000000e+00> : vector<64x32xf32>
    %4 = tpu.matmul %2, %3, %cst {dimension_numbers = #tpu.dot_dimension_numbers<[1], [0], [0], [1], [0, 0, 1, 1], [], []>} : vector<64x80xbf16>, vector<80x32xbf16>, vector<64x32xf32> -> vector<64x32xf32>
    %c0_3 = arith.constant 0 : index
    %c0_4 = arith.constant 0 : index
    %5 = vector.load %arg3[%c0_3, %c0_4] : memref<1x32xf32, #tpu.memory_space<vmem>>, vector<1x32xf32>
    %6 = vector.broadcast %5 : vector<1x32xf32> to vector<64x32xf32>
    %7 = arith.addf %4, %6 : vector<64x32xf32>
    %c0_5 = arith.constant 0 : index
    %c0_6 = arith.constant 0 : index
    %8 = vector.load %arg4[%c0_5, %c0_6] : memref<64x32xf32, #tpu.memory_space<vmem>>, vector<64x32xf32>
    tpu.vector_store %arg4[%c0_5, %c0_6], %7 {strides = array<i32>} : memref<64x32xf32, #tpu.memory_space<vmem>>, vector<64x32xf32>,
    return
  }
  func.func @transform_0(%arg0: i32) -> (i32, i32) {
    %c0_i32 = arith.constant 0 : i32
    %c0_i32_0 = arith.constant 0 : i32
    return %arg0, %c0_i32 : i32, i32
  }
  func.func @transform_1(%arg0: i32) -> (i32, i32) {
    %c0_i32 = arith.constant 0 : i32
    %c0_i32_0 = arith.constant 0 : i32
    %c0_i32_1 = arith.constant 0 : i32
    return %c0_i32, %c0_i32_0 : i32, i32
  }
  func.func @transform_2(%arg0: i32) -> (i32, i32) {
    %c0_i32 = arith.constant 0 : i32
    %c0_i32_0 = arith.constant 0 : i32
    %c0_i32_1 = arith.constant 0 : i32
    return %c0_i32, %c0_i32_0 : i32, i32
  }
  func.func @transform_3(%arg0: i32) -> (i32, i32) {
    %c0_i32 = arith.constant 0 : i32
    %c0_i32_0 = arith.constant 0 : i32
    return %arg0, %c0_i32 : i32, i32
  }
}

module attributes {stable_mosaic.version = 11 : i64} {
  func.func @_matmul_kernel(%arg0: i32, %arg1: memref<16x80xf32, #tpu.memory_space<vmem>>, %arg2: memref<80x32xf32, #tpu.memory_space<vmem>>, %arg3: memref<1x32xf32, #tpu.memory_space<vmem>>, %arg4: memref<16x32xf32, #tpu.memory_space<vmem>>) attributes {dimension_semantics = [#tpu.dimension_semantics<parallel>], iteration_bounds = array<i64: 1>, scalar_prefetch = 0 : i64, scratch_operands = 0 : i64, tpu.core_type = #tpu.core_type<tc>, window_params = [{transform_indices = @transform_0, window_bounds = array<i64: 16, 80>}, {pipeline_mode = #tpu.pipeline_mode<synchronous>, transform_indices = @transform_1, window_bounds = array<i64: 80, 32>}, {pipeline_mode = #tpu.pipeline_mode<synchronous>, transform_indices = @transform_2, window_bounds = array<i64: 1, 32>}, {transform_indices = @transform_3, window_bounds = array<i64: 16, 32>}]} {
    %c0 = arith.constant 0 : index
    %c0_0 = arith.constant 0 : index
    %0 = vector.load %arg1[%c0, %c0_0] : memref<16x80xf32, #tpu.memory_space<vmem>>, vector<16x80xf32>
    %c0_1 = arith.constant 0 : index
    %c0_2 = arith.constant 0 : index
    %1 = vector.load %arg2[%c0_1, %c0_2] : memref<80x32xf32, #tpu.memory_space<vmem>>, vector<80x32xf32>
    %2 = arith.truncf %0 : vector<16x80xf32> to vector<16x80xbf16>
    %3 = arith.truncf %1 : vector<80x32xf32> to vector<80x32xbf16>
    %cst = arith.constant dense<0.000000e+00> : vector<16x32xf32>
    %4 = tpu.matmul %2, %3, %cst {dimension_numbers = #tpu.dot_dimension_numbers<[1], [0], [0], [1], [0, 0, 1, 1], [], []>} : vector<16x80xbf16>, vector<80x32xbf16>, vector<16x32xf32> -> vector<16x32xf32>
    %c0_3 = arith.constant 0 : index
    %c0_4 = arith.constant 0 : index
    %5 = vector.load %arg3[%c0_3, %c0_4] : memref<1x32xf32, #tpu.memory_space<vmem>>, vector<1x32xf32>
    %6 = vector.broadcast %5 : vector<1x32xf32> to vector<16x32xf32>
    %7 = arith.addf %4, %6 : vector<16x32xf32>
    %c0_5 = arith.constant 0 : index
    %c0_6 = arith.constant 0 : index
    %8 = vector.load %arg4[%c0_5, %c0_6] : memref<16x32xf32, #tpu.memory_space<vmem>>, vector<16x32xf32>
    tpu.vector_store %arg4[%c0_5, %c0_6], %7 {strides = array<i32>} : memref<16x32xf32, #tpu.memory_space<vmem>>, vector<16x32xf32>,
    return
  }
  func.func @transform_0(%arg0: i32) -> (i32, i32) {
    %c0_i32 = arith.constant 0 : i32
    %c0_i32_0 = arith.constant 0 : i32
    return %arg0, %c0_i32 : i32, i32
  }
  func.func @transform_1(%arg0: i32) -> (i32, i32) {
    %c0_i32 = arith.constant 0 : i32
    %c0_i32_0 = arith.constant 0 : i32
    %c0_i32_1 = arith.constant 0 : i32
    return %c0_i32, %c0_i32_0 : i32, i32
  }
  func.func @transform_2(%arg0: i32) -> (i32, i32) {
    %c0_i32 = arith.constant 0 : i32
    %c0_i32_0 = arith.constant 0 : i32
    %c0_i32_1 = arith.constant 0 : i32
    return %c0_i32, %c0_i32_0 : i32, i32
  }
  func.func @transform_3(%arg0: i32) -> (i32, i32) {
    %c0_i32 = arith.constant 0 : i32
    %c0_i32_0 = arith.constant 0 : i32
    return %arg0, %c0_i32 : i32, i32
  }
}

module attributes {stable_mosaic.version = 11 : i64} {
  func.func @_highway_kernel(%arg0: i32, %arg1: memref<16x32xf32, #tpu.memory_space<vmem>>, %arg2: memref<2x32x32xf32, #tpu.memory_space<vmem>>, %arg3: memref<2x32xf32, #tpu.memory_space<vmem>>, %arg4: memref<16x32xf32, #tpu.memory_space<vmem>>) attributes {dimension_semantics = [#tpu.dimension_semantics<parallel>], iteration_bounds = array<i64: 1>, scalar_prefetch = 0 : i64, scratch_operands = 0 : i64, tpu.core_type = #tpu.core_type<tc>, window_params = [{transform_indices = @transform_0, window_bounds = array<i64: 16, 32>}, {pipeline_mode = #tpu.pipeline_mode<synchronous>, transform_indices = @transform_1, window_bounds = array<i64: 2, 32, 32>}, {pipeline_mode = #tpu.pipeline_mode<synchronous>, transform_indices = @transform_2, window_bounds = array<i64: 2, 32>}, {transform_indices = @transform_3, window_bounds = array<i64: 16, 32>}]} {
    %c0 = arith.constant 0 : index
    %c0_0 = arith.constant 0 : index
    %0 = vector.load %arg1[%c0, %c0_0] : memref<16x32xf32, #tpu.memory_space<vmem>>, vector<16x32xf32>
    %c0_1 = arith.constant 0 : index
    %c0_2 = arith.constant 0 : index
    %c0_3 = arith.constant 0 : index
    %1 = vector.load %arg2[%c0_1, %c0_2, %c0_3] : memref<2x32x32xf32, #tpu.memory_space<vmem>>, vector<1x32x32xf32>
    %2 = vector.shape_cast %1 : vector<1x32x32xf32> to vector<32x32xf32>
    %3 = arith.truncf %0 : vector<16x32xf32> to vector<16x32xbf16>
    %4 = arith.truncf %2 : vector<32x32xf32> to vector<32x32xbf16>
    %cst = arith.constant dense<0.000000e+00> : vector<16x32xf32>
    %5 = tpu.matmul %3, %4, %cst {dimension_numbers = #tpu.dot_dimension_numbers<[1], [0], [0], [1], [0, 0, 1, 1], [], []>} : vector<16x32xbf16>, vector<32x32xbf16>, vector<16x32xf32> -> vector<16x32xf32>
    %c0_4 = arith.constant 0 : index
    %c0_5 = arith.constant 0 : index
    %6 = vector.load %arg3[%c0_4, %c0_5] : memref<2x32xf32, #tpu.memory_space<vmem>>, vector<1x32xf32>
    %7 = vector.broadcast %6 : vector<1x32xf32> to vector<16x32xf32>
    %8 = arith.addf %5, %7 : vector<16x32xf32>
    %9 = arith.negf %8 : vector<16x32xf32>
    %10 = math.exp %9 : vector<16x32xf32>
    %cst_6 = arith.constant 1.000000e+00 : f32
    %11 = vector.broadcast %cst_6 : f32 to vector<16x32xf32>
    %12 = arith.addf %11, %10 : vector<16x32xf32>
    %13 = arith.divf %11, %12 : vector<16x32xf32>
    %c1 = arith.constant 1 : index
    %c0_7 = arith.constant 0 : index
    %c0_8 = arith.constant 0 : index
    %14 = vector.load %arg2[%c1, %c0_7, %c0_8] : memref<2x32x32xf32, #tpu.memory_space<vmem>>, vector<1x32x32xf32>
    %15 = vector.shape_cast %14 : vector<1x32x32xf32> to vector<32x32xf32>
    %16 = arith.truncf %0 : vector<16x32xf32> to vector<16x32xbf16>
    %17 = arith.truncf %15 : vector<32x32xf32> to vector<32x32xbf16>
    %cst_9 = arith.constant dense<0.000000e+00> : vector<16x32xf32>
    %18 = tpu.matmul %16, %17, %cst_9 {dimension_numbers = #tpu.dot_dimension_numbers<[1], [0], [0], [1], [0, 0, 1, 1], [], []>} : vector<16x32xbf16>, vector<32x32xbf16>, vector<16x32xf32> -> vector<16x32xf32>
    %c1_10 = arith.constant 1 : index
    %c0_11 = arith.constant 0 : index
    %19 = vector.load %arg3[%c1_10, %c0_11] : memref<2x32xf32, #tpu.memory_space<vmem>>, vector<1x32xf32>
    %20 = vector.broadcast %19 : vector<1x32xf32> to vector<16x32xf32>
    %21 = arith.addf %18, %20 : vector<16x32xf32>
    %22 = arith.mulf %13, %21 : vector<16x32xf32>
    %cst_12 = arith.constant 1.000000e+00 : f32
    %23 = vector.broadcast %cst_12 : f32 to vector<16x32xf32>
    %24 = arith.subf %23, %13 : vector<16x32xf32>
    %25 = arith.mulf %24, %0 : vector<16x32xf32>
    %26 = arith.addf %22, %25 : vector<16x32xf32>
    %c0_13 = arith.constant 0 : index
    %c0_14 = arith.constant 0 : index
    %27 = vector.load %arg4[%c0_13, %c0_14] : memref<16x32xf32, #tpu.memory_space<vmem>>, vector<16x32xf32>
    tpu.vector_store %arg4[%c0_13, %c0_14], %26 {strides = array<i32>} : memref<16x32xf32, #tpu.memory_space<vmem>>, vector<16x32xf32>,
    return
  }
  func.func @transform_0(%arg0: i32) -> (i32, i32) {
    %c0_i32 = arith.constant 0 : i32
    %c0_i32_0 = arith.constant 0 : i32
    return %arg0, %c0_i32 : i32, i32
  }
  func.func @transform_1(%arg0: i32) -> (i32, i32, i32) {
    %c0_i32 = arith.constant 0 : i32
    %c0_i32_0 = arith.constant 0 : i32
    %c0_i32_1 = arith.constant 0 : i32
    %c0_i32_2 = arith.constant 0 : i32
    return %c0_i32, %c0_i32_0, %c0_i32_1 : i32, i32, i32
  }
  func.func @transform_2(%arg0: i32) -> (i32, i32) {
    %c0_i32 = arith.constant 0 : i32
    %c0_i32_0 = arith.constant 0 : i32
    %c0_i32_1 = arith.constant 0 : i32
    return %c0_i32, %c0_i32_0 : i32, i32
  }
  func.func @transform_3(%arg0: i32) -> (i32, i32) {
    %c0_i32 = arith.constant 0 : i32
    %c0_i32_0 = arith.constant 0 : i32
    return %arg0, %c0_i32 : i32, i32
  }
}

module attributes {stable_mosaic.version = 11 : i64} {
  func.func @_encoder_block_kernel(%arg0: i32, %arg1: memref<1x1x8xf32, #tpu.memory_space<vmem>>, %arg2: memref<1x8x32xf32, #tpu.memory_space<vmem>>, %arg3: memref<8x32xf32, #tpu.memory_space<vmem>>, %arg4: memref<4x32xf32, #tpu.memory_space<vmem>>, %arg5: memref<4x32xf32, #tpu.memory_space<vmem>>, %arg6: memref<4x7x32xf32, #tpu.memory_space<vmem>>, %arg7: memref<4x32x32xf32, #tpu.memory_space<vmem>>, %arg8: memref<4x32xf32, #tpu.memory_space<vmem>>, %arg9: memref<2x32xf32, #tpu.memory_space<vmem>>, %arg10: memref<2x32xf32, #tpu.memory_space<vmem>>, %arg11: memref<3x32x32xf32, #tpu.memory_space<vmem>>, %arg12: memref<2x32x32xf32, #tpu.memory_space<vmem>>, %arg13: memref<2x32xf32, #tpu.memory_space<vmem>>, %arg14: memref<1x8x32xf32, #tpu.memory_space<vmem>>, %arg15: memref<24x32xf32, #tpu.memory_space<vmem>>) attributes {dimension_semantics = [#tpu.dimension_semantics<parallel>], iteration_bounds = array<i64: 2>, scalar_prefetch = 0 : i64, scratch_operands = 1 : i64, tpu.core_type = #tpu.core_type<tc>, window_params = [{transform_indices = @transform_0, window_bounds = array<i64: 1, 1, 8>}, {transform_indices = @transform_1, window_bounds = array<i64: 1, 8, 32>}, {pipeline_mode = #tpu.pipeline_mode<synchronous>, transform_indices = @transform_2, window_bounds = array<i64: 8, 32>}, {pipeline_mode = #tpu.pipeline_mode<synchronous>, transform_indices = @transform_3, window_bounds = array<i64: 4, 32>}, {pipeline_mode = #tpu.pipeline_mode<synchronous>, transform_indices = @transform_4, window_bounds = array<i64: 4, 32>}, {pipeline_mode = #tpu.pipeline_mode<synchronous>, transform_indices = @transform_5, window_bounds = array<i64: 4, 7, 32>}, {pipeline_mode = #tpu.pipeline_mode<synchronous>, transform_indices = @transform_6, window_bounds = array<i64: 4, 32, 32>}, {pipeline_mode = #tpu.pipeline_mode<synchronous>, transform_indices = @transform_7, window_bounds = array<i64: 4, 32>}, {pipeline_mode = #tpu.pipeline_mode<synchronous>, transform_indices = @transform_8, window_bounds = array<i64: 2, 32>}, {pipeline_mode = #tpu.pipeline_mode<synchronous>, transform_indices = @transform_9, window_bounds = array<i64: 2, 32>}, {pipeline_mode = #tpu.pipeline_mode<synchronous>, transform_indices = @transform_10, window_bounds = array<i64: 3, 32, 32>}, {pipeline_mode = #tpu.pipeline_mode<synchronous>, transform_indices = @transform_11, window_bounds = array<i64: 2, 32, 32>}, {pipeline_mode = #tpu.pipeline_mode<synchronous>, transform_indices = @transform_12, window_bounds = array<i64: 2, 32>}, {transform_indices = @transform_13, window_bounds = array<i64: 1, 8, 32>}]} {
    %c0 = arith.constant 0 : index
    %c0_0 = arith.constant 0 : index
    %c0_1 = arith.constant 0 : index
    %0 = vector.load %arg2[%c0, %c0_0, %c0_1] : memref<1x8x32xf32, #tpu.memory_space<vmem>>, vector<1x8x32xf32>
    %1 = vector.shape_cast %0 : vector<1x8x32xf32> to vector<8x32xf32>
    %c0_2 = arith.constant 0 : index
    %c0_3 = arith.constant 0 : index
    %2 = vector.load %arg3[%c0_2, %c0_3] : memref<8x32xf32, #tpu.memory_space<vmem>>, vector<8x32xf32>
    %3 = arith.addf %1, %2 : vector<8x32xf32>
    %cst = arith.constant 0.000000e+00 : f32
    %4 = vector.broadcast %cst : f32 to vector<24x32xf32>
    %c0_4 = arith.constant 0 : index
    %c0_5 = arith.constant 0 : index
    %5 = vector.load %arg15[%c0_4, %c0_5] : memref<24x32xf32, #tpu.memory_space<vmem>>, vector<24x32xf32>
    tpu.vector_store %arg15[%c0_4, %c0_5], %4 {strides = array<i32>} : memref<24x32xf32, #tpu.memory_space<vmem>>, vector<24x32xf32>,
    %c0_6 = arith.constant 0 : index
    %c0_7 = arith.constant 0 : index
    %6 = vector.load %arg4[%c0_6, %c0_7] : memref<4x32xf32, #tpu.memory_space<vmem>>, vector<1x32xf32>
    %c0_8 = arith.constant 0 : index
    %c0_9 = arith.constant 0 : index
    %7 = vector.load %arg5[%c0_8, %c0_9] : memref<4x32xf32, #tpu.memory_space<vmem>>, vector<1x32xf32>
    %cst_10 = arith.constant dense<0.000000e+00> : vector<8xf32>
    %8 = vector.multi_reduction <add>, %3, %cst_10 [1] : vector<8x32xf32> to vector<8xf32>
    %9 = vector.shape_cast %8 : vector<8xf32> to vector<8x1xf32>
    %cst_11 = arith.constant 3.200000e+01 : f32
    %10 = vector.broadcast %cst_11 : f32 to vector<8x1xf32>
    %11 = arith.divf %9, %10 : vector<8x1xf32>
    %12 = vector.broadcast %11 : vector<8x1xf32> to vector<8x32xf32>
    %13 = arith.subf %3, %12 : vector<8x32xf32>
    %14 = arith.mulf %13, %13 : vector<8x32xf32>
    %cst_12 = arith.constant dense<0.000000e+00> : vector<8xf32>
    %15 = vector.multi_reduction <add>, %14, %cst_12 [1] : vector<8x32xf32> to vector<8xf32>
    %16 = vector.shape_cast %15 : vector<8xf32> to vector<8x1xf32>
    %cst_13 = arith.constant 3.200000e+01 : f32
    %17 = vector.broadcast %cst_13 : f32 to vector<8x1xf32>
    %18 = arith.divf %16, %17 : vector<8x1xf32>
    %19 = vector.broadcast %11 : vector<8x1xf32> to vector<8x32xf32>
    %20 = arith.subf %3, %19 : vector<8x32xf32>
    %cst_14 = arith.constant 9.99999974E-6 : f32
    %21 = vector.broadcast %cst_14 : f32 to vector<8x1xf32>
    %22 = arith.addf %18, %21 : vector<8x1xf32>
    %23 = math.rsqrt %22 : vector<8x1xf32>
    %24 = vector.broadcast %23 : vector<8x1xf32> to vector<8x32xf32>
    %25 = arith.mulf %20, %24 : vector<8x32xf32>
    %26 = vector.broadcast %6 : vector<1x32xf32> to vector<8x32xf32>
    %27 = arith.mulf %25, %26 : vector<8x32xf32>
    %28 = vector.broadcast %7 : vector<1x32xf32> to vector<8x32xf32>
    %29 = arith.addf %27, %28 : vector<8x32xf32>
    %c8 = arith.constant 8 : index
    %c0_15 = arith.constant 0 : index
    %30 = vector.load %arg15[%c8, %c0_15] : memref<24x32xf32, #tpu.memory_space<vmem>>, vector<8x32xf32>
    tpu.vector_store %arg15[%c8, %c0_15], %29 {strides = array<i32>} : memref<24x32xf32, #tpu.memory_space<vmem>>, vector<8x32xf32>,
    %c0_16 = arith.constant 0 : index
    %c0_17 = arith.constant 0 : index
    %c0_18 = arith.constant 0 : index
    %31 = vector.load %arg6[%c0_16, %c0_17, %c0_18] : memref<4x7x32xf32, #tpu.memory_space<vmem>>, vector<1x7x32xf32>
    %32 = vector.shape_cast %31 : vector<1x7x32xf32> to vector<7x32xf32>
    %cst_19 = arith.constant 0.000000e+00 : f32
    %33 = vector.broadcast %cst_19 : f32 to vector<8x32xf32>
    %c5 = arith.constant 5 : index
    %c0_20 = arith.constant 0 : index
    %34 = vector.load %arg15[%c5, %c0_20] : memref<24x32xf32, #tpu.memory_space<vmem>>, vector<8x32xf32>
    %35 = vector.extract_strided_slice %32 {offsets = [0, 0], sizes = [1, 32], strides = [1, 1]} : vector<7x32xf32> to vector<1x32xf32>
    %36 = vector.broadcast %35 : vector<1x32xf32> to vector<8x32xf32>
    %37 = arith.mulf %34, %36 : vector<8x32xf32>
    %38 = arith.addf %33, %37 : vector<8x32xf32>
    %c6 = arith.constant 6 : index
    %c0_21 = arith.constant 0 : index
    %39 = vector.load %arg15[%c6, %c0_21] : memref<24x32xf32, #tpu.memory_space<vmem>>, vector<8x32xf32>
    %40 = vector.extract_strided_slice %32 {offsets = [1, 0], sizes = [1, 32], strides = [1, 1]} : vector<7x32xf32> to vector<1x32xf32>
    %41 = vector.broadcast %40 : vector<1x32xf32> to vector<8x32xf32>
    %42 = arith.mulf %39, %41 : vector<8x32xf32>
    %43 = arith.addf %38, %42 : vector<8x32xf32>
    %c7 = arith.constant 7 : index
    %c0_22 = arith.constant 0 : index
    %44 = vector.load %arg15[%c7, %c0_22] : memref<24x32xf32, #tpu.memory_space<vmem>>, vector<8x32xf32>
    %45 = vector.extract_strided_slice %32 {offsets = [2, 0], sizes = [1, 32], strides = [1, 1]} : vector<7x32xf32> to vector<1x32xf32>
    %46 = vector.broadcast %45 : vector<1x32xf32> to vector<8x32xf32>
    %47 = arith.mulf %44, %46 : vector<8x32xf32>
    %48 = arith.addf %43, %47 : vector<8x32xf32>
    %c8_23 = arith.constant 8 : index
    %c0_24 = arith.constant 0 : index
    %49 = vector.load %arg15[%c8_23, %c0_24] : memref<24x32xf32, #tpu.memory_space<vmem>>, vector<8x32xf32>
    %50 = vector.extract_strided_slice %32 {offsets = [3, 0], sizes = [1, 32], strides = [1, 1]} : vector<7x32xf32> to vector<1x32xf32>
    %51 = vector.broadcast %50 : vector<1x32xf32> to vector<8x32xf32>
    %52 = arith.mulf %49, %51 : vector<8x32xf32>
    %53 = arith.addf %48, %52 : vector<8x32xf32>
    %c9 = arith.constant 9 : index
    %c0_25 = arith.constant 0 : index
    %54 = vector.load %arg15[%c9, %c0_25] : memref<24x32xf32, #tpu.memory_space<vmem>>, vector<8x32xf32>
    %55 = vector.extract_strided_slice %32 {offsets = [4, 0], sizes = [1, 32], strides = [1, 1]} : vector<7x32xf32> to vector<1x32xf32>
    %56 = vector.broadcast %55 : vector<1x32xf32> to vector<8x32xf32>
    %57 = arith.mulf %54, %56 : vector<8x32xf32>
    %58 = arith.addf %53, %57 : vector<8x32xf32>
    %c10 = arith.constant 10 : index
    %c0_26 = arith.constant 0 : index
    %59 = vector.load %arg15[%c10, %c0_26] : memref<24x32xf32, #tpu.memory_space<vmem>>, vector<8x32xf32>
    %60 = vector.extract_strided_slice %32 {offsets = [5, 0], sizes = [1, 32], strides = [1, 1]} : vector<7x32xf32> to vector<1x32xf32>
    %61 = vector.broadcast %60 : vector<1x32xf32> to vector<8x32xf32>
    %62 = arith.mulf %59, %61 : vector<8x32xf32>
    %63 = arith.addf %58, %62 : vector<8x32xf32>
    %c11 = arith.constant 11 : index
    %c0_27 = arith.constant 0 : index
    %64 = vector.load %arg15[%c11, %c0_27] : memref<24x32xf32, #tpu.memory_space<vmem>>, vector<8x32xf32>
    %65 = vector.extract_strided_slice %32 {offsets = [6, 0], sizes = [1, 32], strides = [1, 1]} : vector<7x32xf32> to vector<1x32xf32>
    %66 = vector.broadcast %65 : vector<1x32xf32> to vector<8x32xf32>
    %67 = arith.mulf %64, %66 : vector<8x32xf32>
    %68 = arith.addf %63, %67 : vector<8x32xf32>
    %c0_28 = arith.constant 0 : index
    %c0_29 = arith.constant 0 : index
    %c0_30 = arith.constant 0 : index
    %69 = vector.load %arg7[%c0_28, %c0_29, %c0_30] : memref<4x32x32xf32, #tpu.memory_space<vmem>>, vector<1x32x32xf32>
    %70 = vector.shape_cast %69 : vector<1x32x32xf32> to vector<32x32xf32>
    %71 = arith.truncf %68 : vector<8x32xf32> to vector<8x32xbf16>
    %72 = arith.truncf %70 : vector<32x32xf32> to vector<32x32xbf16>
    %cst_31 = arith.constant dense<0.000000e+00> : vector<8x32xf32>
    %73 = tpu.matmul %71, %72, %cst_31 {dimension_numbers = #tpu.dot_dimension_numbers<[1], [0], [0], [1], [0, 0, 1, 1], [], []>} : vector<8x32xbf16>, vector<32x32xbf16>, vector<8x32xf32> -> vector<8x32xf32>
    %c0_32 = arith.constant 0 : index
    %c0_33 = arith.constant 0 : index
    %74 = vector.load %arg8[%c0_32, %c0_33] : memref<4x32xf32, #tpu.memory_space<vmem>>, vector<1x32xf32>
    %75 = vector.broadcast %74 : vector<1x32xf32> to vector<8x32xf32>
    %76 = arith.addf %73, %75 : vector<8x32xf32>
    %cst_34 = arith.constant 0.000000e+00 : f32
    %77 = vector.broadcast %cst_34 : f32 to vector<8x32xf32>
    %78 = arith.maximumf %76, %77 : vector<8x32xf32>
    %79 = arith.addf %78, %3 : vector<8x32xf32>
    %c1 = arith.constant 1 : index
    %c0_35 = arith.constant 0 : index
    %80 = vector.load %arg4[%c1, %c0_35] : memref<4x32xf32, #tpu.memory_space<vmem>>, vector<1x32xf32>
    %c1_36 = arith.constant 1 : index
    %c0_37 = arith.constant 0 : index
    %81 = vector.load %arg5[%c1_36, %c0_37] : memref<4x32xf32, #tpu.memory_space<vmem>>, vector<1x32xf32>
    %cst_38 = arith.constant dense<0.000000e+00> : vector<8xf32>
    %82 = vector.multi_reduction <add>, %79, %cst_38 [1] : vector<8x32xf32> to vector<8xf32>
    %83 = vector.shape_cast %82 : vector<8xf32> to vector<8x1xf32>
    %cst_39 = arith.constant 3.200000e+01 : f32
    %84 = vector.broadcast %cst_39 : f32 to vector<8x1xf32>
    %85 = arith.divf %83, %84 : vector<8x1xf32>
    %86 = vector.broadcast %85 : vector<8x1xf32> to vector<8x32xf32>
    %87 = arith.subf %79, %86 : vector<8x32xf32>
    %88 = arith.mulf %87, %87 : vector<8x32xf32>
    %cst_40 = arith.constant dense<0.000000e+00> : vector<8xf32>
    %89 = vector.multi_reduction <add>, %88, %cst_40 [1] : vector<8x32xf32> to vector<8xf32>
    %90 = vector.shape_cast %89 : vector<8xf32> to vector<8x1xf32>
    %cst_41 = arith.constant 3.200000e+01 : f32
    %91 = vector.broadcast %cst_41 : f32 to vector<8x1xf32>
    %92 = arith.divf %90, %91 : vector<8x1xf32>
    %93 = vector.broadcast %85 : vector<8x1xf32> to vector<8x32xf32>
    %94 = arith.subf %79, %93 : vector<8x32xf32>
    %cst_42 = arith.constant 9.99999974E-6 : f32
    %95 = vector.broadcast %cst_42 : f32 to vector<8x1xf32>
    %96 = arith.addf %92, %95 : vector<8x1xf32>
    %97 = math.rsqrt %96 : vector<8x1xf32>
    %98 = vector.broadcast %97 : vector<8x1xf32> to vector<8x32xf32>
    %99 = arith.mulf %94, %98 : vector<8x32xf32>
    %100 = vector.broadcast %80 : vector<1x32xf32> to vector<8x32xf32>
    %101 = arith.mulf %99, %100 : vector<8x32xf32>
    %102 = vector.broadcast %81 : vector<1x32xf32> to vector<8x32xf32>
    %103 = arith.addf %101, %102 : vector<8x32xf32>
    %c8_43 = arith.constant 8 : index
    %c0_44 = arith.constant 0 : index
    %104 = vector.load %arg15[%c8_43, %c0_44] : memref<24x32xf32, #tpu.memory_space<vmem>>, vector<8x32xf32>
    tpu.vector_store %arg15[%c8_43, %c0_44], %103 {strides = array<i32>} : memref<24x32xf32, #tpu.memory_space<vmem>>, vector<8x32xf32>,
    %c1_45 = arith.constant 1 : index
    %c0_46 = arith.constant 0 : index
    %c0_47 = arith.constant 0 : index
    %105 = vector.load %arg6[%c1_45, %c0_46, %c0_47] : memref<4x7x32xf32, #tpu.memory_space<vmem>>, vector<1x7x32xf32>
    %106 = vector.shape_cast %105 : vector<1x7x32xf32> to vector<7x32xf32>
    %cst_48 = arith.constant 0.000000e+00 : f32
    %107 = vector.broadcast %cst_48 : f32 to vector<8x32xf32>
    %c5_49 = arith.constant 5 : index
    %c0_50 = arith.constant 0 : index
    %108 = vector.load %arg15[%c5_49, %c0_50] : memref<24x32xf32, #tpu.memory_space<vmem>>, vector<8x32xf32>
    %109 = vector.extract_strided_slice %106 {offsets = [0, 0], sizes = [1, 32], strides = [1, 1]} : vector<7x32xf32> to vector<1x32xf32>
    %110 = vector.broadcast %109 : vector<1x32xf32> to vector<8x32xf32>
    %111 = arith.mulf %108, %110 : vector<8x32xf32>
    %112 = arith.addf %107, %111 : vector<8x32xf32>
    %c6_51 = arith.constant 6 : index
    %c0_52 = arith.constant 0 : index
    %113 = vector.load %arg15[%c6_51, %c0_52] : memref<24x32xf32, #tpu.memory_space<vmem>>, vector<8x32xf32>
    %114 = vector.extract_strided_slice %106 {offsets = [1, 0], sizes = [1, 32], strides = [1, 1]} : vector<7x32xf32> to vector<1x32xf32>
    %115 = vector.broadcast %114 : vector<1x32xf32> to vector<8x32xf32>
    %116 = arith.mulf %113, %115 : vector<8x32xf32>
    %117 = arith.addf %112, %116 : vector<8x32xf32>
    %c7_53 = arith.constant 7 : index
    %c0_54 = arith.constant 0 : index
    %118 = vector.load %arg15[%c7_53, %c0_54] : memref<24x32xf32, #tpu.memory_space<vmem>>, vector<8x32xf32>
    %119 = vector.extract_strided_slice %106 {offsets = [2, 0], sizes = [1, 32], strides = [1, 1]} : vector<7x32xf32> to vector<1x32xf32>
    %120 = vector.broadcast %119 : vector<1x32xf32> to vector<8x32xf32>
    %121 = arith.mulf %118, %120 : vector<8x32xf32>
    %122 = arith.addf %117, %121 : vector<8x32xf32>
    %c8_55 = arith.constant 8 : index
    %c0_56 = arith.constant 0 : index
    %123 = vector.load %arg15[%c8_55, %c0_56] : memref<24x32xf32, #tpu.memory_space<vmem>>, vector<8x32xf32>
    %124 = vector.extract_strided_slice %106 {offsets = [3, 0], sizes = [1, 32], strides = [1, 1]} : vector<7x32xf32> to vector<1x32xf32>
    %125 = vector.broadcast %124 : vector<1x32xf32> to vector<8x32xf32>
    %126 = arith.mulf %123, %125 : vector<8x32xf32>
    %127 = arith.addf %122, %126 : vector<8x32xf32>
    %c9_57 = arith.constant 9 : index
    %c0_58 = arith.constant 0 : index
    %128 = vector.load %arg15[%c9_57, %c0_58] : memref<24x32xf32, #tpu.memory_space<vmem>>, vector<8x32xf32>
    %129 = vector.extract_strided_slice %106 {offsets = [4, 0], sizes = [1, 32], strides = [1, 1]} : vector<7x32xf32> to vector<1x32xf32>
    %130 = vector.broadcast %129 : vector<1x32xf32> to vector<8x32xf32>
    %131 = arith.mulf %128, %130 : vector<8x32xf32>
    %132 = arith.addf %127, %131 : vector<8x32xf32>
    %c10_59 = arith.constant 10 : index
    %c0_60 = arith.constant 0 : index
    %133 = vector.load %arg15[%c10_59, %c0_60] : memref<24x32xf32, #tpu.memory_space<vmem>>, vector<8x32xf32>
    %134 = vector.extract_strided_slice %106 {offsets = [5, 0], sizes = [1, 32], strides = [1, 1]} : vector<7x32xf32> to vector<1x32xf32>
    %135 = vector.broadcast %134 : vector<1x32xf32> to vector<8x32xf32>
    %136 = arith.mulf %133, %135 : vector<8x32xf32>
    %137 = arith.addf %132, %136 : vector<8x32xf32>
    %c11_61 = arith.constant 11 : index
    %c0_62 = arith.constant 0 : index
    %138 = vector.load %arg15[%c11_61, %c0_62] : memref<24x32xf32, #tpu.memory_space<vmem>>, vector<8x32xf32>
    %139 = vector.extract_strided_slice %106 {offsets = [6, 0], sizes = [1, 32], strides = [1, 1]} : vector<7x32xf32> to vector<1x32xf32>
    %140 = vector.broadcast %139 : vector<1x32xf32> to vector<8x32xf32>
    %141 = arith.mulf %138, %140 : vector<8x32xf32>
    %142 = arith.addf %137, %141 : vector<8x32xf32>
    %c1_63 = arith.constant 1 : index
    %c0_64 = arith.constant 0 : index
    %c0_65 = arith.constant 0 : index
    %143 = vector.load %arg7[%c1_63, %c0_64, %c0_65] : memref<4x32x32xf32, #tpu.memory_space<vmem>>, vector<1x32x32xf32>
    %144 = vector.shape_cast %143 : vector<1x32x32xf32> to vector<32x32xf32>
    %145 = arith.truncf %142 : vector<8x32xf32> to vector<8x32xbf16>
    %146 = arith.truncf %144 : vector<32x32xf32> to vector<32x32xbf16>
    %cst_66 = arith.constant dense<0.000000e+00> : vector<8x32xf32>
    %147 = tpu.matmul %145, %146, %cst_66 {dimension_numbers = #tpu.dot_dimension_numbers<[1], [0], [0], [1], [0, 0, 1, 1], [], []>} : vector<8x32xbf16>, vector<32x32xbf16>, vector<8x32xf32> -> vector<8x32xf32>
    %c1_67 = arith.constant 1 : index
    %c0_68 = arith.constant 0 : index
    %148 = vector.load %arg8[%c1_67, %c0_68] : memref<4x32xf32, #tpu.memory_space<vmem>>, vector<1x32xf32>
    %149 = vector.broadcast %148 : vector<1x32xf32> to vector<8x32xf32>
    %150 = arith.addf %147, %149 : vector<8x32xf32>
    %cst_69 = arith.constant 0.000000e+00 : f32
    %151 = vector.broadcast %cst_69 : f32 to vector<8x32xf32>
    %152 = arith.maximumf %150, %151 : vector<8x32xf32>
    %153 = arith.addf %152, %79 : vector<8x32xf32>
    %c2 = arith.constant 2 : index
    %c0_70 = arith.constant 0 : index
    %154 = vector.load %arg4[%c2, %c0_70] : memref<4x32xf32, #tpu.memory_space<vmem>>, vector<1x32xf32>
    %c2_71 = arith.constant 2 : index
    %c0_72 = arith.constant 0 : index
    %155 = vector.load %arg5[%c2_71, %c0_72] : memref<4x32xf32, #tpu.memory_space<vmem>>, vector<1x32xf32>
    %cst_73 = arith.constant dense<0.000000e+00> : vector<8xf32>
    %156 = vector.multi_reduction <add>, %153, %cst_73 [1] : vector<8x32xf32> to vector<8xf32>
    %157 = vector.shape_cast %156 : vector<8xf32> to vector<8x1xf32>
    %cst_74 = arith.constant 3.200000e+01 : f32
    %158 = vector.broadcast %cst_74 : f32 to vector<8x1xf32>
    %159 = arith.divf %157, %158 : vector<8x1xf32>
    %160 = vector.broadcast %159 : vector<8x1xf32> to vector<8x32xf32>
    %161 = arith.subf %153, %160 : vector<8x32xf32>
    %162 = arith.mulf %161, %161 : vector<8x32xf32>
    %cst_75 = arith.constant dense<0.000000e+00> : vector<8xf32>
    %163 = vector.multi_reduction <add>, %162, %cst_75 [1] : vector<8x32xf32> to vector<8xf32>
    %164 = vector.shape_cast %163 : vector<8xf32> to vector<8x1xf32>
    %cst_76 = arith.constant 3.200000e+01 : f32
    %165 = vector.broadcast %cst_76 : f32 to vector<8x1xf32>
    %166 = arith.divf %164, %165 : vector<8x1xf32>
    %167 = vector.broadcast %159 : vector<8x1xf32> to vector<8x32xf32>
    %168 = arith.subf %153, %167 : vector<8x32xf32>
    %cst_77 = arith.constant 9.99999974E-6 : f32
    %169 = vector.broadcast %cst_77 : f32 to vector<8x1xf32>
    %170 = arith.addf %166, %169 : vector<8x1xf32>
    %171 = math.rsqrt %170 : vector<8x1xf32>
    %172 = vector.broadcast %171 : vector<8x1xf32> to vector<8x32xf32>
    %173 = arith.mulf %168, %172 : vector<8x32xf32>
    %174 = vector.broadcast %154 : vector<1x32xf32> to vector<8x32xf32>
    %175 = arith.mulf %173, %174 : vector<8x32xf32>
    %176 = vector.broadcast %155 : vector<1x32xf32> to vector<8x32xf32>
    %177 = arith.addf %175, %176 : vector<8x32xf32>
    %c8_78 = arith.constant 8 : index
    %c0_79 = arith.constant 0 : index
    %178 = vector.load %arg15[%c8_78, %c0_79] : memref<24x32xf32, #tpu.memory_space<vmem>>, vector<8x32xf32>
    tpu.vector_store %arg15[%c8_78, %c0_79], %177 {strides = array<i32>} : memref<24x32xf32, #tpu.memory_space<vmem>>, vector<8x32xf32>,
    %c2_80 = arith.constant 2 : index
    %c0_81 = arith.constant 0 : index
    %c0_82 = arith.constant 0 : index
    %179 = vector.load %arg6[%c2_80, %c0_81, %c0_82] : memref<4x7x32xf32, #tpu.memory_space<vmem>>, vector<1x7x32xf32>
    %180 = vector.shape_cast %179 : vector<1x7x32xf32> to vector<7x32xf32>
    %cst_83 = arith.constant 0.000000e+00 : f32
    %181 = vector.broadcast %cst_83 : f32 to vector<8x32xf32>
    %c5_84 = arith.constant 5 : index
    %c0_85 = arith.constant 0 : index
    %182 = vector.load %arg15[%c5_84, %c0_85] : memref<24x32xf32, #tpu.memory_space<vmem>>, vector<8x32xf32>
    %183 = vector.extract_strided_slice %180 {offsets = [0, 0], sizes = [1, 32], strides = [1, 1]} : vector<7x32xf32> to vector<1x32xf32>
    %184 = vector.broadcast %183 : vector<1x32xf32> to vector<8x32xf32>
    %185 = arith.mulf %182, %184 : vector<8x32xf32>
    %186 = arith.addf %181, %185 : vector<8x32xf32>
    %c6_86 = arith.constant 6 : index
    %c0_87 = arith.constant 0 : index
    %187 = vector.load %arg15[%c6_86, %c0_87] : memref<24x32xf32, #tpu.memory_space<vmem>>, vector<8x32xf32>
    %188 = vector.extract_strided_slice %180 {offsets = [1, 0], sizes = [1, 32], strides = [1, 1]} : vector<7x32xf32> to vector<1x32xf32>
    %189 = vector.broadcast %188 : vector<1x32xf32> to vector<8x32xf32>
    %190 = arith.mulf %187, %189 : vector<8x32xf32>
    %191 = arith.addf %186, %190 : vector<8x32xf32>
    %c7_88 = arith.constant 7 : index
    %c0_89 = arith.constant 0 : index
    %192 = vector.load %arg15[%c7_88, %c0_89] : memref<24x32xf32, #tpu.memory_space<vmem>>, vector<8x32xf32>
    %193 = vector.extract_strided_slice %180 {offsets = [2, 0], sizes = [1, 32], strides = [1, 1]} : vector<7x32xf32> to vector<1x32xf32>
    %194 = vector.broadcast %193 : vector<1x32xf32> to vector<8x32xf32>
    %195 = arith.mulf %192, %194 : vector<8x32xf32>
    %196 = arith.addf %191, %195 : vector<8x32xf32>
    %c8_90 = arith.constant 8 : index
    %c0_91 = arith.constant 0 : index
    %197 = vector.load %arg15[%c8_90, %c0_91] : memref<24x32xf32, #tpu.memory_space<vmem>>, vector<8x32xf32>
    %198 = vector.extract_strided_slice %180 {offsets = [3, 0], sizes = [1, 32], strides = [1, 1]} : vector<7x32xf32> to vector<1x32xf32>
    %199 = vector.broadcast %198 : vector<1x32xf32> to vector<8x32xf32>
    %200 = arith.mulf %197, %199 : vector<8x32xf32>
    %201 = arith.addf %196, %200 : vector<8x32xf32>
    %c9_92 = arith.constant 9 : index
    %c0_93 = arith.constant 0 : index
    %202 = vector.load %arg15[%c9_92, %c0_93] : memref<24x32xf32, #tpu.memory_space<vmem>>, vector<8x32xf32>
    %203 = vector.extract_strided_slice %180 {offsets = [4, 0], sizes = [1, 32], strides = [1, 1]} : vector<7x32xf32> to vector<1x32xf32>
    %204 = vector.broadcast %203 : vector<1x32xf32> to vector<8x32xf32>
    %205 = arith.mulf %202, %204 : vector<8x32xf32>
    %206 = arith.addf %201, %205 : vector<8x32xf32>
    %c10_94 = arith.constant 10 : index
    %c0_95 = arith.constant 0 : index
    %207 = vector.load %arg15[%c10_94, %c0_95] : memref<24x32xf32, #tpu.memory_space<vmem>>, vector<8x32xf32>
    %208 = vector.extract_strided_slice %180 {offsets = [5, 0], sizes = [1, 32], strides = [1, 1]} : vector<7x32xf32> to vector<1x32xf32>
    %209 = vector.broadcast %208 : vector<1x32xf32> to vector<8x32xf32>
    %210 = arith.mulf %207, %209 : vector<8x32xf32>
    %211 = arith.addf %206, %210 : vector<8x32xf32>
    %c11_96 = arith.constant 11 : index
    %c0_97 = arith.constant 0 : index
    %212 = vector.load %arg15[%c11_96, %c0_97] : memref<24x32xf32, #tpu.memory_space<vmem>>, vector<8x32xf32>
    %213 = vector.extract_strided_slice %180 {offsets = [6, 0], sizes = [1, 32], strides = [1, 1]} : vector<7x32xf32> to vector<1x32xf32>
    %214 = vector.broadcast %213 : vector<1x32xf32> to vector<8x32xf32>
    %215 = arith.mulf %212, %214 : vector<8x32xf32>
    %216 = arith.addf %211, %215 : vector<8x32xf32>
    %c2_98 = arith.constant 2 : index
    %c0_99 = arith.constant 0 : index
    %c0_100 = arith.constant 0 : index
    %217 = vector.load %arg7[%c2_98, %c0_99, %c0_100] : memref<4x32x32xf32, #tpu.memory_space<vmem>>, vector<1x32x32xf32>
    %218 = vector.shape_cast %217 : vector<1x32x32xf32> to vector<32x32xf32>
    %219 = arith.truncf %216 : vector<8x32xf32> to vector<8x32xbf16>
    %220 = arith.truncf %218 : vector<32x32xf32> to vector<32x32xbf16>
    %cst_101 = arith.constant dense<0.000000e+00> : vector<8x32xf32>
    %221 = tpu.matmul %219, %220, %cst_101 {dimension_numbers = #tpu.dot_dimension_numbers<[1], [0], [0], [1], [0, 0, 1, 1], [], []>} : vector<8x32xbf16>, vector<32x32xbf16>, vector<8x32xf32> -> vector<8x32xf32>
    %c2_102 = arith.constant 2 : index
    %c0_103 = arith.constant 0 : index
    %222 = vector.load %arg8[%c2_102, %c0_103] : memref<4x32xf32, #tpu.memory_space<vmem>>, vector<1x32xf32>
    %223 = vector.broadcast %222 : vector<1x32xf32> to vector<8x32xf32>
    %224 = arith.addf %221, %223 : vector<8x32xf32>
    %cst_104 = arith.constant 0.000000e+00 : f32
    %225 = vector.broadcast %cst_104 : f32 to vector<8x32xf32>
    %226 = arith.maximumf %224, %225 : vector<8x32xf32>
    %227 = arith.addf %226, %153 : vector<8x32xf32>
    %c3 = arith.constant 3 : index
    %c0_105 = arith.constant 0 : index
    %228 = vector.load %arg4[%c3, %c0_105] : memref<4x32xf32, #tpu.memory_space<vmem>>, vector<1x32xf32>
    %c3_106 = arith.constant 3 : index
    %c0_107 = arith.constant 0 : index
    %229 = vector.load %arg5[%c3_106, %c0_107] : memref<4x32xf32, #tpu.memory_space<vmem>>, vector<1x32xf32>
    %cst_108 = arith.constant dense<0.000000e+00> : vector<8xf32>
    %230 = vector.multi_reduction <add>, %227, %cst_108 [1] : vector<8x32xf32> to vector<8xf32>
    %231 = vector.shape_cast %230 : vector<8xf32> to vector<8x1xf32>
    %cst_109 = arith.constant 3.200000e+01 : f32
    %232 = vector.broadcast %cst_109 : f32 to vector<8x1xf32>
    %233 = arith.divf %231, %232 : vector<8x1xf32>
    %234 = vector.broadcast %233 : vector<8x1xf32> to vector<8x32xf32>
    %235 = arith.subf %227, %234 : vector<8x32xf32>
    %236 = arith.mulf %235, %235 : vector<8x32xf32>
    %cst_110 = arith.constant dense<0.000000e+00> : vector<8xf32>
    %237 = vector.multi_reduction <add>, %236, %cst_110 [1] : vector<8x32xf32> to vector<8xf32>
    %238 = vector.shape_cast %237 : vector<8xf32> to vector<8x1xf32>
    %cst_111 = arith.constant 3.200000e+01 : f32
    %239 = vector.broadcast %cst_111 : f32 to vector<8x1xf32>
    %240 = arith.divf %238, %239 : vector<8x1xf32>
    %241 = vector.broadcast %233 : vector<8x1xf32> to vector<8x32xf32>
    %242 = arith.subf %227, %241 : vector<8x32xf32>
    %cst_112 = arith.constant 9.99999974E-6 : f32
    %243 = vector.broadcast %cst_112 : f32 to vector<8x1xf32>
    %244 = arith.addf %240, %243 : vector<8x1xf32>
    %245 = math.rsqrt %244 : vector<8x1xf32>
    %246 = vector.broadcast %245 : vector<8x1xf32> to vector<8x32xf32>
    %247 = arith.mulf %242, %246 : vector<8x32xf32>
    %248 = vector.broadcast %228 : vector<1x32xf32> to vector<8x32xf32>
    %249 = arith.mulf %247, %248 : vector<8x32xf32>
    %250 = vector.broadcast %229 : vector<1x32xf32> to vector<8x32xf32>
    %251 = arith.addf %249, %250 : vector<8x32xf32>
    %c8_113 = arith.constant 8 : index
    %c0_114 = arith.constant 0 : index
    %252 = vector.load %arg15[%c8_113, %c0_114] : memref<24x32xf32, #tpu.memory_space<vmem>>, vector<8x32xf32>
    tpu.vector_store %arg15[%c8_113, %c0_114], %251 {strides = array<i32>} : memref<24x32xf32, #tpu.memory_space<vmem>>, vector<8x32xf32>,
    %c3_115 = arith.constant 3 : index
    %c0_116 = arith.constant 0 : index
    %c0_117 = arith.constant 0 : index
    %253 = vector.load %arg6[%c3_115, %c0_116, %c0_117] : memref<4x7x32xf32, #tpu.memory_space<vmem>>, vector<1x7x32xf32>
    %254 = vector.shape_cast %253 : vector<1x7x32xf32> to vector<7x32xf32>
    %cst_118 = arith.constant 0.000000e+00 : f32
    %255 = vector.broadcast %cst_118 : f32 to vector<8x32xf32>
    %c5_119 = arith.constant 5 : index
    %c0_120 = arith.constant 0 : index
    %256 = vector.load %arg15[%c5_119, %c0_120] : memref<24x32xf32, #tpu.memory_space<vmem>>, vector<8x32xf32>
    %257 = vector.extract_strided_slice %254 {offsets = [0, 0], sizes = [1, 32], strides = [1, 1]} : vector<7x32xf32> to vector<1x32xf32>
    %258 = vector.broadcast %257 : vector<1x32xf32> to vector<8x32xf32>
    %259 = arith.mulf %256, %258 : vector<8x32xf32>
    %260 = arith.addf %255, %259 : vector<8x32xf32>
    %c6_121 = arith.constant 6 : index
    %c0_122 = arith.constant 0 : index
    %261 = vector.load %arg15[%c6_121, %c0_122] : memref<24x32xf32, #tpu.memory_space<vmem>>, vector<8x32xf32>
    %262 = vector.extract_strided_slice %254 {offsets = [1, 0], sizes = [1, 32], strides = [1, 1]} : vector<7x32xf32> to vector<1x32xf32>
    %263 = vector.broadcast %262 : vector<1x32xf32> to vector<8x32xf32>
    %264 = arith.mulf %261, %263 : vector<8x32xf32>
    %265 = arith.addf %260, %264 : vector<8x32xf32>
    %c7_123 = arith.constant 7 : index
    %c0_124 = arith.constant 0 : index
    %266 = vector.load %arg15[%c7_123, %c0_124] : memref<24x32xf32, #tpu.memory_space<vmem>>, vector<8x32xf32>
    %267 = vector.extract_strided_slice %254 {offsets = [2, 0], sizes = [1, 32], strides = [1, 1]} : vector<7x32xf32> to vector<1x32xf32>
    %268 = vector.broadcast %267 : vector<1x32xf32> to vector<8x32xf32>
    %269 = arith.mulf %266, %268 : vector<8x32xf32>
    %270 = arith.addf %265, %269 : vector<8x32xf32>
    %c8_125 = arith.constant 8 : index
    %c0_126 = arith.constant 0 : index
    %271 = vector.load %arg15[%c8_125, %c0_126] : memref<24x32xf32, #tpu.memory_space<vmem>>, vector<8x32xf32>
    %272 = vector.extract_strided_slice %254 {offsets = [3, 0], sizes = [1, 32], strides = [1, 1]} : vector<7x32xf32> to vector<1x32xf32>
    %273 = vector.broadcast %272 : vector<1x32xf32> to vector<8x32xf32>
    %274 = arith.mulf %271, %273 : vector<8x32xf32>
    %275 = arith.addf %270, %274 : vector<8x32xf32>
    %c9_127 = arith.constant 9 : index
    %c0_128 = arith.constant 0 : index
    %276 = vector.load %arg15[%c9_127, %c0_128] : memref<24x32xf32, #tpu.memory_space<vmem>>, vector<8x32xf32>
    %277 = vector.extract_strided_slice %254 {offsets = [4, 0], sizes = [1, 32], strides = [1, 1]} : vector<7x32xf32> to vector<1x32xf32>
    %278 = vector.broadcast %277 : vector<1x32xf32> to vector<8x32xf32>
    %279 = arith.mulf %276, %278 : vector<8x32xf32>
    %280 = arith.addf %275, %279 : vector<8x32xf32>
    %c10_129 = arith.constant 10 : index
    %c0_130 = arith.constant 0 : index
    %281 = vector.load %arg15[%c10_129, %c0_130] : memref<24x32xf32, #tpu.memory_space<vmem>>, vector<8x32xf32>
    %282 = vector.extract_strided_slice %254 {offsets = [5, 0], sizes = [1, 32], strides = [1, 1]} : vector<7x32xf32> to vector<1x32xf32>
    %283 = vector.broadcast %282 : vector<1x32xf32> to vector<8x32xf32>
    %284 = arith.mulf %281, %283 : vector<8x32xf32>
    %285 = arith.addf %280, %284 : vector<8x32xf32>
    %c11_131 = arith.constant 11 : index
    %c0_132 = arith.constant 0 : index
    %286 = vector.load %arg15[%c11_131, %c0_132] : memref<24x32xf32, #tpu.memory_space<vmem>>, vector<8x32xf32>
    %287 = vector.extract_strided_slice %254 {offsets = [6, 0], sizes = [1, 32], strides = [1, 1]} : vector<7x32xf32> to vector<1x32xf32>
    %288 = vector.broadcast %287 : vector<1x32xf32> to vector<8x32xf32>
    %289 = arith.mulf %286, %288 : vector<8x32xf32>
    %290 = arith.addf %285, %289 : vector<8x32xf32>
    %c3_133 = arith.constant 3 : index
    %c0_134 = arith.constant 0 : index
    %c0_135 = arith.constant 0 : index
    %291 = vector.load %arg7[%c3_133, %c0_134, %c0_135] : memref<4x32x32xf32, #tpu.memory_space<vmem>>, vector<1x32x32xf32>
    %292 = vector.shape_cast %291 : vector<1x32x32xf32> to vector<32x32xf32>
    %293 = arith.truncf %290 : vector<8x32xf32> to vector<8x32xbf16>
    %294 = arith.truncf %292 : vector<32x32xf32> to vector<32x32xbf16>
    %cst_136 = arith.constant dense<0.000000e+00> : vector<8x32xf32>
    %295 = tpu.matmul %293, %294, %cst_136 {dimension_numbers = #tpu.dot_dimension_numbers<[1], [0], [0], [1], [0, 0, 1, 1], [], []>} : vector<8x32xbf16>, vector<32x32xbf16>, vector<8x32xf32> -> vector<8x32xf32>
    %c3_137 = arith.constant 3 : index
    %c0_138 = arith.constant 0 : index
    %296 = vector.load %arg8[%c3_137, %c0_138] : memref<4x32xf32, #tpu.memory_space<vmem>>, vector<1x32xf32>
    %297 = vector.broadcast %296 : vector<1x32xf32> to vector<8x32xf32>
    %298 = arith.addf %295, %297 : vector<8x32xf32>
    %cst_139 = arith.constant 0.000000e+00 : f32
    %299 = vector.broadcast %cst_139 : f32 to vector<8x32xf32>
    %300 = arith.maximumf %298, %299 : vector<8x32xf32>
    %301 = arith.addf %300, %227 : vector<8x32xf32>
    %c0_140 = arith.constant 0 : index
    %c0_141 = arith.constant 0 : index
    %302 = vector.load %arg9[%c0_140, %c0_141] : memref<2x32xf32, #tpu.memory_space<vmem>>, vector<1x32xf32>
    %c0_142 = arith.constant 0 : index
    %c0_143 = arith.constant 0 : index
    %303 = vector.load %arg10[%c0_142, %c0_143] : memref<2x32xf32, #tpu.memory_space<vmem>>, vector<1x32xf32>
    %cst_144 = arith.constant dense<0.000000e+00> : vector<8xf32>
    %304 = vector.multi_reduction <add>, %301, %cst_144 [1] : vector<8x32xf32> to vector<8xf32>
    %305 = vector.shape_cast %304 : vector<8xf32> to vector<8x1xf32>
    %cst_145 = arith.constant 3.200000e+01 : f32
    %306 = vector.broadcast %cst_145 : f32 to vector<8x1xf32>
    %307 = arith.divf %305, %306 : vector<8x1xf32>
    %308 = vector.broadcast %307 : vector<8x1xf32> to vector<8x32xf32>
    %309 = arith.subf %301, %308 : vector<8x32xf32>
    %310 = arith.mulf %309, %309 : vector<8x32xf32>
    %cst_146 = arith.constant dense<0.000000e+00> : vector<8xf32>
    %311 = vector.multi_reduction <add>, %310, %cst_146 [1] : vector<8x32xf32> to vector<8xf32>
    %312 = vector.shape_cast %311 : vector<8xf32> to vector<8x1xf32>
    %cst_147 = arith.constant 3.200000e+01 : f32
    %313 = vector.broadcast %cst_147 : f32 to vector<8x1xf32>
    %314 = arith.divf %312, %313 : vector<8x1xf32>
    %315 = vector.broadcast %307 : vector<8x1xf32> to vector<8x32xf32>
    %316 = arith.subf %301, %315 : vector<8x32xf32>
    %cst_148 = arith.constant 9.99999974E-6 : f32
    %317 = vector.broadcast %cst_148 : f32 to vector<8x1xf32>
    %318 = arith.addf %314, %317 : vector<8x1xf32>
    %319 = math.rsqrt %318 : vector<8x1xf32>
    %320 = vector.broadcast %319 : vector<8x1xf32> to vector<8x32xf32>
    %321 = arith.mulf %316, %320 : vector<8x32xf32>
    %322 = vector.broadcast %302 : vector<1x32xf32> to vector<8x32xf32>
    %323 = arith.mulf %321, %322 : vector<8x32xf32>
    %324 = vector.broadcast %303 : vector<1x32xf32> to vector<8x32xf32>
    %325 = arith.addf %323, %324 : vector<8x32xf32>
    %c0_149 = arith.constant 0 : index
    %c0_150 = arith.constant 0 : index
    %c0_151 = arith.constant 0 : index
    %326 = vector.load %arg11[%c0_149, %c0_150, %c0_151] : memref<3x32x32xf32, #tpu.memory_space<vmem>>, vector<1x32x32xf32>
    %327 = vector.shape_cast %326 : vector<1x32x32xf32> to vector<32x32xf32>
    %328 = arith.truncf %325 : vector<8x32xf32> to vector<8x32xbf16>
    %329 = arith.truncf %327 : vector<32x32xf32> to vector<32x32xbf16>
    %cst_152 = arith.constant dense<0.000000e+00> : vector<8x32xf32>
    %330 = tpu.matmul %328, %329, %cst_152 {dimension_numbers = #tpu.dot_dimension_numbers<[1], [0], [0], [1], [0, 0, 1, 1], [], []>} : vector<8x32xbf16>, vector<32x32xbf16>, vector<8x32xf32> -> vector<8x32xf32>
    %c1_153 = arith.constant 1 : index
    %c0_154 = arith.constant 0 : index
    %c0_155 = arith.constant 0 : index
    %331 = vector.load %arg11[%c1_153, %c0_154, %c0_155] : memref<3x32x32xf32, #tpu.memory_space<vmem>>, vector<1x32x32xf32>
    %332 = vector.shape_cast %331 : vector<1x32x32xf32> to vector<32x32xf32>
    %333 = arith.truncf %325 : vector<8x32xf32> to vector<8x32xbf16>
    %334 = arith.truncf %332 : vector<32x32xf32> to vector<32x32xbf16>
    %cst_156 = arith.constant dense<0.000000e+00> : vector<8x32xf32>
    %335 = tpu.matmul %333, %334, %cst_156 {dimension_numbers = #tpu.dot_dimension_numbers<[1], [0], [0], [1], [0, 0, 1, 1], [], []>} : vector<8x32xbf16>, vector<32x32xbf16>, vector<8x32xf32> -> vector<8x32xf32>
    %c2_157 = arith.constant 2 : index
    %c0_158 = arith.constant 0 : index
    %c0_159 = arith.constant 0 : index
    %336 = vector.load %arg11[%c2_157, %c0_158, %c0_159] : memref<3x32x32xf32, #tpu.memory_space<vmem>>, vector<1x32x32xf32>
    %337 = vector.shape_cast %336 : vector<1x32x32xf32> to vector<32x32xf32>
    %338 = arith.truncf %325 : vector<8x32xf32> to vector<8x32xbf16>
    %339 = arith.truncf %337 : vector<32x32xf32> to vector<32x32xbf16>
    %cst_160 = arith.constant dense<0.000000e+00> : vector<8x32xf32>
    %340 = tpu.matmul %338, %339, %cst_160 {dimension_numbers = #tpu.dot_dimension_numbers<[1], [0], [0], [1], [0, 0, 1, 1], [], []>} : vector<8x32xbf16>, vector<32x32xbf16>, vector<8x32xf32> -> vector<8x32xf32>
    %cst_161 = arith.constant 0.176776692 : f32
    %341 = vector.broadcast %cst_161 : f32 to vector<8x32xf32>
    %342 = arith.mulf %340, %341 : vector<8x32xf32>
    %c0_162 = arith.constant 0 : index
    %c0_163 = arith.constant 0 : index
    %c0_164 = arith.constant 0 : index
    %343 = vector.load %arg1[%c0_162, %c0_163, %c0_164] : memref<1x1x8xf32, #tpu.memory_space<vmem>>, vector<1x1x8xf32>
    %344 = vector.shape_cast %343 : vector<1x1x8xf32> to vector<1x8xf32>
    %345 = arith.truncf %342 : vector<8x32xf32> to vector<8x32xbf16>
    %346 = arith.truncf %330 : vector<8x32xf32> to vector<8x32xbf16>
    %cst_165 = arith.constant dense<0.000000e+00> : vector<8x8xf32>
    %347 = tpu.matmul %345, %346, %cst_165 {dimension_numbers = #tpu.dot_dimension_numbers<[1], [1], [0], [0], [0, 0, 1, 0], [], []>} : vector<8x32xbf16>, vector<8x32xbf16>, vector<8x8xf32> -> vector<8x8xf32>
    %cst_166 = arith.constant 0.000000e+00 : f32
    %348 = vector.broadcast %cst_166 : f32 to vector<1x8xf32>
    %349 = arith.cmpf ogt, %344, %348 : vector<1x8xf32>
    %cst_167 = arith.constant -1.000000e+30 : f32
    %350 = vector.shape_cast %349 : vector<1x8xi1> to vector<1x8xi1>
    %351 = vector.broadcast %350 : vector<1x8xi1> to vector<8x8xi1>
    %352 = vector.broadcast %cst_167 : f32 to vector<8x8xf32>
    %353 = arith.select %351, %347, %352 : vector<8x8xi1>, vector<8x8xf32>
    %cst_168 = arith.constant dense<0xFF800000> : vector<8xf32>
    %354 = vector.multi_reduction <maximumf>, %353, %cst_168 [1] : vector<8x8xf32> to vector<8xf32>
    %355 = vector.shape_cast %354 : vector<8xf32> to vector<8x1xf32>
    %356 = vector.broadcast %355 : vector<8x1xf32> to vector<8x8xf32>
    %357 = arith.subf %353, %356 : vector<8x8xf32>
    %358 = math.exp %357 : vector<8x8xf32>
    %cst_169 = arith.constant dense<0.000000e+00> : vector<8xf32>
    %359 = vector.multi_reduction <add>, %358, %cst_169 [1] : vector<8x8xf32> to vector<8xf32>
    %360 = vector.shape_cast %359 : vector<8xf32> to vector<8x1xf32>
    %361 = tpu.reciprocal %360 {approx = true} : vector<8x1xf32> -> vector<8x1xf32>
    %362 = vector.broadcast %361 : vector<8x1xf32> to vector<8x8xf32>
    %363 = arith.mulf %358, %362 : vector<8x8xf32>
    %364 = arith.truncf %363 : vector<8x8xf32> to vector<8x8xbf16>
    %365 = arith.truncf %335 : vector<8x32xf32> to vector<8x32xbf16>
    %cst_170 = arith.constant dense<0.000000e+00> : vector<8x32xf32>
    %366 = tpu.matmul %364, %365, %cst_170 {dimension_numbers = #tpu.dot_dimension_numbers<[1], [0], [0], [1], [0, 0, 1, 1], [], []>} : vector<8x8xbf16>, vector<8x32xbf16>, vector<8x32xf32> -> vector<8x32xf32>
    %367 = arith.addf %366, %301 : vector<8x32xf32>
    %c1_171 = arith.constant 1 : index
    %c0_172 = arith.constant 0 : index
    %368 = vector.load %arg9[%c1_171, %c0_172] : memref<2x32xf32, #tpu.memory_space<vmem>>, vector<1x32xf32>
    %c1_173 = arith.constant 1 : index
    %c0_174 = arith.constant 0 : index
    %369 = vector.load %arg10[%c1_173, %c0_174] : memref<2x32xf32, #tpu.memory_space<vmem>>, vector<1x32xf32>
    %cst_175 = arith.constant dense<0.000000e+00> : vector<8xf32>
    %370 = vector.multi_reduction <add>, %367, %cst_175 [1] : vector<8x32xf32> to vector<8xf32>
    %371 = vector.shape_cast %370 : vector<8xf32> to vector<8x1xf32>
    %cst_176 = arith.constant 3.200000e+01 : f32
    %372 = vector.broadcast %cst_176 : f32 to vector<8x1xf32>
    %373 = arith.divf %371, %372 : vector<8x1xf32>
    %374 = vector.broadcast %373 : vector<8x1xf32> to vector<8x32xf32>
    %375 = arith.subf %367, %374 : vector<8x32xf32>
    %376 = arith.mulf %375, %375 : vector<8x32xf32>
    %cst_177 = arith.constant dense<0.000000e+00> : vector<8xf32>
    %377 = vector.multi_reduction <add>, %376, %cst_177 [1] : vector<8x32xf32> to vector<8xf32>
    %378 = vector.shape_cast %377 : vector<8xf32> to vector<8x1xf32>
    %cst_178 = arith.constant 3.200000e+01 : f32
    %379 = vector.broadcast %cst_178 : f32 to vector<8x1xf32>
    %380 = arith.divf %378, %379 : vector<8x1xf32>
    %381 = vector.broadcast %373 : vector<8x1xf32> to vector<8x32xf32>
    %382 = arith.subf %367, %381 : vector<8x32xf32>
    %cst_179 = arith.constant 9.99999974E-6 : f32
    %383 = vector.broadcast %cst_179 : f32 to vector<8x1xf32>
    %384 = arith.addf %380, %383 : vector<8x1xf32>
    %385 = math.rsqrt %384 : vector<8x1xf32>
    %386 = vector.broadcast %385 : vector<8x1xf32> to vector<8x32xf32>
    %387 = arith.mulf %382, %386 : vector<8x32xf32>
    %388 = vector.broadcast %368 : vector<1x32xf32> to vector<8x32xf32>
    %389 = arith.mulf %387, %388 : vector<8x32xf32>
    %390 = vector.broadcast %369 : vector<1x32xf32> to vector<8x32xf32>
    %391 = arith.addf %389, %390 : vector<8x32xf32>
    %c0_180 = arith.constant 0 : index
    %c0_181 = arith.constant 0 : index
    %c0_182 = arith.constant 0 : index
    %392 = vector.load %arg12[%c0_180, %c0_181, %c0_182] : memref<2x32x32xf32, #tpu.memory_space<vmem>>, vector<1x32x32xf32>
    %393 = vector.shape_cast %392 : vector<1x32x32xf32> to vector<32x32xf32>
    %394 = arith.truncf %391 : vector<8x32xf32> to vector<8x32xbf16>
    %395 = arith.truncf %393 : vector<32x32xf32> to vector<32x32xbf16>
    %cst_183 = arith.constant dense<0.000000e+00> : vector<8x32xf32>
    %396 = tpu.matmul %394, %395, %cst_183 {dimension_numbers = #tpu.dot_dimension_numbers<[1], [0], [0], [1], [0, 0, 1, 1], [], []>} : vector<8x32xbf16>, vector<32x32xbf16>, vector<8x32xf32> -> vector<8x32xf32>
    %c0_184 = arith.constant 0 : index
    %c0_185 = arith.constant 0 : index
    %397 = vector.load %arg13[%c0_184, %c0_185] : memref<2x32xf32, #tpu.memory_space<vmem>>, vector<1x32xf32>
    %398 = vector.broadcast %397 : vector<1x32xf32> to vector<8x32xf32>
    %399 = arith.addf %396, %398 : vector<8x32xf32>
    %cst_186 = arith.constant 0.000000e+00 : f32
    %400 = vector.broadcast %cst_186 : f32 to vector<8x32xf32>
    %401 = arith.maximumf %399, %400 : vector<8x32xf32>
    %c1_187 = arith.constant 1 : index
    %c0_188 = arith.constant 0 : index
    %c0_189 = arith.constant 0 : index
    %402 = vector.load %arg12[%c1_187, %c0_188, %c0_189] : memref<2x32x32xf32, #tpu.memory_space<vmem>>, vector<1x32x32xf32>
    %403 = vector.shape_cast %402 : vector<1x32x32xf32> to vector<32x32xf32>
    %404 = arith.truncf %401 : vector<8x32xf32> to vector<8x32xbf16>
    %405 = arith.truncf %403 : vector<32x32xf32> to vector<32x32xbf16>
    %cst_190 = arith.constant dense<0.000000e+00> : vector<8x32xf32>
    %406 = tpu.matmul %404, %405, %cst_190 {dimension_numbers = #tpu.dot_dimension_numbers<[1], [0], [0], [1], [0, 0, 1, 1], [], []>} : vector<8x32xbf16>, vector<32x32xbf16>, vector<8x32xf32> -> vector<8x32xf32>
    %c1_191 = arith.constant 1 : index
    %c0_192 = arith.constant 0 : index
    %407 = vector.load %arg13[%c1_191, %c0_192] : memref<2x32xf32, #tpu.memory_space<vmem>>, vector<1x32xf32>
    %408 = vector.broadcast %407 : vector<1x32xf32> to vector<8x32xf32>
    %409 = arith.addf %406, %408 : vector<8x32xf32>
    %410 = arith.addf %409, %367 : vector<8x32xf32>
    %c0_193 = arith.constant 0 : index
    %c0_194 = arith.constant 0 : index
    %c0_195 = arith.constant 0 : index
    %411 = vector.load %arg14[%c0_193, %c0_194, %c0_195] : memref<1x8x32xf32, #tpu.memory_space<vmem>>, vector<1x8x32xf32>
    %412 = vector.shape_cast %411 : vector<1x8x32xf32> to vector<8x32xf32>
    %413 = vector.shape_cast %410 : vector<8x32xf32> to vector<1x8x32xf32>
    tpu.vector_store %arg14[%c0_193, %c0_194, %c0_195], %413 {strides = array<i32>} : memref<1x8x32xf32, #tpu.memory_space<vmem>>, vector<1x8x32xf32>,
    return
  }
  func.func @transform_0(%arg0: i32) -> (i32, i32, i32) {
    %c0_i32 = arith.constant 0 : i32
    %c0_i32_0 = arith.constant 0 : i32
    %c0_i32_1 = arith.constant 0 : i32
    return %arg0, %c0_i32, %c0_i32_0 : i32, i32, i32
  }
  func.func @transform_1(%arg0: i32) -> (i32, i32, i32) {
    %c0_i32 = arith.constant 0 : i32
    %c0_i32_0 = arith.constant 0 : i32
    %c0_i32_1 = arith.constant 0 : i32
    return %arg0, %c0_i32, %c0_i32_0 : i32, i32, i32
  }
  func.func @transform_2(%arg0: i32) -> (i32, i32) {
    %c0_i32 = arith.constant 0 : i32
    %c0_i32_0 = arith.constant 0 : i32
    %c0_i32_1 = arith.constant 0 : i32
    return %c0_i32, %c0_i32_0 : i32, i32
  }
  func.func @transform_3(%arg0: i32) -> (i32, i32) {
    %c0_i32 = arith.constant 0 : i32
    %c0_i32_0 = arith.constant 0 : i32
    %c0_i32_1 = arith.constant 0 : i32
    return %c0_i32, %c0_i32_0 : i32, i32
  }
  func.func @transform_4(%arg0: i32) -> (i32, i32) {
    %c0_i32 = arith.constant 0 : i32
    %c0_i32_0 = arith.constant 0 : i32
    %c0_i32_1 = arith.constant 0 : i32
    return %c0_i32, %c0_i32_0 : i32, i32
  }
  func.func @transform_5(%arg0: i32) -> (i32, i32, i32) {
    %c0_i32 = arith.constant 0 : i32
    %c0_i32_0 = arith.constant 0 : i32
    %c0_i32_1 = arith.constant 0 : i32
    %c0_i32_2 = arith.constant 0 : i32
    return %c0_i32, %c0_i32_0, %c0_i32_1 : i32, i32, i32
  }
  func.func @transform_6(%arg0: i32) -> (i32, i32, i32) {
    %c0_i32 = arith.constant 0 : i32
    %c0_i32_0 = arith.constant 0 : i32
    %c0_i32_1 = arith.constant 0 : i32
    %c0_i32_2 = arith.constant 0 : i32
    return %c0_i32, %c0_i32_0, %c0_i32_1 : i32, i32, i32
  }
  func.func @transform_7(%arg0: i32) -> (i32, i32) {
    %c0_i32 = arith.constant 0 : i32
    %c0_i32_0 = arith.constant 0 : i32
    %c0_i32_1 = arith.constant 0 : i32
    return %c0_i32, %c0_i32_0 : i32, i32
  }
  func.func @transform_8(%arg0: i32) -> (i32, i32) {
    %c0_i32 = arith.constant 0 : i32
    %c0_i32_0 = arith.constant 0 : i32
    %c0_i32_1 = arith.constant 0 : i32
    return %c0_i32, %c0_i32_0 : i32, i32
  }
  func.func @transform_9(%arg0: i32) -> (i32, i32) {
    %c0_i32 = arith.constant 0 : i32
    %c0_i32_0 = arith.constant 0 : i32
    %c0_i32_1 = arith.constant 0 : i32
    return %c0_i32, %c0_i32_0 : i32, i32
  }
  func.func @transform_10(%arg0: i32) -> (i32, i32, i32) {
    %c0_i32 = arith.constant 0 : i32
    %c0_i32_0 = arith.constant 0 : i32
    %c0_i32_1 = arith.constant 0 : i32
    %c0_i32_2 = arith.constant 0 : i32
    return %c0_i32, %c0_i32_0, %c0_i32_1 : i32, i32, i32
  }
  func.func @transform_11(%arg0: i32) -> (i32, i32, i32) {
    %c0_i32 = arith.constant 0 : i32
    %c0_i32_0 = arith.constant 0 : i32
    %c0_i32_1 = arith.constant 0 : i32
    %c0_i32_2 = arith.constant 0 : i32
    return %c0_i32, %c0_i32_0, %c0_i32_1 : i32, i32, i32
  }
  func.func @transform_12(%arg0: i32) -> (i32, i32) {
    %c0_i32 = arith.constant 0 : i32
    %c0_i32_0 = arith.constant 0 : i32
    %c0_i32_1 = arith.constant 0 : i32
    return %c0_i32, %c0_i32_0 : i32, i32
  }
  func.func @transform_13(%arg0: i32) -> (i32, i32, i32) {
    %c0_i32 = arith.constant 0 : i32
    %c0_i32_0 = arith.constant 0 : i32
    %c0_i32_1 = arith.constant 0 : i32
    return %arg0, %c0_i32, %c0_i32_0 : i32, i32, i32
  }
}

module attributes {stable_mosaic.version = 11 : i64} {
  func.func @_cqatt_kernel(%arg0: i32, %arg1: memref<1x16x32xf32, #tpu.memory_space<vmem>>, %arg2: memref<1x8x32xf32, #tpu.memory_space<vmem>>, %arg3: memref<1x32xf32, #tpu.memory_space<vmem>>, %arg4: memref<1x32xf32, #tpu.memory_space<vmem>>, %arg5: memref<1x32xf32, #tpu.memory_space<vmem>>, %arg6: memref<1x1xf32, #tpu.memory_space<vmem>>, %arg7: memref<1x16x1xf32, #tpu.memory_space<vmem>>, %arg8: memref<1x1x8xf32, #tpu.memory_space<vmem>>, %arg9: memref<4x32x32xf32, #tpu.memory_space<vmem>>, %arg10: memref<1x16x32xf32, #tpu.memory_space<vmem>>) attributes {dimension_semantics = [#tpu.dimension_semantics<parallel>], iteration_bounds = array<i64: 2>, scalar_prefetch = 0 : i64, scratch_operands = 0 : i64, tpu.core_type = #tpu.core_type<tc>, window_params = [{transform_indices = @transform_0, window_bounds = array<i64: 1, 16, 32>}, {transform_indices = @transform_1, window_bounds = array<i64: 1, 8, 32>}, {pipeline_mode = #tpu.pipeline_mode<synchronous>, transform_indices = @transform_2, window_bounds = array<i64: 1, 32>}, {pipeline_mode = #tpu.pipeline_mode<synchronous>, transform_indices = @transform_3, window_bounds = array<i64: 1, 32>}, {pipeline_mode = #tpu.pipeline_mode<synchronous>, transform_indices = @transform_4, window_bounds = array<i64: 1, 32>}, {pipeline_mode = #tpu.pipeline_mode<synchronous>, transform_indices = @transform_5, window_bounds = array<i64: 1, 1>}, {transform_indices = @transform_6, window_bounds = array<i64: 1, 16, 1>}, {transform_indices = @transform_7, window_bounds = array<i64: 1, 1, 8>}, {pipeline_mode = #tpu.pipeline_mode<synchronous>, transform_indices = @transform_8, window_bounds = array<i64: 4, 32, 32>}, {transform_indices = @transform_9, window_bounds = array<i64: 1, 16, 32>}]} {
    %c0 = arith.constant 0 : index
    %c0_0 = arith.constant 0 : index
    %c0_1 = arith.constant 0 : index
    %0 = vector.load %arg1[%c0, %c0_0, %c0_1] : memref<1x16x32xf32, #tpu.memory_space<vmem>>, vector<1x16x32xf32>
    %1 = vector.shape_cast %0 : vector<1x16x32xf32> to vector<16x32xf32>
    %c0_2 = arith.constant 0 : index
    %c0_3 = arith.constant 0 : index
    %c0_4 = arith.constant 0 : index
    %2 = vector.load %arg2[%c0_2, %c0_3, %c0_4] : memref<1x8x32xf32, #tpu.memory_space<vmem>>, vector<1x8x32xf32>
    %3 = vector.shape_cast %2 : vector<1x8x32xf32> to vector<8x32xf32>
    %c0_5 = arith.constant 0 : index
    %c0_6 = arith.constant 0 : index
    %4 = vector.load %arg3[%c0_5, %c0_6] : memref<1x32xf32, #tpu.memory_space<vmem>>, vector<1x32xf32>
    %c0_7 = arith.constant 0 : index
    %c0_8 = arith.constant 0 : index
    %5 = vector.load %arg4[%c0_7, %c0_8] : memref<1x32xf32, #tpu.memory_space<vmem>>, vector<1x32xf32>
    %c0_9 = arith.constant 0 : index
    %c0_10 = arith.constant 0 : index
    %6 = vector.load %arg5[%c0_9, %c0_10] : memref<1x32xf32, #tpu.memory_space<vmem>>, vector<1x32xf32>
    %7 = vector.broadcast %4 : vector<1x32xf32> to vector<16x32xf32>
    %8 = arith.mulf %1, %7 : vector<16x32xf32>
    %cst = arith.constant dense<0.000000e+00> : vector<16xf32>
    %9 = vector.multi_reduction <add>, %8, %cst [1] : vector<16x32xf32> to vector<16xf32>
    %10 = vector.shape_cast %9 : vector<16xf32> to vector<16x1xf32>
    %11 = arith.truncf %5 : vector<1x32xf32> to vector<1x32xbf16>
    %12 = arith.truncf %3 : vector<8x32xf32> to vector<8x32xbf16>
    %cst_11 = arith.constant dense<0.000000e+00> : vector<1x8xf32>
    %13 = tpu.matmul %11, %12, %cst_11 {dimension_numbers = #tpu.dot_dimension_numbers<[1], [1], [0], [0], [0, 0, 1, 0], [], []>} : vector<1x32xbf16>, vector<8x32xbf16>, vector<1x8xf32> -> vector<1x8xf32>
    %14 = vector.broadcast %6 : vector<1x32xf32> to vector<16x32xf32>
    %15 = arith.mulf %1, %14 : vector<16x32xf32>
    %16 = arith.truncf %15 : vector<16x32xf32> to vector<16x32xbf16>
    %17 = arith.truncf %3 : vector<8x32xf32> to vector<8x32xbf16>
    %cst_12 = arith.constant dense<0.000000e+00> : vector<16x8xf32>
    %18 = tpu.matmul %16, %17, %cst_12 {dimension_numbers = #tpu.dot_dimension_numbers<[1], [1], [0], [0], [0, 0, 1, 0], [], []>} : vector<16x32xbf16>, vector<8x32xbf16>, vector<16x8xf32> -> vector<16x8xf32>
    %19 = vector.broadcast %10 : vector<16x1xf32> to vector<16x8xf32>
    %20 = arith.addf %18, %19 : vector<16x8xf32>
    %21 = vector.broadcast %13 : vector<1x8xf32> to vector<16x8xf32>
    %22 = arith.addf %20, %21 : vector<16x8xf32>
    %c0_13 = arith.constant 0 : index
    %c0_14 = arith.constant 0 : index
    %23 = vector.load %arg6[%c0_13, %c0_14] : memref<1x1xf32, #tpu.memory_space<vmem>>, vector<1x1xf32>
    %24 = vector.broadcast %23 : vector<1x1xf32> to vector<16x8xf32>
    %25 = arith.addf %22, %24 : vector<16x8xf32>
    %c0_15 = arith.constant 0 : index
    %c0_16 = arith.constant 0 : index
    %c0_17 = arith.constant 0 : index
    %26 = vector.load %arg7[%c0_15, %c0_16, %c0_17] : memref<1x16x1xf32, #tpu.memory_space<vmem>>, vector<1x16x1xf32>
    %27 = vector.shape_cast %26 : vector<1x16x1xf32> to vector<16x1xf32>
    %c0_18 = arith.constant 0 : index
    %c0_19 = arith.constant 0 : index
    %c0_20 = arith.constant 0 : index
    %28 = vector.load %arg8[%c0_18, %c0_19, %c0_20] : memref<1x1x8xf32, #tpu.memory_space<vmem>>, vector<1x1x8xf32>
    %29 = vector.shape_cast %28 : vector<1x1x8xf32> to vector<1x8xf32>
    %cst_21 = arith.constant 0.000000e+00 : f32
    %30 = vector.broadcast %cst_21 : f32 to vector<1x8xf32>
    %31 = arith.cmpf ogt, %29, %30 : vector<1x8xf32>
    %cst_22 = arith.constant -1.000000e+30 : f32
    %32 = vector.shape_cast %31 : vector<1x8xi1> to vector<1x8xi1>
    %33 = vector.broadcast %32 : vector<1x8xi1> to vector<16x8xi1>
    %34 = vector.broadcast %cst_22 : f32 to vector<16x8xf32>
    %35 = arith.select %33, %25, %34 : vector<16x8xi1>, vector<16x8xf32>
    %cst_23 = arith.constant dense<0xFF800000> : vector<16xf32>
    %36 = vector.multi_reduction <maximumf>, %35, %cst_23 [1] : vector<16x8xf32> to vector<16xf32>
    %37 = vector.shape_cast %36 : vector<16xf32> to vector<16x1xf32>
    %38 = vector.broadcast %37 : vector<16x1xf32> to vector<16x8xf32>
    %39 = arith.subf %35, %38 : vector<16x8xf32>
    %40 = math.exp %39 : vector<16x8xf32>
    %cst_24 = arith.constant dense<0.000000e+00> : vector<16xf32>
    %41 = vector.multi_reduction <add>, %40, %cst_24 [1] : vector<16x8xf32> to vector<16xf32>
    %42 = vector.shape_cast %41 : vector<16xf32> to vector<16x1xf32>
    %43 = tpu.reciprocal %42 {approx = true} : vector<16x1xf32> -> vector<16x1xf32>
    %44 = vector.broadcast %43 : vector<16x1xf32> to vector<16x8xf32>
    %45 = arith.mulf %40, %44 : vector<16x8xf32>
    %cst_25 = arith.constant 0.000000e+00 : f32
    %46 = vector.broadcast %cst_25 : f32 to vector<16x1xf32>
    %47 = arith.cmpf ogt, %27, %46 : vector<16x1xf32>
    %cst_26 = arith.constant -1.000000e+30 : f32
    %48 = vector.shape_cast %47 : vector<16x1xi1> to vector<16x1xi1>
    %49 = vector.broadcast %48 : vector<16x1xi1> to vector<16x8xi1>
    %50 = vector.broadcast %cst_26 : f32 to vector<16x8xf32>
    %51 = arith.select %49, %25, %50 : vector<16x8xi1>, vector<16x8xf32>
    %cst_27 = arith.constant dense<0xFF800000> : vector<8xf32>
    %52 = vector.multi_reduction <maximumf>, %51, %cst_27 [0] : vector<16x8xf32> to vector<8xf32>
    %53 = vector.shape_cast %52 : vector<8xf32> to vector<1x8xf32>
    %54 = vector.broadcast %53 : vector<1x8xf32> to vector<16x8xf32>
    %55 = arith.subf %51, %54 : vector<16x8xf32>
    %56 = math.exp %55 : vector<16x8xf32>
    %cst_28 = arith.constant dense<0.000000e+00> : vector<8xf32>
    %57 = vector.multi_reduction <add>, %56, %cst_28 [0] : vector<16x8xf32> to vector<8xf32>
    %58 = vector.shape_cast %57 : vector<8xf32> to vector<1x8xf32>
    %59 = tpu.reciprocal %58 {approx = true} : vector<1x8xf32> -> vector<1x8xf32>
    %60 = vector.broadcast %59 : vector<1x8xf32> to vector<16x8xf32>
    %61 = arith.mulf %56, %60 : vector<16x8xf32>
    %62 = arith.truncf %45 : vector<16x8xf32> to vector<16x8xbf16>
    %63 = arith.truncf %3 : vector<8x32xf32> to vector<8x32xbf16>
    %cst_29 = arith.constant dense<0.000000e+00> : vector<16x32xf32>
    %64 = tpu.matmul %62, %63, %cst_29 {dimension_numbers = #tpu.dot_dimension_numbers<[1], [0], [0], [1], [0, 0, 1, 1], [], []>} : vector<16x8xbf16>, vector<8x32xbf16>, vector<16x32xf32> -> vector<16x32xf32>
    %65 = arith.truncf %45 : vector<16x8xf32> to vector<16x8xbf16>
    %66 = arith.truncf %61 : vector<16x8xf32> to vector<16x8xbf16>
    %cst_30 = arith.constant dense<0.000000e+00> : vector<16x16xf32>
    %67 = tpu.matmul %65, %66, %cst_30 {dimension_numbers = #tpu.dot_dimension_numbers<[1], [1], [0], [0], [0, 0, 1, 0], [], []>} : vector<16x8xbf16>, vector<16x8xbf16>, vector<16x16xf32> -> vector<16x16xf32>
    %68 = arith.truncf %67 : vector<16x16xf32> to vector<16x16xbf16>
    %69 = arith.truncf %1 : vector<16x32xf32> to vector<16x32xbf16>
    %cst_31 = arith.constant dense<0.000000e+00> : vector<16x32xf32>
    %70 = tpu.matmul %68, %69, %cst_31 {dimension_numbers = #tpu.dot_dimension_numbers<[1], [0], [0], [1], [0, 0, 1, 1], [], []>} : vector<16x16xbf16>, vector<16x32xbf16>, vector<16x32xf32> -> vector<16x32xf32>
    %c0_32 = arith.constant 0 : index
    %c0_33 = arith.constant 0 : index
    %c0_34 = arith.constant 0 : index
    %71 = vector.load %arg9[%c0_32, %c0_33, %c0_34] : memref<4x32x32xf32, #tpu.memory_space<vmem>>, vector<1x32x32xf32>
    %72 = vector.shape_cast %71 : vector<1x32x32xf32> to vector<32x32xf32>
    %73 = arith.truncf %1 : vector<16x32xf32> to vector<16x32xbf16>
    %74 = arith.truncf %72 : vector<32x32xf32> to vector<32x32xbf16>
    %cst_35 = arith.constant dense<0.000000e+00> : vector<16x32xf32>
    %75 = tpu.matmul %73, %74, %cst_35 {dimension_numbers = #tpu.dot_dimension_numbers<[1], [0], [0], [1], [0, 0, 1, 1], [], []>} : vector<16x32xbf16>, vector<32x32xbf16>, vector<16x32xf32> -> vector<16x32xf32>
    %c1 = arith.constant 1 : index
    %c0_36 = arith.constant 0 : index
    %c0_37 = arith.constant 0 : index
    %76 = vector.load %arg9[%c1, %c0_36, %c0_37] : memref<4x32x32xf32, #tpu.memory_space<vmem>>, vector<1x32x32xf32>
    %77 = vector.shape_cast %76 : vector<1x32x32xf32> to vector<32x32xf32>
    %78 = arith.truncf %64 : vector<16x32xf32> to vector<16x32xbf16>
    %79 = arith.truncf %77 : vector<32x32xf32> to vector<32x32xbf16>
    %cst_38 = arith.constant dense<0.000000e+00> : vector<16x32xf32>
    %80 = tpu.matmul %78, %79, %cst_38 {dimension_numbers = #tpu.dot_dimension_numbers<[1], [0], [0], [1], [0, 0, 1, 1], [], []>} : vector<16x32xbf16>, vector<32x32xbf16>, vector<16x32xf32> -> vector<16x32xf32>
    %81 = arith.addf %75, %80 : vector<16x32xf32>
    %82 = arith.mulf %1, %64 : vector<16x32xf32>
    %c2 = arith.constant 2 : index
    %c0_39 = arith.constant 0 : index
    %c0_40 = arith.constant 0 : index
    %83 = vector.load %arg9[%c2, %c0_39, %c0_40] : memref<4x32x32xf32, #tpu.memory_space<vmem>>, vector<1x32x32xf32>
    %84 = vector.shape_cast %83 : vector<1x32x32xf32> to vector<32x32xf32>
    %85 = arith.truncf %82 : vector<16x32xf32> to vector<16x32xbf16>
    %86 = arith.truncf %84 : vector<32x32xf32> to vector<32x32xbf16>
    %cst_41 = arith.constant dense<0.000000e+00> : vector<16x32xf32>
    %87 = tpu.matmul %85, %86, %cst_41 {dimension_numbers = #tpu.dot_dimension_numbers<[1], [0], [0], [1], [0, 0, 1, 1], [], []>} : vector<16x32xbf16>, vector<32x32xbf16>, vector<16x32xf32> -> vector<16x32xf32>
    %88 = arith.addf %81, %87 : vector<16x32xf32>
    %89 = arith.mulf %1, %70 : vector<16x32xf32>
    %c3 = arith.constant 3 : index
    %c0_42 = arith.constant 0 : index
    %c0_43 = arith.constant 0 : index
    %90 = vector.load %arg9[%c3, %c0_42, %c0_43] : memref<4x32x32xf32, #tpu.memory_space<vmem>>, vector<1x32x32xf32>
    %91 = vector.shape_cast %90 : vector<1x32x32xf32> to vector<32x32xf32>
    %92 = arith.truncf %89 : vector<16x32xf32> to vector<16x32xbf16>
    %93 = arith.truncf %91 : vector<32x32xf32> to vector<32x32xbf16>
    %cst_44 = arith.constant dense<0.000000e+00> : vector<16x32xf32>
    %94 = tpu.matmul %92, %93, %cst_44 {dimension_numbers = #tpu.dot_dimension_numbers<[1], [0], [0], [1], [0, 0, 1, 1], [], []>} : vector<16x32xbf16>, vector<32x32xbf16>, vector<16x32xf32> -> vector<16x32xf32>
    %95 = arith.addf %88, %94 : vector<16x32xf32>
    %c0_45 = arith.constant 0 : index
    %c0_46 = arith.constant 0 : index
    %c0_47 = arith.constant 0 : index
    %96 = vector.load %arg10[%c0_45, %c0_46, %c0_47] : memref<1x16x32xf32, #tpu.memory_space<vmem>>, vector<1x16x32xf32>
    %97 = vector.shape_cast %96 : vector<1x16x32xf32> to vector<16x32xf32>
    %98 = vector.shape_cast %95 : vector<16x32xf32> to vector<1x16x32xf32>
    tpu.vector_store %arg10[%c0_45, %c0_46, %c0_47], %98 {strides = array<i32>} : memref<1x16x32xf32, #tpu.memory_space<vmem>>, vector<1x16x32xf32>,
    return
  }
  func.func @transform_0(%arg0: i32) -> (i32, i32, i32) {
    %c0_i32 = arith.constant 0 : i32
    %c0_i32_0 = arith.constant 0 : i32
    %c0_i32_1 = arith.constant 0 : i32
    return %arg0, %c0_i32, %c0_i32_0 : i32, i32, i32
  }
  func.func @transform_1(%arg0: i32) -> (i32, i32, i32) {
    %c0_i32 = arith.constant 0 : i32
    %c0_i32_0 = arith.constant 0 : i32
    %c0_i32_1 = arith.constant 0 : i32
    return %arg0, %c0_i32, %c0_i32_0 : i32, i32, i32
  }
  func.func @transform_2(%arg0: i32) -> (i32, i32) {
    %c0_i32 = arith.constant 0 : i32
    %c0_i32_0 = arith.constant 0 : i32
    %c0_i32_1 = arith.constant 0 : i32
    return %c0_i32, %c0_i32_0 : i32, i32
  }
  func.func @transform_3(%arg0: i32) -> (i32, i32) {
    %c0_i32 = arith.constant 0 : i32
    %c0_i32_0 = arith.constant 0 : i32
    %c0_i32_1 = arith.constant 0 : i32
    return %c0_i32, %c0_i32_0 : i32, i32
  }
  func.func @transform_4(%arg0: i32) -> (i32, i32) {
    %c0_i32 = arith.constant 0 : i32
    %c0_i32_0 = arith.constant 0 : i32
    %c0_i32_1 = arith.constant 0 : i32
    return %c0_i32, %c0_i32_0 : i32, i32
  }
  func.func @transform_5(%arg0: i32) -> (i32, i32) {
    %c0_i32 = arith.constant 0 : i32
    %c0_i32_0 = arith.constant 0 : i32
    %c0_i32_1 = arith.constant 0 : i32
    return %c0_i32, %c0_i32_0 : i32, i32
  }
  func.func @transform_6(%arg0: i32) -> (i32, i32, i32) {
    %c0_i32 = arith.constant 0 : i32
    %c0_i32_0 = arith.constant 0 : i32
    %c0_i32_1 = arith.constant 0 : i32
    return %arg0, %c0_i32, %c0_i32_0 : i32, i32, i32
  }
  func.func @transform_7(%arg0: i32) -> (i32, i32, i32) {
    %c0_i32 = arith.constant 0 : i32
    %c0_i32_0 = arith.constant 0 : i32
    %c0_i32_1 = arith.constant 0 : i32
    return %arg0, %c0_i32, %c0_i32_0 : i32, i32, i32
  }
  func.func @transform_8(%arg0: i32) -> (i32, i32, i32) {
    %c0_i32 = arith.constant 0 : i32
    %c0_i32_0 = arith.constant 0 : i32
    %c0_i32_1 = arith.constant 0 : i32
    %c0_i32_2 = arith.constant 0 : i32
    return %c0_i32, %c0_i32_0, %c0_i32_1 : i32, i32, i32
  }
  func.func @transform_9(%arg0: i32) -> (i32, i32, i32) {
    %c0_i32 = arith.constant 0 : i32
    %c0_i32_0 = arith.constant 0 : i32
    %c0_i32_1 = arith.constant 0 : i32
    return %arg0, %c0_i32, %c0_i32_0 : i32, i32, i32
  }
}

module attributes {stable_mosaic.version = 11 : i64} {
  func.func @_encoder_block_kernel(%arg0: i32, %arg1: memref<1x1x16xf32, #tpu.memory_space<vmem>>, %arg2: memref<1x16x32xf32, #tpu.memory_space<vmem>>, %arg3: memref<16x32xf32, #tpu.memory_space<vmem>>, %arg4: memref<2x32xf32, #tpu.memory_space<vmem>>, %arg5: memref<2x32xf32, #tpu.memory_space<vmem>>, %arg6: memref<2x5x32xf32, #tpu.memory_space<vmem>>, %arg7: memref<2x32x32xf32, #tpu.memory_space<vmem>>, %arg8: memref<2x32xf32, #tpu.memory_space<vmem>>, %arg9: memref<2x32xf32, #tpu.memory_space<vmem>>, %arg10: memref<2x32xf32, #tpu.memory_space<vmem>>, %arg11: memref<3x32x32xf32, #tpu.memory_space<vmem>>, %arg12: memref<2x32x32xf32, #tpu.memory_space<vmem>>, %arg13: memref<2x32xf32, #tpu.memory_space<vmem>>, %arg14: memref<1x16x32xf32, #tpu.memory_space<vmem>>, %arg15: memref<32x32xf32, #tpu.memory_space<vmem>>) attributes {dimension_semantics = [#tpu.dimension_semantics<parallel>], iteration_bounds = array<i64: 2>, scalar_prefetch = 0 : i64, scratch_operands = 1 : i64, tpu.core_type = #tpu.core_type<tc>, window_params = [{transform_indices = @transform_0, window_bounds = array<i64: 1, 1, 16>}, {transform_indices = @transform_1, window_bounds = array<i64: 1, 16, 32>}, {pipeline_mode = #tpu.pipeline_mode<synchronous>, transform_indices = @transform_2, window_bounds = array<i64: 16, 32>}, {pipeline_mode = #tpu.pipeline_mode<synchronous>, transform_indices = @transform_3, window_bounds = array<i64: 2, 32>}, {pipeline_mode = #tpu.pipeline_mode<synchronous>, transform_indices = @transform_4, window_bounds = array<i64: 2, 32>}, {pipeline_mode = #tpu.pipeline_mode<synchronous>, transform_indices = @transform_5, window_bounds = array<i64: 2, 5, 32>}, {pipeline_mode = #tpu.pipeline_mode<synchronous>, transform_indices = @transform_6, window_bounds = array<i64: 2, 32, 32>}, {pipeline_mode = #tpu.pipeline_mode<synchronous>, transform_indices = @transform_7, window_bounds = array<i64: 2, 32>}, {pipeline_mode = #tpu.pipeline_mode<synchronous>, transform_indices = @transform_8, window_bounds = array<i64: 2, 32>}, {pipeline_mode = #tpu.pipeline_mode<synchronous>, transform_indices = @transform_9, window_bounds = array<i64: 2, 32>}, {pipeline_mode = #tpu.pipeline_mode<synchronous>, transform_indices = @transform_10, window_bounds = array<i64: 3, 32, 32>}, {pipeline_mode = #tpu.pipeline_mode<synchronous>, transform_indices = @transform_11, window_bounds = array<i64: 2, 32, 32>}, {pipeline_mode = #tpu.pipeline_mode<synchronous>, transform_indices = @transform_12, window_bounds = array<i64: 2, 32>}, {transform_indices = @transform_13, window_bounds = array<i64: 1, 16, 32>}]} {
    %c0 = arith.constant 0 : index
    %c0_0 = arith.constant 0 : index
    %c0_1 = arith.constant 0 : index
    %0 = vector.load %arg2[%c0, %c0_0, %c0_1] : memref<1x16x32xf32, #tpu.memory_space<vmem>>, vector<1x16x32xf32>
    %1 = vector.shape_cast %0 : vector<1x16x32xf32> to vector<16x32xf32>
    %c0_2 = arith.constant 0 : index
    %c0_3 = arith.constant 0 : index
    %2 = vector.load %arg3[%c0_2, %c0_3] : memref<16x32xf32, #tpu.memory_space<vmem>>, vector<16x32xf32>
    %3 = arith.addf %1, %2 : vector<16x32xf32>
    %cst = arith.constant 0.000000e+00 : f32
    %4 = vector.broadcast %cst : f32 to vector<32x32xf32>
    %c0_4 = arith.constant 0 : index
    %c0_5 = arith.constant 0 : index
    %5 = vector.load %arg15[%c0_4, %c0_5] : memref<32x32xf32, #tpu.memory_space<vmem>>, vector<32x32xf32>
    tpu.vector_store %arg15[%c0_4, %c0_5], %4 {strides = array<i32>} : memref<32x32xf32, #tpu.memory_space<vmem>>, vector<32x32xf32>,
    %c0_6 = arith.constant 0 : index
    %c0_7 = arith.constant 0 : index
    %6 = vector.load %arg4[%c0_6, %c0_7] : memref<2x32xf32, #tpu.memory_space<vmem>>, vector<1x32xf32>
    %c0_8 = arith.constant 0 : index
    %c0_9 = arith.constant 0 : index
    %7 = vector.load %arg5[%c0_8, %c0_9] : memref<2x32xf32, #tpu.memory_space<vmem>>, vector<1x32xf32>
    %cst_10 = arith.constant dense<0.000000e+00> : vector<16xf32>
    %8 = vector.multi_reduction <add>, %3, %cst_10 [1] : vector<16x32xf32> to vector<16xf32>
    %9 = vector.shape_cast %8 : vector<16xf32> to vector<16x1xf32>
    %cst_11 = arith.constant 3.200000e+01 : f32
    %10 = vector.broadcast %cst_11 : f32 to vector<16x1xf32>
    %11 = arith.divf %9, %10 : vector<16x1xf32>
    %12 = vector.broadcast %11 : vector<16x1xf32> to vector<16x32xf32>
    %13 = arith.subf %3, %12 : vector<16x32xf32>
    %14 = arith.mulf %13, %13 : vector<16x32xf32>
    %cst_12 = arith.constant dense<0.000000e+00> : vector<16xf32>
    %15 = vector.multi_reduction <add>, %14, %cst_12 [1] : vector<16x32xf32> to vector<16xf32>
    %16 = vector.shape_cast %15 : vector<16xf32> to vector<16x1xf32>
    %cst_13 = arith.constant 3.200000e+01 : f32
    %17 = vector.broadcast %cst_13 : f32 to vector<16x1xf32>
    %18 = arith.divf %16, %17 : vector<16x1xf32>
    %19 = vector.broadcast %11 : vector<16x1xf32> to vector<16x32xf32>
    %20 = arith.subf %3, %19 : vector<16x32xf32>
    %cst_14 = arith.constant 9.99999974E-6 : f32
    %21 = vector.broadcast %cst_14 : f32 to vector<16x1xf32>
    %22 = arith.addf %18, %21 : vector<16x1xf32>
    %23 = math.rsqrt %22 : vector<16x1xf32>
    %24 = vector.broadcast %23 : vector<16x1xf32> to vector<16x32xf32>
    %25 = arith.mulf %20, %24 : vector<16x32xf32>
    %26 = vector.broadcast %6 : vector<1x32xf32> to vector<16x32xf32>
    %27 = arith.mulf %25, %26 : vector<16x32xf32>
    %28 = vector.broadcast %7 : vector<1x32xf32> to vector<16x32xf32>
    %29 = arith.addf %27, %28 : vector<16x32xf32>
    %c8 = arith.constant 8 : index
    %c0_15 = arith.constant 0 : index
    %30 = vector.load %arg15[%c8, %c0_15] : memref<32x32xf32, #tpu.memory_space<vmem>>, vector<16x32xf32>
    tpu.vector_store %arg15[%c8, %c0_15], %29 {strides = array<i32>} : memref<32x32xf32, #tpu.memory_space<vmem>>, vector<16x32xf32>,
    %c0_16 = arith.constant 0 : index
    %c0_17 = arith.constant 0 : index
    %c0_18 = arith.constant 0 : index
    %31 = vector.load %arg6[%c0_16, %c0_17, %c0_18] : memref<2x5x32xf32, #tpu.memory_space<vmem>>, vector<1x5x32xf32>
    %32 = vector.shape_cast %31 : vector<1x5x32xf32> to vector<5x32xf32>
    %cst_19 = arith.constant 0.000000e+00 : f32
    %33 = vector.broadcast %cst_19 : f32 to vector<16x32xf32>
    %c6 = arith.constant 6 : index
    %c0_20 = arith.constant 0 : index
    %34 = vector.load %arg15[%c6, %c0_20] : memref<32x32xf32, #tpu.memory_space<vmem>>, vector<16x32xf32>
    %35 = vector.extract_strided_slice %32 {offsets = [0, 0], sizes = [1, 32], strides = [1, 1]} : vector<5x32xf32> to vector<1x32xf32>
    %36 = vector.broadcast %35 : vector<1x32xf32> to vector<16x32xf32>
    %37 = arith.mulf %34, %36 : vector<16x32xf32>
    %38 = arith.addf %33, %37 : vector<16x32xf32>
    %c7 = arith.constant 7 : index
    %c0_21 = arith.constant 0 : index
    %39 = vector.load %arg15[%c7, %c0_21] : memref<32x32xf32, #tpu.memory_space<vmem>>, vector<16x32xf32>
    %40 = vector.extract_strided_slice %32 {offsets = [1, 0], sizes = [1, 32], strides = [1, 1]} : vector<5x32xf32> to vector<1x32xf32>
    %41 = vector.broadcast %40 : vector<1x32xf32> to vector<16x32xf32>
    %42 = arith.mulf %39, %41 : vector<16x32xf32>
    %43 = arith.addf %38, %42 : vector<16x32xf32>
    %c8_22 = arith.constant 8 : index
    %c0_23 = arith.constant 0 : index
    %44 = vector.load %arg15[%c8_22, %c0_23] : memref<32x32xf32, #tpu.memory_space<vmem>>, vector<16x32xf32>
    %45 = vector.extract_strided_slice %32 {offsets = [2, 0], sizes = [1, 32], strides = [1, 1]} : vector<5x32xf32> to vector<1x32xf32>
    %46 = vector.broadcast %45 : vector<1x32xf32> to vector<16x32xf32>
    %47 = arith.mulf %44, %46 : vector<16x32xf32>
    %48 = arith.addf %43, %47 : vector<16x32xf32>
    %c9 = arith.constant 9 : index
    %c0_24 = arith.constant 0 : index
    %49 = vector.load %arg15[%c9, %c0_24] : memref<32x32xf32, #tpu.memory_space<vmem>>, vector<16x32xf32>
    %50 = vector.extract_strided_slice %32 {offsets = [3, 0], sizes = [1, 32], strides = [1, 1]} : vector<5x32xf32> to vector<1x32xf32>
    %51 = vector.broadcast %50 : vector<1x32xf32> to vector<16x32xf32>
    %52 = arith.mulf %49, %51 : vector<16x32xf32>
    %53 = arith.addf %48, %52 : vector<16x32xf32>
    %c10 = arith.constant 10 : index
    %c0_25 = arith.constant 0 : index
    %54 = vector.load %arg15[%c10, %c0_25] : memref<32x32xf32, #tpu.memory_space<vmem>>, vector<16x32xf32>
    %55 = vector.extract_strided_slice %32 {offsets = [4, 0], sizes = [1, 32], strides = [1, 1]} : vector<5x32xf32> to vector<1x32xf32>
    %56 = vector.broadcast %55 : vector<1x32xf32> to vector<16x32xf32>
    %57 = arith.mulf %54, %56 : vector<16x32xf32>
    %58 = arith.addf %53, %57 : vector<16x32xf32>
    %c0_26 = arith.constant 0 : index
    %c0_27 = arith.constant 0 : index
    %c0_28 = arith.constant 0 : index
    %59 = vector.load %arg7[%c0_26, %c0_27, %c0_28] : memref<2x32x32xf32, #tpu.memory_space<vmem>>, vector<1x32x32xf32>
    %60 = vector.shape_cast %59 : vector<1x32x32xf32> to vector<32x32xf32>
    %61 = arith.truncf %58 : vector<16x32xf32> to vector<16x32xbf16>
    %62 = arith.truncf %60 : vector<32x32xf32> to vector<32x32xbf16>
    %cst_29 = arith.constant dense<0.000000e+00> : vector<16x32xf32>
    %63 = tpu.matmul %61, %62, %cst_29 {dimension_numbers = #tpu.dot_dimension_numbers<[1], [0], [0], [1], [0, 0, 1, 1], [], []>} : vector<16x32xbf16>, vector<32x32xbf16>, vector<16x32xf32> -> vector<16x32xf32>
    %c0_30 = arith.constant 0 : index
    %c0_31 = arith.constant 0 : index
    %64 = vector.load %arg8[%c0_30, %c0_31] : memref<2x32xf32, #tpu.memory_space<vmem>>, vector<1x32xf32>
    %65 = vector.broadcast %64 : vector<1x32xf32> to vector<16x32xf32>
    %66 = arith.addf %63, %65 : vector<16x32xf32>
    %cst_32 = arith.constant 0.000000e+00 : f32
    %67 = vector.broadcast %cst_32 : f32 to vector<16x32xf32>
    %68 = arith.maximumf %66, %67 : vector<16x32xf32>
    %69 = arith.addf %68, %3 : vector<16x32xf32>
    %c1 = arith.constant 1 : index
    %c0_33 = arith.constant 0 : index
    %70 = vector.load %arg4[%c1, %c0_33] : memref<2x32xf32, #tpu.memory_space<vmem>>, vector<1x32xf32>
    %c1_34 = arith.constant 1 : index
    %c0_35 = arith.constant 0 : index
    %71 = vector.load %arg5[%c1_34, %c0_35] : memref<2x32xf32, #tpu.memory_space<vmem>>, vector<1x32xf32>
    %cst_36 = arith.constant dense<0.000000e+00> : vector<16xf32>
    %72 = vector.multi_reduction <add>, %69, %cst_36 [1] : vector<16x32xf32> to vector<16xf32>
    %73 = vector.shape_cast %72 : vector<16xf32> to vector<16x1xf32>
    %cst_37 = arith.constant 3.200000e+01 : f32
    %74 = vector.broadcast %cst_37 : f32 to vector<16x1xf32>
    %75 = arith.divf %73, %74 : vector<16x1xf32>
    %76 = vector.broadcast %75 : vector<16x1xf32> to vector<16x32xf32>
    %77 = arith.subf %69, %76 : vector<16x32xf32>
    %78 = arith.mulf %77, %77 : vector<16x32xf32>
    %cst_38 = arith.constant dense<0.000000e+00> : vector<16xf32>
    %79 = vector.multi_reduction <add>, %78, %cst_38 [1] : vector<16x32xf32> to vector<16xf32>
    %80 = vector.shape_cast %79 : vector<16xf32> to vector<16x1xf32>
    %cst_39 = arith.constant 3.200000e+01 : f32
    %81 = vector.broadcast %cst_39 : f32 to vector<16x1xf32>
    %82 = arith.divf %80, %81 : vector<16x1xf32>
    %83 = vector.broadcast %75 : vector<16x1xf32> to vector<16x32xf32>
    %84 = arith.subf %69, %83 : vector<16x32xf32>
    %cst_40 = arith.constant 9.99999974E-6 : f32
    %85 = vector.broadcast %cst_40 : f32 to vector<16x1xf32>
    %86 = arith.addf %82, %85 : vector<16x1xf32>
    %87 = math.rsqrt %86 : vector<16x1xf32>
    %88 = vector.broadcast %87 : vector<16x1xf32> to vector<16x32xf32>
    %89 = arith.mulf %84, %88 : vector<16x32xf32>
    %90 = vector.broadcast %70 : vector<1x32xf32> to vector<16x32xf32>
    %91 = arith.mulf %89, %90 : vector<16x32xf32>
    %92 = vector.broadcast %71 : vector<1x32xf32> to vector<16x32xf32>
    %93 = arith.addf %91, %92 : vector<16x32xf32>
    %c8_41 = arith.constant 8 : index
    %c0_42 = arith.constant 0 : index
    %94 = vector.load %arg15[%c8_41, %c0_42] : memref<32x32xf32, #tpu.memory_space<vmem>>, vector<16x32xf32>
    tpu.vector_store %arg15[%c8_41, %c0_42], %93 {strides = array<i32>} : memref<32x32xf32, #tpu.memory_space<vmem>>, vector<16x32xf32>,
    %c1_43 = arith.constant 1 : index
    %c0_44 = arith.constant 0 : index
    %c0_45 = arith.constant 0 : index
    %95 = vector.load %arg6[%c1_43, %c0_44, %c0_45] : memref<2x5x32xf32, #tpu.memory_space<vmem>>, vector<1x5x32xf32>
    %96 = vector.shape_cast %95 : vector<1x5x32xf32> to vector<5x32xf32>
    %cst_46 = arith.constant 0.000000e+00 : f32
    %97 = vector.broadcast %cst_46 : f32 to vector<16x32xf32>
    %c6_47 = arith.constant 6 : index
    %c0_48 = arith.constant 0 : index
    %98 = vector.load %arg15[%c6_47, %c0_48] : memref<32x32xf32, #tpu.memory_space<vmem>>, vector<16x32xf32>
    %99 = vector.extract_strided_slice %96 {offsets = [0, 0], sizes = [1, 32], strides = [1, 1]} : vector<5x32xf32> to vector<1x32xf32>
    %100 = vector.broadcast %99 : vector<1x32xf32> to vector<16x32xf32>
    %101 = arith.mulf %98, %100 : vector<16x32xf32>
    %102 = arith.addf %97, %101 : vector<16x32xf32>
    %c7_49 = arith.constant 7 : index
    %c0_50 = arith.constant 0 : index
    %103 = vector.load %arg15[%c7_49, %c0_50] : memref<32x32xf32, #tpu.memory_space<vmem>>, vector<16x32xf32>
    %104 = vector.extract_strided_slice %96 {offsets = [1, 0], sizes = [1, 32], strides = [1, 1]} : vector<5x32xf32> to vector<1x32xf32>
    %105 = vector.broadcast %104 : vector<1x32xf32> to vector<16x32xf32>
    %106 = arith.mulf %103, %105 : vector<16x32xf32>
    %107 = arith.addf %102, %106 : vector<16x32xf32>
    %c8_51 = arith.constant 8 : index
    %c0_52 = arith.constant 0 : index
    %108 = vector.load %arg15[%c8_51, %c0_52] : memref<32x32xf32, #tpu.memory_space<vmem>>, vector<16x32xf32>
    %109 = vector.extract_strided_slice %96 {offsets = [2, 0], sizes = [1, 32], strides = [1, 1]} : vector<5x32xf32> to vector<1x32xf32>
    %110 = vector.broadcast %109 : vector<1x32xf32> to vector<16x32xf32>
    %111 = arith.mulf %108, %110 : vector<16x32xf32>
    %112 = arith.addf %107, %111 : vector<16x32xf32>
    %c9_53 = arith.constant 9 : index
    %c0_54 = arith.constant 0 : index
    %113 = vector.load %arg15[%c9_53, %c0_54] : memref<32x32xf32, #tpu.memory_space<vmem>>, vector<16x32xf32>
    %114 = vector.extract_strided_slice %96 {offsets = [3, 0], sizes = [1, 32], strides = [1, 1]} : vector<5x32xf32> to vector<1x32xf32>
    %115 = vector.broadcast %114 : vector<1x32xf32> to vector<16x32xf32>
    %116 = arith.mulf %113, %115 : vector<16x32xf32>
    %117 = arith.addf %112, %116 : vector<16x32xf32>
    %c10_55 = arith.constant 10 : index
    %c0_56 = arith.constant 0 : index
    %118 = vector.load %arg15[%c10_55, %c0_56] : memref<32x32xf32, #tpu.memory_space<vmem>>, vector<16x32xf32>
    %119 = vector.extract_strided_slice %96 {offsets = [4, 0], sizes = [1, 32], strides = [1, 1]} : vector<5x32xf32> to vector<1x32xf32>
    %120 = vector.broadcast %119 : vector<1x32xf32> to vector<16x32xf32>
    %121 = arith.mulf %118, %120 : vector<16x32xf32>
    %122 = arith.addf %117, %121 : vector<16x32xf32>
    %c1_57 = arith.constant 1 : index
    %c0_58 = arith.constant 0 : index
    %c0_59 = arith.constant 0 : index
    %123 = vector.load %arg7[%c1_57, %c0_58, %c0_59] : memref<2x32x32xf32, #tpu.memory_space<vmem>>, vector<1x32x32xf32>
    %124 = vector.shape_cast %123 : vector<1x32x32xf32> to vector<32x32xf32>
    %125 = arith.truncf %122 : vector<16x32xf32> to vector<16x32xbf16>
    %126 = arith.truncf %124 : vector<32x32xf32> to vector<32x32xbf16>
    %cst_60 = arith.constant dense<0.000000e+00> : vector<16x32xf32>
    %127 = tpu.matmul %125, %126, %cst_60 {dimension_numbers = #tpu.dot_dimension_numbers<[1], [0], [0], [1], [0, 0, 1, 1], [], []>} : vector<16x32xbf16>, vector<32x32xbf16>, vector<16x32xf32> -> vector<16x32xf32>
    %c1_61 = arith.constant 1 : index
    %c0_62 = arith.constant 0 : index
    %128 = vector.load %arg8[%c1_61, %c0_62] : memref<2x32xf32, #tpu.memory_space<vmem>>, vector<1x32xf32>
    %129 = vector.broadcast %128 : vector<1x32xf32> to vector<16x32xf32>
    %130 = arith.addf %127, %129 : vector<16x32xf32>
    %cst_63 = arith.constant 0.000000e+00 : f32
    %131 = vector.broadcast %cst_63 : f32 to vector<16x32xf32>
    %132 = arith.maximumf %130, %131 : vector<16x32xf32>
    %133 = arith.addf %132, %69 : vector<16x32xf32>
    %c0_64 = arith.constant 0 : index
    %c0_65 = arith.constant 0 : index
    %134 = vector.load %arg9[%c0_64, %c0_65] : memref<2x32xf32, #tpu.memory_space<vmem>>, vector<1x32xf32>
    %c0_66 = arith.constant 0 : index
    %c0_67 = arith.constant 0 : index
    %135 = vector.load %arg10[%c0_66, %c0_67] : memref<2x32xf32, #tpu.memory_space<vmem>>, vector<1x32xf32>
    %cst_68 = arith.constant dense<0.000000e+00> : vector<16xf32>
    %136 = vector.multi_reduction <add>, %133, %cst_68 [1] : vector<16x32xf32> to vector<16xf32>
    %137 = vector.shape_cast %136 : vector<16xf32> to vector<16x1xf32>
    %cst_69 = arith.constant 3.200000e+01 : f32
    %138 = vector.broadcast %cst_69 : f32 to vector<16x1xf32>
    %139 = arith.divf %137, %138 : vector<16x1xf32>
    %140 = vector.broadcast %139 : vector<16x1xf32> to vector<16x32xf32>
    %141 = arith.subf %133, %140 : vector<16x32xf32>
    %142 = arith.mulf %141, %141 : vector<16x32xf32>
    %cst_70 = arith.constant dense<0.000000e+00> : vector<16xf32>
    %143 = vector.multi_reduction <add>, %142, %cst_70 [1] : vector<16x32xf32> to vector<16xf32>
    %144 = vector.shape_cast %143 : vector<16xf32> to vector<16x1xf32>
    %cst_71 = arith.constant 3.200000e+01 : f32
    %145 = vector.broadcast %cst_71 : f32 to vector<16x1xf32>
    %146 = arith.divf %144, %145 : vector<16x1xf32>
    %147 = vector.broadcast %139 : vector<16x1xf32> to vector<16x32xf32>
    %148 = arith.subf %133, %147 : vector<16x32xf32>
    %cst_72 = arith.constant 9.99999974E-6 : f32
    %149 = vector.broadcast %cst_72 : f32 to vector<16x1xf32>
    %150 = arith.addf %146, %149 : vector<16x1xf32>
    %151 = math.rsqrt %150 : vector<16x1xf32>
    %152 = vector.broadcast %151 : vector<16x1xf32> to vector<16x32xf32>
    %153 = arith.mulf %148, %152 : vector<16x32xf32>
    %154 = vector.broadcast %134 : vector<1x32xf32> to vector<16x32xf32>
    %155 = arith.mulf %153, %154 : vector<16x32xf32>
    %156 = vector.broadcast %135 : vector<1x32xf32> to vector<16x32xf32>
    %157 = arith.addf %155, %156 : vector<16x32xf32>
    %c0_73 = arith.constant 0 : index
    %c0_74 = arith.constant 0 : index
    %c0_75 = arith.constant 0 : index
    %158 = vector.load %arg11[%c0_73, %c0_74, %c0_75] : memref<3x32x32xf32, #tpu.memory_space<vmem>>, vector<1x32x32xf32>
    %159 = vector.shape_cast %158 : vector<1x32x32xf32> to vector<32x32xf32>
    %160 = arith.truncf %157 : vector<16x32xf32> to vector<16x32xbf16>
    %161 = arith.truncf %159 : vector<32x32xf32> to vector<32x32xbf16>
    %cst_76 = arith.constant dense<0.000000e+00> : vector<16x32xf32>
    %162 = tpu.matmul %160, %161, %cst_76 {dimension_numbers = #tpu.dot_dimension_numbers<[1], [0], [0], [1], [0, 0, 1, 1], [], []>} : vector<16x32xbf16>, vector<32x32xbf16>, vector<16x32xf32> -> vector<16x32xf32>
    %c1_77 = arith.constant 1 : index
    %c0_78 = arith.constant 0 : index
    %c0_79 = arith.constant 0 : index
    %163 = vector.load %arg11[%c1_77, %c0_78, %c0_79] : memref<3x32x32xf32, #tpu.memory_space<vmem>>, vector<1x32x32xf32>
    %164 = vector.shape_cast %163 : vector<1x32x32xf32> to vector<32x32xf32>
    %165 = arith.truncf %157 : vector<16x32xf32> to vector<16x32xbf16>
    %166 = arith.truncf %164 : vector<32x32xf32> to vector<32x32xbf16>
    %cst_80 = arith.constant dense<0.000000e+00> : vector<16x32xf32>
    %167 = tpu.matmul %165, %166, %cst_80 {dimension_numbers = #tpu.dot_dimension_numbers<[1], [0], [0], [1], [0, 0, 1, 1], [], []>} : vector<16x32xbf16>, vector<32x32xbf16>, vector<16x32xf32> -> vector<16x32xf32>
    %c2 = arith.constant 2 : index
    %c0_81 = arith.constant 0 : index
    %c0_82 = arith.constant 0 : index
    %168 = vector.load %arg11[%c2, %c0_81, %c0_82] : memref<3x32x32xf32, #tpu.memory_space<vmem>>, vector<1x32x32xf32>
    %169 = vector.shape_cast %168 : vector<1x32x32xf32> to vector<32x32xf32>
    %170 = arith.truncf %157 : vector<16x32xf32> to vector<16x32xbf16>
    %171 = arith.truncf %169 : vector<32x32xf32> to vector<32x32xbf16>
    %cst_83 = arith.constant dense<0.000000e+00> : vector<16x32xf32>
    %172 = tpu.matmul %170, %171, %cst_83 {dimension_numbers = #tpu.dot_dimension_numbers<[1], [0], [0], [1], [0, 0, 1, 1], [], []>} : vector<16x32xbf16>, vector<32x32xbf16>, vector<16x32xf32> -> vector<16x32xf32>
    %cst_84 = arith.constant 0.176776692 : f32
    %173 = vector.broadcast %cst_84 : f32 to vector<16x32xf32>
    %174 = arith.mulf %172, %173 : vector<16x32xf32>
    %c0_85 = arith.constant 0 : index
    %c0_86 = arith.constant 0 : index
    %c0_87 = arith.constant 0 : index
    %175 = vector.load %arg1[%c0_85, %c0_86, %c0_87] : memref<1x1x16xf32, #tpu.memory_space<vmem>>, vector<1x1x16xf32>
    %176 = vector.shape_cast %175 : vector<1x1x16xf32> to vector<1x16xf32>
    %177 = arith.truncf %174 : vector<16x32xf32> to vector<16x32xbf16>
    %178 = arith.truncf %162 : vector<16x32xf32> to vector<16x32xbf16>
    %cst_88 = arith.constant dense<0.000000e+00> : vector<16x16xf32>
    %179 = tpu.matmul %177, %178, %cst_88 {dimension_numbers = #tpu.dot_dimension_numbers<[1], [1], [0], [0], [0, 0, 1, 0], [], []>} : vector<16x32xbf16>, vector<16x32xbf16>, vector<16x16xf32> -> vector<16x16xf32>
    %cst_89 = arith.constant 0.000000e+00 : f32
    %180 = vector.broadcast %cst_89 : f32 to vector<1x16xf32>
    %181 = arith.cmpf ogt, %176, %180 : vector<1x16xf32>
    %cst_90 = arith.constant -1.000000e+30 : f32
    %182 = vector.shape_cast %181 : vector<1x16xi1> to vector<1x16xi1>
    %183 = vector.broadcast %182 : vector<1x16xi1> to vector<16x16xi1>
    %184 = vector.broadcast %cst_90 : f32 to vector<16x16xf32>
    %185 = arith.select %183, %179, %184 : vector<16x16xi1>, vector<16x16xf32>
    %cst_91 = arith.constant dense<0xFF800000> : vector<16xf32>
    %186 = vector.multi_reduction <maximumf>, %185, %cst_91 [1] : vector<16x16xf32> to vector<16xf32>
    %187 = vector.shape_cast %186 : vector<16xf32> to vector<16x1xf32>
    %188 = vector.broadcast %187 : vector<16x1xf32> to vector<16x16xf32>
    %189 = arith.subf %185, %188 : vector<16x16xf32>
    %190 = math.exp %189 : vector<16x16xf32>
    %cst_92 = arith.constant dense<0.000000e+00> : vector<16xf32>
    %191 = vector.multi_reduction <add>, %190, %cst_92 [1] : vector<16x16xf32> to vector<16xf32>
    %192 = vector.shape_cast %191 : vector<16xf32> to vector<16x1xf32>
    %193 = tpu.reciprocal %192 {approx = true} : vector<16x1xf32> -> vector<16x1xf32>
    %194 = vector.broadcast %193 : vector<16x1xf32> to vector<16x16xf32>
    %195 = arith.mulf %190, %194 : vector<16x16xf32>
    %196 = arith.truncf %195 : vector<16x16xf32> to vector<16x16xbf16>
    %197 = arith.truncf %167 : vector<16x32xf32> to vector<16x32xbf16>
    %cst_93 = arith.constant dense<0.000000e+00> : vector<16x32xf32>
    %198 = tpu.matmul %196, %197, %cst_93 {dimension_numbers = #tpu.dot_dimension_numbers<[1], [0], [0], [1], [0, 0, 1, 1], [], []>} : vector<16x16xbf16>, vector<16x32xbf16>, vector<16x32xf32> -> vector<16x32xf32>
    %199 = arith.addf %198, %133 : vector<16x32xf32>
    %c1_94 = arith.constant 1 : index
    %c0_95 = arith.constant 0 : index
    %200 = vector.load %arg9[%c1_94, %c0_95] : memref<2x32xf32, #tpu.memory_space<vmem>>, vector<1x32xf32>
    %c1_96 = arith.constant 1 : index
    %c0_97 = arith.constant 0 : index
    %201 = vector.load %arg10[%c1_96, %c0_97] : memref<2x32xf32, #tpu.memory_space<vmem>>, vector<1x32xf32>
    %cst_98 = arith.constant dense<0.000000e+00> : vector<16xf32>
    %202 = vector.multi_reduction <add>, %199, %cst_98 [1] : vector<16x32xf32> to vector<16xf32>
    %203 = vector.shape_cast %202 : vector<16xf32> to vector<16x1xf32>
    %cst_99 = arith.constant 3.200000e+01 : f32
    %204 = vector.broadcast %cst_99 : f32 to vector<16x1xf32>
    %205 = arith.divf %203, %204 : vector<16x1xf32>
    %206 = vector.broadcast %205 : vector<16x1xf32> to vector<16x32xf32>
    %207 = arith.subf %199, %206 : vector<16x32xf32>
    %208 = arith.mulf %207, %207 : vector<16x32xf32>
    %cst_100 = arith.constant dense<0.000000e+00> : vector<16xf32>
    %209 = vector.multi_reduction <add>, %208, %cst_100 [1] : vector<16x32xf32> to vector<16xf32>
    %210 = vector.shape_cast %209 : vector<16xf32> to vector<16x1xf32>
    %cst_101 = arith.constant 3.200000e+01 : f32
    %211 = vector.broadcast %cst_101 : f32 to vector<16x1xf32>
    %212 = arith.divf %210, %211 : vector<16x1xf32>
    %213 = vector.broadcast %205 : vector<16x1xf32> to vector<16x32xf32>
    %214 = arith.subf %199, %213 : vector<16x32xf32>
    %cst_102 = arith.constant 9.99999974E-6 : f32
    %215 = vector.broadcast %cst_102 : f32 to vector<16x1xf32>
    %216 = arith.addf %212, %215 : vector<16x1xf32>
    %217 = math.rsqrt %216 : vector<16x1xf32>
    %218 = vector.broadcast %217 : vector<16x1xf32> to vector<16x32xf32>
    %219 = arith.mulf %214, %218 : vector<16x32xf32>
    %220 = vector.broadcast %200 : vector<1x32xf32> to vector<16x32xf32>
    %221 = arith.mulf %219, %220 : vector<16x32xf32>
    %222 = vector.broadcast %201 : vector<1x32xf32> to vector<16x32xf32>
    %223 = arith.addf %221, %222 : vector<16x32xf32>
    %c0_103 = arith.constant 0 : index
    %c0_104 = arith.constant 0 : index
    %c0_105 = arith.constant 0 : index
    %224 = vector.load %arg12[%c0_103, %c0_104, %c0_105] : memref<2x32x32xf32, #tpu.memory_space<vmem>>, vector<1x32x32xf32>
    %225 = vector.shape_cast %224 : vector<1x32x32xf32> to vector<32x32xf32>
    %226 = arith.truncf %223 : vector<16x32xf32> to vector<16x32xbf16>
    %227 = arith.truncf %225 : vector<32x32xf32> to vector<32x32xbf16>
    %cst_106 = arith.constant dense<0.000000e+00> : vector<16x32xf32>
    %228 = tpu.matmul %226, %227, %cst_106 {dimension_numbers = #tpu.dot_dimension_numbers<[1], [0], [0], [1], [0, 0, 1, 1], [], []>} : vector<16x32xbf16>, vector<32x32xbf16>, vector<16x32xf32> -> vector<16x32xf32>
    %c0_107 = arith.constant 0 : index
    %c0_108 = arith.constant 0 : index
    %229 = vector.load %arg13[%c0_107, %c0_108] : memref<2x32xf32, #tpu.memory_space<vmem>>, vector<1x32xf32>
    %230 = vector.broadcast %229 : vector<1x32xf32> to vector<16x32xf32>
    %231 = arith.addf %228, %230 : vector<16x32xf32>
    %cst_109 = arith.constant 0.000000e+00 : f32
    %232 = vector.broadcast %cst_109 : f32 to vector<16x32xf32>
    %233 = arith.maximumf %231, %232 : vector<16x32xf32>
    %c1_110 = arith.constant 1 : index
    %c0_111 = arith.constant 0 : index
    %c0_112 = arith.constant 0 : index
    %234 = vector.load %arg12[%c1_110, %c0_111, %c0_112] : memref<2x32x32xf32, #tpu.memory_space<vmem>>, vector<1x32x32xf32>
    %235 = vector.shape_cast %234 : vector<1x32x32xf32> to vector<32x32xf32>
    %236 = arith.truncf %233 : vector<16x32xf32> to vector<16x32xbf16>
    %237 = arith.truncf %235 : vector<32x32xf32> to vector<32x32xbf16>
    %cst_113 = arith.constant dense<0.000000e+00> : vector<16x32xf32>
    %238 = tpu.matmul %236, %237, %cst_113 {dimension_numbers = #tpu.dot_dimension_numbers<[1], [0], [0], [1], [0, 0, 1, 1], [], []>} : vector<16x32xbf16>, vector<32x32xbf16>, vector<16x32xf32> -> vector<16x32xf32>
    %c1_114 = arith.constant 1 : index
    %c0_115 = arith.constant 0 : index
    %239 = vector.load %arg13[%c1_114, %c0_115] : memref<2x32xf32, #tpu.memory_space<vmem>>, vector<1x32xf32>
    %240 = vector.broadcast %239 : vector<1x32xf32> to vector<16x32xf32>
    %241 = arith.addf %238, %240 : vector<16x32xf32>
    %242 = arith.addf %241, %199 : vector<16x32xf32>
    %c0_116 = arith.constant 0 : index
    %c0_117 = arith.constant 0 : index
    %c0_118 = arith.constant 0 : index
    %243 = vector.load %arg14[%c0_116, %c0_117, %c0_118] : memref<1x16x32xf32, #tpu.memory_space<vmem>>, vector<1x16x32xf32>
    %244 = vector.shape_cast %243 : vector<1x16x32xf32> to vector<16x32xf32>
    %245 = vector.shape_cast %242 : vector<16x32xf32> to vector<1x16x32xf32>
    tpu.vector_store %arg14[%c0_116, %c0_117, %c0_118], %245 {strides = array<i32>} : memref<1x16x32xf32, #tpu.memory_space<vmem>>, vector<1x16x32xf32>,
    return
  }
  func.func @transform_0(%arg0: i32) -> (i32, i32, i32) {
    %c0_i32 = arith.constant 0 : i32
    %c0_i32_0 = arith.constant 0 : i32
    %c0_i32_1 = arith.constant 0 : i32
    return %arg0, %c0_i32, %c0_i32_0 : i32, i32, i32
  }
  func.func @transform_1(%arg0: i32) -> (i32, i32, i32) {
    %c0_i32 = arith.constant 0 : i32
    %c0_i32_0 = arith.constant 0 : i32
    %c0_i32_1 = arith.constant 0 : i32
    return %arg0, %c0_i32, %c0_i32_0 : i32, i32, i32
  }
  func.func @transform_2(%arg0: i32) -> (i32, i32) {
    %c0_i32 = arith.constant 0 : i32
    %c0_i32_0 = arith.constant 0 : i32
    %c0_i32_1 = arith.constant 0 : i32
    return %c0_i32, %c0_i32_0 : i32, i32
  }
  func.func @transform_3(%arg0: i32) -> (i32, i32) {
    %c0_i32 = arith.constant 0 : i32
    %c0_i32_0 = arith.constant 0 : i32
    %c0_i32_1 = arith.constant 0 : i32
    return %c0_i32, %c0_i32_0 : i32, i32
  }
  func.func @transform_4(%arg0: i32) -> (i32, i32) {
    %c0_i32 = arith.constant 0 : i32
    %c0_i32_0 = arith.constant 0 : i32
    %c0_i32_1 = arith.constant 0 : i32
    return %c0_i32, %c0_i32_0 : i32, i32
  }
  func.func @transform_5(%arg0: i32) -> (i32, i32, i32) {
    %c0_i32 = arith.constant 0 : i32
    %c0_i32_0 = arith.constant 0 : i32
    %c0_i32_1 = arith.constant 0 : i32
    %c0_i32_2 = arith.constant 0 : i32
    return %c0_i32, %c0_i32_0, %c0_i32_1 : i32, i32, i32
  }
  func.func @transform_6(%arg0: i32) -> (i32, i32, i32) {
    %c0_i32 = arith.constant 0 : i32
    %c0_i32_0 = arith.constant 0 : i32
    %c0_i32_1 = arith.constant 0 : i32
    %c0_i32_2 = arith.constant 0 : i32
    return %c0_i32, %c0_i32_0, %c0_i32_1 : i32, i32, i32
  }
  func.func @transform_7(%arg0: i32) -> (i32, i32) {
    %c0_i32 = arith.constant 0 : i32
    %c0_i32_0 = arith.constant 0 : i32
    %c0_i32_1 = arith.constant 0 : i32
    return %c0_i32, %c0_i32_0 : i32, i32
  }
  func.func @transform_8(%arg0: i32) -> (i32, i32) {
    %c0_i32 = arith.constant 0 : i32
    %c0_i32_0 = arith.constant 0 : i32
    %c0_i32_1 = arith.constant 0 : i32
    return %c0_i32, %c0_i32_0 : i32, i32
  }
  func.func @transform_9(%arg0: i32) -> (i32, i32) {
    %c0_i32 = arith.constant 0 : i32
    %c0_i32_0 = arith.constant 0 : i32
    %c0_i32_1 = arith.constant 0 : i32
    return %c0_i32, %c0_i32_0 : i32, i32
  }
  func.func @transform_10(%arg0: i32) -> (i32, i32, i32) {
    %c0_i32 = arith.constant 0 : i32
    %c0_i32_0 = arith.constant 0 : i32
    %c0_i32_1 = arith.constant 0 : i32
    %c0_i32_2 = arith.constant 0 : i32
    return %c0_i32, %c0_i32_0, %c0_i32_1 : i32, i32, i32
  }
  func.func @transform_11(%arg0: i32) -> (i32, i32, i32) {
    %c0_i32 = arith.constant 0 : i32
    %c0_i32_0 = arith.constant 0 : i32
    %c0_i32_1 = arith.constant 0 : i32
    %c0_i32_2 = arith.constant 0 : i32
    return %c0_i32, %c0_i32_0, %c0_i32_1 : i32, i32, i32
  }
  func.func @transform_12(%arg0: i32) -> (i32, i32) {
    %c0_i32 = arith.constant 0 : i32
    %c0_i32_0 = arith.constant 0 : i32
    %c0_i32_1 = arith.constant 0 : i32
    return %c0_i32, %c0_i32_0 : i32, i32
  }
  func.func @transform_13(%arg0: i32) -> (i32, i32, i32) {
    %c0_i32 = arith.constant 0 : i32
    %c0_i32_0 = arith.constant 0 : i32
    %c0_i32_1 = arith.constant 0 : i32
    return %arg0, %c0_i32, %c0_i32_0 : i32, i32, i32
  }
}

</mosaic_0001>

<bundles_post_ra>
// kernel: qanet_forward.32
= control target key start
LH: loop header
LB: loop body
LE: loop exit
PB: predicated region body
PF: predicated region fallthrough
CT: control target
= control target key end

     0   :  { %vm61_vm0 = vcmask 654336   ;;  %vm183_vm1 = vcmask 261120   ;;  %s435_s1 = inlined_call_operand.vmem [shape: f32[80,32], index: 1, kind: input, shape index: {}]   ;;  %s436_s0 = inlined_call_operand.vmem [shape: f32[128,80], index: 0, kind: input, shape index: {}]   ;;  %s437_s2 = inlined_call_operand.vmem [shape: f32[1,32], index: 2, kind: input, shape index: {}]   ;;  %s438_s3 = inlined_call_operand.vmem [shape: f32[128,32], index: 3, kind: output, shape index: {}]  }
   0x1   :  { %v39_v0 = vld [vmem:[%s435_s1 + $0x40] sm:$0xff]  ;;  %v40_v1 = vld [vmem:[%s435_s1 + $0x48] sm:$0xff]  ;;  %v37_v2 = vld [vmem:[%s435_s1 + $0x30] sm:$0xff] }
   0x2   :  { %v53_v3 = vpack.c.bf16 %v40_v1, %v39_v0  ;;  %v38_v4 = vld [vmem:[%s435_s1 + $0x38] sm:$0xff]  ;;  %v35_v6 = vld [vmem:[%s435_s1 + $0x20] sm:$0xff]  ;;  %v36_v7 = vld [vmem:[%s435_s1 + $0x28] sm:$0xff] }
   0x3   :  { %v52_v5 = vpack.c.bf16 %v38_v4, %v37_v2  ;;  %v15_v8 = vld [vmem:[%s436_s0] sm:$0xff]  ;;  %v16_v9 = vld [vmem:[%s436_s0 + $0x8] sm:$0xff]  ;;  %v51_v13 = vpack.c.bf16 %v36_v7, %v35_v6  ;;  %v33_v15 = vld [vmem:[%s435_s1 + $0x10] sm:$0xff] }
   0x4   :  { %226 = vmatprep.subr.bf16.mxu0 %v53_v3  ;;  %252 = vmatprep.subr.bf16.mxu1 %v53_v3  ;;  %v41_v10 = vpack.c.bf16 %v16_v9, %v15_v8  ;;  %v23_v11 = vld [vmem:[%s436_s0 + $0x40] sm:$0xff]  ;;  %v24_v12 = vld [vmem:[%s436_s0 + $0x48] sm:$0xff]  ;;  %v34_v16 = vld [vmem:[%s435_s1 + $0x18] sm:$0xff] }
   0x5   :  { %227 = vmatpush3.bf16.msra.mxu0 %v53_v3  ;;  %257 = vmatpush3.bf16.msra.mxu1 %v53_v3  ;;  %v45_v14 = vpack.c.bf16 %v24_v12, %v23_v11  ;;  %v50_v17 = vpack.c.bf16 %v34_v16, %v33_v15  ;;  %v31_v18 = vld [vmem:[%s435_s1] sm:$0xff]  ;;  %v32_v19 = vld [vmem:[%s435_s1 + $0x8] sm:$0xff]  ;;  %v17_v21 = vld [vmem:[%s436_s0 + $0x10] sm:$0xff] }
   0x6   :  { %228 = vmatprep.subr.bf16.mxu0 %v52_v5  ;;  %253 = vmatprep.subr.bf16.mxu1 %v52_v5  ;;  %v49_v20 = vpack.c.bf16 %v32_v19, %v31_v18  ;;  %v18_v22 = vld [vmem:[%s436_s0 + $0x18] sm:$0xff]  ;;  %v25_v23 = vld [vmem:[%s436_s0 + $0x50] sm:$0xff]  ;;  %v19_v25 = vld [vmem:[%s436_s0 + $0x20] sm:$0xff] }
   0x7   :  { %236 = vmatprep.mubr.msk.bf16.mxu0 %vm61_vm0, %v41_v10  ;;  %244 = vmatprep.mubr.msk.bf16.mxu1 %vm61_vm0, %v45_v14  ;;  %v26_v24 = vld [vmem:[%s436_s0 + $0x58] sm:$0xff]  ;;  %v20_v26 = vld [vmem:[%s436_s0 + $0x28] sm:$0xff]  ;;  %v27_v27 = vld [vmem:[%s436_s0 + $0x60] sm:$0xff]  ;;  %v42_v29 = vpack.c.bf16 %v18_v22, %v17_v21 }
   0x8   :  { %v28_v28 = vld [vmem:[%s436_s0 + $0x68] sm:$0xff]  ;;  %v46_v30 = vpack.c.bf16 %v26_v24, %v25_v23  ;;  %v43_v31 = vpack.c.bf16 %v20_v26, %v19_v25  ;;  %v21_v33 = vld [vmem:[%s436_s0 + $0x30] sm:$0xff]  ;;  %v22_v34 = vld [vmem:[%s436_s0 + $0x38] sm:$0xff] }
   0x9   :  { %229 = vmatpush3.bf16.msra.mxu0 %v52_v5  ;;  %258 = vmatpush3.bf16.msra.mxu1 %v52_v5  ;;  %v47_v32 = vpack.c.bf16 %v28_v28, %v27_v27  ;;  %v29_v35 = vld [vmem:[%s436_s0 + $0x70] sm:$0xff]  ;;  %v30_v36 = vld [vmem:[%s436_s0 + $0x78] sm:$0xff]  ;;  %v44_v37 = vpack.c.bf16 %v22_v34, %v21_v33  ;;  %v204_v39 = vld [vmem:[%s437_s2] ss:$0 sm:$0xff] }
   0xa   :  { %230 = vmatprep.subr.bf16.mxu0 %v51_v13  ;;  %254 = vmatprep.subr.bf16.mxu1 %v51_v13  ;;  %v48_v38 = vpack.c.bf16 %v30_v36, %v29_v35 }
   0xd   :  { %231 = vmatpush3.bf16.msra.mxu0 %v51_v13  ;;  %259 = vmatpush3.bf16.msra.mxu1 %v51_v13 }
   0xe   :  { %232 = vmatprep.subr.bf16.mxu0 %v50_v17  ;;  %255 = vmatprep.subr.bf16.mxu1 %v50_v17 }
  0x11   :  { %233 = vmatpush3.bf16.msra.mxu0 %v50_v17  ;;  %260 = vmatpush3.bf16.msra.mxu1 %v50_v17 }
  0x12   :  { %234 = vmatprep.subr.bf16.mxu0 %v49_v20  ;;  %256 = vmatprep.subr.bf16.mxu1 %v49_v20 }
  0x15   :  { %235 = vmatpush3.bf16.msra.mxu0 %v49_v20  ;;  %261 = vmatpush3.bf16.msra.mxu1 %v49_v20 }
  0x18   :  { %237 = vmatmul.mubr.msk.bf16.vlgmr.msra.gmra.mxu0 %vm61_vm0, %v42_v29  ;;  %245 = vmatmul.mubr.msk.bf16.vlgmr.msra.gmra.mxu1 %vm61_vm0, %v46_v30 }
  0x19   :  { %240 = vmatprep.mubr.msk.bf16.mxu0 %vm61_vm0, %v43_v31  ;;  %248 = vmatprep.mubr.msk.bf16.mxu1 %vm61_vm0, %v47_v32 }
  0x20   :  { %241 = vmatmul.mubr.msk.bf16.gmra.mxu0 %vm61_vm0, %v44_v37  ;;  %249 = vmatmul.mubr.msk.bf16.gmra.mxu1 %vm61_vm0, %v48_v38 }
  0xd8   :  { %v238_v40 = vpop.f32.mrf.mxu0  ;;  %v246_v41 = vpop.f32.mrf.mxu1 }
  0xd9   :  { %v129_v42 = vadd.f32 %v238_v40, %v204_v39  ;;  %v161_v43 = vadd.f32 %v246_v41, %v204_v39 }
  0xda   :  { %v120_v44 = vpop.f32.mrf.mxu0  ;;  %v152_v45 = vpop.f32.mrf.mxu1 }
  0xdb   :  { %186 = vst.msk [vmem:[%s438_s3 + $0x10] sm:$0xff] %vm183_vm1, %v129_v42  ;;  %194 = vst.msk [vmem:[%s438_s3 + $0x50] sm:$0xff] %vm183_vm1, %v161_v43  ;;  %v121_v46 = vadd.f32 %v204_v39, %v120_v44  ;;  %v153_v47 = vadd.f32 %v204_v39, %v152_v45 }
  0xdc   :  { %v239_v48 = vpop.f32.mrf.mxu0  ;;  %v247_v49 = vpop.f32.mrf.mxu1 }
  0xdd   :  { %184 = vst.msk [vmem:[%s438_s3] sm:$0xff] %vm183_vm1, %v121_v46  ;;  %192 = vst.msk [vmem:[%s438_s3 + $0x40] sm:$0xff] %vm183_vm1, %v153_v47  ;;  %v132_v50 = vadd.f32 %v239_v48, %v204_v39  ;;  %v164_v51 = vadd.f32 %v247_v49, %v204_v39 }
  0xde   :  { %v123_v52 = vpop.f32.mrf.mxu0  ;;  %v155_v53 = vpop.f32.mrf.mxu1 }
  0xdf   :  { %187 = vst.msk [vmem:[%s438_s3 + $0x18] sm:$0xff] %vm183_vm1, %v132_v50  ;;  %195 = vst.msk [vmem:[%s438_s3 + $0x58] sm:$0xff] %vm183_vm1, %v164_v51  ;;  %v124_v54 = vadd.f32 %v204_v39, %v123_v52  ;;  %v156_v55 = vadd.f32 %v204_v39, %v155_v53 }
  0xe0   :  { %v242_v56 = vpop.f32.mrf.mxu0  ;;  %v250_v57 = vpop.f32.mrf.mxu1 }
  0xe1   :  { %185 = vst.msk [vmem:[%s438_s3 + $0x8] sm:$0xff] %vm183_vm1, %v124_v54  ;;  %193 = vst.msk [vmem:[%s438_s3 + $0x48] sm:$0xff] %vm183_vm1, %v156_v55  ;;  %v145_v58 = vadd.f32 %v242_v56, %v204_v39  ;;  %v177_v59 = vadd.f32 %v250_v57, %v204_v39 }
  0xe2   :  { %v136_v60 = vpop.f32.mrf.mxu0  ;;  %v168_v61 = vpop.f32.mrf.mxu1 }
  0xe3   :  { %190 = vst.msk [vmem:[%s438_s3 + $0x30] sm:$0xff] %vm183_vm1, %v145_v58  ;;  %198 = vst.msk [vmem:[%s438_s3 + $0x70] sm:$0xff] %vm183_vm1, %v177_v59  ;;  %v137_v62 = vadd.f32 %v204_v39, %v136_v60  ;;  %v169_v63 = vadd.f32 %v204_v39, %v168_v61 }
  0xe4   :  { %v243_v0 = vpop.f32.mrf.mxu0  ;;  %v251_v1 = vpop.f32.mrf.mxu1 }
  0xe5   :  { %188 = vst.msk [vmem:[%s438_s3 + $0x20] sm:$0xff] %vm183_vm1, %v137_v62  ;;  %196 = vst.msk [vmem:[%s438_s3 + $0x60] sm:$0xff] %vm183_vm1, %v169_v63  ;;  %v148_v2 = vadd.f32 %v243_v0, %v204_v39  ;;  %v180_v3 = vadd.f32 %v251_v1, %v204_v39 }
  0xe6   :  { %v139_v4 = vpop.f32.mrf.mxu0  ;;  %v171_v5 = vpop.f32.mrf.mxu1 }
  0xe7   :  { %191 = vst.msk [vmem:[%s438_s3 + $0x38] sm:$0xff] %vm183_vm1, %v148_v2  ;;  %199 = vst.msk [vmem:[%s438_s3 + $0x78] sm:$0xff] %vm183_vm1, %v180_v3  ;;  %v140_v6 = vadd.f32 %v204_v39, %v139_v4  ;;  %v172_v7 = vadd.f32 %v204_v39, %v171_v5 }
  0xe9   :  { %189 = vst.msk [vmem:[%s438_s3 + $0x28] sm:$0xff] %vm183_vm1, %v140_v6  ;;  %197 = vst.msk [vmem:[%s438_s3 + $0x68] sm:$0xff] %vm183_vm1, %v172_v7 }

// kernel: qanet_forward.33
= control target key start
LH: loop header
LB: loop body
LE: loop exit
PB: predicated region body
PF: predicated region fallthrough
CT: control target
= control target key end

     0   :  { %vm43_vm0 = vcmask 654336   ;;  %vm99_vm1 = vcmask 261120   ;;  %s211_s1 = inlined_call_operand.vmem [shape: f32[80,32], index: 1, kind: input, shape index: {}]   ;;  %s212_s0 = inlined_call_operand.vmem [shape: f32[32,80], index: 0, kind: input, shape index: {}]   ;;  %s213_s2 = inlined_call_operand.vmem [shape: f32[1,32], index: 2, kind: input, shape index: {}]   ;;  %s214_s3 = inlined_call_operand.vmem [shape: f32[32,32], index: 3, kind: output, shape index: {}]  }
   0x1   :  { %v27_v0 = vld [vmem:[%s211_s1 + $0x40] sm:$0xff]  ;;  %v28_v1 = vld [vmem:[%s211_s1 + $0x48] sm:$0xff]  ;;  %v25_v2 = vld [vmem:[%s211_s1 + $0x30] sm:$0xff] }
   0x2   :  { %v35_v3 = vpack.c.bf16 %v28_v1, %v27_v0  ;;  %v26_v4 = vld [vmem:[%s211_s1 + $0x38] sm:$0xff]  ;;  %v23_v6 = vld [vmem:[%s211_s1 + $0x20] sm:$0xff]  ;;  %v24_v7 = vld [vmem:[%s211_s1 + $0x28] sm:$0xff] }
   0x3   :  { %v34_v5 = vpack.c.bf16 %v26_v4, %v25_v2  ;;  %v15_v8 = vld [vmem:[%s212_s0] sm:$0xff]  ;;  %v16_v9 = vld [vmem:[%s212_s0 + $0x8] sm:$0xff]  ;;  %v33_v11 = vpack.c.bf16 %v24_v7, %v23_v6  ;;  %v21_v12 = vld [vmem:[%s211_s1 + $0x10] sm:$0xff] }
   0x4   :  { %118 = vmatprep.subr.bf16.mxu0 %v35_v3  ;;  %v29_v10 = vpack.c.bf16 %v16_v9, %v15_v8  ;;  %v22_v13 = vld [vmem:[%s211_s1 + $0x18] sm:$0xff]  ;;  %v19_v15 = vld [vmem:[%s211_s1] sm:$0xff]  ;;  %v20_v16 = vld [vmem:[%s211_s1 + $0x8] sm:$0xff] }
   0x5   :  { %119 = vmatpush3.bf16.msra.mxu0 %v35_v3  ;;  %v32_v14 = vpack.c.bf16 %v22_v13, %v21_v12  ;;  %v31_v17 = vpack.c.bf16 %v20_v16, %v19_v15  ;;  %v17_v18 = vld [vmem:[%s212_s0 + $0x10] sm:$0xff]  ;;  %v18_v19 = vld [vmem:[%s212_s0 + $0x18] sm:$0xff]  ;;  %v108_v21 = vld [vmem:[%s213_s2] ss:$0 sm:$0xff] }
   0x6   :  { %120 = vmatprep.subr.bf16.mxu0 %v34_v5  ;;  %128 = vmatprep.mubr.msk.bf16.mxu0 %vm43_vm0, %v29_v10  ;;  %v30_v20 = vpack.c.bf16 %v18_v19, %v17_v18 }
   0x9   :  { %121 = vmatpush3.bf16.msra.mxu0 %v34_v5 }
   0xa   :  { %122 = vmatprep.subr.bf16.mxu0 %v33_v11 }
   0xd   :  { %123 = vmatpush3.bf16.msra.mxu0 %v33_v11 }
   0xe   :  { %124 = vmatprep.subr.bf16.mxu0 %v32_v14 }
  0x11   :  { %125 = vmatpush3.bf16.msra.mxu0 %v32_v14 }
  0x12   :  { %126 = vmatprep.subr.bf16.mxu0 %v31_v17 }
  0x15   :  { %127 = vmatpush3.bf16.msra.mxu0 %v31_v17 }
  0x18   :  { %129 = vmatmul.mubr.msk.bf16.vlgmr.msra.gmra.mxu0 %vm43_vm0, %v30_v20 }
  0xd8   :  { %v130_v22 = vpop.f32.mrf.mxu0 }
  0xd9   :  { %v93_v23 = vadd.f32 %v130_v22, %v108_v21 }
  0xda   :  { %v84_v24 = vpop.f32.mrf.mxu0 }
  0xdb   :  { %102 = vst.msk [vmem:[%s214_s3 + $0x10] sm:$0xff] %vm99_vm1, %v93_v23  ;;  %v85_v25 = vadd.f32 %v108_v21, %v84_v24 }
  0xdc   :  { %v131_v26 = vpop.f32.mrf.mxu0 }
  0xdd   :  { %100 = vst.msk [vmem:[%s214_s3] sm:$0xff] %vm99_vm1, %v85_v25  ;;  %v96_v27 = vadd.f32 %v131_v26, %v108_v21 }
  0xde   :  { %v87_v28 = vpop.f32.mrf.mxu0 }
  0xdf   :  { %103 = vst.msk [vmem:[%s214_s3 + $0x18] sm:$0xff] %vm99_vm1, %v96_v27  ;;  %v88_v29 = vadd.f32 %v108_v21, %v87_v28 }
  0xe1   :  { %101 = vst.msk [vmem:[%s214_s3 + $0x8] sm:$0xff] %vm99_vm1, %v88_v29 }

// kernel: qanet_forward.34
= control target key start
LH: loop header
LB: loop body
LE: loop exit
PB: predicated region body
PF: predicated region fallthrough
CT: control target
= control target key end

     0   :  { %vm32_vm0 = vcmask 261120   ;;  %s345_s1 = inlined_call_operand.vmem [shape: f32[2,32,32], index: 1, kind: input, shape index: {}]   ;;  %s346_s0 = inlined_call_operand.vmem [shape: f32[32,32], index: 0, kind: input, shape index: {}]   ;;  %s347_s2 = inlined_call_operand.vmem [shape: f32[2,32], index: 2, kind: input, shape index: {}]   ;;  %s348_s3 = inlined_call_operand.vmem [shape: f32[32,32], index: 3, kind: output, shape index: {}]  }
   0x1   :  { %v21_v0 = vld [vmem:[%s345_s1 + $0x10] sm:$0xff]  ;;  %v22_v1 = vld [vmem:[%s345_s1 + $0x18] sm:$0xff]  ;;  %v19_v2 = vld [vmem:[%s345_s1] sm:$0xff] }
   0x2   :  { %v26_v3 = vpack.c.bf16 %v22_v1, %v21_v0  ;;  %v20_v4 = vld [vmem:[%s345_s1 + $0x8] sm:$0xff]  ;;  %v286_v5 = vld [vmem:[%s346_s0] sm:$0xff]  ;;  %v206_v9 = vld [vmem:[%s345_s1 + $0x30] sm:$0xff] }
   0x3   :  { %v291_v6 = vld [vmem:[%s346_s0 + $0x8] sm:$0xff]  ;;  %v25_v7 = vpack.c.bf16 %v20_v4, %v19_v2  ;;  %v207_v10 = vld [vmem:[%s345_s1 + $0x38] sm:$0xff]  ;;  %v204_v11 = vld [vmem:[%s345_s1 + $0x20] sm:$0xff] }
   0x4   :  { %v23_v8 = vpack.c.bf16 %v291_v6, %v286_v5  ;;  %219 = vmatprep.subr.bf16.mxu0 %v26_v3  ;;  %v205_v12 = vld [vmem:[%s345_s1 + $0x28] sm:$0xff]  ;;  %v17_v13 = vld [vmem:[%s346_s0 + $0x10] sm:$0xff]  ;;  %v314_v14 = vld [vmem:[%s346_s0 + $0x18] sm:$0xff]  ;;  %v118_v15 = vpack.c.bf16 %v207_v10, %v206_v9 }
   0x5   :  { %220 = vmatpush3.bf16.msra.mxu0 %v26_v3  ;;  %v117_v16 = vpack.c.bf16 %v205_v12, %v204_v11  ;;  %v24_v17 = vpack.c.bf16 %v314_v14, %v17_v13  ;;  %v197_v18 = vld [vmem:[%s347_s2] ss:$0 sm:$0xff]  ;;  %v208_v41 = vld [vmem:[%s347_s2 + $0x1] ss:$0 sm:$0xff] }
   0x6   :  { %223 = vmatprep.mubr.msk.bf16.mxu0 %vm32_vm0, %v23_v8  ;;  %221 = vmatprep.subr.bf16.mxu0 %v25_v7 }
   0x7   :  { %231 = vmatprep.mubr.msk.bf16.mxu1 %vm32_vm0, %v23_v8  ;;  %227 = vmatprep.subr.bf16.mxu1 %v118_v15 }
   0x8   :  { %228 = vmatpush3.bf16.msra.mxu1 %v118_v15 }
   0x9   :  { %222 = vmatpush3.bf16.msra.mxu0 %v25_v7  ;;  %229 = vmatprep.subr.bf16.mxu1 %v117_v16 }
   0xc   :  { %224 = vmatmul.mubr.msk.bf16.vlgmr.msra.gmra.mxu0 %vm32_vm0, %v24_v17  ;;  %230 = vmatpush3.bf16.msra.mxu1 %v117_v16 }
   0xf   :  { %232 = vmatmul.mubr.msk.bf16.vlgmr.msra.gmra.mxu1 %vm32_vm0, %v24_v17 }
  0xcc   :  { %v225_v19 = vpop.f32.mrf.mxu0 }
  0xcd   :  { %v82_v20 = vadd.f32 %v225_v19, %v197_v18 }
  0xce   :  { %v73_v21 = vpop.f32.mrf.mxu0 }
  0xcf   :  { %v202_v22 = vmul.f32 -1.442695, %v82_v20  ;;  %v74_v23 = vadd.f32 %v197_v18, %v73_v21  ;;  %v233_v39 = vpop.f32.mrf.mxu1 }
  0xd0   :  { %v226_v24 = vpop.f32.mrf.mxu0  ;;  %v167_v42 = vadd.f32 %v233_v39, %v208_v41 }
  0xd1   :  { %235 = vpow2.f32 %v202_v22  ;;  %v200_v25 = vmul.f32 -1.442695, %v74_v23  ;;  %v85_v26 = vadd.f32 %v226_v24, %v197_v18  ;;  %v158_v40 = vpop.f32.mrf.mxu1 }
  0xd2   :  { %v76_v27 = vpop.f32.mrf.mxu0  ;;  %v159_v46 = vadd.f32 %v208_v41, %v158_v40 }
  0xd3   :  { %237 = vpow2.f32 %v200_v25  ;;  %v203_v28 = vmul.f32 -1.442695, %v85_v26  ;;  %v77_v29 = vadd.f32 %v197_v18, %v76_v27  ;;  %v234_v43 = vpop.f32.mrf.mxu1 }
  0xd4   :  { %v170_v53 = vadd.f32 %v234_v43, %v208_v41 }
  0xd5   :  { %239 = vpow2.f32 %v203_v28  ;;  %v201_v30 = vmul.f32 -1.442695, %v77_v29  ;;  %v161_v51 = vpop.f32.mrf.mxu1 }
  0xd6   :  { %v162_v59 = vadd.f32 %v208_v41, %v161_v51 }
  0xd7   :  { %241 = vpow2.f32 %v201_v30 }
  0xde   :  { %v236_v31 = vpop.eup %235 }
  0xdf   :  { %v102_v32 = vadd.f32 1.0, %v236_v31 }
  0xe0   :  { %v238_v33 = vpop.eup %237 }
  0xe1   :  { %243 = vrcp.f32 %v102_v32  ;;  %v100_v34 = vadd.f32 1.0, %v238_v33 }
  0xe2   :  { %v240_v35 = vpop.eup %239 }
  0xe3   :  { %245 = vrcp.f32 %v100_v34  ;;  %v103_v36 = vadd.f32 1.0, %v240_v35 }
  0xe4   :  { %v242_v37 = vpop.eup %241 }
  0xe5   :  { %247 = vrcp.f32 %v103_v36  ;;  %v101_v38 = vadd.f32 1.0, %v242_v37 }
  0xe7   :  { %249 = vrcp.f32 %v101_v38 }
  0xee   :  { %v244_v44 = vpop.eup %243 }
  0xef   :  { %v179_v45 = vsub.f32 1.0, %v244_v44  ;;  %v175_v48 = vmul.f32 %v244_v44, %v167_v42 }
  0xf0   :  { %v246_v47 = vpop.eup %245 }
  0xf1   :  { %v183_v49 = vmul.f32 %v179_v45, %v17_v13  ;;  %v177_v50 = vsub.f32 1.0, %v246_v47  ;;  %v173_v55 = vmul.f32 %v246_v47, %v159_v46 }
  0xf2   :  { %v248_v52 = vpop.eup %247 }
  0xf3   :  { %v187_v54 = vadd.f32 %v183_v49, %v175_v48  ;;  %v181_v56 = vmul.f32 %v177_v50, %v286_v5  ;;  %v180_v57 = vsub.f32 1.0, %v248_v52  ;;  %v176_v61 = vmul.f32 %v248_v52, %v170_v53 }
  0xf4   :  { %v250_v58 = vpop.eup %249 }
  0xf5   :  { %191 = vst.msk [vmem:[%s348_s3 + $0x10] sm:$0xff] %vm32_vm0, %v187_v54  ;;  %v185_v60 = vadd.f32 %v181_v56, %v173_v55  ;;  %v184_v62 = vmul.f32 %v180_v57, %v314_v14  ;;  %v178_v63 = vsub.f32 1.0, %v250_v58  ;;  %v174_v1 = vmul.f32 %v250_v58, %v162_v59 }
  0xf7   :  { %189 = vst.msk [vmem:[%s348_s3] sm:$0xff] %vm32_vm0, %v185_v60  ;;  %v188_v0 = vadd.f32 %v184_v62, %v176_v61  ;;  %v182_v2 = vmul.f32 %v178_v63, %v291_v6 }
  0xf9   :  { %192 = vst.msk [vmem:[%s348_s3 + $0x18] sm:$0xff] %vm32_vm0, %v188_v0  ;;  %v186_v3 = vadd.f32 %v182_v2, %v174_v1 }
  0xfb   :  { %190 = vst.msk [vmem:[%s348_s3 + $0x8] sm:$0xff] %vm32_vm0, %v186_v3 }

// kernel: qanet_forward.40
= control target key start
LH: loop header
LB: loop body
LE: loop exit
PB: predicated region body
PF: predicated region fallthrough
CT: control target
= control target key end

     0   :  { %s2014_s25 = smov 0   ;;  %s2425_s0 = inlined_call_operand.vmem [shape: f32[2,1,16], index: 0, kind: input, shape index: {}]   ;;  %s2426_s1 = inlined_call_operand.vmem [shape: f32[2,16,32], index: 1, kind: input, shape index: {}]   ;;  %s2427_s2 = inlined_call_operand.vmem [shape: f32[16,32], index: 2, kind: input, shape index: {}]   ;;  %s2428_s3 = inlined_call_operand.vmem [shape: f32[4,32], index: 3, kind: input, shape index: {}]   ;;  %s2429_s4 = inlined_call_operand.vmem [shape: f32[4,32], index: 4, kind: input, shape index: {}]   ;;  %s2430_s5 = inlined_call_operand.vmem [shape: f32[4,7,32], index: 5, kind: input, shape index: {}]   ;;  %s2431_s6 = inlined_call_operand.vmem [shape: f32[4,32,32], index: 6, kind: input, shape index: {}]   ;;  %s2432_s7 = inlined_call_operand.vmem [shape: f32[4,32], index: 7, kind: input, shape index: {}]   ;;  %s2433_s8 = inlined_call_operand.vmem [shape: f32[2,32], index: 8, kind: input, shape index: {}]   ;;  %s2434_s9 = inlined_call_operand.vmem [shape: f32[2,32], index: 9, kind: input, shape index: {}]   ;;  %s2435_s10 = inlined_call_operand.vmem [shape: f32[3,32,32], index: 10, kind: input, shape index: {}]   ;;  %s2436_s11 = inlined_call_operand.vmem [shape: f32[2,32,32], index: 11, kind: input, shape index: {}]   ;;  %s2437_s12 = inlined_call_operand.vmem [shape: f32[2,32], index: 12, kind: input, shape index: {}]   ;;  %s2438_s13 = inlined_call_operand.vmem [shape: f32[2,16,32], index: 13, kind: output, shape index: {}]  }
   0x1 LB: > { %s1706_s26 = sadd.s32 4294967295, %s1939_s25   ;;  %p1710_p0 = scmp.ge.s32.totalorder %s1939_s25, 1  ;;  %s1939_s25 = sphi %s2014_s25, %s23_s25  }
   0x2   : > { %p395_p1 = scmp.lt.s32.totalorder %s1939_s25, 3 }
   0x4   : > { %p396_p2 = pnand %p1710_p0, %p395_p1 }
   0x5   : > { %p442_p3 = scmp.lt.s32.totalorder (!%p396_p2), %s1706_s26, 1 }
   0x6   : > { %399 = sbr.rel (%p396_p2) target bundleno = 4110 (0x100e), region = 72 }
   0xb   : > { %s2440_s26 = smov (!%p442_p3, %s1706_s26), 1  ;;  %v458_v0 = vld [vmem:[%s2427_s2] sm:$0xff]  ;;  %v459_v1 = vld [vmem:[%s2427_s2 + $0x8] sm:$0xff]  ;;  %vm462_vm0 = vcmask 261120   ;;  %v1941_v8 = vmov 0.0   ;;  %v583_v19 = vld [vmem:[%s2431_s6 + $0x10] sm:$0xff]  ;;  %v513_v31 = vlaneseq }
   0xc   : > { %s1773_s27 = sshll.u32 %s2440_s26, 4  ;;  %464 = vst.msk [vmem:[#allocation2 + $0x8] sm:$0xff] %vm462_vm0, %v1941_v8  ;;  %463 = vst.msk [vmem:[#allocation2] sm:$0xff] %vm462_vm0, %v1941_v8  ;;  %1806 = vmatprep.subr.bf16.mxu0 %v1941_v8  ;;  %1814 = vmatprep.subr.bf16.mxu1 %v1941_v8  ;;  %v584_v20 = vld [vmem:[%s2431_s6 + $0x18] sm:$0xff]  ;;  %v581_v21 = vld [vmem:[%s2431_s6] sm:$0xff]  ;;  %vm1942_vm1 = vmmov 0   ;;  %s444_s14 = scalar_lea.vmem %s2425_s0, %s2440_s26 }
   0xd   : > { %s449_s17 = scalar_lea.vmem %s2426_s1, %s1773_s27  ;;  %465 = vst.msk [vmem:[#allocation2 + $0x10] sm:$0xff] %vm462_vm0, %v1941_v8  ;;  %466 = vst.msk [vmem:[#allocation2 + $0x18] sm:$0xff] %vm462_vm0, %v1941_v8  ;;  %v587_v22 = vpack.c.bf16 %v584_v20, %v583_v19  ;;  %v582_v23 = vld [vmem:[%s2431_s6 + $0x8] sm:$0xff]  ;;  %1810 = vmatprep.mubr.msk.bf16.mxu0 %vm1942_vm1, %v1941_v8  ;;  %1818 = vmatprep.mubr.msk.bf16.mxu1 %vm1942_vm1, %v1941_v8  ;;  %v1715_v33 = vld [vmem:[%s2428_s3] ss:$0 sm:$0xff]  ;;  %v514_v37 = vshrl.u32 %v513_v31, 7  ;;  %s454_s30 = scalar_lea.vmem %s2438_s13, %s1773_s27 }
   0xe   : > { %v456_v2 = vld [vmem:[%s449_s17] sm:$0xff]  ;;  %v457_v3 = vld [vmem:[%s449_s17 + $0x8] sm:$0xff]  ;;  %v586_v24 = vpack.c.bf16 %v582_v23, %v581_v21  ;;  %vm1414_vm4 = vcmask 130048  }
   0xf   : > { %v2036_v4 = vadd.f32 %v458_v0, %v456_v2  ;;  %v2038_v5 = vadd.f32 %v459_v1, %v457_v3  ;;  %1807 = vmatpush3.bf16.msra.mxu0 %v587_v22  ;;  %v1716_v35 = vld [vmem:[%s2429_s4] ss:$0 sm:$0xff]  ;;  %v2083_v42 = vsub.s32 0, %v514_v37  ;;  %v2085_v43 = vsub.s32 1, %v514_v37 }
  0x10   : > { %1808 = vmatprep.subr.bf16.mxu0 %v1941_v8  ;;  %v510_v44 = vld [vmem:[%s2430_s5] sm:$0x7f]  ;;  %v2090_v46 = vsub.s32 2, %v514_v37  ;;  %v2095_v49 = vsub.s32 3, %v514_v37  ;;  %v2098_v51 = vsub.s32 4, %v514_v37  ;;  %v2101_v59 = vsub.s32 5, %v514_v37 }
  0x11   : > { %v469_v6 = vsel %vm462_vm0, %v2036_v4, 0.0  ;;  %v472_v7 = vsel %vm462_vm0, %v2038_v5, 0.0  ;;  %v516_v47 = vrot.slane %v510_v44, %v2083_v42  ;;  %v526_v48 = vrot.slane %v510_v44, %v2085_v43 }
  0x12   : > { %470 = vadd.xlane.f32.xlu0 %v469_v6  ;;  %v536_v50 = vrot.slane %v510_v44, %v2090_v46  ;;  %v546_v57 = vrot.slane %v510_v44, %v2095_v49  ;;  %v556_v62 = vrot.slane %v510_v44, %v2098_v51 }
  0x13   : > { %1809 = vmatpush3.bf16.msra.mxu0 %v586_v24 }
  0x14   : > { %1822 = vmatprep.subr.bf16.mxu0 %v1941_v8 }
  0x16   : > { %473 = vadd.xlane.f32.xlu0 %v472_v7 }
  0x9b   : > { %v471_v9 = vpop.xlane.xlu0 %470 }
  0x9c   : > { %v476_v10 = vmul.f32 0.03125, %v471_v9 }
  0x9e   : > { %v478_v11 = vsub.f32 %v2036_v4, %v476_v10 }
  0x9f   : > { %v474_v12 = vpop.xlane.xlu0 %473 }
  0xa0   : > { %v477_v13 = vmul.f32 0.03125, %v474_v12  ;;  %v480_v14 = vmul.f32 %v478_v11, %v478_v11  ;;  %v2105_v12 = vsub.s32 6, %v514_v37 }
  0xa2   : > { %v479_v15 = vsub.f32 %v2038_v5, %v477_v13  ;;  %v482_v16 = vsel %vm462_vm0, %v480_v14, 0.0 }
  0xa3   : > { %483 = vadd.xlane.f32.xlu1 %v482_v16 }
  0xa4   : > { %v481_v17 = vmul.f32 %v479_v15, %v479_v15 }
  0xa6   : > { %v485_v18 = vsel %vm462_vm0, %v481_v17, 0.0 }
  0xa7   : > { %486 = vadd.xlane.f32.xlu1 %v485_v18 }
 0x12c   : > { %v484_v25 = vpop.xlane.xlu1 %483 }
 0x12d   : > { %v488_v26 = vmul.f32 0.03125, %v484_v25 }
 0x12f   : > { %v490_v27 = vadd.f32 1e-05, %v488_v26  ;;  %v576_v26 = vrot.slane %v510_v44, %v2105_v12 }
 0x130   : > { %v487_v28 = vpop.xlane.xlu1 %486 }
 0x131   : > { %1901 = vrsqrt.f32 %v490_v27  ;;  %v489_v29 = vmul.f32 0.03125, %v487_v28 }
 0x133   : > { %v491_v30 = vadd.f32 1e-05, %v489_v29 }
 0x135   : > { %1903 = vrsqrt.f32 %v491_v30 }
 0x13e   : > { %v1902_v32 = vpop.eup %1901 }
 0x13f   : > { %v494_v34 = vmul.f32 %v1902_v32, %v478_v11  ;;  %v566_v11 = vrot.slane %v510_v44, %v2101_v59 }
 0x141   : > { %v500_v36 = vmul.f32 %v1715_v33, %v494_v34 }
 0x142   : > { %v1904_v38 = vpop.eup %1903 }
 0x143   : > { %v506_v39 = vadd.f32 %v1716_v35, %v500_v36  ;;  %v495_v40 = vmul.f32 %v1904_v38, %v479_v15  ;;  %v1717_v38 = vld [vmem:[%s2432_s7] ss:$0 sm:$0xff] }
 0x145   : > { %508 = vst.msk [vmem:[#allocation2 + $0x8] sm:$0xff] %vm462_vm0, %v506_v39  ;;  %v501_v41 = vmul.f32 %v1715_v33, %v495_v40 }
 0x147   : > { %v507_v45 = vadd.f32 %v1716_v35, %v501_v41 }
 0x149   : > { %509 = vst.msk [vmem:[#allocation2 + $0x10] sm:$0xff] %vm462_vm0, %v507_v45 }
 0x14c   : > { %v511_v52 = vld [vmem:[#allocation2 + $0x5] sm:$0xff] }
 0x14d   : > { %v521_v53 = vld [vmem:[#allocation2 + $0x6] sm:$0xff]  ;;  %v517_v55 = vmul.f32 %v516_v47, %v511_v52 }
 0x14e   : > { %v531_v54 = vld [vmem:[#allocation2 + $0x7] sm:$0xff]  ;;  %v527_v56 = vmul.f32 %v526_v48, %v521_v53 }
 0x14f   : > { %v541_v58 = vld [vmem:[#allocation2 + $0x8] sm:$0xff]  ;;  %v537_v61 = vmul.f32 %v536_v50, %v531_v54 }
 0x150   : > { %v529_v60 = vadd.f32 %v527_v56, %v517_v55  ;;  %v512_v63 = vld [vmem:[#allocation2 + $0xd] sm:$0xff]  ;;  %v547_v7 = vmul.f32 %v546_v57, %v541_v58 }
 0x151   : > { %v522_v0 = vld [vmem:[#allocation2 + $0xe] sm:$0xff]  ;;  %v518_v2 = vmul.f32 %v516_v47, %v512_v63 }
 0x152   : > { %v532_v1 = vld [vmem:[#allocation2 + $0xf] sm:$0xff]  ;;  %v528_v3 = vmul.f32 %v526_v48, %v522_v0  ;;  %v539_v6 = vadd.f32 %v537_v61, %v529_v60 }
 0x153   : > { %v551_v9 = vld [vmem:[#allocation2 + $0x9] sm:$0xff]  ;;  %v538_v14 = vmul.f32 %v536_v50, %v532_v1  ;;  %v552_v17 = vld [vmem:[#allocation2 + $0x11] sm:$0xff] }
 0x154   : > { %v542_v10 = vld [vmem:[#allocation2 + $0x10] sm:$0xff]  ;;  %v530_v13 = vadd.f32 %v528_v3, %v518_v2  ;;  %v549_v15 = vadd.f32 %v547_v7, %v539_v6  ;;  %v557_v16 = vmul.f32 %v556_v62, %v551_v9  ;;  %v558_v24 = vmul.f32 %v556_v62, %v552_v17  ;;  %v1725_v2 = vld [vmem:[%s2431_s6 + $0x38] sm:$0xff]  ;;  %v1722_v3 = vld [vmem:[%s2431_s6 + $0x20] sm:$0xff] }
 0x155   : > { %v561_v18 = vld [vmem:[#allocation2 + $0xa] sm:$0xff]  ;;  %v548_v20 = vmul.f32 %v546_v57, %v542_v10  ;;  %v562_v22 = vld [vmem:[#allocation2 + $0x12] sm:$0xff] }
 0x156   : > { %v540_v19 = vadd.f32 %v538_v14, %v530_v13  ;;  %v559_v21 = vadd.f32 %v557_v16, %v549_v15  ;;  %v567_v25 = vmul.f32 %v566_v11, %v561_v18  ;;  %v571_v27 = vld [vmem:[#allocation2 + $0xb] sm:$0xff]  ;;  %v572_v28 = vld [vmem:[#allocation2 + $0x13] sm:$0xff]  ;;  %v568_v30 = vmul.f32 %v566_v11, %v562_v22  ;;  %v1719_v18 = vld [vmem:[%s2428_s3 + $0x1] ss:$0 sm:$0xff] }
 0x157   : > { %v577_v33 = vmul.f32 %v576_v26, %v571_v27  ;;  %v578_v34 = vmul.f32 %v576_v26, %v572_v28  ;;  %v1724_v1 = vld [vmem:[%s2431_s6 + $0x30] sm:$0xff]  ;;  %v1723_v7 = vld [vmem:[%s2431_s6 + $0x28] sm:$0xff] }
 0x158   : > { %v550_v23 = vadd.f32 %v548_v20, %v540_v19  ;;  %v569_v31 = vadd.f32 %v567_v25, %v559_v21  ;;  %v762_v6 = vpack.c.bf16 %v1725_v2, %v1724_v1  ;;  %v761_v9 = vpack.c.bf16 %v1723_v7, %v1722_v3  ;;  %v1720_v20 = vld [vmem:[%s2429_s4 + $0x1] ss:$0 sm:$0xff]  ;;  %v1721_v26 = vld [vmem:[%s2430_s5 + $0x8] sm:$0x7f] }
 0x159   : > { %v690_v28 = vrot.slane %v1721_v26, %v2083_v42 }
 0x15a   : > { %v560_v29 = vadd.f32 %v558_v24, %v550_v23  ;;  %v579_v35 = vadd.f32 %v577_v33, %v569_v31  ;;  %1815 = vmatpush3.bf16.msra.mxu1 %v762_v6 }
 0x15b   : > { %1816 = vmatprep.subr.bf16.mxu1 %v1941_v8 }
 0x15c   : > { %v570_v32 = vadd.f32 %v568_v30, %v560_v29  ;;  %v700_v29 = vrot.slane %v1721_v26, %v2085_v43  ;;  %v710_v30 = vrot.slane %v1721_v26, %v2090_v46 }
 0x15e   : > { %v580_v36 = vadd.f32 %v578_v34, %v570_v32  ;;  %1817 = vmatpush3.bf16.msra.mxu1 %v761_v9  ;;  %v750_v9 = vrot.slane %v1721_v26, %v2105_v12 }
 0x15f   : > { %1830 = vmatprep.subr.bf16.mxu1 %v1941_v8 }
 0x160   : > { %v585_v37 = vpack.c.bf16 %v580_v36, %v579_v35  ;;  %v720_v36 = vrot.slane %v1721_v26, %v2095_v49 }
 0x162   : > { %1811 = vmatmul.mubr.msk.bf16.vlgmr.msra.gmra.mxu0 %vm462_vm0, %v585_v37 }
 0x163   : > { %1826 = vmatprep.mubr.msk.bf16.mxu0 %vm1942_vm1, %v1941_v8 }
 0x222   : > { %v630_v39 = vpop.f32.mrf.mxu0 }
 0x223   : > { %v631_v40 = vadd.f32 %v1717_v38, %v630_v39 }
 0x224   : > { %v1812_v41 = vpop.f32.mrf.mxu0 }
 0x225   : > { %v637_v44 = vmax.f32 %v631_v40, 0.0  ;;  %v730_v40 = vrot.slane %v1721_v26, %v2098_v51 }
 0x226   : > { %v633_v45 = vpop.f32.mrf.mxu0 }
 0x227   : > { %v2115_v47 = vadd.f32 %v637_v44, %v2036_v4  ;;  %v634_v48 = vadd.f32 %v1717_v38, %v633_v45 }
 0x228   : > { %v1813_v50 = vpop.f32.mrf.mxu0 }
 0x229   : > { %v638_v52 = vmax.f32 %v634_v48, 0.0  ;;  %v643_v53 = vsel %vm462_vm0, %v2115_v47, 0.0 }
 0x22a   : > { %644 = vadd.xlane.f32.xlu0 %v643_v53 }
 0x22b   : > { %v2120_v54 = vadd.f32 %v638_v52, %v2038_v5 }
 0x22d   : > { %v646_v55 = vsel %vm462_vm0, %v2120_v54, 0.0 }
 0x22e   : > { %647 = vadd.xlane.f32.xlu1 %v646_v55 }
 0x2b3   : > { %v645_v56 = vpop.xlane.xlu0 %644 }
 0x2b4   : > { %v649_v57 = vmul.f32 0.03125, %v645_v56 }
 0x2b6   : > { %v651_v58 = vsub.f32 %v2115_v47, %v649_v57  ;;  %v740_v57 = vrot.slane %v1721_v26, %v2101_v59 }
 0x2b7   : > { %v648_v4 = vpop.xlane.xlu1 %647 }
 0x2b8   : > { %v650_v60 = vmul.f32 0.03125, %v648_v4  ;;  %v653_v61 = vmul.f32 %v651_v58, %v651_v58 }
 0x2ba   : > { %v652_v62 = vsub.f32 %v2120_v54, %v650_v60  ;;  %v655_v63 = vsel %vm462_vm0, %v653_v61, 0.0 }
 0x2bb   : > { %656 = vadd.xlane.f32.xlu0 %v655_v63 }
 0x2bc   : > { %v654_v0 = vmul.f32 %v652_v62, %v652_v62 }
 0x2be   : > { %v658_v5 = vsel %vm462_vm0, %v654_v0, 0.0 }
 0x2bf   : > { %659 = vadd.xlane.f32.xlu1 %v658_v5 }
 0x344   : > { %v657_v10 = vpop.xlane.xlu0 %656 }
 0x345   : > { %v661_v11 = vmul.f32 0.03125, %v657_v10 }
 0x347   : > { %v663_v13 = vadd.f32 1e-05, %v661_v11 }
 0x348   : > { %v660_v14 = vpop.xlane.xlu1 %659 }
 0x349   : > { %1905 = vrsqrt.f32 %v663_v13  ;;  %v662_v15 = vmul.f32 0.03125, %v660_v14 }
 0x34b   : > { %v664_v16 = vadd.f32 1e-05, %v662_v15 }
 0x34d   : > { %1907 = vrsqrt.f32 %v664_v16 }
 0x356   : > { %v1906_v17 = vpop.eup %1905 }
 0x357   : > { %v667_v19 = vmul.f32 %v1906_v17, %v651_v58 }
 0x359   : > { %v673_v21 = vmul.f32 %v1719_v18, %v667_v19 }
 0x35a   : > { %v1908_v22 = vpop.eup %1907 }
 0x35b   : > { %v679_v23 = vadd.f32 %v1720_v20, %v673_v21  ;;  %v668_v24 = vmul.f32 %v1908_v22, %v652_v62  ;;  %v1726_v22 = vld [vmem:[%s2432_s7 + $0x1] ss:$0 sm:$0xff] }
 0x35d   : > { %681 = vst.msk [vmem:[#allocation2 + $0x8] sm:$0xff] %vm462_vm0, %v679_v23  ;;  %v674_v25 = vmul.f32 %v1719_v18, %v668_v24 }
 0x35f   : > { %v680_v27 = vadd.f32 %v1720_v20, %v674_v25 }
 0x361   : > { %682 = vst.msk [vmem:[#allocation2 + $0x10] sm:$0xff] %vm462_vm0, %v680_v27 }
 0x364   : > { %v685_v31 = vld [vmem:[#allocation2 + $0x5] sm:$0xff] }
 0x365   : > { %v695_v32 = vld [vmem:[#allocation2 + $0x6] sm:$0xff]  ;;  %v691_v34 = vmul.f32 %v690_v28, %v685_v31 }
 0x366   : > { %v705_v33 = vld [vmem:[#allocation2 + $0x7] sm:$0xff]  ;;  %v701_v35 = vmul.f32 %v700_v29, %v695_v32 }
 0x367   : > { %v715_v37 = vld [vmem:[#allocation2 + $0x8] sm:$0xff]  ;;  %v711_v39 = vmul.f32 %v710_v30, %v705_v33 }
 0x368   : > { %v703_v38 = vadd.f32 %v701_v35, %v691_v34  ;;  %v686_v41 = vld [vmem:[#allocation2 + $0xd] sm:$0xff]  ;;  %v721_v53 = vmul.f32 %v720_v36, %v715_v37 }
 0x369   : > { %v696_v44 = vld [vmem:[#allocation2 + $0xe] sm:$0xff]  ;;  %v692_v48 = vmul.f32 %v690_v28, %v686_v41 }
 0x36a   : > { %v706_v45 = vld [vmem:[#allocation2 + $0xf] sm:$0xff]  ;;  %v702_v50 = vmul.f32 %v700_v29, %v696_v44  ;;  %v713_v52 = vadd.f32 %v711_v39, %v703_v38 }
 0x36b   : > { %v725_v55 = vld [vmem:[#allocation2 + $0x9] sm:$0xff]  ;;  %v712_v4 = vmul.f32 %v710_v30, %v706_v45  ;;  %v726_v62 = vld [vmem:[#allocation2 + $0x11] sm:$0xff] }
 0x36c   : > { %v716_v56 = vld [vmem:[#allocation2 + $0x10] sm:$0xff]  ;;  %v704_v58 = vadd.f32 %v702_v50, %v692_v48  ;;  %v723_v60 = vadd.f32 %v721_v53, %v713_v52  ;;  %v731_v61 = vmul.f32 %v730_v40, %v725_v55  ;;  %v732_v6 = vmul.f32 %v730_v40, %v726_v62  ;;  %v1734_v48 = vld [vmem:[%s2431_s6 + $0x58] sm:$0xff]  ;;  %v1731_v50 = vld [vmem:[%s2431_s6 + $0x40] sm:$0xff] }
 0x36d   : > { %v735_v63 = vld [vmem:[#allocation2 + $0xa] sm:$0xff]  ;;  %v722_v5 = vmul.f32 %v720_v36, %v716_v56  ;;  %v736_v2 = vld [vmem:[#allocation2 + $0x12] sm:$0xff] }
 0x36e   : > { %v714_v0 = vadd.f32 %v712_v4, %v704_v58  ;;  %v733_v1 = vadd.f32 %v731_v61, %v723_v60  ;;  %v741_v7 = vmul.f32 %v740_v57, %v735_v63  ;;  %v745_v10 = vld [vmem:[#allocation2 + $0xb] sm:$0xff]  ;;  %v746_v11 = vld [vmem:[#allocation2 + $0x13] sm:$0xff]  ;;  %v742_v14 = vmul.f32 %v740_v57, %v736_v2  ;;  %v1728_v63 = vld [vmem:[%s2428_s3 + $0x2] ss:$0 sm:$0xff] }
 0x36f   : > { %v751_v17 = vmul.f32 %v750_v9, %v745_v10  ;;  %v752_v18 = vmul.f32 %v750_v9, %v746_v11  ;;  %v1733_v45 = vld [vmem:[%s2431_s6 + $0x50] sm:$0xff]  ;;  %v1732_v53 = vld [vmem:[%s2431_s6 + $0x48] sm:$0xff] }
 0x370   : > { %v724_v3 = vadd.f32 %v722_v5, %v714_v0  ;;  %v743_v15 = vadd.f32 %v741_v7, %v733_v1  ;;  %v937_v52 = vpack.c.bf16 %v1734_v48, %v1733_v45  ;;  %v936_v55 = vpack.c.bf16 %v1732_v53, %v1731_v50  ;;  %v1729_v5 = vld [vmem:[%s2429_s4 + $0x2] ss:$0 sm:$0xff]  ;;  %v1730_v9 = vld [vmem:[%s2430_s5 + $0x10] sm:$0x7f] }
 0x371   : > { %v865_v11 = vrot.slane %v1730_v9, %v2083_v42 }
 0x372   : > { %v734_v13 = vadd.f32 %v732_v6, %v724_v3  ;;  %v753_v19 = vadd.f32 %v751_v17, %v743_v15  ;;  %1823 = vmatpush3.bf16.msra.mxu0 %v937_v52 }
 0x373   : > { %1824 = vmatprep.subr.bf16.mxu0 %v1941_v8 }
 0x374   : > { %v744_v16 = vadd.f32 %v742_v14, %v734_v13  ;;  %v875_v13 = vrot.slane %v1730_v9, %v2085_v43  ;;  %v885_v14 = vrot.slane %v1730_v9, %v2090_v46 }
 0x376   : > { %v754_v20 = vadd.f32 %v752_v18, %v744_v16  ;;  %1825 = vmatpush3.bf16.msra.mxu0 %v936_v55  ;;  %v925_v55 = vrot.slane %v1730_v9, %v2105_v12 }
 0x377   : > { %1838 = vmatprep.subr.bf16.mxu0 %v1941_v8 }
 0x378   : > { %v760_v21 = vpack.c.bf16 %v754_v20, %v753_v19  ;;  %v895_v20 = vrot.slane %v1730_v9, %v2095_v49 }
 0x37a   : > { %1819 = vmatmul.mubr.msk.bf16.vlgmr.msra.gmra.mxu1 %vm462_vm0, %v760_v21 }
 0x37b   : > { %1834 = vmatprep.mubr.msk.bf16.mxu1 %vm1942_vm1, %v1941_v8 }
 0x43a   : > { %v805_v23 = vpop.f32.mrf.mxu1 }
 0x43b   : > { %v806_v24 = vadd.f32 %v1726_v22, %v805_v23 }
 0x43c   : > { %v1820_v25 = vpop.f32.mrf.mxu1 }
 0x43d   : > { %v812_v26 = vmax.f32 %v806_v24, 0.0  ;;  %v905_v24 = vrot.slane %v1730_v9, %v2098_v51 }
 0x43e   : > { %v808_v27 = vpop.f32.mrf.mxu1 }
 0x43f   : > { %v2167_v28 = vadd.f32 %v812_v26, %v2115_v47  ;;  %v809_v29 = vadd.f32 %v1726_v22, %v808_v27 }
 0x440   : > { %v1821_v30 = vpop.f32.mrf.mxu1 }
 0x441   : > { %v813_v31 = vmax.f32 %v809_v29, 0.0  ;;  %v818_v32 = vsel %vm462_vm0, %v2167_v28, 0.0 }
 0x442   : > { %819 = vadd.xlane.f32.xlu0 %v818_v32 }
 0x443   : > { %v2172_v33 = vadd.f32 %v813_v31, %v2120_v54 }
 0x445   : > { %v821_v34 = vsel %vm462_vm0, %v2172_v33, 0.0 }
 0x446   : > { %822 = vadd.xlane.f32.xlu1 %v821_v34 }
 0x4cb   : > { %v820_v35 = vpop.xlane.xlu0 %819 }
 0x4cc   : > { %v824_v36 = vmul.f32 0.03125, %v820_v35 }
 0x4ce   : > { %v826_v37 = vsub.f32 %v2167_v28, %v824_v36  ;;  %v915_v36 = vrot.slane %v1730_v9, %v2101_v59 }
 0x4cf   : > { %v823_v47 = vpop.xlane.xlu1 %822 }
 0x4d0   : > { %v825_v38 = vmul.f32 0.03125, %v823_v47  ;;  %v828_v39 = vmul.f32 %v826_v37, %v826_v37 }
 0x4d2   : > { %v827_v40 = vsub.f32 %v2172_v33, %v825_v38  ;;  %v830_v41 = vsel %vm462_vm0, %v828_v39, 0.0 }
 0x4d3   : > { %831 = vadd.xlane.f32.xlu0 %v830_v41 }
 0x4d4   : > { %v829_v44 = vmul.f32 %v827_v40, %v827_v40 }
 0x4d6   : > { %v833_v54 = vsel %vm462_vm0, %v829_v44, 0.0 }
 0x4d7   : > { %834 = vadd.xlane.f32.xlu1 %v833_v54 }
 0x55c   : > { %v832_v56 = vpop.xlane.xlu0 %831 }
 0x55d   : > { %v836_v57 = vmul.f32 0.03125, %v832_v56 }
 0x55f   : > { %v838_v58 = vadd.f32 1e-05, %v836_v57 }
 0x560   : > { %v835_v4 = vpop.xlane.xlu1 %834 }
 0x561   : > { %1909 = vrsqrt.f32 %v838_v58  ;;  %v837_v60 = vmul.f32 0.03125, %v835_v4 }
 0x563   : > { %v839_v61 = vadd.f32 1e-05, %v837_v60 }
 0x565   : > { %1911 = vrsqrt.f32 %v839_v61 }
 0x56e   : > { %v1910_v62 = vpop.eup %1909 }
 0x56f   : > { %v842_v0 = vmul.f32 %v1910_v62, %v826_v37 }
 0x571   : > { %v848_v1 = vmul.f32 %v1728_v63, %v842_v0 }
 0x572   : > { %v1912_v2 = vpop.eup %1911 }
 0x573   : > { %v854_v3 = vadd.f32 %v1729_v5, %v848_v1  ;;  %v843_v6 = vmul.f32 %v1912_v2, %v827_v40  ;;  %v1735_v2 = vld [vmem:[%s2432_s7 + $0x2] ss:$0 sm:$0xff] }
 0x575   : > { %856 = vst.msk [vmem:[#allocation2 + $0x8] sm:$0xff] %vm462_vm0, %v854_v3  ;;  %v849_v7 = vmul.f32 %v1728_v63, %v843_v6 }
 0x577   : > { %v855_v10 = vadd.f32 %v1729_v5, %v849_v7 }
 0x579   : > { %857 = vst.msk [vmem:[#allocation2 + $0x10] sm:$0xff] %vm462_vm0, %v855_v10 }
 0x57c   : > { %v860_v15 = vld [vmem:[#allocation2 + $0x5] sm:$0xff] }
 0x57d   : > { %v870_v16 = vld [vmem:[#allocation2 + $0x6] sm:$0xff]  ;;  %v866_v18 = vmul.f32 %v865_v11, %v860_v15 }
 0x57e   : > { %v880_v17 = vld [vmem:[#allocation2 + $0x7] sm:$0xff]  ;;  %v876_v19 = vmul.f32 %v875_v13, %v870_v16 }
 0x57f   : > { %v890_v21 = vld [vmem:[#allocation2 + $0x8] sm:$0xff]  ;;  %v886_v23 = vmul.f32 %v885_v14, %v880_v17 }
 0x580   : > { %v878_v22 = vadd.f32 %v876_v19, %v866_v18  ;;  %v861_v25 = vld [vmem:[#allocation2 + $0xd] sm:$0xff]  ;;  %v896_v32 = vmul.f32 %v895_v20, %v890_v21 }
 0x581   : > { %v871_v26 = vld [vmem:[#allocation2 + $0xe] sm:$0xff]  ;;  %v867_v29 = vmul.f32 %v865_v11, %v861_v25 }
 0x582   : > { %v881_v27 = vld [vmem:[#allocation2 + $0xf] sm:$0xff]  ;;  %v877_v30 = vmul.f32 %v875_v13, %v871_v26  ;;  %v888_v31 = vadd.f32 %v886_v23, %v878_v22 }
 0x583   : > { %v900_v34 = vld [vmem:[#allocation2 + $0x9] sm:$0xff]  ;;  %v887_v47 = vmul.f32 %v885_v14, %v881_v27  ;;  %v901_v40 = vld [vmem:[#allocation2 + $0x11] sm:$0xff] }
 0x584   : > { %v891_v35 = vld [vmem:[#allocation2 + $0x10] sm:$0xff]  ;;  %v879_v37 = vadd.f32 %v877_v30, %v867_v29  ;;  %v898_v38 = vadd.f32 %v896_v32, %v888_v31  ;;  %v906_v39 = vmul.f32 %v905_v24, %v900_v34  ;;  %v907_v52 = vmul.f32 %v905_v24, %v901_v40  ;;  %v1743_v29 = vld [vmem:[%s2431_s6 + $0x78] sm:$0xff]  ;;  %v1740_v30 = vld [vmem:[%s2431_s6 + $0x60] sm:$0xff] }
 0x585   : > { %v910_v41 = vld [vmem:[#allocation2 + $0xa] sm:$0xff]  ;;  %v897_v54 = vmul.f32 %v895_v20, %v891_v35  ;;  %v911_v48 = vld [vmem:[#allocation2 + $0x12] sm:$0xff] }
 0x586   : > { %v889_v44 = vadd.f32 %v887_v47, %v879_v37  ;;  %v908_v45 = vadd.f32 %v906_v39, %v898_v38  ;;  %v916_v53 = vmul.f32 %v915_v36, %v910_v41  ;;  %v920_v56 = vld [vmem:[#allocation2 + $0xb] sm:$0xff]  ;;  %v921_v57 = vld [vmem:[#allocation2 + $0x13] sm:$0xff]  ;;  %v917_v4 = vmul.f32 %v915_v36, %v911_v48  ;;  %v1737_v41 = vld [vmem:[%s2428_s3 + $0x3] ss:$0 sm:$0xff] }
 0x587   : > { %v926_v62 = vmul.f32 %v925_v55, %v920_v56  ;;  %v927_v63 = vmul.f32 %v925_v55, %v921_v57  ;;  %v1742_v27 = vld [vmem:[%s2431_s6 + $0x70] sm:$0xff]  ;;  %v1741_v32 = vld [vmem:[%s2431_s6 + $0x68] sm:$0xff]  ;;  %v1739_v55 = vld [vmem:[%s2430_s5 + $0x18] sm:$0x7f] }
 0x588   : > { %v899_v50 = vadd.f32 %v897_v54, %v889_v44  ;;  %v918_v60 = vadd.f32 %v916_v53, %v908_v45  ;;  %v1112_v31 = vpack.c.bf16 %v1743_v29, %v1742_v27  ;;  %v1111_v34 = vpack.c.bf16 %v1741_v32, %v1740_v30  ;;  %v1738_v54 = vld [vmem:[%s2429_s4 + $0x3] ss:$0 sm:$0xff] }
 0x589   : > { %v1040_v57 = vrot.slane %v1739_v55, %v2083_v42  ;;  %v1100_v29 = vrot.slane %v1739_v55, %v2105_v12  ;;  %v1744_v12 = vld [vmem:[%s2432_s7 + $0x3] ss:$0 sm:$0xff] }
 0x58a   : > { %v909_v58 = vadd.f32 %v907_v52, %v899_v50  ;;  %v928_v0 = vadd.f32 %v926_v62, %v918_v60  ;;  %1831 = vmatpush3.bf16.msra.mxu1 %v1112_v31 }
 0x58b   : > { %1832 = vmatprep.subr.bf16.mxu1 %v1941_v8 }
 0x58c   : > { %v919_v61 = vadd.f32 %v917_v4, %v909_v58  ;;  %v1050_v58 = vrot.slane %v1739_v55, %v2085_v43  ;;  %v1060_v4 = vrot.slane %v1739_v55, %v2090_v46 }
 0x58e   : > { %v929_v5 = vadd.f32 %v927_v63, %v919_v61  ;;  %1833 = vmatpush3.bf16.msra.mxu1 %v1111_v34 }
 0x58f   : > { %1846 = vmatprep.subr.bf16.mxu1 %v1941_v8 }
 0x590   : > { %v935_v1 = vpack.c.bf16 %v929_v5, %v928_v0  ;;  %v1070_v5 = vrot.slane %v1739_v55, %v2095_v49 }
 0x592   : > { %1827 = vmatmul.mubr.msk.bf16.vlgmr.msra.gmra.mxu0 %vm462_vm0, %v935_v1 }
 0x593   : > { %1842 = vmatprep.mubr.msk.bf16.mxu0 %vm1942_vm1, %v1941_v8 }
 0x652   : > { %v980_v3 = vpop.f32.mrf.mxu0 }
 0x653   : > { %v981_v6 = vadd.f32 %v1735_v2, %v980_v3 }
 0x654   : > { %v1828_v7 = vpop.f32.mrf.mxu0 }
 0x655   : > { %v987_v9 = vmax.f32 %v981_v6, 0.0  ;;  %v1080_v6 = vrot.slane %v1739_v55, %v2098_v51 }
 0x656   : > { %v983_v10 = vpop.f32.mrf.mxu0 }
 0x657   : > { %v2219_v11 = vadd.f32 %v987_v9, %v2167_v28  ;;  %v984_v13 = vadd.f32 %v1735_v2, %v983_v10 }
 0x658   : > { %v1829_v14 = vpop.f32.mrf.mxu0 }
 0x659   : > { %v988_v15 = vmax.f32 %v984_v13, 0.0  ;;  %v993_v16 = vsel %vm462_vm0, %v2219_v11, 0.0 }
 0x65a   : > { %994 = vadd.xlane.f32.xlu0 %v993_v16 }
 0x65b   : > { %v2224_v17 = vadd.f32 %v988_v15, %v2172_v33 }
 0x65d   : > { %v996_v18 = vsel %vm462_vm0, %v2224_v17, 0.0 }
 0x65e   : > { %997 = vadd.xlane.f32.xlu1 %v996_v18  ;;  %v1090_v18 = vrot.slane %v1739_v55, %v2101_v59 }
 0x6e3   : > { %v995_v19 = vpop.xlane.xlu0 %994 }
 0x6e4   : > { %v999_v20 = vmul.f32 0.03125, %v995_v19 }
 0x6e6   : > { %v1001_v21 = vsub.f32 %v2219_v11, %v999_v20 }
 0x6e7   : > { %v998_v28 = vpop.xlane.xlu1 %997 }
 0x6e8   : > { %v1000_v22 = vmul.f32 0.03125, %v998_v28  ;;  %v1003_v23 = vmul.f32 %v1001_v21, %v1001_v21 }
 0x6ea   : > { %v1002_v24 = vsub.f32 %v2224_v17, %v1000_v22  ;;  %v1005_v25 = vsel %vm462_vm0, %v1003_v23, 0.0 }
 0x6eb   : > { %1006 = vadd.xlane.f32.xlu0 %v1005_v25 }
 0x6ec   : > { %v1004_v26 = vmul.f32 %v1002_v24, %v1002_v24 }
 0x6ee   : > { %v1008_v33 = vsel %vm462_vm0, %v1004_v26, 0.0 }
 0x6ef   : > { %1009 = vadd.xlane.f32.xlu1 %v1008_v33 }
 0x774   : > { %v1007_v35 = vpop.xlane.xlu0 %1006 }
 0x775   : > { %v1011_v36 = vmul.f32 0.03125, %v1007_v35 }
 0x777   : > { %v1013_v37 = vadd.f32 1e-05, %v1011_v36 }
 0x778   : > { %v1010_v47 = vpop.xlane.xlu1 %1009 }
 0x779   : > { %1913 = vrsqrt.f32 %v1013_v37  ;;  %v1012_v38 = vmul.f32 0.03125, %v1010_v47 }
 0x77b   : > { %v1014_v39 = vadd.f32 1e-05, %v1012_v38 }
 0x77d   : > { %1915 = vrsqrt.f32 %v1014_v39 }
 0x786   : > { %v1914_v40 = vpop.eup %1913 }
 0x787   : > { %v1017_v44 = vmul.f32 %v1914_v40, %v1001_v21 }
 0x789   : > { %v1023_v45 = vmul.f32 %v1737_v41, %v1017_v44 }
 0x78a   : > { %v1916_v48 = vpop.eup %1915 }
 0x78b   : > { %v1029_v50 = vadd.f32 %v1738_v54, %v1023_v45  ;;  %v1018_v52 = vmul.f32 %v1916_v48, %v1002_v24 }
 0x78d   : > { %1031 = vst.msk [vmem:[#allocation2 + $0x8] sm:$0xff] %vm462_vm0, %v1029_v50  ;;  %v1024_v53 = vmul.f32 %v1737_v41, %v1018_v52 }
 0x78f   : > { %v1030_v56 = vadd.f32 %v1738_v54, %v1024_v53 }
 0x791   : > { %1032 = vst.msk [vmem:[#allocation2 + $0x10] sm:$0xff] %vm462_vm0, %v1030_v56 }
 0x794   : > { %v1035_v60 = vld [vmem:[#allocation2 + $0x5] sm:$0xff] }
 0x795   : > { %v1045_v61 = vld [vmem:[#allocation2 + $0x6] sm:$0xff]  ;;  %v1041_v63 = vmul.f32 %v1040_v57, %v1035_v60 }
 0x796   : > { %v1055_v62 = vld [vmem:[#allocation2 + $0x7] sm:$0xff]  ;;  %v1051_v0 = vmul.f32 %v1050_v58, %v1045_v61 }
 0x797   : > { %v1065_v1 = vld [vmem:[#allocation2 + $0x8] sm:$0xff]  ;;  %v1061_v3 = vmul.f32 %v1060_v4, %v1055_v62 }
 0x798   : > { %v1053_v2 = vadd.f32 %v1051_v0, %v1041_v63  ;;  %v1036_v7 = vld [vmem:[#allocation2 + $0xd] sm:$0xff]  ;;  %v1071_v15 = vmul.f32 %v1070_v5, %v1065_v1 }
 0x799   : > { %v1046_v9 = vld [vmem:[#allocation2 + $0xe] sm:$0xff]  ;;  %v1042_v13 = vmul.f32 %v1040_v57, %v1036_v7  ;;  %v1752_v7 = vld [vmem:[%s2435_s10 + $0x38] sm:$0xff] }
 0x79a   : > { %v1056_v10 = vld [vmem:[#allocation2 + $0xf] sm:$0xff]  ;;  %v1052_v14 = vmul.f32 %v1050_v58, %v1046_v9  ;;  %v1063_v43 = vadd.f32 %v1061_v3, %v1053_v2  ;;  %v1209_v2 = vld [vmem:[%s2435_s10 + $0x18] sm:$0xff]  ;;  %v1206_v9 = vld [vmem:[%s2435_s10] sm:$0xff] }
 0x79b   : > { %v1075_v46 = vld [vmem:[#allocation2 + $0x9] sm:$0xff]  ;;  %v1062_v20 = vmul.f32 %v1060_v4, %v1056_v10  ;;  %v1076_v28 = vld [vmem:[#allocation2 + $0x11] sm:$0xff] }
 0x79c   : > { %v1066_v16 = vld [vmem:[#allocation2 + $0x10] sm:$0xff]  ;;  %v1054_v19 = vadd.f32 %v1052_v14, %v1042_v13  ;;  %v1073_v21 = vadd.f32 %v1071_v15, %v1063_v43  ;;  %v1081_v49 = vmul.f32 %v1080_v6, %v1075_v46  ;;  %v1082_v33 = vmul.f32 %v1080_v6, %v1076_v28  ;;  %v1207_v10 = vld [vmem:[%s2435_s10 + $0x8] sm:$0xff]  ;;  %v1749_v14 = vld [vmem:[%s2435_s10 + $0x20] sm:$0xff] }
 0x79d   : > { %v1085_v22 = vld [vmem:[#allocation2 + $0xa] sm:$0xff]  ;;  %v1072_v24 = vmul.f32 %v1070_v5, %v1066_v16  ;;  %v1086_v25 = vld [vmem:[#allocation2 + $0x12] sm:$0xff]  ;;  %v1211_v15 = vpack.c.bf16 %v1207_v10, %v1206_v9 }
 0x79e   : > { %v1064_v23 = vadd.f32 %v1062_v20, %v1054_v19  ;;  %v1083_v51 = vadd.f32 %v1081_v49, %v1073_v21  ;;  %v1091_v27 = vmul.f32 %v1090_v18, %v1085_v22  ;;  %v1095_v30 = vld [vmem:[#allocation2 + $0xb] sm:$0xff]  ;;  %v1096_v31 = vld [vmem:[#allocation2 + $0x13] sm:$0xff]  ;;  %v1092_v34 = vmul.f32 %v1090_v18, %v1086_v25 }
 0x79f   : > { %v1101_v36 = vmul.f32 %v1100_v29, %v1095_v30  ;;  %v1102_v37 = vmul.f32 %v1100_v29, %v1096_v31  ;;  %v1208_v1 = vld [vmem:[%s2435_s10 + $0x10] sm:$0xff]  ;;  %v1750_v43 = vld [vmem:[%s2435_s10 + $0x28] sm:$0xff]  ;;  %v1757_v29 = vld [vmem:[%s2435_s10 + $0x58] sm:$0xff] }
 0x7a0   : > { %v1074_v26 = vadd.f32 %v1072_v24, %v1064_v23  ;;  %v1093_v59 = vadd.f32 %v1091_v27, %v1083_v51  ;;  %v1751_v3 = vld [vmem:[%s2435_s10 + $0x30] sm:$0xff]  ;;  %v1212_v6 = vpack.c.bf16 %v1209_v2, %v1208_v1  ;;  %v1262_v46 = vpack.c.bf16 %v1750_v43, %v1749_v14  ;;  %v1746_v23 = vld [vmem:[%s2433_s8] ss:$0 sm:$0xff] }
 0x7a1   : > { %v1263_v13 = vpack.c.bf16 %v1752_v7, %v1751_v3  ;;  %v1756_v27 = vld [vmem:[%s2435_s10 + $0x50] sm:$0xff] }
 0x7a2   : > { %v1084_v32 = vadd.f32 %v1082_v33, %v1074_v26  ;;  %v1103_v47 = vadd.f32 %v1101_v36, %v1093_v59  ;;  %1839 = vmatpush3.bf16.msra.mxu0 %v1212_v6  ;;  %v1747_v26 = vld [vmem:[%s2434_s9] ss:$0 sm:$0xff] }
 0x7a3   : > { %1840 = vmatprep.subr.bf16.mxu0 %v1941_v8  ;;  %v1754_v59 = vld [vmem:[%s2435_s10 + $0x40] sm:$0xff] }
 0x7a4   : > { %v1094_v35 = vadd.f32 %v1092_v34, %v1084_v32  ;;  %v1311_v32 = vpack.c.bf16 %v1757_v29, %v1756_v27 }
 0x7a6   : > { %v1104_v38 = vadd.f32 %v1102_v37, %v1094_v35  ;;  %1841 = vmatpush3.bf16.msra.mxu0 %v1211_v15  ;;  %v1755_v35 = vld [vmem:[%s2435_s10 + $0x48] sm:$0xff] }
 0x7a7   : > { %1854 = vmatprep.subr.bf16.mxu0 %v1941_v8  ;;  %v1310_v36 = vpack.c.bf16 %v1755_v35, %v1754_v59 }
 0x7a8   : > { %v1110_v39 = vpack.c.bf16 %v1104_v38, %v1103_v47 }
 0x7aa   : > { %1835 = vmatmul.mubr.msk.bf16.vlgmr.msra.gmra.mxu1 %vm462_vm0, %v1110_v39 }
 0x7ab   : > { %1850 = vmatprep.mubr.msk.bf16.mxu1 %vm1942_vm1, %v1941_v8  ;;  %1847 = vmatpush3.bf16.msra.mxu1 %v1263_v13 }
 0x7ac   : > { %1848 = vmatprep.subr.bf16.mxu1 %v1941_v8 }
 0x7af   : > { %1849 = vmatpush3.bf16.msra.mxu1 %v1262_v46 }
 0x7b0   : > { %1862 = vmatprep.subr.bf16.mxu1 %v1941_v8 }
 0x86a   : > { %v1155_v40 = vpop.f32.mrf.mxu1 }
 0x86b   : > { %v1156_v41 = vadd.f32 %v1744_v12, %v1155_v40 }
 0x86c   : > { %v1836_v44 = vpop.f32.mrf.mxu1 }
 0x86d   : > { %v1162_v54 = vmax.f32 %v1156_v41, 0.0 }
 0x86e   : > { %v1158_v45 = vpop.f32.mrf.mxu1 }
 0x86f   : > { %v2271_v48 = vadd.f32 %v1162_v54, %v2219_v11  ;;  %v1159_v50 = vadd.f32 %v1744_v12, %v1158_v45 }
 0x870   : > { %v1837_v52 = vpop.f32.mrf.mxu1 }
 0x871   : > { %v1163_v53 = vmax.f32 %v1159_v50, 0.0  ;;  %v1168_v55 = vsel %vm462_vm0, %v2271_v48, 0.0 }
 0x872   : > { %1169 = vadd.xlane.f32.xlu0 %v1168_v55 }
 0x873   : > { %v2276_v56 = vadd.f32 %v1163_v53, %v2224_v17 }
 0x875   : > { %v1171_v57 = vsel %vm462_vm0, %v2276_v56, 0.0 }
 0x876   : > { %1172 = vadd.xlane.f32.xlu1 %v1171_v57 }
 0x8fb   : > { %v1170_v58 = vpop.xlane.xlu0 %1169 }
 0x8fc   : > { %v1174_v4 = vmul.f32 0.03125, %v1170_v58 }
 0x8fe   : > { %v1176_v60 = vsub.f32 %v2271_v48, %v1174_v4 }
 0x8ff   : > { %v1173_v11 = vpop.xlane.xlu1 %1172 }
 0x900   : > { %v1175_v61 = vmul.f32 0.03125, %v1173_v11  ;;  %v1178_v62 = vmul.f32 %v1176_v60, %v1176_v60  ;;  %v1355_v11 = vld [vmem:[%s444_s14] sm:$0x1] }
 0x901   : > { %vm1405_vm2 = vcmp.gt.f32.partialorder %v1355_v11, 0.0 }
 0x902   : > { %v1177_v63 = vsub.f32 %v2276_v56, %v1175_v61  ;;  %v1180_v0 = vsel %vm462_vm0, %v1178_v62, 0.0  ;;  %v1943_v61 = vmov 0  }
 0x903   : > { %1181 = vadd.xlane.f32.xlu0 %v1180_v0  ;;  %v1406_v62 = vsel %vm1405_vm2, 1, %v1943_v61 }
 0x904   : > { %v1179_v5 = vmul.f32 %v1177_v63, %v1177_v63 }
 0x906   : > { %v1183_v17 = vsel %vm462_vm0, %v1179_v5, 0.0 }
 0x907   : > { %1184 = vadd.xlane.f32.xlu1 %v1183_v17 }
 0x98c   : > { %v1182_v16 = vpop.xlane.xlu0 %1181 }
 0x98d   : > { %v1186_v18 = vmul.f32 0.03125, %v1182_v16 }
 0x98f   : > { %v1188_v19 = vadd.f32 1e-05, %v1186_v18 }
 0x990   : > { %v1185_v20 = vpop.xlane.xlu1 %1184 }
 0x991   : > { %1917 = vrsqrt.f32 %v1188_v19  ;;  %v1187_v21 = vmul.f32 0.03125, %v1185_v20 }
 0x993   : > { %v1189_v49 = vadd.f32 1e-05, %v1187_v21 }
 0x995   : > { %1919 = vrsqrt.f32 %v1189_v49 }
 0x99e   : > { %v1918_v28 = vpop.eup %1917 }
 0x99f   : > { %v1192_v22 = vmul.f32 %v1918_v28, %v1176_v60 }
 0x9a1   : > { %v1198_v25 = vmul.f32 %v1746_v23, %v1192_v22 }
 0x9a2   : > { %v1920_v24 = vpop.eup %1919 }
 0x9a3   : > { %v1193_v51 = vmul.f32 %v1920_v24, %v1177_v63  ;;  %v1204_v30 = vadd.f32 %v1747_v26, %v1198_v25  ;;  %v1410_v63 = vrot.slane %v1406_v62, %v2083_v42  ;;  %v1762_v62 = vld [vmem:[%s2434_s9 + $0x1] ss:$0 sm:$0xff] }
 0x9a5   : > { %v1199_v33 = vmul.f32 %v1746_v23, %v1193_v51  ;;  %vm1411_vm3 = vcmp.eq.s32.totalorder %v1410_v63, 1 }
 0x9a7   : > { %v1205_v31 = vadd.f32 %v1747_v26, %v1199_v33 }
 0x9a9   : > { %v1210_v34 = vpack.c.bf16 %v1205_v31, %v1204_v30 }
 0x9ab   : > { %1843 = vmatmul.mubr.msk.bf16.vlgmr.msra.gmra.mxu0 %vm462_vm0, %v1210_v34  ;;  %1851 = vmatmul.mubr.msk.bf16.vlgmr.msra.gmra.mxu1 %vm462_vm0, %v1210_v34 }
 0x9ac   : > { %1855 = vmatpush3.bf16.msra.mxu0 %v1311_v32  ;;  %1858 = vmatprep.mubr.msk.bf16.mxu0 %vm1942_vm1, %v1941_v8 }
 0x9ad   : > { %1856 = vmatprep.subr.bf16.mxu0 %v1941_v8  ;;  %1864 = vmatprep.mubr.msk.bf16.mxu1 %vm1942_vm1, %v1941_v8 }
 0x9b0   : > { %1857 = vmatpush3.bf16.msra.mxu0 %v1310_v36 }
 0x9b1   : > { %1868 = vmatprep.subr.bf16.mxu0 %v1941_v8 }
 0x9b3   : > { %1859 = vmatmul.mubr.msk.bf16.vlgmr.msra.gmra.mxu0 %vm462_vm0, %v1210_v34 }
 0x9b4   : > { %1870 = vmatprep.mubr.msk.bf16.mxu0 %vm1942_vm1, %v1941_v8 }
 0xa6b   : > { %v1250_v37 = vpop.f32.mrf.mxu0  ;;  %v1298_v47 = vpop.f32.mrf.mxu1 }
 0xa6d   : > { %v1844_v38 = vpop.f32.mrf.mxu0  ;;  %v1852_v39 = vpop.f32.mrf.mxu1 }
 0xa6e   : > { %v1525_v38 = vld [vmem:[%s2436_s11 + $0x10] sm:$0xff]  ;;  %v1526_v39 = vld [vmem:[%s2436_s11 + $0x18] sm:$0xff] }
 0xa6f   : > { %v1253_v12 = vpop.f32.mrf.mxu0  ;;  %v1301_v40 = vpop.f32.mrf.mxu1 }
 0xa70   : > { %v1357_v41 = vpack.c.bf16 %v1253_v12, %v1250_v37  ;;  %v1438_v44 = vpack.c.bf16 %v1301_v40, %v1298_v47  ;;  %v1523_v12 = vld [vmem:[%s2436_s11] sm:$0xff]  ;;  %v1529_v40 = vpack.c.bf16 %v1526_v39, %v1525_v38 }
 0xa71   : > { %v1845_v54 = vpop.f32.mrf.mxu0  ;;  %v1853_v45 = vpop.f32.mrf.mxu1 }
 0xa72   : > { %v1362_v50 = vsel %vm462_vm0, %v1357_v41, 0  ;;  %1869 = vmatpush3.bf16.msra.mxu0 %v1438_v44  ;;  %v1524_v41 = vld [vmem:[%s2436_s11 + $0x8] sm:$0xff] }
 0xa73   : > { %v1346_v52 = vpop.f32.mrf.mxu0  ;;  %1863 = vmatpush3.bf16.xpose.msra.mxu1 %v1362_v50  ;;  %1882 = vmatprep.subr.bf16.mxu0 %v1941_v8  ;;  %v1528_v44 = vpack.c.bf16 %v1524_v41, %v1523_v12 }
 0xa74   : > { %1874 = vmatprep.subr.bf16.mxu1 %v1941_v8  ;;  %v1353_v57 = vmul.f32 0.17677669, %v1346_v52 }
 0xa75   : > { %v1860_v53 = vpop.f32.mrf.mxu0 }
 0xa77   : > { %v1349_v55 = vpop.f32.mrf.mxu0 }
 0xa78   : > { %v1354_v58 = vmul.f32 0.17677669, %v1349_v55 }
 0xa79   : > { %v1861_v4 = vpop.f32.mrf.mxu0 }
 0xa7a   : > { %v1356_v60 = vpack.c.bf16 %v1354_v58, %v1353_v57  ;;  %v1761_v4 = vld [vmem:[%s2433_s8 + $0x1] ss:$0 sm:$0xff] }
 0xa7c   : > { %1865 = vmatmul.mubr.msk.bf16.vlgmr.msra.gmra.mxu1 %vm462_vm0, %v1356_v60 }
 0xa7d   : > { %1878 = vmatprep.mubr.msk.bf16.mxu1 %vm1942_vm1, %v1941_v8  ;;  %1875 = vmatpush3.bf16.msra.mxu1 %v1529_v40 }
 0xa7e   : > { %1876 = vmatprep.subr.bf16.mxu1 %v1941_v8 }
 0xa81   : > { %1877 = vmatpush3.bf16.msra.mxu1 %v1528_v44 }
 0xb3c   : > { %v1398_v0 = vpop.f32.mrf.mxu1 }
 0xb3d   : > { %v1412_v5 = vsel %vm1411_vm3, %v1398_v0, -1e+30 }
 0xb3e   : > { %v1866_v17 = vpop.f32.mrf.mxu1  ;;  %v1415_v1 = vsel %vm1414_vm4, %v1412_v5, -inf }
 0xb3f   : > { %1416 = vmax.xlane.f32.xlu0 %v1415_v1  ;;  %v1767_v1 = vld [vmem:[%s2436_s11 + $0x30] sm:$0xff] }
 0xb40   : > { %v1401_v2 = vpop.f32.mrf.mxu1 }
 0xb41   : > { %v1413_v3 = vsel %vm1411_vm3, %v1401_v2, -1e+30  ;;  %v1768_v2 = vld [vmem:[%s2436_s11 + $0x38] sm:$0xff] }
 0xb42   : > { %v1867_v6 = vpop.f32.mrf.mxu1  ;;  %v1418_v7 = vsel %vm1414_vm4, %v1413_v3, -inf }
 0xb43   : > { %1419 = vmax.xlane.f32.xlu1 %v1418_v7  ;;  %v1765_v6 = vld [vmem:[%s2436_s11 + $0x20] sm:$0xff]  ;;  %v1766_v7 = vld [vmem:[%s2436_s11 + $0x28] sm:$0xff] }
 0xbc8   : > { %v1417_v9 = vpop.xlane.xlu0 %1416 }
 0xbc9   : > { %v1421_v10 = vsub.f32 %v1412_v5, %v1417_v9  ;;  %v1587_v9 = vpack.c.bf16 %v1766_v7, %v1765_v6 }
 0xbcb   : > { %v1423_v13 = vmul.f32 1.442695, %v1421_v10  ;;  %v1763_v10 = vld [vmem:[%s2437_s12] ss:$0 sm:$0xff] }
 0xbcc   : > { %v1420_v14 = vpop.xlane.xlu1 %1419 }
 0xbcd   : > { %1921 = vpow2.f32 %v1423_v13  ;;  %v1422_v42 = vsub.f32 %v1413_v3, %v1420_v14  ;;  %v1588_v3 = vpack.c.bf16 %v1768_v2, %v1767_v1 }
 0xbcf   : > { %v1425_v43 = vmul.f32 1.442695, %v1422_v42 }
 0xbd1   : > { %1923 = vpow2.f32 %v1425_v43 }
 0xbda   : > { %v1922_v15 = vpop.eup %1921 }
 0xbdb   : > { %v1427_v46 = vsel %vm1414_vm4, %v1922_v15, 0.0 }
 0xbdc   : > { %1428 = vadd.xlane.f32.xlu0 %v1427_v46 }
 0xbde   : > { %v1924_v16 = vpop.eup %1923 }
 0xbdf   : > { %v1430_v18 = vsel %vm1414_vm4, %v1924_v16, 0.0 }
 0xbe0   : > { %1431 = vadd.xlane.f32.xlu1 %v1430_v18 }
 0xc65   : > { %v1429_v19 = vpop.xlane.xlu0 %1428 }
 0xc66   : > { %1925 = vrcp.f32 %v1429_v19  ;;  %v1769_v19 = vld [vmem:[%s2437_s12 + $0x1] ss:$0 sm:$0xff] }
 0xc69   : > { %v1432_v20 = vpop.xlane.xlu1 %1431 }
 0xc6a   : > { %1927 = vrcp.f32 %v1432_v20 }
 0xc73   : > { %v1926_v21 = vpop.eup %1925 }
 0xc74   : > { %v1435_v28 = vmul.f32 %v1926_v21, %v1922_v15 }
 0xc77   : > { %v1928_v49 = vpop.eup %1927 }
 0xc78   : > { %v1436_v22 = vmul.f32 %v1928_v49, %v1924_v16 }
 0xc7a   : > { %v1437_v23 = vpack.c.bf16 %v1436_v22, %v1435_v28 }
 0xc7c   : > { %1871 = vmatmul.mubr.msk.bf16.vlgmr.msra.gmra.mxu0 %vm1414_vm4, %v1437_v23 }
 0xc7d   : > { %1886 = vmatprep.mubr.msk.bf16.mxu0 %vm1942_vm1, %v1941_v8  ;;  %1883 = vmatpush3.bf16.msra.mxu0 %v1588_v3 }
 0xc7e   : > { %1884 = vmatprep.subr.bf16.mxu0 %v1941_v8 }
 0xc81   : > { %1885 = vmatpush3.bf16.msra.mxu0 %v1587_v9 }
 0xd3c   : > { %v1476_v24 = vpop.f32.mrf.mxu0 }
 0xd3d   : > { %v2360_v51 = vadd.f32 %v1476_v24, %v2271_v48 }
 0xd3e   : > { %v1872_v25 = vpop.f32.mrf.mxu0 }
 0xd3f   : > { %v1485_v26 = vsel %vm462_vm0, %v2360_v51, 0.0 }
 0xd40   : > { %1486 = vadd.xlane.f32.xlu0 %v1485_v26  ;;  %v1479_v33 = vpop.f32.mrf.mxu0 }
 0xd41   : > { %v2365_v27 = vadd.f32 %v1479_v33, %v2276_v56 }
 0xd42   : > { %v1873_v29 = vpop.f32.mrf.mxu0 }
 0xd43   : > { %v1488_v30 = vsel %vm462_vm0, %v2365_v27, 0.0 }
 0xd44   : > { %1489 = vadd.xlane.f32.xlu1 %v1488_v30 }
 0xdc9   : > { %v1487_v31 = vpop.xlane.xlu0 %1486 }
 0xdca   : > { %v1491_v32 = vmul.f32 0.03125, %v1487_v31 }
 0xdcc   : > { %v1493_v34 = vsub.f32 %v2360_v51, %v1491_v32 }
 0xdcd   : > { %v1490_v48 = vpop.xlane.xlu1 %1489 }
 0xdce   : > { %v1492_v59 = vmul.f32 0.03125, %v1490_v48  ;;  %v1495_v35 = vmul.f32 %v1493_v34, %v1493_v34 }
 0xdd0   : > { %v1494_v36 = vsub.f32 %v2365_v27, %v1492_v59  ;;  %v1497_v37 = vsel %vm462_vm0, %v1495_v35, 0.0 }
 0xdd1   : > { %1498 = vadd.xlane.f32.xlu0 %v1497_v37 }
 0xdd2   : > { %v1496_v47 = vmul.f32 %v1494_v36, %v1494_v36 }
 0xdd4   : > { %v1500_v56 = vsel %vm462_vm0, %v1496_v47, 0.0 }
 0xdd5   : > { %1501 = vadd.xlane.f32.xlu1 %v1500_v56 }
 0xe5a   : > { %v1499_v54 = vpop.xlane.xlu0 %1498 }
 0xe5b   : > { %v1503_v45 = vmul.f32 0.03125, %v1499_v54 }
 0xe5d   : > { %v1505_v50 = vadd.f32 1e-05, %v1503_v45 }
 0xe5e   : > { %v1502_v52 = vpop.xlane.xlu1 %1501 }
 0xe5f   : > { %1929 = vrsqrt.f32 %v1505_v50  ;;  %v1504_v53 = vmul.f32 0.03125, %v1502_v52 }
 0xe61   : > { %v1506_v55 = vadd.f32 1e-05, %v1504_v53 }
 0xe63   : > { %1931 = vrsqrt.f32 %v1506_v55 }
 0xe6c   : > { %v1930_v57 = vpop.eup %1929 }
 0xe6d   : > { %v1509_v58 = vmul.f32 %v1930_v57, %v1493_v34 }
 0xe6f   : > { %v1515_v61 = vmul.f32 %v1761_v4, %v1509_v58 }
 0xe70   : > { %v1932_v60 = vpop.eup %1931 }
 0xe71   : > { %v1510_v11 = vmul.f32 %v1932_v60, %v1494_v36  ;;  %v1521_v0 = vadd.f32 %v1762_v62, %v1515_v61 }
 0xe73   : > { %v1516_v63 = vmul.f32 %v1761_v4, %v1510_v11 }
 0xe75   : > { %v1522_v5 = vadd.f32 %v1762_v62, %v1516_v63 }
 0xe77   : > { %v1527_v17 = vpack.c.bf16 %v1522_v5, %v1521_v0 }
 0xe79   : > { %1879 = vmatmul.mubr.msk.bf16.vlgmr.msra.gmra.mxu1 %vm462_vm0, %v1527_v17 }
 0xf39   : > { %v1572_v13 = vpop.f32.mrf.mxu1 }
 0xf3a   : > { %v1573_v42 = vadd.f32 %v1763_v10, %v1572_v13 }
 0xf3b   : > { %v1880_v14 = vpop.f32.mrf.mxu1 }
 0xf3c   : > { %v1579_v46 = vmax.f32 %v1573_v42, 0.0 }
 0xf3d   : > { %v1575_v43 = vpop.f32.mrf.mxu1 }
 0xf3e   : > { %v1576_v8 = vadd.f32 %v1763_v10, %v1575_v43 }
 0xf3f   : > { %v1881_v15 = vpop.f32.mrf.mxu1 }
 0xf40   : > { %v1580_v16 = vmax.f32 %v1576_v8, 0.0 }
 0xf42   : > { %v1586_v18 = vpack.c.bf16 %v1580_v16, %v1579_v46 }
 0xf44   : > { %1887 = vmatmul.mubr.msk.bf16.vlgmr.msra.gmra.mxu0 %vm462_vm0, %v1586_v18 }
0x1004   : > { %v1631_v20 = vpop.f32.mrf.mxu0 }
0x1005   : > { %v1632_v21 = vadd.f32 %v1769_v19, %v1631_v20 }
0x1006   : > { %v1888_v49 = vpop.f32.mrf.mxu0 }
0x1007   : > { %v1638_v28 = vadd.f32 %v1632_v21, %v2360_v51 }
0x1008   : > { %v1634_v22 = vpop.f32.mrf.mxu0 }
0x1009   : > { %1640 = vst.msk [vmem:[%s454_s30] sm:$0xff] %vm462_vm0, %v1638_v28  ;;  %v1635_v23 = vadd.f32 %v1769_v19, %v1634_v22 }
0x100a   : > { %v1889_v24 = vpop.f32.mrf.mxu0 }
0x100b   : > { %v1639_v25 = vadd.f32 %v1635_v23, %v2365_v27 }
0x100d   : > { %1641 = vst.msk [vmem:[%s454_s30 + $0x8] sm:$0xff] %vm462_vm0, %v1639_v25 }
0x100e PF: > { %s23_s25 = sadd.s32 1, %s1939_s25  }
0x100f   : > { %p20_p4 = scmp.ge.s32.totalorder %s23_s25, 4  }
0x1011   :  { %22 = sbr.rel (!%p20_p4) target bundleno = 1 (0x1), region = 114 }

// kernel: qanet_forward.36
= control target key start
LH: loop header
LB: loop body
LE: loop exit
PB: predicated region body
PF: predicated region fallthrough
CT: control target
= control target key end

     0   :  { %vm49_vm0 = vcmask 654336   ;;  %vm127_vm1 = vcmask 261120   ;;  %s295_s1 = inlined_call_operand.vmem [shape: f32[80,32], index: 1, kind: input, shape index: {}]   ;;  %s296_s0 = inlined_call_operand.vmem [shape: f32[64,80], index: 0, kind: input, shape index: {}]   ;;  %s297_s2 = inlined_call_operand.vmem [shape: f32[1,32], index: 2, kind: input, shape index: {}]   ;;  %s298_s3 = inlined_call_operand.vmem [shape: f32[64,32], index: 3, kind: output, shape index: {}]  }
   0x1   :  { %v31_v0 = vld [vmem:[%s295_s1 + $0x40] sm:$0xff]  ;;  %v32_v1 = vld [vmem:[%s295_s1 + $0x48] sm:$0xff]  ;;  %v29_v2 = vld [vmem:[%s295_s1 + $0x30] sm:$0xff] }
   0x2   :  { %v41_v3 = vpack.c.bf16 %v32_v1, %v31_v0  ;;  %v30_v4 = vld [vmem:[%s295_s1 + $0x38] sm:$0xff]  ;;  %v27_v6 = vld [vmem:[%s295_s1 + $0x20] sm:$0xff]  ;;  %v28_v7 = vld [vmem:[%s295_s1 + $0x28] sm:$0xff] }
   0x3   :  { %v40_v5 = vpack.c.bf16 %v30_v4, %v29_v2  ;;  %v15_v8 = vld [vmem:[%s296_s0] sm:$0xff]  ;;  %v16_v9 = vld [vmem:[%s296_s0 + $0x8] sm:$0xff]  ;;  %v39_v13 = vpack.c.bf16 %v28_v7, %v27_v6  ;;  %v25_v15 = vld [vmem:[%s295_s1 + $0x10] sm:$0xff] }
   0x4   :  { %154 = vmatprep.subr.bf16.mxu0 %v41_v3  ;;  %172 = vmatprep.subr.bf16.mxu1 %v41_v3  ;;  %v33_v10 = vpack.c.bf16 %v16_v9, %v15_v8  ;;  %v19_v11 = vld [vmem:[%s296_s0 + $0x20] sm:$0xff]  ;;  %v20_v12 = vld [vmem:[%s296_s0 + $0x28] sm:$0xff]  ;;  %v26_v16 = vld [vmem:[%s295_s1 + $0x18] sm:$0xff] }
   0x5   :  { %155 = vmatpush3.bf16.msra.mxu0 %v41_v3  ;;  %177 = vmatpush3.bf16.msra.mxu1 %v41_v3  ;;  %v35_v14 = vpack.c.bf16 %v20_v12, %v19_v11  ;;  %v38_v17 = vpack.c.bf16 %v26_v16, %v25_v15  ;;  %v23_v18 = vld [vmem:[%s295_s1] sm:$0xff]  ;;  %v24_v19 = vld [vmem:[%s295_s1 + $0x8] sm:$0xff]  ;;  %v17_v21 = vld [vmem:[%s296_s0 + $0x10] sm:$0xff] }
   0x6   :  { %156 = vmatprep.subr.bf16.mxu0 %v40_v5  ;;  %173 = vmatprep.subr.bf16.mxu1 %v40_v5  ;;  %v37_v20 = vpack.c.bf16 %v24_v19, %v23_v18  ;;  %v18_v22 = vld [vmem:[%s296_s0 + $0x18] sm:$0xff]  ;;  %v21_v23 = vld [vmem:[%s296_s0 + $0x30] sm:$0xff]  ;;  %v140_v27 = vld [vmem:[%s297_s2] ss:$0 sm:$0xff] }
   0x7   :  { %164 = vmatprep.mubr.msk.bf16.mxu0 %vm49_vm0, %v33_v10  ;;  %168 = vmatprep.mubr.msk.bf16.mxu1 %vm49_vm0, %v35_v14  ;;  %v22_v24 = vld [vmem:[%s296_s0 + $0x38] sm:$0xff]  ;;  %v34_v25 = vpack.c.bf16 %v18_v22, %v17_v21 }
   0x8   :  { %v36_v26 = vpack.c.bf16 %v22_v24, %v21_v23 }
   0x9   :  { %157 = vmatpush3.bf16.msra.mxu0 %v40_v5  ;;  %178 = vmatpush3.bf16.msra.mxu1 %v40_v5 }
   0xa   :  { %158 = vmatprep.subr.bf16.mxu0 %v39_v13  ;;  %174 = vmatprep.subr.bf16.mxu1 %v39_v13 }
   0xd   :  { %159 = vmatpush3.bf16.msra.mxu0 %v39_v13  ;;  %179 = vmatpush3.bf16.msra.mxu1 %v39_v13 }
   0xe   :  { %160 = vmatprep.subr.bf16.mxu0 %v38_v17  ;;  %175 = vmatprep.subr.bf16.mxu1 %v38_v17 }
  0x11   :  { %161 = vmatpush3.bf16.msra.mxu0 %v38_v17  ;;  %180 = vmatpush3.bf16.msra.mxu1 %v38_v17 }
  0x12   :  { %162 = vmatprep.subr.bf16.mxu0 %v37_v20  ;;  %176 = vmatprep.subr.bf16.mxu1 %v37_v20 }
  0x15   :  { %163 = vmatpush3.bf16.msra.mxu0 %v37_v20  ;;  %181 = vmatpush3.bf16.msra.mxu1 %v37_v20 }
  0x18   :  { %165 = vmatmul.mubr.msk.bf16.vlgmr.msra.gmra.mxu0 %vm49_vm0, %v34_v25  ;;  %169 = vmatmul.mubr.msk.bf16.vlgmr.msra.gmra.mxu1 %vm49_vm0, %v36_v26 }
  0xd8   :  { %v166_v28 = vpop.f32.mrf.mxu0  ;;  %v170_v29 = vpop.f32.mrf.mxu1 }
  0xd9   :  { %v105_v30 = vadd.f32 %v166_v28, %v140_v27  ;;  %v121_v31 = vadd.f32 %v170_v29, %v140_v27 }
  0xda   :  { %v96_v32 = vpop.f32.mrf.mxu0  ;;  %v112_v33 = vpop.f32.mrf.mxu1 }
  0xdb   :  { %130 = vst.msk [vmem:[%s298_s3 + $0x10] sm:$0xff] %vm127_vm1, %v105_v30  ;;  %134 = vst.msk [vmem:[%s298_s3 + $0x30] sm:$0xff] %vm127_vm1, %v121_v31  ;;  %v97_v34 = vadd.f32 %v140_v27, %v96_v32  ;;  %v113_v35 = vadd.f32 %v140_v27, %v112_v33 }
  0xdc   :  { %v167_v36 = vpop.f32.mrf.mxu0  ;;  %v171_v37 = vpop.f32.mrf.mxu1 }
  0xdd   :  { %128 = vst.msk [vmem:[%s298_s3] sm:$0xff] %vm127_vm1, %v97_v34  ;;  %132 = vst.msk [vmem:[%s298_s3 + $0x20] sm:$0xff] %vm127_vm1, %v113_v35  ;;  %v108_v38 = vadd.f32 %v167_v36, %v140_v27  ;;  %v124_v39 = vadd.f32 %v171_v37, %v140_v27 }
  0xde   :  { %v99_v40 = vpop.f32.mrf.mxu0  ;;  %v115_v41 = vpop.f32.mrf.mxu1 }
  0xdf   :  { %131 = vst.msk [vmem:[%s298_s3 + $0x18] sm:$0xff] %vm127_vm1, %v108_v38  ;;  %135 = vst.msk [vmem:[%s298_s3 + $0x38] sm:$0xff] %vm127_vm1, %v124_v39  ;;  %v100_v42 = vadd.f32 %v140_v27, %v99_v40  ;;  %v116_v43 = vadd.f32 %v140_v27, %v115_v41 }
  0xe1   :  { %129 = vst.msk [vmem:[%s298_s3 + $0x8] sm:$0xff] %vm127_vm1, %v100_v42  ;;  %133 = vst.msk [vmem:[%s298_s3 + $0x28] sm:$0xff] %vm127_vm1, %v116_v43 }

// kernel: qanet_forward.37
= control target key start
LH: loop header
LB: loop body
LE: loop exit
PB: predicated region body
PF: predicated region fallthrough
CT: control target
= control target key end

     0   :  { %v116_v0 = vmov 0.0   ;;  %vm117_vm0 = vmmov 0   ;;  %vm40_vm1 = vcmask 654336   ;;  %vm85_vm2 = vcmask 261120   ;;  %s183_s1 = inlined_call_operand.vmem [shape: f32[80,32], index: 1, kind: input, shape index: {}]   ;;  %s184_s0 = inlined_call_operand.vmem [shape: f32[16,80], index: 0, kind: input, shape index: {}]   ;;  %s185_s2 = inlined_call_operand.vmem [shape: f32[1,32], index: 2, kind: input, shape index: {}]   ;;  %s186_s3 = inlined_call_operand.vmem [shape: f32[16,32], index: 3, kind: output, shape index: {}]  }
   0x1   :  { %100 = vmatprep.subr.bf16.mxu0 %v116_v0  ;;  %v25_v1 = vld [vmem:[%s183_s1 + $0x40] sm:$0xff]  ;;  %v26_v2 = vld [vmem:[%s183_s1 + $0x48] sm:$0xff]  ;;  %v23_v3 = vld [vmem:[%s183_s1 + $0x30] sm:$0xff]  ;;  %110 = vmatprep.mubr.msk.bf16.mxu0 %vm117_vm0, %v116_v0 }
   0x2   :  { %v32_v4 = vpack.c.bf16 %v26_v2, %v25_v1  ;;  %v24_v5 = vld [vmem:[%s183_s1 + $0x38] sm:$0xff]  ;;  %v21_v7 = vld [vmem:[%s183_s1 + $0x20] sm:$0xff]  ;;  %v22_v8 = vld [vmem:[%s183_s1 + $0x28] sm:$0xff] }
   0x3   :  { %v31_v6 = vpack.c.bf16 %v24_v5, %v23_v3  ;;  %v30_v9 = vpack.c.bf16 %v22_v8, %v21_v7  ;;  %v19_v10 = vld [vmem:[%s183_s1 + $0x10] sm:$0xff]  ;;  %v20_v11 = vld [vmem:[%s183_s1 + $0x18] sm:$0xff]  ;;  %v17_v13 = vld [vmem:[%s183_s1] sm:$0xff] }
   0x4   :  { %101 = vmatpush3.bf16.msra.mxu0 %v32_v4  ;;  %v29_v12 = vpack.c.bf16 %v20_v11, %v19_v10  ;;  %v18_v14 = vld [vmem:[%s183_s1 + $0x8] sm:$0xff]  ;;  %v15_v16 = vld [vmem:[%s184_s0] sm:$0xff] }
   0x5   :  { %102 = vmatprep.subr.bf16.mxu0 %v116_v0  ;;  %v28_v15 = vpack.c.bf16 %v18_v14, %v17_v13  ;;  %v16_v17 = vld [vmem:[%s184_s0 + $0x8] sm:$0xff]  ;;  %v92_v19 = vld [vmem:[%s185_s2] ss:$0 sm:$0xff] }
   0x6   :  { %v27_v18 = vpack.c.bf16 %v16_v17, %v15_v16 }
   0x8   :  { %103 = vmatpush3.bf16.msra.mxu0 %v31_v6 }
   0x9   :  { %104 = vmatprep.subr.bf16.mxu0 %v116_v0 }
   0xc   :  { %105 = vmatpush3.bf16.msra.mxu0 %v30_v9 }
   0xd   :  { %106 = vmatprep.subr.bf16.mxu0 %v116_v0 }
  0x10   :  { %107 = vmatpush3.bf16.msra.mxu0 %v29_v12 }
  0x11   :  { %108 = vmatprep.subr.bf16.mxu0 %v116_v0 }
  0x14   :  { %109 = vmatpush3.bf16.msra.mxu0 %v28_v15 }
  0x17   :  { %111 = vmatmul.mubr.msk.bf16.vlgmr.msra.gmra.mxu0 %vm40_vm1, %v27_v18 }
  0xd7   :  { %v78_v20 = vpop.f32.mrf.mxu0 }
  0xd8   :  { %v79_v21 = vadd.f32 %v92_v19, %v78_v20 }
  0xd9   :  { %v112_v22 = vpop.f32.mrf.mxu0 }
  0xda   :  { %86 = vst.msk [vmem:[%s186_s3] sm:$0xff] %vm85_vm2, %v79_v21 }
  0xdb   :  { %v81_v23 = vpop.f32.mrf.mxu0 }
  0xdc   :  { %v82_v24 = vadd.f32 %v92_v19, %v81_v23 }
  0xdd   :  { %v113_v25 = vpop.f32.mrf.mxu0 }
  0xde   :  { %87 = vst.msk [vmem:[%s186_s3 + $0x8] sm:$0xff] %vm85_vm2, %v82_v24 }

// kernel: qanet_forward.38
= control target key start
LH: loop header
LB: loop body
LE: loop exit
PB: predicated region body
PF: predicated region fallthrough
CT: control target
= control target key end

     0   :  { %v195_v0 = vmov 0.0   ;;  %vm196_vm0 = vmmov 0   ;;  %vm29_vm1 = vcmask 261120   ;;  %s263_s1 = inlined_call_operand.vmem [shape: f32[2,32,32], index: 1, kind: input, shape index: {}]   ;;  %s264_s0 = inlined_call_operand.vmem [shape: f32[16,32], index: 0, kind: input, shape index: {}]   ;;  %s265_s2 = inlined_call_operand.vmem [shape: f32[2,32], index: 2, kind: input, shape index: {}]   ;;  %s266_s3 = inlined_call_operand.vmem [shape: f32[16,32], index: 3, kind: output, shape index: {}]  }
   0x1   :  { %169 = vmatprep.subr.bf16.mxu0 %v195_v0  ;;  %v19_v1 = vld [vmem:[%s263_s1 + $0x10] sm:$0xff]  ;;  %v20_v2 = vld [vmem:[%s263_s1 + $0x18] sm:$0xff]  ;;  %v17_v3 = vld [vmem:[%s263_s1] sm:$0xff]  ;;  %173 = vmatprep.mubr.msk.bf16.mxu0 %vm196_vm0, %v195_v0 }
   0x2   :  { %v23_v4 = vpack.c.bf16 %v20_v2, %v19_v1  ;;  %v18_v5 = vld [vmem:[%s263_s1 + $0x8] sm:$0xff]  ;;  %177 = vmatprep.subr.bf16.mxu1 %v195_v0  ;;  %181 = vmatprep.mubr.msk.bf16.mxu1 %vm196_vm0, %v195_v0  ;;  %v159_v6 = vld [vmem:[%s263_s1 + $0x30] sm:$0xff]  ;;  %v160_v7 = vld [vmem:[%s263_s1 + $0x38] sm:$0xff] }
   0x3   :  { %v157_v8 = vld [vmem:[%s263_s1 + $0x20] sm:$0xff]  ;;  %v22_v9 = vpack.c.bf16 %v18_v5, %v17_v3  ;;  %v16_v11 = vld [vmem:[%s264_s0 + $0x8] sm:$0xff]  ;;  %v92_v12 = vpack.c.bf16 %v160_v7, %v159_v6 }
   0x4   :  { %170 = vmatpush3.bf16.msra.mxu0 %v23_v4  ;;  %v15_v10 = vld [vmem:[%s264_s0] sm:$0xff]  ;;  %v158_v13 = vld [vmem:[%s263_s1 + $0x28] sm:$0xff] }
   0x5   :  { %171 = vmatprep.subr.bf16.mxu0 %v195_v0  ;;  %178 = vmatpush3.bf16.msra.mxu1 %v92_v12  ;;  %v91_v14 = vpack.c.bf16 %v158_v13, %v157_v8  ;;  %v21_v15 = vpack.c.bf16 %v16_v11, %v15_v10  ;;  %v153_v16 = vld [vmem:[%s265_s2] ss:$0 sm:$0xff]  ;;  %v161_v33 = vld [vmem:[%s265_s2 + $0x1] ss:$0 sm:$0xff] }
   0x6   :  { %179 = vmatprep.subr.bf16.mxu1 %v195_v0 }
   0x8   :  { %172 = vmatpush3.bf16.msra.mxu0 %v22_v9 }
   0x9   :  { %180 = vmatpush3.bf16.msra.mxu1 %v91_v14 }
   0xb   :  { %174 = vmatmul.mubr.msk.bf16.vlgmr.msra.gmra.mxu0 %vm29_vm1, %v21_v15 }
   0xc   :  { %182 = vmatmul.mubr.msk.bf16.vlgmr.msra.gmra.mxu1 %vm29_vm1, %v21_v15 }
  0xcb   :  { %v67_v17 = vpop.f32.mrf.mxu0 }
  0xcc   :  { %v68_v18 = vadd.f32 %v153_v16, %v67_v17  ;;  %v132_v20 = vpop.f32.mrf.mxu1 }
  0xcd   :  { %v175_v19 = vpop.f32.mrf.mxu0  ;;  %v133_v34 = vadd.f32 %v161_v33, %v132_v20 }
  0xce   :  { %v155_v21 = vmul.f32 -1.442695, %v68_v18  ;;  %v183_v23 = vpop.f32.mrf.mxu1 }
  0xcf   :  { %v70_v22 = vpop.f32.mrf.mxu0 }
  0xd0   :  { %187 = vpow2.f32 %v155_v21  ;;  %v71_v24 = vadd.f32 %v153_v16, %v70_v22  ;;  %v135_v26 = vpop.f32.mrf.mxu1 }
  0xd1   :  { %v176_v25 = vpop.f32.mrf.mxu0  ;;  %v136_v41 = vadd.f32 %v161_v33, %v135_v26 }
  0xd2   :  { %v156_v27 = vmul.f32 -1.442695, %v71_v24  ;;  %v184_v28 = vpop.f32.mrf.mxu1 }
  0xd4   :  { %189 = vpow2.f32 %v156_v27 }
  0xdd   :  { %v188_v29 = vpop.eup %187 }
  0xde   :  { %v80_v30 = vadd.f32 1.0, %v188_v29 }
  0xe0   :  { %191 = vrcp.f32 %v80_v30 }
  0xe1   :  { %v190_v31 = vpop.eup %189 }
  0xe2   :  { %v81_v32 = vadd.f32 1.0, %v190_v31 }
  0xe4   :  { %193 = vrcp.f32 %v81_v32 }
  0xed   :  { %v192_v35 = vpop.eup %191 }
  0xee   :  { %v141_v36 = vsub.f32 1.0, %v192_v35  ;;  %v139_v37 = vmul.f32 %v192_v35, %v133_v34 }
  0xf0   :  { %v143_v38 = vmul.f32 %v141_v36, %v15_v10 }
  0xf1   :  { %v194_v39 = vpop.eup %193 }
  0xf2   :  { %v145_v40 = vadd.f32 %v143_v38, %v139_v37  ;;  %v142_v42 = vsub.f32 1.0, %v194_v39  ;;  %v140_v43 = vmul.f32 %v194_v39, %v136_v41 }
  0xf4   :  { %147 = vst.msk [vmem:[%s266_s3] sm:$0xff] %vm29_vm1, %v145_v40  ;;  %v144_v44 = vmul.f32 %v142_v42, %v16_v11 }
  0xf6   :  { %v146_v45 = vadd.f32 %v144_v44, %v140_v43 }
  0xf8   :  { %148 = vst.msk [vmem:[%s266_s3 + $0x8] sm:$0xff] %vm29_vm1, %v146_v45 }

// kernel: qanet_forward.42
= control target key start
LH: loop header
LB: loop body
LE: loop exit
PB: predicated region body
PF: predicated region fallthrough
CT: control target
= control target key end

     0   :  { %s1263_s11 = smov 0   ;;  %s1432_s0 = inlined_call_operand.vmem [shape: f32[2,16,32], index: 0, kind: input, shape index: {}]   ;;  %s1433_s1 = inlined_call_operand.vmem [shape: f32[2,8,32], index: 1, kind: input, shape index: {}]   ;;  %s1434_s2 = inlined_call_operand.vmem [shape: f32[1,32], index: 2, kind: input, shape index: {}]   ;;  %s1435_s3 = inlined_call_operand.vmem [shape: f32[1,32], index: 3, kind: input, shape index: {}]   ;;  %s1436_s4 = inlined_call_operand.vmem [shape: f32[1,32], index: 4, kind: input, shape index: {}]   ;;  %s1437_s5 = inlined_call_operand.<no memory space> [shape: f32[1,1], index: 5, kind: input, shape index: {}]   ;;  %s1438_s6 = inlined_call_operand.vmem [shape: f32[2,16,1], index: 6, kind: input, shape index: {}]   ;;  %s1439_s7 = inlined_call_operand.vmem [shape: f32[2,1,8], index: 7, kind: input, shape index: {}]   ;;  %s1440_s8 = inlined_call_operand.vmem [shape: f32[4,32,32], index: 8, kind: input, shape index: {}]   ;;  %s1441_s9 = inlined_call_operand.vmem [shape: f32[2,16,32], index: 9, kind: output, shape index: {}]  }
   0x1   :  { %v14_v0 = vstv %s1437_s5 }
   0x2   :  { %15 = vst [vmem:[#allocation2] sm:$0x1] %v14_v0 }
   0x3 LB: > { %s1047_s12 = sadd.s32 4294967295, %s1205_s11   ;;  %p1051_p0 = scmp.ge.s32.totalorder %s1205_s11, 1  ;;  %s1205_s11 = sphi %s1263_s11, %s21_s11  }
   0x4   : > { %p316_p1 = scmp.lt.s32.totalorder %s1205_s11, 3 }
   0x6   : > { %p317_p2 = pnand %p1051_p0, %p316_p1 }
   0x7   : > { %p364_p3 = scmp.lt.s32.totalorder (!%p317_p2), %s1047_s12, 1 }
   0x8   : > { %320 = sbr.rel (%p317_p2) target bundleno = 1146 (0x47a), region = 56 }
   0xd   : > { %v1207_v1 = vmov 0.0   ;;  %s1443_s12 = smov (!%p364_p3, %s1047_s12), 1  ;;  %vm1208_vm0 = vmmov 0   ;;  %v1063_v2 = vld [vmem:[#allocation2] ss:$0 sm:$0xff]  ;;  %v1209_v3 = vmov 0   ;;  %v509_v20 = vlaneseq }
   0xe   : > { %1110 = vmatprep.subr.bf16.mxu0 %v1207_v1  ;;  %1116 = vmatprep.subr.bf16.mxu1 %v1207_v1  ;;  %s1282_s5 = sshll.u32 %s1443_s12, 4  ;;  %s1054_s13 = sshll.u32 %s1443_s12, 3  ;;  %v1059_v4 = vld [vmem:[%s1434_s2] ss:$0 sm:$0xff]  ;;  %vm401_vm1 = vcmask 261120   ;;  %vm539_vm4 = vcmask 64512  }
   0xf   : > { %1112 = vmatprep.mubr.msk.bf16.mxu0 %vm1208_vm0, %v1207_v1  ;;  %1118 = vmatprep.mubr.msk.bf16.mxu1 %vm1208_vm0, %v1207_v1  ;;  %s368_s18 = scalar_lea.vmem %s1432_s0, %s1282_s5  ;;  %s372_s21 = scalar_lea.vmem %s1433_s1, %s1054_s13  ;;  %v1061_v5 = vld [vmem:[%s1436_s4] ss:$0 sm:$0xff]  ;;  %v510_v22 = vshrl.u32 %v509_v20, 7  ;;  %vm607_vm9 = vcmask 1043456   ;;  %vm698_vm10 = vcmask 130048  }
  0x10   : > { %1183 = vset.pattern.permute.xlu1 %v1209_v3  ;;  %1184 = vset.pattern.permute.xlu0 %v1209_v3  ;;  %v1298_v6 = vld [vmem:[%s368_s18] sm:$0xff]  ;;  %v1300_v7 = vld [vmem:[%s368_s18 + $0x8] sm:$0xff]  ;;  %s380_s28 = scalar_lea.vmem %s1439_s7, %s1443_s12  ;;  %s377_s10 = scalar_lea.vmem %s1438_s6, %s1282_s5 }
  0x11   : > { %522 = vperm.xlu1 %1183, %v1063_v2   ;;  %v389_v8 = vld [vmem:[%s372_s21] sm:$0xff]  ;;  %v399_v10 = vmul.f32 %v1059_v4, %v1298_v6  ;;  %v400_v11 = vmul.f32 %v1059_v4, %v1300_v7  ;;  %v462_v13 = vmul.f32 %v1061_v5, %v1298_v6  ;;  %v463_v14 = vmul.f32 %v1061_v5, %v1300_v7  ;;  %v528_v48 = vld [vmem:[%s377_s10 + $0x8] sm:$0xff]  ;;  %s385_s26 = scalar_lea.vmem %s1441_s9, %s1282_s5 }
  0x12   : > { %v1302_v9 = vpack.c.bf16 %v389_v8, %v389_v8  ;;  %v391_v16 = vld [vmem:[%s1435_s3] sm:$0x1]  ;;  %v511_v24 = vsub.s32 0, %v510_v22  ;;  %vm563_vm5 = vcmp.gt.f32.partialorder %v528_v48, 0.0 }
  0x13   : > { %v402_v15 = vsel %vm401_vm1, %v399_v10, 0.0  ;;  %v405_v17 = vsel %vm401_vm1, %v400_v11, 0.0  ;;  %v408_v18 = vpack.c.bf16 %v391_v16, %v391_v16  ;;  %v464_v19 = vpack.c.bf16 %v463_v14, %v462_v13  ;;  %v529_v21 = vld [vmem:[%s380_s28] sm:$0x1] }
  0x14   : > { %v414_v12 = vsel %vm401_vm1, %v1302_v9, 0  ;;  %403 = vadd.xlane.f32.xlu0 %v402_v15  ;;  %vm530_vm2 = vcmp.gt.f32.partialorder %v529_v21, 0.0  ;;  %v565_v49 = vsel %vm563_vm5, 1, %v1209_v3  ;;  %v527_v50 = vld [vmem:[%s377_s10] sm:$0xff] }
  0x15   : > { %1111 = vmatpush3.bf16.xpose.msra.mxu0 %v414_v12  ;;  %1117 = vmatpush3.bf16.xpose.msra.mxu1 %v414_v12  ;;  %v531_v25 = vsel %vm530_vm2, 1, %v1209_v3  ;;  %vm562_vm6 = vcmp.gt.f32.partialorder %v527_v50, 0.0 }
  0x16   : > { %1128 = vmatprep.subr.bf16.mxu1 %v1207_v1  ;;  %1122 = vmatprep.subr.bf16.mxu0 %v1207_v1  ;;  %v535_v28 = vrot.slane %v531_v25, %v511_v24  ;;  %v564_v51 = vsel %vm562_vm6, 1, %v1209_v3 }
  0x18   : > { %406 = vadd.xlane.f32.xlu0 %v405_v17  ;;  %vm536_vm3 = vcmp.eq.s32.totalorder %v535_v28, 1 }
  0x1c   : > { %1113 = vmatmul.mubr.msk.bf16.vlgmr.msra.gmra.mxu0 %vm401_vm1, %v408_v18  ;;  %1119 = vmatmul.mubr.msk.bf16.vlgmr.msra.gmra.mxu1 %vm401_vm1, %v464_v19 }
  0x1d   : > { %1124 = vmatprep.mubr.msk.bf16.mxu0 %vm1208_vm0, %v1207_v1  ;;  %1130 = vmatprep.mubr.msk.bf16.mxu1 %vm1208_vm0, %v1207_v1 }
  0x8c   : > { %v523_v31 = vpop.permute.xlu1 %522 }
  0x9d   : > { %v404_v23 = vpop.xlane.xlu0 %403 }
  0xa1   : > { %v407_v32 = vpop.xlane.xlu0 %406 }
  0xdc   : > { %v450_v26 = vpop.f32.mrf.mxu0  ;;  %v502_v27 = vpop.f32.mrf.mxu1 }
  0xdd   : > { %v512_v29 = vrot.slane %v450_v26, %v511_v24  ;;  %v503_v30 = vadd.f32 %v502_v27, %v404_v23  ;;  %v608_v23 = vsel %vm607_vm9, %v1302_v9, 0 }
  0xde   : > { %v1114_v33 = vpop.f32.mrf.mxu0  ;;  %v1120_v34 = vpop.f32.mrf.mxu1  ;;  %1123 = vmatpush3.bf16.msra.mxu0 %v608_v23 }
  0xdf   : > { %v513_v35 = vadd.f32 %v512_v29, %v503_v30  ;;  %1134 = vmatprep.subr.bf16.mxu0 %v1207_v1 }
  0xe0   : > { %v453_v36 = vpop.f32.mrf.mxu0  ;;  %v505_v37 = vpop.f32.mrf.mxu1 }
  0xe1   : > { %v525_v38 = vadd.f32 %v523_v31, %v513_v35  ;;  %v506_v39 = vadd.f32 %v505_v37, %v407_v32 }
  0xe2   : > { %v1115_v40 = vpop.f32.mrf.mxu0  ;;  %v1121_v41 = vpop.f32.mrf.mxu1 }
  0xe3   : > { %v514_v42 = vadd.f32 %v512_v29, %v506_v39  ;;  %v537_v43 = vsel %vm536_vm3, %v525_v38, -1e+30  ;;  %v697_v41 = vpack.c.bf16 %v1300_v7, %v1298_v6 }
  0xe4   : > { %v540_v44 = vsel %vm539_vm4, %v537_v43, -inf }
  0xe5   : > { %541 = vmax.xlane.f32.xlu1 %v540_v44  ;;  %v526_v45 = vadd.f32 %v523_v31, %v514_v42  ;;  %v1070_v44 = vld [vmem:[%s1440_s8 + $0x38] sm:$0xff] }
  0xe7   : > { %v538_v46 = vsel %vm536_vm3, %v526_v45, -1e+30 }
  0xe8   : > { %v543_v47 = vsel %vm539_vm4, %v538_v46, -inf }
  0xe9   : > { %544 = vmax.xlane.f32.xlu0 %v543_v47  ;;  %v1068_v47 = vld [vmem:[%s1440_s8 + $0x28] sm:$0xff] }
  0xf6   : > { %570 = vperm.xlu1 %1183, %v565_v49  }
  0xff   : > { %567 = vperm.xlu0 %1184, %v564_v51   ;;  %v745_v51 = vld [vmem:[%s1440_s8 + $0x10] sm:$0xff] }
 0x16e   : > { %v542_v52 = vpop.xlane.xlu1 %541 }
 0x16f   : > { %v546_v53 = vsub.f32 %v537_v43, %v542_v52  ;;  %v1069_v43 = vld [vmem:[%s1440_s8 + $0x30] sm:$0xff]  ;;  %v746_v52 = vld [vmem:[%s1440_s8 + $0x18] sm:$0xff] }
 0x171   : > { %v548_v54 = vmul.f32 1.442695, %v546_v53  ;;  %v1075_v53 = vld [vmem:[%s1440_s8 + $0x50] sm:$0xff] }
 0x172   : > { %v545_v55 = vpop.xlane.xlu0 %544  ;;  %v571_v57 = vpop.permute.xlu1 %570 }
 0x173   : > { %1185 = vpow2.f32 %v548_v54  ;;  %v547_v56 = vsub.f32 %v538_v46, %v545_v55  ;;  %vm573_vm7 = vcmp.eq.s32.totalorder %v571_v57, 1  ;;  %v1067_v46 = vld [vmem:[%s1440_s8 + $0x20] sm:$0xff]  ;;  %v1076_v54 = vld [vmem:[%s1440_s8 + $0x58] sm:$0xff] }
 0x174   : > { %v575_v59 = vsel %vm573_vm7, %v526_v45, -1e+30  ;;  %v756_v45 = vpack.c.bf16 %v1070_v44, %v1069_v43  ;;  %v755_v48 = vpack.c.bf16 %v1068_v47, %v1067_v46 }
 0x175   : > { %v550_v58 = vmul.f32 1.442695, %v547_v56  ;;  %v577_v62 = vsel %vm539_vm4, %v575_v59, -inf }
 0x177   : > { %1187 = vpow2.f32 %v550_v58 }
 0x17a   : > { %v568_v60 = vpop.permute.xlu0 %567 }
 0x17b   : > { %vm572_vm8 = vcmp.eq.s32.totalorder %v568_v60, 1  ;;  %v854_v60 = vpack.c.bf16 %v1076_v54, %v1075_v53 }
 0x17c   : > { %v574_v61 = vsel %vm572_vm8, %v525_v38, -1e+30 }
 0x17d   : > { %v576_v63 = vsel %vm539_vm4, %v574_v61, -inf }
 0x17e   : > { %v578_v0 = vmax.f32 %v576_v63, %v577_v62 }
 0x180   : > { %v1186_v2 = vpop.eup %1185  ;;  %v579_v3 = vrot.slane %v578_v0, 4 }
 0x181   : > { %v552_v4 = vsel %vm539_vm4, %v1186_v2, 0.0 }
 0x182   : > { %v580_v5 = vmax.f32 %v578_v0, %v579_v3  ;;  %553 = vadd.xlane.f32.xlu0 %v552_v4  ;;  %v744_v0 = vld [vmem:[%s1440_s8 + $0x8] sm:$0xff] }
 0x183   : > { %v1074_v3 = vld [vmem:[%s1440_s8 + $0x48] sm:$0xff] }
 0x184   : > { %v1188_v8 = vpop.eup %1187  ;;  %v581_v10 = vrot.slane %v580_v5, 2 }
 0x185   : > { %v555_v11 = vsel %vm539_vm4, %v1188_v8, 0.0 }
 0x186   : > { %v582_v12 = vmax.f32 %v580_v5, %v581_v10  ;;  %556 = vadd.xlane.f32.xlu1 %v555_v11 }
 0x188   : > { %v583_v13 = vrot.slane %v582_v12, 1 }
 0x18a   : > { %v584_v14 = vmax.f32 %v582_v12, %v583_v13 }
 0x18c   : > { %v585_v15 = vsub.f32 %v574_v61, %v584_v14  ;;  %v586_v16 = vsub.f32 %v575_v59, %v584_v14  ;;  %v748_v59 = vpack.c.bf16 %v746_v52, %v745_v51  ;;  %v743_v61 = vld [vmem:[%s1440_s8] sm:$0xff]  ;;  %v1080_v14 = vld [vmem:[%s1440_s8 + $0x70] sm:$0xff] }
 0x18e   : > { %v587_v17 = vmul.f32 1.442695, %v585_v15  ;;  %v589_v18 = vmul.f32 1.442695, %v586_v16  ;;  %v1081_v15 = vld [vmem:[%s1440_s8 + $0x78] sm:$0xff] }
 0x18f   : > { %v910_v16 = vpack.c.bf16 %v1081_v15, %v1080_v14 }
 0x190   : > { %1189 = vpow2.f32 %v587_v17  ;;  %v1078_v17 = vld [vmem:[%s1440_s8 + $0x60] sm:$0xff] }
 0x191   : > { %1191 = vpow2.f32 %v589_v18  ;;  %v1079_v18 = vld [vmem:[%s1440_s8 + $0x68] sm:$0xff] }
 0x19d   : > { %v1190_v19 = vpop.eup %1189 }
 0x19e   : > { %v1192_v20 = vpop.eup %1191  ;;  %v591_v21 = vsel %vm539_vm4, %v1190_v19, 0.0 }
 0x19f   : > { %v592_v22 = vsel %vm539_vm4, %v1192_v20, 0.0 }
 0x1a0   : > { %v593_v24 = vadd.f32 %v592_v22, %v591_v21 }
 0x1a2   : > { %v594_v25 = vrot.slane %v593_v24, 4 }
 0x1a4   : > { %v595_v26 = vadd.f32 %v594_v25, %v593_v24 }
 0x1a6   : > { %v596_v27 = vrot.slane %v595_v26, 2 }
 0x1a8   : > { %v597_v28 = vadd.f32 %v596_v27, %v595_v26 }
 0x1aa   : > { %v598_v29 = vrot.slane %v597_v28, 1 }
 0x1ac   : > { %v599_v30 = vadd.f32 %v598_v29, %v597_v28 }
 0x1ae   : > { %1193 = vrcp.f32 %v599_v30 }
 0x1bb   : > { %v1194_v31 = vpop.eup %1193 }
 0x1bc   : > { %v601_v32 = vmul.f32 %v1194_v31, %v1190_v19  ;;  %v602_v33 = vmul.f32 %v1194_v31, %v1192_v20  ;;  %v909_v19 = vpack.c.bf16 %v1079_v18, %v1078_v17 }
 0x1be   : > { %v651_v34 = vpack.c.bf16 %v602_v33, %v601_v32 }
 0x1c0   : > { %v653_v35 = vsel %vm539_vm4, %v651_v34, 0 }
 0x1c1   : > { %1129 = vmatpush3.bf16.xpose.msra.mxu1 %v653_v35 }
 0x1c2   : > { %1140 = vmatprep.subr.bf16.mxu1 %v1207_v1 }
 0x20b   : > { %v554_v9 = vpop.xlane.xlu0 %553 }
 0x20c   : > { %1195 = vrcp.f32 %v554_v9 }
 0x20f   : > { %v557_v36 = vpop.xlane.xlu1 %556 }
 0x210   : > { %1197 = vrcp.f32 %v557_v36 }
 0x219   : > { %v1196_v37 = vpop.eup %1195 }
 0x21a   : > { %v560_v39 = vmul.f32 %v1196_v37, %v1186_v2  ;;  %v1073_v2 = vld [vmem:[%s1440_s8 + $0x40] sm:$0xff] }
 0x21b   : > { %v853_v10 = vpack.c.bf16 %v1074_v3, %v1073_v2 }
 0x21d   : > { %v1198_v38 = vpop.eup %1197 }
 0x21e   : > { %v561_v40 = vmul.f32 %v1198_v38, %v1188_v8  ;;  %v747_v8 = vpack.c.bf16 %v744_v0, %v743_v61 }
 0x220   : > { %v603_v42 = vpack.c.bf16 %v561_v40, %v560_v39 }
 0x222   : > { %1125 = vmatmul.mubr.msk.bf16.vlgmr.msra.gmra.mxu0 %vm539_vm4, %v603_v42  ;;  %1131 = vmatmul.mubr.msk.bf16.vlgmr.msra.gmra.mxu1 %vm539_vm4, %v603_v42 }
 0x223   : > { %1135 = vmatpush3.bf16.msra.mxu0 %v697_v41  ;;  %1136 = vmatprep.mubr.msk.bf16.mxu0 %vm1208_vm0, %v1207_v1 }
 0x224   : > { %1144 = vmatprep.mubr.msk.bf16.mxu1 %vm1208_vm0, %v1207_v1  ;;  %1148 = vmatprep.subr.bf16.mxu0 %v1207_v1 }
 0x225   : > { %1141 = vmatpush3.bf16.msra.mxu1 %v756_v45 }
 0x226   : > { %1142 = vmatprep.subr.bf16.mxu1 %v1207_v1 }
 0x229   : > { %1143 = vmatpush3.bf16.msra.mxu1 %v755_v48 }
 0x22a   : > { %1156 = vmatprep.subr.bf16.mxu1 %v1207_v1 }
 0x2e2   : > { %v644_v49 = vpop.f32.mrf.mxu0  ;;  %v689_v50 = vpop.f32.mrf.mxu1 }
 0x2e3   : > { %v845_v12 = vmul.f32 %v644_v49, %v1298_v6 }
 0x2e4   : > { %v1126_v55 = vpop.f32.mrf.mxu0  ;;  %v1132_v56 = vpop.f32.mrf.mxu1 }
 0x2e6   : > { %v647_v57 = vpop.f32.mrf.mxu0  ;;  %v692_v58 = vpop.f32.mrf.mxu1 }
 0x2e7   : > { %v754_v62 = vpack.c.bf16 %v647_v57, %v644_v49  ;;  %v696_v63 = vpack.c.bf16 %v692_v58, %v689_v50  ;;  %v846_v11 = vmul.f32 %v647_v57, %v1300_v7 }
 0x2e8   : > { %v1127_v4 = vpop.f32.mrf.mxu0  ;;  %v1133_v5 = vpop.f32.mrf.mxu1 }
 0x2e9   : > { %1137 = vmatmul.mubr.msk.bf16.vlgmr.msra.gmra.mxu0 %vm698_vm10, %v696_v63  ;;  %1145 = vmatmul.mubr.msk.bf16.vlgmr.msra.gmra.mxu1 %vm401_vm1, %v754_v62  ;;  %v852_v13 = vpack.c.bf16 %v846_v11, %v845_v12 }
 0x2ea   : > { %1149 = vmatpush3.bf16.msra.mxu0 %v748_v59  ;;  %1157 = vmatpush3.bf16.msra.mxu1 %v854_v60 }
 0x2eb   : > { %1150 = vmatprep.subr.bf16.mxu0 %v1207_v1  ;;  %1158 = vmatprep.subr.bf16.mxu1 %v1207_v1 }
 0x2ec   : > { %1152 = vmatprep.mubr.msk.bf16.mxu0 %vm1208_vm0, %v1207_v1  ;;  %1160 = vmatprep.mubr.msk.bf16.mxu1 %vm1208_vm0, %v1207_v1 }
 0x2ee   : > { %1151 = vmatpush3.bf16.msra.mxu0 %v747_v8  ;;  %1159 = vmatpush3.bf16.msra.mxu1 %v853_v10 }
 0x2ef   : > { %1164 = vmatprep.subr.bf16.mxu0 %v1207_v1 }
 0x2f1   : > { %1153 = vmatmul.mubr.msk.bf16.vlgmr.msra.gmra.mxu0 %vm401_vm1, %v697_v41  ;;  %1161 = vmatmul.mubr.msk.bf16.vlgmr.msra.gmra.mxu1 %vm401_vm1, %v852_v13 }
 0x2f2   : > { %1168 = vmatprep.mubr.msk.bf16.mxu0 %vm1208_vm0, %v1207_v1  ;;  %1165 = vmatpush3.bf16.msra.mxu0 %v910_v16 }
 0x2f3   : > { %1166 = vmatprep.subr.bf16.mxu0 %v1207_v1 }
 0x2f6   : > { %1167 = vmatpush3.bf16.msra.mxu0 %v909_v19 }
 0x3a9   : > { %v736_v20 = vpop.f32.mrf.mxu0  ;;  %v794_v21 = vpop.f32.mrf.mxu1 }
 0x3aa   : > { %v901_v26 = vmul.f32 %v736_v20, %v1298_v6 }
 0x3ab   : > { %v1138_v22 = vpop.f32.mrf.mxu0  ;;  %v1146_v23 = vpop.f32.mrf.mxu1 }
 0x3ad   : > { %v739_v24 = vpop.f32.mrf.mxu0  ;;  %v797_v25 = vpop.f32.mrf.mxu1 }
 0x3ae   : > { %v902_v1 = vmul.f32 %v739_v24, %v1300_v7 }
 0x3af   : > { %v1139_v27 = vpop.f32.mrf.mxu0  ;;  %v1147_v28 = vpop.f32.mrf.mxu1 }
 0x3b0   : > { %v908_v29 = vpack.c.bf16 %v902_v1, %v901_v26 }
 0x3b1   : > { %v838_v30 = vpop.f32.mrf.mxu0  ;;  %v892_v31 = vpop.f32.mrf.mxu1 }
 0x3b2   : > { %v839_v32 = vadd.f32 %v838_v30, %v794_v21  ;;  %1169 = vmatmul.mubr.msk.bf16.vlgmr.msra.gmra.mxu0 %vm401_vm1, %v908_v29 }
 0x3b3   : > { %v1154_v33 = vpop.f32.mrf.mxu0  ;;  %v1162_v34 = vpop.f32.mrf.mxu1 }
 0x3b4   : > { %v899_v35 = vadd.f32 %v892_v31, %v839_v32 }
 0x3b5   : > { %v841_v9 = vpop.f32.mrf.mxu0  ;;  %v895_v36 = vpop.f32.mrf.mxu1 }
 0x3b6   : > { %v842_v37 = vadd.f32 %v841_v9, %v797_v25 }
 0x3b7   : > { %v1163_v38 = vpop.f32.mrf.mxu1  ;;  %v1155_v39 = vpop.f32.mrf.mxu0 }
 0x3b8   : > { %v900_v6 = vadd.f32 %v895_v36, %v842_v37 }
 0x472   : > { %v948_v7 = vpop.f32.mrf.mxu0 }
 0x473   : > { %v955_v40 = vadd.f32 %v948_v7, %v899_v35 }
 0x474   : > { %v1170_v41 = vpop.f32.mrf.mxu0 }
 0x475   : > { %957 = vst.msk [vmem:[%s385_s26] sm:$0xff] %vm401_vm1, %v955_v40 }
 0x476   : > { %v951_v42 = vpop.f32.mrf.mxu0 }
 0x477   : > { %v956_v43 = vadd.f32 %v951_v42, %v900_v6 }
 0x478   : > { %v1171_v44 = vpop.f32.mrf.mxu0 }
 0x479   : > { %958 = vst.msk [vmem:[%s385_s26 + $0x8] sm:$0xff] %vm401_vm1, %v956_v43 }
 0x47a PF: > { %s21_s11 = sadd.s32 1, %s1205_s11  }
 0x47b   : > { %p18_p4 = scmp.ge.s32.totalorder %s21_s11, 4  }
 0x47d   :  { %20 = sbr.rel (!%p18_p4) target bundleno = 3 (0x3), region = 98 }

// kernel: qanet_forward.43
= control target key start
LH: loop header
LB: loop body
LE: loop exit
PB: predicated region body
PF: predicated region fallthrough
CT: control target
= control target key end

     0   :  { %s1576_s25 = smov 0   ;;  %s1882_s0 = inlined_call_operand.vmem [shape: f32[2,1,16], index: 0, kind: input, shape index: {}]   ;;  %s1883_s1 = inlined_call_operand.vmem [shape: f32[2,16,32], index: 1, kind: input, shape index: {}]   ;;  %s1884_s2 = inlined_call_operand.vmem [shape: f32[16,32], index: 2, kind: input, shape index: {}]   ;;  %s1885_s3 = inlined_call_operand.vmem [shape: f32[2,32], index: 3, kind: input, shape index: {}]   ;;  %s1886_s4 = inlined_call_operand.vmem [shape: f32[2,32], index: 4, kind: input, shape index: {}]   ;;  %s1887_s5 = inlined_call_operand.vmem [shape: f32[2,5,32], index: 5, kind: input, shape index: {}]   ;;  %s1888_s6 = inlined_call_operand.vmem [shape: f32[2,32,32], index: 6, kind: input, shape index: {}]   ;;  %s1889_s7 = inlined_call_operand.vmem [shape: f32[2,32], index: 7, kind: input, shape index: {}]   ;;  %s1890_s8 = inlined_call_operand.vmem [shape: f32[2,32], index: 8, kind: input, shape index: {}]   ;;  %s1891_s9 = inlined_call_operand.vmem [shape: f32[2,32], index: 9, kind: input, shape index: {}]   ;;  %s1892_s10 = inlined_call_operand.vmem [shape: f32[3,32,32], index: 10, kind: input, shape index: {}]   ;;  %s1893_s11 = inlined_call_operand.vmem [shape: f32[2,32,32], index: 11, kind: input, shape index: {}]   ;;  %s1894_s12 = inlined_call_operand.vmem [shape: f32[2,32], index: 12, kind: input, shape index: {}]   ;;  %s1895_s13 = inlined_call_operand.vmem [shape: f32[2,16,32], index: 13, kind: output, shape index: {}]  }
   0x1 LB: > { %s1316_s26 = sadd.s32 4294967295, %s1501_s25   ;;  %p1320_p0 = scmp.ge.s32.totalorder %s1501_s25, 1  ;;  %s1501_s25 = sphi %s1576_s25, %s23_s25  }
   0x2   : > { %p395_p1 = scmp.lt.s32.totalorder %s1501_s25, 3 }
   0x4   : > { %p396_p2 = pnand %p1320_p0, %p395_p1 }
   0x5   : > { %p442_p3 = scmp.lt.s32.totalorder (!%p396_p2), %s1316_s26, 1 }
   0x6   : > { %399 = sbr.rel (%p396_p2) target bundleno = 3030 (0xbd6), region = 72 }
   0xb   : > { %s1897_s26 = smov (!%p442_p3, %s1316_s26), 1  ;;  %v458_v0 = vld [vmem:[%s1884_s2] sm:$0xff]  ;;  %v459_v1 = vld [vmem:[%s1884_s2 + $0x8] sm:$0xff]  ;;  %vm462_vm0 = vcmask 261120   ;;  %v1503_v8 = vmov 0.0   ;;  %v563_v19 = vld [vmem:[%s1888_s6 + $0x10] sm:$0xff]  ;;  %v513_v31 = vlaneseq }
   0xc   : > { %s1365_s27 = sshll.u32 %s1897_s26, 4  ;;  %464 = vst.msk [vmem:[#allocation2 + $0x8] sm:$0xff] %vm462_vm0, %v1503_v8  ;;  %463 = vst.msk [vmem:[#allocation2] sm:$0xff] %vm462_vm0, %v1503_v8  ;;  %1392 = vmatprep.subr.bf16.mxu0 %v1503_v8  ;;  %1400 = vmatprep.subr.bf16.mxu1 %v1503_v8  ;;  %v564_v20 = vld [vmem:[%s1888_s6 + $0x18] sm:$0xff]  ;;  %v561_v21 = vld [vmem:[%s1888_s6] sm:$0xff]  ;;  %vm1504_vm1 = vmmov 0   ;;  %s444_s24 = scalar_lea.vmem %s1882_s0, %s1897_s26 }
   0xd   : > { %s449_s17 = scalar_lea.vmem %s1883_s1, %s1365_s27  ;;  %465 = vst.msk [vmem:[#allocation2 + $0x10] sm:$0xff] %vm462_vm0, %v1503_v8  ;;  %466 = vst.msk [vmem:[#allocation2 + $0x18] sm:$0xff] %vm462_vm0, %v1503_v8  ;;  %v567_v22 = vpack.c.bf16 %v564_v20, %v563_v19  ;;  %v562_v23 = vld [vmem:[%s1888_s6 + $0x8] sm:$0xff]  ;;  %1396 = vmatprep.mubr.msk.bf16.mxu0 %vm1504_vm1, %v1503_v8  ;;  %1404 = vmatprep.mubr.msk.bf16.mxu1 %vm1504_vm1, %v1503_v8  ;;  %v1325_v33 = vld [vmem:[%s1885_s3] ss:$0 sm:$0xff]  ;;  %v1644_v37 = vshrl.u32 %v513_v31, 7  ;;  %s454_s23 = scalar_lea.vmem %s1895_s13, %s1365_s27 }
   0xe   : > { %v456_v2 = vld [vmem:[%s449_s17] sm:$0xff]  ;;  %v457_v3 = vld [vmem:[%s449_s17 + $0x8] sm:$0xff]  ;;  %v566_v24 = vpack.c.bf16 %v562_v23, %v561_v21  ;;  %vm1024_vm4 = vcmask 130048  }
   0xf   : > { %v1598_v4 = vadd.f32 %v458_v0, %v456_v2  ;;  %v1600_v5 = vadd.f32 %v459_v1, %v457_v3  ;;  %1393 = vmatpush3.bf16.msra.mxu0 %v567_v22  ;;  %v1326_v35 = vld [vmem:[%s1886_s4] ss:$0 sm:$0xff]  ;;  %v1648_v42 = vsub.s32 0, %v1644_v37  ;;  %v525_v43 = vsub.s32 1, %v1644_v37 }
  0x10   : > { %1394 = vmatprep.subr.bf16.mxu0 %v1503_v8  ;;  %v510_v44 = vld [vmem:[%s1887_s5] sm:$0x1f]  ;;  %v535_v46 = vsub.s32 2, %v1644_v37  ;;  %v545_v49 = vsub.s32 3, %v1644_v37  ;;  %v555_v59 = vsub.s32 4, %v1644_v37 }
  0x11   : > { %v469_v6 = vsel %vm462_vm0, %v1598_v4, 0.0  ;;  %v472_v7 = vsel %vm462_vm0, %v1600_v5, 0.0  ;;  %v516_v47 = vrot.slane %v510_v44, %v1648_v42  ;;  %v526_v48 = vrot.slane %v510_v44, %v525_v43  ;;  %v1327_v22 = vld [vmem:[%s1889_s7] ss:$0 sm:$0xff]  ;;  %v1336_v37 = vld [vmem:[%s1889_s7 + $0x1] ss:$0 sm:$0xff] }
  0x12   : > { %470 = vadd.xlane.f32.xlu0 %v469_v6  ;;  %v536_v50 = vrot.slane %v510_v44, %v535_v46  ;;  %v546_v56 = vrot.slane %v510_v44, %v545_v49 }
  0x13   : > { %1395 = vmatpush3.bf16.msra.mxu0 %v566_v24 }
  0x14   : > { %1408 = vmatprep.subr.bf16.mxu0 %v1503_v8 }
  0x16   : > { %473 = vadd.xlane.f32.xlu0 %v472_v7 }
  0x9b   : > { %v471_v9 = vpop.xlane.xlu0 %470 }
  0x9c   : > { %v476_v10 = vmul.f32 0.03125, %v471_v9 }
  0x9e   : > { %v478_v11 = vsub.f32 %v1598_v4, %v476_v10  ;;  %v556_v10 = vrot.slane %v510_v44, %v555_v59 }
  0x9f   : > { %v474_v12 = vpop.xlane.xlu0 %473 }
  0xa0   : > { %v477_v13 = vmul.f32 0.03125, %v474_v12  ;;  %v480_v14 = vmul.f32 %v478_v11, %v478_v11 }
  0xa2   : > { %v479_v15 = vsub.f32 %v1600_v5, %v477_v13  ;;  %v482_v16 = vsel %vm462_vm0, %v480_v14, 0.0 }
  0xa3   : > { %483 = vadd.xlane.f32.xlu1 %v482_v16 }
  0xa4   : > { %v481_v17 = vmul.f32 %v479_v15, %v479_v15 }
  0xa6   : > { %v485_v18 = vsel %vm462_vm0, %v481_v17, 0.0 }
  0xa7   : > { %486 = vadd.xlane.f32.xlu1 %v485_v18 }
 0x12c   : > { %v484_v25 = vpop.xlane.xlu1 %483 }
 0x12d   : > { %v488_v26 = vmul.f32 0.03125, %v484_v25 }
 0x12f   : > { %v490_v27 = vadd.f32 1e-05, %v488_v26 }
 0x130   : > { %v487_v28 = vpop.xlane.xlu1 %486 }
 0x131   : > { %1471 = vrsqrt.f32 %v490_v27  ;;  %v489_v29 = vmul.f32 0.03125, %v487_v28 }
 0x133   : > { %v491_v30 = vadd.f32 1e-05, %v489_v29 }
 0x135   : > { %1473 = vrsqrt.f32 %v491_v30 }
 0x13e   : > { %v1472_v32 = vpop.eup %1471 }
 0x13f   : > { %v494_v34 = vmul.f32 %v1472_v32, %v478_v11 }
 0x141   : > { %v500_v36 = vmul.f32 %v1325_v33, %v494_v34 }
 0x142   : > { %v1474_v38 = vpop.eup %1473 }
 0x143   : > { %v506_v39 = vadd.f32 %v1326_v35, %v500_v36  ;;  %v495_v40 = vmul.f32 %v1474_v38, %v479_v15 }
 0x145   : > { %508 = vst.msk [vmem:[#allocation2 + $0x8] sm:$0xff] %vm462_vm0, %v506_v39  ;;  %v501_v41 = vmul.f32 %v1325_v33, %v495_v40 }
 0x147   : > { %v507_v45 = vadd.f32 %v1326_v35, %v501_v41 }
 0x149   : > { %509 = vst.msk [vmem:[#allocation2 + $0x10] sm:$0xff] %vm462_vm0, %v507_v45 }
 0x14c   : > { %v511_v51 = vld [vmem:[#allocation2 + $0x6] sm:$0xff] }
 0x14d   : > { %v521_v52 = vld [vmem:[#allocation2 + $0x7] sm:$0xff]  ;;  %v517_v54 = vmul.f32 %v516_v47, %v511_v51 }
 0x14e   : > { %v531_v53 = vld [vmem:[#allocation2 + $0x8] sm:$0xff]  ;;  %v527_v55 = vmul.f32 %v526_v48, %v521_v52 }
 0x14f   : > { %v537_v58 = vmul.f32 %v536_v50, %v531_v53  ;;  %v1333_v52 = vld [vmem:[%s1888_s6 + $0x28] sm:$0xff] }
 0x150   : > { %v529_v57 = vadd.f32 %v527_v55, %v517_v54  ;;  %v512_v60 = vld [vmem:[#allocation2 + $0xe] sm:$0xff] }
 0x151   : > { %v522_v61 = vld [vmem:[#allocation2 + $0xf] sm:$0xff]  ;;  %v518_v63 = vmul.f32 %v516_v47, %v512_v60 }
 0x152   : > { %v532_v62 = vld [vmem:[#allocation2 + $0x10] sm:$0xff]  ;;  %v528_v0 = vmul.f32 %v526_v48, %v522_v61  ;;  %v539_v1 = vadd.f32 %v537_v58, %v529_v57  ;;  %v1335_v48 = vld [vmem:[%s1888_s6 + $0x38] sm:$0xff] }
 0x153   : > { %v541_v2 = vld [vmem:[#allocation2 + $0x9] sm:$0xff]  ;;  %v542_v3 = vld [vmem:[#allocation2 + $0x11] sm:$0xff]  ;;  %v538_v9 = vmul.f32 %v536_v50, %v532_v62  ;;  %v1332_v50 = vld [vmem:[%s1888_s6 + $0x20] sm:$0xff] }
 0x154   : > { %v547_v6 = vmul.f32 %v546_v56, %v541_v2  ;;  %v530_v7 = vadd.f32 %v528_v0, %v518_v63  ;;  %v551_v11 = vld [vmem:[#allocation2 + $0xa] sm:$0xff]  ;;  %v552_v12 = vld [vmem:[#allocation2 + $0x12] sm:$0xff]  ;;  %v548_v14 = vmul.f32 %v546_v56, %v542_v3  ;;  %v721_v53 = vpack.c.bf16 %v1333_v52, %v1332_v50  ;;  %v1329_v62 = vld [vmem:[%s1885_s3 + $0x1] ss:$0 sm:$0xff] }
 0x155   : > { %v557_v17 = vmul.f32 %v556_v10, %v551_v11  ;;  %v558_v18 = vmul.f32 %v556_v10, %v552_v12  ;;  %v1334_v47 = vld [vmem:[%s1888_s6 + $0x30] sm:$0xff]  ;;  %v1330_v0 = vld [vmem:[%s1886_s4 + $0x1] ss:$0 sm:$0xff] }
 0x156   : > { %v540_v13 = vadd.f32 %v538_v9, %v530_v7  ;;  %v549_v15 = vadd.f32 %v547_v6, %v539_v1  ;;  %v722_v51 = vpack.c.bf16 %v1335_v48, %v1334_v47  ;;  %v1331_v9 = vld [vmem:[%s1887_s5 + $0x8] sm:$0x1f] }
 0x157   : > { %v670_v11 = vrot.slane %v1331_v9, %v1648_v42  ;;  %v680_v12 = vrot.slane %v1331_v9, %v525_v43 }
 0x158   : > { %v550_v16 = vadd.f32 %v548_v14, %v540_v13  ;;  %v559_v19 = vadd.f32 %v557_v17, %v549_v15  ;;  %1401 = vmatpush3.bf16.msra.mxu1 %v722_v51  ;;  %v690_v13 = vrot.slane %v1331_v9, %v535_v46 }
 0x159   : > { %1402 = vmatprep.subr.bf16.mxu1 %v1503_v8 }
 0x15a   : > { %v560_v20 = vadd.f32 %v558_v18, %v550_v16 }
 0x15c   : > { %v565_v21 = vpack.c.bf16 %v560_v20, %v559_v19  ;;  %1403 = vmatpush3.bf16.msra.mxu1 %v721_v53  ;;  %v700_v19 = vrot.slane %v1331_v9, %v545_v49 }
 0x15d   : > { %1416 = vmatprep.subr.bf16.mxu1 %v1503_v8 }
 0x15e   : > { %1397 = vmatmul.mubr.msk.bf16.vlgmr.msra.gmra.mxu0 %vm462_vm0, %v565_v21 }
 0x15f   : > { %1412 = vmatprep.mubr.msk.bf16.mxu0 %vm1504_vm1, %v1503_v8 }
 0x21e   : > { %v610_v23 = vpop.f32.mrf.mxu0 }
 0x21f   : > { %v611_v24 = vadd.f32 %v1327_v22, %v610_v23 }
 0x220   : > { %v1398_v25 = vpop.f32.mrf.mxu0 }
 0x221   : > { %v617_v26 = vmax.f32 %v611_v24, 0.0 }
 0x222   : > { %v613_v27 = vpop.f32.mrf.mxu0 }
 0x223   : > { %v1674_v28 = vadd.f32 %v617_v26, %v1598_v4  ;;  %v614_v29 = vadd.f32 %v1327_v22, %v613_v27 }
 0x224   : > { %v1399_v30 = vpop.f32.mrf.mxu0 }
 0x225   : > { %v618_v31 = vmax.f32 %v614_v29, 0.0  ;;  %v623_v32 = vsel %vm462_vm0, %v1674_v28, 0.0 }
 0x226   : > { %624 = vadd.xlane.f32.xlu0 %v623_v32  ;;  %v710_v32 = vrot.slane %v1331_v9, %v555_v59 }
 0x227   : > { %v1679_v33 = vadd.f32 %v618_v31, %v1600_v5 }
 0x229   : > { %v626_v34 = vsel %vm462_vm0, %v1679_v33, 0.0 }
 0x22a   : > { %627 = vadd.xlane.f32.xlu1 %v626_v34 }
 0x2af   : > { %v625_v35 = vpop.xlane.xlu0 %624 }
 0x2b0   : > { %v629_v36 = vmul.f32 0.03125, %v625_v35 }
 0x2b2   : > { %v631_v38 = vsub.f32 %v1674_v28, %v629_v36 }
 0x2b3   : > { %v628_v4 = vpop.xlane.xlu1 %627 }
 0x2b4   : > { %v630_v39 = vmul.f32 0.03125, %v628_v4  ;;  %v633_v40 = vmul.f32 %v631_v38, %v631_v38 }
 0x2b6   : > { %v632_v41 = vsub.f32 %v1679_v33, %v630_v39  ;;  %v635_v44 = vsel %vm462_vm0, %v633_v40, 0.0 }
 0x2b7   : > { %636 = vadd.xlane.f32.xlu0 %v635_v44 }
 0x2b8   : > { %v634_v45 = vmul.f32 %v632_v41, %v632_v41 }
 0x2ba   : > { %v638_v5 = vsel %vm462_vm0, %v634_v45, 0.0 }
 0x2bb   : > { %639 = vadd.xlane.f32.xlu1 %v638_v5 }
 0x340   : > { %v637_v54 = vpop.xlane.xlu0 %636 }
 0x341   : > { %v641_v55 = vmul.f32 0.03125, %v637_v54 }
 0x343   : > { %v643_v56 = vadd.f32 1e-05, %v641_v55 }
 0x344   : > { %v640_v57 = vpop.xlane.xlu1 %639 }
 0x345   : > { %1475 = vrsqrt.f32 %v643_v56  ;;  %v642_v58 = vmul.f32 0.03125, %v640_v57 }
 0x347   : > { %v644_v60 = vadd.f32 1e-05, %v642_v58 }
 0x349   : > { %1477 = vrsqrt.f32 %v644_v60 }
 0x352   : > { %v1476_v61 = vpop.eup %1475 }
 0x353   : > { %v647_v63 = vmul.f32 %v1476_v61, %v631_v38 }
 0x355   : > { %v653_v1 = vmul.f32 %v1329_v62, %v647_v63 }
 0x356   : > { %v1478_v2 = vpop.eup %1477 }
 0x357   : > { %v659_v3 = vadd.f32 %v1330_v0, %v653_v1  ;;  %v648_v6 = vmul.f32 %v1478_v2, %v632_v41 }
 0x359   : > { %661 = vst.msk [vmem:[#allocation2 + $0x8] sm:$0xff] %vm462_vm0, %v659_v3  ;;  %v654_v7 = vmul.f32 %v1329_v62, %v648_v6  ;;  %v818_v3 = vld [vmem:[%s1892_s10 + $0x10] sm:$0xff]  ;;  %v819_v6 = vld [vmem:[%s1892_s10 + $0x18] sm:$0xff] }
 0x35a   : > { %v822_v9 = vpack.c.bf16 %v819_v6, %v818_v3 }
 0x35b   : > { %v660_v10 = vadd.f32 %v1330_v0, %v654_v7  ;;  %v1343_v7 = vld [vmem:[%s1892_s10 + $0x30] sm:$0xff] }
 0x35c   : > { %1409 = vmatpush3.bf16.msra.mxu0 %v822_v9 }
 0x35d   : > { %662 = vst.msk [vmem:[#allocation2 + $0x10] sm:$0xff] %vm462_vm0, %v660_v10  ;;  %v1344_v10 = vld [vmem:[%s1892_s10 + $0x38] sm:$0xff]  ;;  %1410 = vmatprep.subr.bf16.mxu0 %v1503_v8 }
 0x360   : > { %v665_v14 = vld [vmem:[#allocation2 + $0x6] sm:$0xff] }
 0x361   : > { %v675_v15 = vld [vmem:[#allocation2 + $0x7] sm:$0xff]  ;;  %v671_v17 = vmul.f32 %v670_v11, %v665_v14 }
 0x362   : > { %v685_v16 = vld [vmem:[#allocation2 + $0x8] sm:$0xff]  ;;  %v681_v18 = vmul.f32 %v680_v12, %v675_v15  ;;  %v1341_v14 = vld [vmem:[%s1892_s10 + $0x20] sm:$0xff] }
 0x363   : > { %v691_v21 = vmul.f32 %v690_v13, %v685_v16  ;;  %v1342_v15 = vld [vmem:[%s1892_s10 + $0x28] sm:$0xff] }
 0x364   : > { %v683_v20 = vadd.f32 %v681_v18, %v671_v17  ;;  %v666_v22 = vld [vmem:[#allocation2 + $0xe] sm:$0xff]  ;;  %v872_v17 = vpack.c.bf16 %v1342_v15, %v1341_v14 }
 0x365   : > { %v676_v23 = vld [vmem:[#allocation2 + $0xf] sm:$0xff]  ;;  %v672_v25 = vmul.f32 %v670_v11, %v666_v22  ;;  %v816_v11 = vld [vmem:[%s1892_s10] sm:$0xff] }
 0x366   : > { %v686_v24 = vld [vmem:[#allocation2 + $0x10] sm:$0xff]  ;;  %v682_v26 = vmul.f32 %v680_v12, %v676_v23  ;;  %v693_v27 = vadd.f32 %v691_v21, %v683_v20  ;;  %v817_v12 = vld [vmem:[%s1892_s10 + $0x8] sm:$0xff] }
 0x367   : > { %v695_v43 = vld [vmem:[#allocation2 + $0x9] sm:$0xff]  ;;  %v696_v29 = vld [vmem:[#allocation2 + $0x11] sm:$0xff]  ;;  %v692_v31 = vmul.f32 %v690_v13, %v686_v24  ;;  %v873_v13 = vpack.c.bf16 %v1344_v10, %v1343_v7  ;;  %v821_v16 = vpack.c.bf16 %v817_v12, %v816_v11 }
 0x368   : > { %v701_v30 = vmul.f32 %v700_v19, %v695_v43  ;;  %v684_v46 = vadd.f32 %v682_v26, %v672_v25  ;;  %v705_v34 = vld [vmem:[#allocation2 + $0xa] sm:$0xff]  ;;  %v706_v35 = vld [vmem:[#allocation2 + $0x12] sm:$0xff]  ;;  %v702_v49 = vmul.f32 %v700_v19, %v696_v29  ;;  %v1338_v26 = vld [vmem:[%s1890_s8] ss:$0 sm:$0xff] }
 0x369   : > { %v711_v39 = vmul.f32 %v710_v32, %v705_v34  ;;  %v712_v40 = vmul.f32 %v710_v32, %v706_v35  ;;  %1411 = vmatpush3.bf16.msra.mxu0 %v821_v16  ;;  %v1349_v32 = vld [vmem:[%s1892_s10 + $0x58] sm:$0xff] }
 0x36a   : > { %v694_v36 = vadd.f32 %v692_v31, %v684_v46  ;;  %v703_v38 = vadd.f32 %v701_v30, %v693_v27  ;;  %1424 = vmatprep.subr.bf16.mxu0 %v1503_v8  ;;  %v1339_v30 = vld [vmem:[%s1891_s9] ss:$0 sm:$0xff]  ;;  %v1348_v31 = vld [vmem:[%s1892_s10 + $0x50] sm:$0xff] }
 0x36c   : > { %v704_v4 = vadd.f32 %v702_v49, %v694_v36  ;;  %v713_v41 = vadd.f32 %v711_v39, %v703_v38  ;;  %v921_v36 = vpack.c.bf16 %v1349_v32, %v1348_v31  ;;  %v1346_v38 = vld [vmem:[%s1892_s10 + $0x40] sm:$0xff] }
 0x36e   : > { %v714_v44 = vadd.f32 %v712_v40, %v704_v4  ;;  %v1347_v4 = vld [vmem:[%s1892_s10 + $0x48] sm:$0xff] }
 0x36f   : > { %v920_v39 = vpack.c.bf16 %v1347_v4, %v1346_v38 }
 0x370   : > { %v720_v45 = vpack.c.bf16 %v714_v44, %v713_v41 }
 0x372   : > { %1405 = vmatmul.mubr.msk.bf16.vlgmr.msra.gmra.mxu1 %vm462_vm0, %v720_v45 }
 0x373   : > { %1420 = vmatprep.mubr.msk.bf16.mxu1 %vm1504_vm1, %v1503_v8  ;;  %1417 = vmatpush3.bf16.msra.mxu1 %v873_v13 }
 0x374   : > { %1418 = vmatprep.subr.bf16.mxu1 %v1503_v8 }
 0x377   : > { %1419 = vmatpush3.bf16.msra.mxu1 %v872_v17 }
 0x378   : > { %1432 = vmatprep.subr.bf16.mxu1 %v1503_v8 }
 0x432   : > { %v765_v59 = vpop.f32.mrf.mxu1 }
 0x433   : > { %v766_v5 = vadd.f32 %v1336_v37, %v765_v59 }
 0x434   : > { %v1406_v47 = vpop.f32.mrf.mxu1 }
 0x435   : > { %v772_v48 = vmax.f32 %v766_v5, 0.0 }
 0x436   : > { %v768_v50 = vpop.f32.mrf.mxu1 }
 0x437   : > { %v1728_v51 = vadd.f32 %v772_v48, %v1674_v28  ;;  %v769_v52 = vadd.f32 %v1336_v37, %v768_v50 }
 0x438   : > { %v1407_v53 = vpop.f32.mrf.mxu1 }
 0x439   : > { %v773_v54 = vmax.f32 %v769_v52, 0.0  ;;  %v778_v55 = vsel %vm462_vm0, %v1728_v51, 0.0 }
 0x43a   : > { %779 = vadd.xlane.f32.xlu0 %v778_v55 }
 0x43b   : > { %v1733_v56 = vadd.f32 %v773_v54, %v1679_v33 }
 0x43d   : > { %v781_v57 = vsel %vm462_vm0, %v1733_v56, 0.0 }
 0x43e   : > { %782 = vadd.xlane.f32.xlu1 %v781_v57 }
 0x4c3   : > { %v780_v58 = vpop.xlane.xlu0 %779 }
 0x4c4   : > { %v784_v60 = vmul.f32 0.03125, %v780_v58 }
 0x4c6   : > { %v786_v61 = vsub.f32 %v1728_v51, %v784_v60 }
 0x4c7   : > { %v783_v28 = vpop.xlane.xlu1 %782 }
 0x4c8   : > { %v785_v62 = vmul.f32 0.03125, %v783_v28  ;;  %v788_v63 = vmul.f32 %v786_v61, %v786_v61  ;;  %v965_v28 = vld [vmem:[%s444_s24] sm:$0x1] }
 0x4c9   : > { %vm1015_vm2 = vcmp.gt.f32.partialorder %v965_v28, 0.0 }
 0x4ca   : > { %v787_v0 = vsub.f32 %v1733_v56, %v785_v62  ;;  %v790_v1 = vsel %vm462_vm0, %v788_v63, 0.0  ;;  %v1505_v62 = vmov 0  }
 0x4cb   : > { %791 = vadd.xlane.f32.xlu0 %v790_v1  ;;  %v1016_v63 = vsel %vm1015_vm2, 1, %v1505_v62 }
 0x4cc   : > { %v789_v2 = vmul.f32 %v787_v0, %v787_v0 }
 0x4ce   : > { %v793_v33 = vsel %vm462_vm0, %v789_v2, 0.0 }
 0x4cf   : > { %794 = vadd.xlane.f32.xlu1 %v793_v33 }
 0x554   : > { %v792_v18 = vpop.xlane.xlu0 %791 }
 0x555   : > { %v796_v19 = vmul.f32 0.03125, %v792_v18 }
 0x557   : > { %v798_v20 = vadd.f32 1e-05, %v796_v19 }
 0x558   : > { %v795_v21 = vpop.xlane.xlu1 %794 }
 0x559   : > { %1479 = vrsqrt.f32 %v798_v20  ;;  %v797_v22 = vmul.f32 0.03125, %v795_v21 }
 0x55b   : > { %v799_v23 = vadd.f32 1e-05, %v797_v22 }
 0x55d   : > { %1481 = vrsqrt.f32 %v799_v23 }
 0x566   : > { %v1480_v24 = vpop.eup %1479 }
 0x567   : > { %v802_v25 = vmul.f32 %v1480_v24, %v786_v61 }
 0x569   : > { %v808_v29 = vmul.f32 %v1338_v26, %v802_v25 }
 0x56a   : > { %v1482_v27 = vpop.eup %1481 }
 0x56b   : > { %v803_v43 = vmul.f32 %v1482_v27, %v787_v0  ;;  %v814_v34 = vadd.f32 %v1339_v30, %v808_v29  ;;  %v1020_v0 = vrot.slane %v1016_v63, %v1648_v42  ;;  %v1354_v63 = vld [vmem:[%s1891_s9 + $0x1] ss:$0 sm:$0xff] }
 0x56d   : > { %v809_v46 = vmul.f32 %v1338_v26, %v803_v43  ;;  %vm1021_vm3 = vcmp.eq.s32.totalorder %v1020_v0, 1 }
 0x56f   : > { %v815_v35 = vadd.f32 %v1339_v30, %v809_v46 }
 0x571   : > { %v820_v49 = vpack.c.bf16 %v815_v35, %v814_v34 }
 0x573   : > { %1413 = vmatmul.mubr.msk.bf16.vlgmr.msra.gmra.mxu0 %vm462_vm0, %v820_v49  ;;  %1421 = vmatmul.mubr.msk.bf16.vlgmr.msra.gmra.mxu1 %vm462_vm0, %v820_v49 }
 0x574   : > { %1425 = vmatpush3.bf16.msra.mxu0 %v921_v36  ;;  %1428 = vmatprep.mubr.msk.bf16.mxu0 %vm1504_vm1, %v1503_v8 }
 0x575   : > { %1426 = vmatprep.subr.bf16.mxu0 %v1503_v8  ;;  %1434 = vmatprep.mubr.msk.bf16.mxu1 %vm1504_vm1, %v1503_v8 }
 0x578   : > { %1427 = vmatpush3.bf16.msra.mxu0 %v920_v39 }
 0x579   : > { %1438 = vmatprep.subr.bf16.mxu0 %v1503_v8 }
 0x57b   : > { %1429 = vmatmul.mubr.msk.bf16.vlgmr.msra.gmra.mxu0 %vm462_vm0, %v820_v49 }
 0x57c   : > { %1440 = vmatprep.mubr.msk.bf16.mxu0 %vm1504_vm1, %v1503_v8 }
 0x633   : > { %v860_v40 = vpop.f32.mrf.mxu0  ;;  %v908_v41 = vpop.f32.mrf.mxu1 }
 0x635   : > { %v1414_v44 = vpop.f32.mrf.mxu0  ;;  %v1422_v45 = vpop.f32.mrf.mxu1 }
 0x636   : > { %v1135_v44 = vld [vmem:[%s1893_s11 + $0x10] sm:$0xff]  ;;  %v1136_v45 = vld [vmem:[%s1893_s11 + $0x18] sm:$0xff] }
 0x637   : > { %v863_v37 = vpop.f32.mrf.mxu0  ;;  %v911_v59 = vpop.f32.mrf.mxu1 }
 0x638   : > { %v967_v5 = vpack.c.bf16 %v863_v37, %v860_v40  ;;  %v1048_v47 = vpack.c.bf16 %v911_v59, %v908_v41  ;;  %v1133_v37 = vld [vmem:[%s1893_s11] sm:$0xff]  ;;  %v1139_v59 = vpack.c.bf16 %v1136_v45, %v1135_v44 }
 0x639   : > { %v1415_v48 = vpop.f32.mrf.mxu0  ;;  %v1423_v50 = vpop.f32.mrf.mxu1 }
 0x63a   : > { %v972_v52 = vsel %vm462_vm0, %v967_v5, 0  ;;  %1439 = vmatpush3.bf16.msra.mxu0 %v1048_v47  ;;  %v1134_v5 = vld [vmem:[%s1893_s11 + $0x8] sm:$0xff] }
 0x63b   : > { %v956_v53 = vpop.f32.mrf.mxu0  ;;  %1433 = vmatpush3.bf16.xpose.msra.mxu1 %v972_v52  ;;  %1452 = vmatprep.subr.bf16.mxu0 %v1503_v8  ;;  %v1138_v47 = vpack.c.bf16 %v1134_v5, %v1133_v37 }
 0x63c   : > { %1444 = vmatprep.subr.bf16.mxu1 %v1503_v8  ;;  %v963_v57 = vmul.f32 0.17677669, %v956_v53 }
 0x63d   : > { %v1430_v54 = vpop.f32.mrf.mxu0 }
 0x63f   : > { %v959_v55 = vpop.f32.mrf.mxu0 }
 0x640   : > { %v964_v58 = vmul.f32 0.17677669, %v959_v55 }
 0x641   : > { %v1431_v60 = vpop.f32.mrf.mxu0 }
 0x642   : > { %v966_v61 = vpack.c.bf16 %v964_v58, %v963_v57  ;;  %v1353_v60 = vld [vmem:[%s1890_s8 + $0x1] ss:$0 sm:$0xff] }
 0x644   : > { %1435 = vmatmul.mubr.msk.bf16.vlgmr.msra.gmra.mxu1 %vm462_vm0, %v966_v61 }
 0x645   : > { %1448 = vmatprep.mubr.msk.bf16.mxu1 %vm1504_vm1, %v1503_v8  ;;  %1445 = vmatpush3.bf16.msra.mxu1 %v1139_v59 }
 0x646   : > { %1446 = vmatprep.subr.bf16.mxu1 %v1503_v8 }
 0x649   : > { %1447 = vmatpush3.bf16.msra.mxu1 %v1138_v47 }
 0x704   : > { %v1008_v1 = vpop.f32.mrf.mxu1 }
 0x705   : > { %v1022_v2 = vsel %vm1021_vm3, %v1008_v1, -1e+30 }
 0x706   : > { %v1436_v33 = vpop.f32.mrf.mxu1  ;;  %v1025_v3 = vsel %vm1024_vm4, %v1022_v2, -inf }
 0x707   : > { %1026 = vmax.xlane.f32.xlu0 %v1025_v3  ;;  %v1359_v3 = vld [vmem:[%s1893_s11 + $0x30] sm:$0xff] }
 0x708   : > { %v1011_v6 = vpop.f32.mrf.mxu1 }
 0x709   : > { %v1023_v7 = vsel %vm1021_vm3, %v1011_v6, -1e+30  ;;  %v1360_v6 = vld [vmem:[%s1893_s11 + $0x38] sm:$0xff] }
 0x70a   : > { %v1437_v9 = vpop.f32.mrf.mxu1  ;;  %v1028_v10 = vsel %vm1024_vm4, %v1023_v7, -inf }
 0x70b   : > { %1029 = vmax.xlane.f32.xlu1 %v1028_v10  ;;  %v1357_v9 = vld [vmem:[%s1893_s11 + $0x20] sm:$0xff]  ;;  %v1358_v10 = vld [vmem:[%s1893_s11 + $0x28] sm:$0xff] }
 0x790   : > { %v1027_v11 = vpop.xlane.xlu0 %1026 }
 0x791   : > { %v1031_v12 = vsub.f32 %v1022_v2, %v1027_v11  ;;  %v1197_v11 = vpack.c.bf16 %v1358_v10, %v1357_v9 }
 0x793   : > { %v1033_v13 = vmul.f32 1.442695, %v1031_v12  ;;  %v1355_v12 = vld [vmem:[%s1894_s12] ss:$0 sm:$0xff] }
 0x794   : > { %v1030_v14 = vpop.xlane.xlu1 %1029 }
 0x795   : > { %1483 = vpow2.f32 %v1033_v13  ;;  %v1032_v42 = vsub.f32 %v1023_v7, %v1030_v14  ;;  %v1198_v7 = vpack.c.bf16 %v1360_v6, %v1359_v3 }
 0x797   : > { %v1035_v15 = vmul.f32 1.442695, %v1032_v42 }
 0x799   : > { %1485 = vpow2.f32 %v1035_v15 }
 0x7a2   : > { %v1484_v16 = vpop.eup %1483 }
 0x7a3   : > { %v1037_v17 = vsel %vm1024_vm4, %v1484_v16, 0.0 }
 0x7a4   : > { %1038 = vadd.xlane.f32.xlu0 %v1037_v17 }
 0x7a6   : > { %v1486_v18 = vpop.eup %1485 }
 0x7a7   : > { %v1040_v19 = vsel %vm1024_vm4, %v1486_v18, 0.0 }
 0x7a8   : > { %1041 = vadd.xlane.f32.xlu1 %v1040_v19 }
 0x82d   : > { %v1039_v20 = vpop.xlane.xlu0 %1038 }
 0x82e   : > { %1487 = vrcp.f32 %v1039_v20  ;;  %v1361_v20 = vld [vmem:[%s1894_s12 + $0x1] ss:$0 sm:$0xff] }
 0x831   : > { %v1042_v21 = vpop.xlane.xlu1 %1041 }
 0x832   : > { %1489 = vrcp.f32 %v1042_v21 }
 0x83b   : > { %v1488_v22 = vpop.eup %1487 }
 0x83c   : > { %v1045_v24 = vmul.f32 %v1488_v22, %v1484_v16 }
 0x83f   : > { %v1490_v23 = vpop.eup %1489 }
 0x840   : > { %v1046_v25 = vmul.f32 %v1490_v23, %v1486_v18 }
 0x842   : > { %v1047_v26 = vpack.c.bf16 %v1046_v25, %v1045_v24 }
 0x844   : > { %1441 = vmatmul.mubr.msk.bf16.vlgmr.msra.gmra.mxu0 %vm1024_vm4, %v1047_v26 }
 0x845   : > { %1456 = vmatprep.mubr.msk.bf16.mxu0 %vm1504_vm1, %v1503_v8  ;;  %1453 = vmatpush3.bf16.msra.mxu0 %v1198_v7 }
 0x846   : > { %1454 = vmatprep.subr.bf16.mxu0 %v1503_v8 }
 0x849   : > { %1455 = vmatpush3.bf16.msra.mxu0 %v1197_v11 }
 0x904   : > { %v1086_v27 = vpop.f32.mrf.mxu0 }
 0x905   : > { %v1817_v43 = vadd.f32 %v1086_v27, %v1728_v51 }
 0x906   : > { %v1442_v29 = vpop.f32.mrf.mxu0 }
 0x907   : > { %v1095_v30 = vsel %vm462_vm0, %v1817_v43, 0.0 }
 0x908   : > { %1096 = vadd.xlane.f32.xlu0 %v1095_v30  ;;  %v1089_v46 = vpop.f32.mrf.mxu0 }
 0x909   : > { %v1822_v31 = vadd.f32 %v1089_v46, %v1733_v56 }
 0x90a   : > { %v1443_v32 = vpop.f32.mrf.mxu0 }
 0x90b   : > { %v1098_v34 = vsel %vm462_vm0, %v1822_v31, 0.0 }
 0x90c   : > { %1099 = vadd.xlane.f32.xlu1 %v1098_v34 }
 0x991   : > { %v1097_v35 = vpop.xlane.xlu0 %1096 }
 0x992   : > { %v1101_v36 = vmul.f32 0.03125, %v1097_v35 }
 0x994   : > { %v1103_v49 = vsub.f32 %v1817_v43, %v1101_v36 }
 0x995   : > { %v1100_v51 = vpop.xlane.xlu1 %1099 }
 0x996   : > { %v1102_v38 = vmul.f32 0.03125, %v1100_v51  ;;  %v1105_v4 = vmul.f32 %v1103_v49, %v1103_v49 }
 0x998   : > { %v1104_v39 = vsub.f32 %v1822_v31, %v1102_v38  ;;  %v1107_v40 = vsel %vm462_vm0, %v1105_v4, 0.0 }
 0x999   : > { %1108 = vadd.xlane.f32.xlu0 %v1107_v40 }
 0x99a   : > { %v1106_v41 = vmul.f32 %v1104_v39, %v1104_v39 }
 0x99c   : > { %v1110_v56 = vsel %vm462_vm0, %v1106_v41, 0.0 }
 0x99d   : > { %1111 = vadd.xlane.f32.xlu1 %v1110_v56 }
 0xa22   : > { %v1109_v48 = vpop.xlane.xlu0 %1108 }
 0xa23   : > { %v1113_v50 = vmul.f32 0.03125, %v1109_v48 }
 0xa25   : > { %v1115_v52 = vadd.f32 1e-05, %v1113_v50 }
 0xa26   : > { %v1112_v53 = vpop.xlane.xlu1 %1111 }
 0xa27   : > { %1491 = vrsqrt.f32 %v1115_v52  ;;  %v1114_v54 = vmul.f32 0.03125, %v1112_v53 }
 0xa29   : > { %v1116_v55 = vadd.f32 1e-05, %v1114_v54 }
 0xa2b   : > { %1493 = vrsqrt.f32 %v1116_v55 }
 0xa34   : > { %v1492_v57 = vpop.eup %1491 }
 0xa35   : > { %v1119_v58 = vmul.f32 %v1492_v57, %v1103_v49 }
 0xa37   : > { %v1125_v62 = vmul.f32 %v1353_v60, %v1119_v58 }
 0xa38   : > { %v1494_v61 = vpop.eup %1493 }
 0xa39   : > { %v1120_v28 = vmul.f32 %v1494_v61, %v1104_v39  ;;  %v1131_v1 = vadd.f32 %v1354_v63, %v1125_v62 }
 0xa3b   : > { %v1126_v0 = vmul.f32 %v1353_v60, %v1120_v28 }
 0xa3d   : > { %v1132_v2 = vadd.f32 %v1354_v63, %v1126_v0 }
 0xa3f   : > { %v1137_v33 = vpack.c.bf16 %v1132_v2, %v1131_v1 }
 0xa41   : > { %1449 = vmatmul.mubr.msk.bf16.vlgmr.msra.gmra.mxu1 %vm462_vm0, %v1137_v33 }
 0xb01   : > { %v1182_v13 = vpop.f32.mrf.mxu1 }
 0xb02   : > { %v1183_v42 = vadd.f32 %v1355_v12, %v1182_v13 }
 0xb03   : > { %v1450_v14 = vpop.f32.mrf.mxu1 }
 0xb04   : > { %v1189_v17 = vmax.f32 %v1183_v42, 0.0 }
 0xb05   : > { %v1185_v15 = vpop.f32.mrf.mxu1 }
 0xb06   : > { %v1186_v8 = vadd.f32 %v1355_v12, %v1185_v15 }
 0xb07   : > { %v1451_v16 = vpop.f32.mrf.mxu1 }
 0xb08   : > { %v1190_v18 = vmax.f32 %v1186_v8, 0.0 }
 0xb0a   : > { %v1196_v19 = vpack.c.bf16 %v1190_v18, %v1189_v17 }
 0xb0c   : > { %1457 = vmatmul.mubr.msk.bf16.vlgmr.msra.gmra.mxu0 %vm462_vm0, %v1196_v19 }
 0xbcc   : > { %v1241_v21 = vpop.f32.mrf.mxu0 }
 0xbcd   : > { %v1242_v22 = vadd.f32 %v1361_v20, %v1241_v21 }
 0xbce   : > { %v1458_v23 = vpop.f32.mrf.mxu0 }
 0xbcf   : > { %v1248_v24 = vadd.f32 %v1242_v22, %v1817_v43 }
 0xbd0   : > { %v1244_v25 = vpop.f32.mrf.mxu0 }
 0xbd1   : > { %1250 = vst.msk [vmem:[%s454_s23] sm:$0xff] %vm462_vm0, %v1248_v24  ;;  %v1245_v26 = vadd.f32 %v1361_v20, %v1244_v25 }
 0xbd2   : > { %v1459_v27 = vpop.f32.mrf.mxu0 }
 0xbd3   : > { %v1249_v29 = vadd.f32 %v1245_v26, %v1822_v31 }
 0xbd5   : > { %1251 = vst.msk [vmem:[%s454_s23 + $0x8] sm:$0xff] %vm462_vm0, %v1249_v29 }
 0xbd6 PF: > { %s23_s25 = sadd.s32 1, %s1501_s25  }
 0xbd7   : > { %p20_p4 = scmp.ge.s32.totalorder %s23_s25, 4  }
 0xbd9   :  { %22 = sbr.rel (!%p20_p4) target bundleno = 1 (0x1), region = 110 }

// kernel: qanet_forward.41
= control target key start
LH: loop header
LB: loop body
LE: loop exit
PB: predicated region body
PF: predicated region fallthrough
CT: control target
= control target key end

     0   :  { %s1774_s25 = smov 0   ;;  %s2126_s0 = inlined_call_operand.vmem [shape: f32[2,1,8], index: 0, kind: input, shape index: {}]   ;;  %s2127_s1 = inlined_call_operand.vmem [shape: f32[2,8,32], index: 1, kind: input, shape index: {}]   ;;  %s2128_s2 = inlined_call_operand.vmem [shape: f32[8,32], index: 2, kind: input, shape index: {}]   ;;  %s2129_s3 = inlined_call_operand.vmem [shape: f32[4,32], index: 3, kind: input, shape index: {}]   ;;  %s2130_s4 = inlined_call_operand.vmem [shape: f32[4,32], index: 4, kind: input, shape index: {}]   ;;  %s2131_s5 = inlined_call_operand.vmem [shape: f32[4,7,32], index: 5, kind: input, shape index: {}]   ;;  %s2132_s6 = inlined_call_operand.vmem [shape: f32[4,32,32], index: 6, kind: input, shape index: {}]   ;;  %s2133_s7 = inlined_call_operand.vmem [shape: f32[4,32], index: 7, kind: input, shape index: {}]   ;;  %s2134_s8 = inlined_call_operand.vmem [shape: f32[2,32], index: 8, kind: input, shape index: {}]   ;;  %s2135_s9 = inlined_call_operand.vmem [shape: f32[2,32], index: 9, kind: input, shape index: {}]   ;;  %s2136_s10 = inlined_call_operand.vmem [shape: f32[3,32,32], index: 10, kind: input, shape index: {}]   ;;  %s2137_s11 = inlined_call_operand.vmem [shape: f32[2,32,32], index: 11, kind: input, shape index: {}]   ;;  %s2138_s12 = inlined_call_operand.vmem [shape: f32[2,32], index: 12, kind: input, shape index: {}]   ;;  %s2139_s13 = inlined_call_operand.vmem [shape: f32[2,8,32], index: 13, kind: output, shape index: {}]  }
   0x1 LB: > { %s1486_s26 = sadd.s32 4294967295, %s1699_s25   ;;  %p1490_p0 = scmp.ge.s32.totalorder %s1699_s25, 1  ;;  %s1699_s25 = sphi %s1774_s25, %s23_s25  }
   0x2   : > { %p394_p1 = scmp.lt.s32.totalorder %s1699_s25, 3 }
   0x4   : > { %p395_p2 = pnand %p1490_p0, %p394_p1 }
   0x5   : > { %p439_p3 = scmp.lt.s32.totalorder (!%p395_p2), %s1486_s26, 1 }
   0x6   : > { %398 = sbr.rel (%p395_p2) target bundleno = 4071 (0xfe7), region = 72 }
   0xb   : > { %s2141_s26 = smov (!%p439_p3, %s1486_s26), 1  ;;  %v452_v0 = vld [vmem:[%s2128_s2] sm:$0xff]  ;;  %vm454_vm0 = vcmask 261120   ;;  %v1701_v4 = vmov 0.0   ;;  %v537_v10 = vld [vmem:[%s2132_s6 + $0x10] sm:$0xff]  ;;  %v538_v11 = vld [vmem:[%s2132_s6 + $0x18] sm:$0xff]  ;;  %v487_v19 = vlaneseq }
   0xc   : > { %s1491_s27 = sshll.u32 %s2141_s26, 3  ;;  %456 = vst.msk [vmem:[#allocation2 + $0x8] sm:$0xff] %vm454_vm0, %v1701_v4  ;;  %455 = vst.msk [vmem:[#allocation2] sm:$0xff] %vm454_vm0, %v1701_v4  ;;  %1582 = vmatprep.subr.bf16.mxu0 %v1701_v4  ;;  %1590 = vmatprep.subr.bf16.mxu1 %v1701_v4  ;;  %v535_v12 = vld [vmem:[%s2132_s6] sm:$0xff]  ;;  %v541_v13 = vpack.c.bf16 %v538_v11, %v537_v10  ;;  %v536_v14 = vld [vmem:[%s2132_s6 + $0x8] sm:$0xff]  ;;  %vm1702_vm1 = vmmov 0   ;;  %s441_s29 = scalar_lea.vmem %s2126_s0, %s2141_s26 }
   0xd   : > { %s445_s15 = scalar_lea.vmem %s2127_s1, %s1491_s27  ;;  %457 = vst.msk [vmem:[#allocation2 + $0x10] sm:$0xff] %vm454_vm0, %v1701_v4  ;;  %1586 = vmatprep.mubr.msk.bf16.mxu0 %vm1702_vm1, %v1701_v4  ;;  %1594 = vmatprep.mubr.msk.bf16.mxu1 %vm1702_vm1, %v1701_v4  ;;  %v540_v15 = vpack.c.bf16 %v536_v14, %v535_v12  ;;  %v1493_v21 = vld [vmem:[%s2129_s3] ss:$0 sm:$0xff]  ;;  %v488_v25 = vshrl.u32 %v487_v19, 7  ;;  %vm1241_vm2 = vcmask 1043456   ;;  %vm1224_vm5 = vcmask 64512   ;;  %s449_s28 = scalar_lea.vmem %s2139_s13, %s1491_s27 }
   0xe   : > { %v451_v1 = vld [vmem:[%s445_s15] sm:$0xff]  ;;  %1583 = vmatpush3.bf16.msra.mxu0 %v541_v13 }
   0xf   : > { %v1793_v2 = vadd.f32 %v452_v0, %v451_v1  ;;  %1584 = vmatprep.subr.bf16.mxu0 %v1701_v4  ;;  %v1494_v23 = vld [vmem:[%s2130_s4] ss:$0 sm:$0xff]  ;;  %v1832_v27 = vsub.s32 0, %v488_v25  ;;  %v1834_v28 = vsub.s32 1, %v488_v25  ;;  %v1839_v30 = vsub.s32 2, %v488_v25 }
  0x10   : > { %v485_v29 = vld [vmem:[%s2131_s5] sm:$0x7f]  ;;  %v1843_v33 = vsub.s32 3, %v488_v25  ;;  %v1846_v35 = vsub.s32 4, %v488_v25  ;;  %v1849_v42 = vsub.s32 5, %v488_v25  ;;  %v1852_v47 = vsub.s32 6, %v488_v25 }
  0x11   : > { %v460_v3 = vsel %vm454_vm0, %v1793_v2, 0.0  ;;  %v490_v31 = vrot.slane %v485_v29, %v1832_v27  ;;  %v497_v32 = vrot.slane %v485_v29, %v1834_v28  ;;  %v504_v34 = vrot.slane %v485_v29, %v1839_v30  ;;  %v1495_v63 = vld [vmem:[%s2133_s7] ss:$0 sm:$0xff] }
  0x12   : > { %461 = vadd.xlane.f32.xlu0 %v460_v3  ;;  %1585 = vmatpush3.bf16.msra.mxu0 %v540_v15  ;;  %v511_v41 = vrot.slane %v485_v29, %v1843_v33  ;;  %v518_v46 = vrot.slane %v485_v29, %v1846_v35  ;;  %v525_v51 = vrot.slane %v485_v29, %v1849_v42  ;;  %v1502_v15 = vld [vmem:[%s2132_s6 + $0x30] sm:$0xff] }
  0x13   : > { %1598 = vmatprep.subr.bf16.mxu0 %v1701_v4  ;;  %v532_v55 = vrot.slane %v485_v29, %v1852_v47 }
  0x9b   : > { %v462_v5 = vpop.xlane.xlu0 %461 }
  0x9c   : > { %v464_v6 = vmul.f32 0.03125, %v462_v5 }
  0x9e   : > { %v465_v7 = vsub.f32 %v1793_v2, %v464_v6 }
  0xa0   : > { %v466_v8 = vmul.f32 %v465_v7, %v465_v7 }
  0xa2   : > { %v467_v9 = vsel %vm454_vm0, %v466_v8, 0.0 }
  0xa3   : > { %468 = vadd.xlane.f32.xlu0 %v467_v9 }
 0x12c   : > { %v469_v16 = vpop.xlane.xlu0 %468 }
 0x12d   : > { %v470_v17 = vmul.f32 0.03125, %v469_v16  ;;  %v1500_v16 = vld [vmem:[%s2132_s6 + $0x20] sm:$0xff] }
 0x12f   : > { %v471_v18 = vadd.f32 1e-05, %v470_v17 }
 0x131   : > { %1677 = vrsqrt.f32 %v471_v18  ;;  %v1501_v18 = vld [vmem:[%s2132_s6 + $0x28] sm:$0xff] }
 0x132   : > { %v675_v19 = vpack.c.bf16 %v1501_v18, %v1500_v16  ;;  %v1509_v18 = vld [vmem:[%s2132_s6 + $0x40] sm:$0xff] }
 0x13e   : > { %v1678_v20 = vpop.eup %1677 }
 0x13f   : > { %v473_v22 = vmul.f32 %v1678_v20, %v465_v7 }
 0x141   : > { %v478_v24 = vmul.f32 %v1493_v21, %v473_v22 }
 0x143   : > { %v483_v26 = vadd.f32 %v1494_v23, %v478_v24  ;;  %v1497_v24 = vld [vmem:[%s2129_s3 + $0x1] ss:$0 sm:$0xff] }
 0x145   : > { %484 = vst.msk [vmem:[#allocation2 + $0x8] sm:$0xff] %vm454_vm0, %v483_v26  ;;  %v1498_v26 = vld [vmem:[%s2130_s4 + $0x1] ss:$0 sm:$0xff] }
 0x14c   : > { %v486_v36 = vld [vmem:[#allocation2 + $0x5] sm:$0xff] }
 0x14d   : > { %v493_v37 = vld [vmem:[#allocation2 + $0x6] sm:$0xff]  ;;  %v491_v39 = vmul.f32 %v490_v31, %v486_v36 }
 0x14e   : > { %v500_v38 = vld [vmem:[#allocation2 + $0x7] sm:$0xff]  ;;  %v498_v40 = vmul.f32 %v497_v32, %v493_v37 }
 0x14f   : > { %v507_v43 = vld [vmem:[#allocation2 + $0x8] sm:$0xff]  ;;  %v505_v45 = vmul.f32 %v504_v34, %v500_v38 }
 0x150   : > { %v499_v44 = vadd.f32 %v498_v40, %v491_v39  ;;  %v514_v48 = vld [vmem:[#allocation2 + $0x9] sm:$0xff]  ;;  %v512_v50 = vmul.f32 %v511_v41, %v507_v43 }
 0x151   : > { %v521_v52 = vld [vmem:[#allocation2 + $0xa] sm:$0xff]  ;;  %v519_v54 = vmul.f32 %v518_v46, %v514_v48 }
 0x152   : > { %v506_v49 = vadd.f32 %v505_v45, %v499_v44  ;;  %v528_v56 = vld [vmem:[#allocation2 + $0xb] sm:$0xff]  ;;  %v526_v58 = vmul.f32 %v525_v51, %v521_v52 }
 0x153   : > { %v533_v60 = vmul.f32 %v532_v55, %v528_v56  ;;  %v1499_v32 = vld [vmem:[%s2131_s5 + $0x8] sm:$0x7f] }
 0x154   : > { %v513_v53 = vadd.f32 %v512_v50, %v506_v49  ;;  %v624_v34 = vrot.slane %v1499_v32, %v1832_v27  ;;  %v631_v36 = vrot.slane %v1499_v32, %v1834_v28  ;;  %v638_v37 = vrot.slane %v1499_v32, %v1839_v30 }
 0x155   : > { %v645_v44 = vrot.slane %v1499_v32, %v1843_v33  ;;  %v652_v49 = vrot.slane %v1499_v32, %v1846_v35 }
 0x156   : > { %v520_v57 = vadd.f32 %v519_v54, %v513_v53  ;;  %v659_v53 = vrot.slane %v1499_v32, %v1849_v42 }
 0x158   : > { %v527_v59 = vadd.f32 %v526_v58, %v520_v57  ;;  %v666_v57 = vrot.slane %v1499_v32, %v1852_v47 }
 0x15a   : > { %v534_v61 = vadd.f32 %v533_v60, %v527_v59 }
 0x15c   : > { %v539_v62 = vpack.c.bf16 %v534_v61, %v534_v61 }
 0x15e   : > { %1587 = vmatmul.mubr.msk.bf16.vlgmr.msra.gmra.mxu0 %vm454_vm0, %v539_v62 }
 0x15f   : > { %1602 = vmatprep.mubr.msk.bf16.mxu0 %vm1702_vm1, %v1701_v4 }
 0x21e   : > { %v584_v0 = vpop.f32.mrf.mxu0 }
 0x21f   : > { %v585_v1 = vadd.f32 %v1495_v63, %v584_v0 }
 0x220   : > { %v1588_v3 = vpop.f32.mrf.mxu0 }
 0x221   : > { %v590_v5 = vmax.f32 %v585_v1, 0.0  ;;  %v1504_v1 = vld [vmem:[%s2133_s7 + $0x1] ss:$0 sm:$0xff] }
 0x222   : > { %v587_v6 = vpop.f32.mrf.mxu0 }
 0x223   : > { %v1863_v7 = vadd.f32 %v590_v5, %v1793_v2  ;;  %v1503_v2 = vld [vmem:[%s2132_s6 + $0x38] sm:$0xff] }
 0x224   : > { %v1589_v8 = vpop.f32.mrf.mxu0  ;;  %v676_v17 = vpack.c.bf16 %v1503_v2, %v1502_v15 }
 0x225   : > { %v594_v9 = vsel %vm454_vm0, %v1863_v7, 0.0 }
 0x226   : > { %595 = vadd.xlane.f32.xlu1 %v594_v9  ;;  %1591 = vmatpush3.bf16.msra.mxu1 %v676_v17  ;;  %v1511_v17 = vld [vmem:[%s2132_s6 + $0x50] sm:$0xff] }
 0x227   : > { %1592 = vmatprep.subr.bf16.mxu1 %v1701_v4 }
 0x22a   : > { %1593 = vmatpush3.bf16.msra.mxu1 %v675_v19 }
 0x22b   : > { %1606 = vmatprep.subr.bf16.mxu1 %v1701_v4 }
 0x2af   : > { %v596_v10 = vpop.xlane.xlu1 %595 }
 0x2b0   : > { %v597_v11 = vmul.f32 0.03125, %v596_v10 }
 0x2b2   : > { %v598_v12 = vsub.f32 %v1863_v7, %v597_v11 }
 0x2b4   : > { %v599_v13 = vmul.f32 %v598_v12, %v598_v12 }
 0x2b6   : > { %v600_v14 = vsel %vm454_vm0, %v599_v13, 0.0 }
 0x2b7   : > { %601 = vadd.xlane.f32.xlu1 %v600_v14 }
 0x340   : > { %v602_v20 = vpop.xlane.xlu1 %601 }
 0x341   : > { %v603_v21 = vmul.f32 0.03125, %v602_v20  ;;  %v1510_v20 = vld [vmem:[%s2132_s6 + $0x48] sm:$0xff] }
 0x343   : > { %v604_v22 = vadd.f32 1e-05, %v603_v21  ;;  %v810_v21 = vpack.c.bf16 %v1510_v20, %v1509_v18  ;;  %v1518_v20 = vld [vmem:[%s2132_s6 + $0x60] sm:$0xff] }
 0x345   : > { %1679 = vrsqrt.f32 %v604_v22 }
 0x352   : > { %v1680_v23 = vpop.eup %1679 }
 0x353   : > { %v606_v25 = vmul.f32 %v1680_v23, %v598_v12 }
 0x355   : > { %v611_v29 = vmul.f32 %v1497_v24, %v606_v25 }
 0x357   : > { %v616_v31 = vadd.f32 %v1498_v26, %v611_v29  ;;  %v1506_v26 = vld [vmem:[%s2129_s3 + $0x2] ss:$0 sm:$0xff] }
 0x359   : > { %617 = vst.msk [vmem:[#allocation2 + $0x8] sm:$0xff] %vm454_vm0, %v616_v31  ;;  %v1507_v31 = vld [vmem:[%s2130_s4 + $0x2] ss:$0 sm:$0xff] }
 0x360   : > { %v620_v38 = vld [vmem:[#allocation2 + $0x5] sm:$0xff] }
 0x361   : > { %v627_v39 = vld [vmem:[#allocation2 + $0x6] sm:$0xff]  ;;  %v625_v41 = vmul.f32 %v624_v34, %v620_v38 }
 0x362   : > { %v634_v40 = vld [vmem:[#allocation2 + $0x7] sm:$0xff]  ;;  %v632_v43 = vmul.f32 %v631_v36, %v627_v39  ;;  %v1508_v36 = vld [vmem:[%s2131_s5 + $0x10] sm:$0x7f] }
 0x363   : > { %v641_v45 = vld [vmem:[#allocation2 + $0x8] sm:$0xff]  ;;  %v639_v48 = vmul.f32 %v638_v37, %v634_v40  ;;  %v759_v37 = vrot.slane %v1508_v36, %v1832_v27  ;;  %v766_v38 = vrot.slane %v1508_v36, %v1834_v28  ;;  %v773_v39 = vrot.slane %v1508_v36, %v1839_v30 }
 0x364   : > { %v633_v46 = vadd.f32 %v632_v43, %v625_v41  ;;  %v648_v50 = vld [vmem:[#allocation2 + $0x9] sm:$0xff]  ;;  %v646_v52 = vmul.f32 %v645_v44, %v641_v45 }
 0x365   : > { %v655_v54 = vld [vmem:[#allocation2 + $0xa] sm:$0xff]  ;;  %v653_v56 = vmul.f32 %v652_v49, %v648_v50 }
 0x366   : > { %v640_v51 = vadd.f32 %v639_v48, %v633_v46  ;;  %v662_v58 = vld [vmem:[#allocation2 + $0xb] sm:$0xff]  ;;  %v660_v60 = vmul.f32 %v659_v53, %v655_v54  ;;  %v780_v46 = vrot.slane %v1508_v36, %v1843_v33 }
 0x367   : > { %v667_v62 = vmul.f32 %v666_v57, %v662_v58 }
 0x368   : > { %v647_v55 = vadd.f32 %v646_v52, %v640_v51  ;;  %v787_v51 = vrot.slane %v1508_v36, %v1846_v35 }
 0x36a   : > { %v654_v59 = vadd.f32 %v653_v56, %v647_v55  ;;  %v794_v55 = vrot.slane %v1508_v36, %v1849_v42 }
 0x36c   : > { %v661_v61 = vadd.f32 %v660_v60, %v654_v59  ;;  %v801_v59 = vrot.slane %v1508_v36, %v1852_v47 }
 0x36e   : > { %v668_v63 = vadd.f32 %v667_v62, %v661_v61 }
 0x370   : > { %v674_v0 = vpack.c.bf16 %v668_v63, %v668_v63 }
 0x372   : > { %1595 = vmatmul.mubr.msk.bf16.vlgmr.msra.gmra.mxu1 %vm454_vm0, %v674_v0 }
 0x373   : > { %1610 = vmatprep.mubr.msk.bf16.mxu1 %vm1702_vm1, %v1701_v4 }
 0x432   : > { %v719_v3 = vpop.f32.mrf.mxu1 }
 0x433   : > { %v720_v5 = vadd.f32 %v1504_v1, %v719_v3 }
 0x434   : > { %v1596_v6 = vpop.f32.mrf.mxu1 }
 0x435   : > { %v725_v8 = vmax.f32 %v720_v5, 0.0  ;;  %v1513_v5 = vld [vmem:[%s2133_s7 + $0x2] ss:$0 sm:$0xff] }
 0x436   : > { %v722_v9 = vpop.f32.mrf.mxu1 }
 0x437   : > { %v1907_v10 = vadd.f32 %v725_v8, %v1863_v7  ;;  %v1512_v7 = vld [vmem:[%s2132_s6 + $0x58] sm:$0xff] }
 0x438   : > { %v1597_v11 = vpop.f32.mrf.mxu1  ;;  %v811_v19 = vpack.c.bf16 %v1512_v7, %v1511_v17 }
 0x439   : > { %v729_v12 = vsel %vm454_vm0, %v1907_v10, 0.0 }
 0x43a   : > { %730 = vadd.xlane.f32.xlu0 %v729_v12  ;;  %1599 = vmatpush3.bf16.msra.mxu0 %v811_v19  ;;  %v1520_v19 = vld [vmem:[%s2132_s6 + $0x70] sm:$0xff] }
 0x43b   : > { %1600 = vmatprep.subr.bf16.mxu0 %v1701_v4 }
 0x43e   : > { %1601 = vmatpush3.bf16.msra.mxu0 %v810_v21 }
 0x43f   : > { %1614 = vmatprep.subr.bf16.mxu0 %v1701_v4 }
 0x4c3   : > { %v731_v13 = vpop.xlane.xlu0 %730 }
 0x4c4   : > { %v732_v14 = vmul.f32 0.03125, %v731_v13 }
 0x4c6   : > { %v733_v15 = vsub.f32 %v1907_v10, %v732_v14 }
 0x4c8   : > { %v734_v2 = vmul.f32 %v733_v15, %v733_v15 }
 0x4ca   : > { %v735_v16 = vsel %vm454_vm0, %v734_v2, 0.0 }
 0x4cb   : > { %736 = vadd.xlane.f32.xlu1 %v735_v16 }
 0x554   : > { %v737_v22 = vpop.xlane.xlu1 %736 }
 0x555   : > { %v738_v23 = vmul.f32 0.03125, %v737_v22  ;;  %v1519_v22 = vld [vmem:[%s2132_s6 + $0x68] sm:$0xff] }
 0x557   : > { %v739_v24 = vadd.f32 1e-05, %v738_v23  ;;  %v945_v23 = vpack.c.bf16 %v1519_v22, %v1518_v20  ;;  %v1023_v20 = vld [vmem:[%s2136_s10 + $0x8] sm:$0xff]  ;;  %v1527_v22 = vld [vmem:[%s2136_s10 + $0x20] sm:$0xff] }
 0x559   : > { %1681 = vrsqrt.f32 %v739_v24 }
 0x566   : > { %v1682_v25 = vpop.eup %1681 }
 0x567   : > { %v741_v29 = vmul.f32 %v1682_v25, %v733_v15 }
 0x569   : > { %v746_v32 = vmul.f32 %v1506_v26, %v741_v29 }
 0x56b   : > { %v751_v34 = vadd.f32 %v1507_v31, %v746_v32  ;;  %v1515_v31 = vld [vmem:[%s2129_s3 + $0x3] ss:$0 sm:$0xff] }
 0x56d   : > { %752 = vst.msk [vmem:[#allocation2 + $0x8] sm:$0xff] %vm454_vm0, %v751_v34  ;;  %v1516_v34 = vld [vmem:[%s2130_s4 + $0x3] ss:$0 sm:$0xff] }
 0x574   : > { %v755_v40 = vld [vmem:[#allocation2 + $0x5] sm:$0xff] }
 0x575   : > { %v762_v41 = vld [vmem:[#allocation2 + $0x6] sm:$0xff]  ;;  %v760_v44 = vmul.f32 %v759_v37, %v755_v40 }
 0x576   : > { %v769_v43 = vld [vmem:[#allocation2 + $0x7] sm:$0xff]  ;;  %v767_v45 = vmul.f32 %v766_v38, %v762_v41  ;;  %v1517_v38 = vld [vmem:[%s2131_s5 + $0x18] sm:$0x7f] }
 0x577   : > { %v776_v48 = vld [vmem:[#allocation2 + $0x8] sm:$0xff]  ;;  %v774_v50 = vmul.f32 %v773_v39, %v769_v43  ;;  %v894_v39 = vrot.slane %v1517_v38, %v1832_v27  ;;  %v901_v40 = vrot.slane %v1517_v38, %v1834_v28  ;;  %v908_v41 = vrot.slane %v1517_v38, %v1839_v30 }
 0x578   : > { %v768_v49 = vadd.f32 %v767_v45, %v760_v44  ;;  %v783_v52 = vld [vmem:[#allocation2 + $0x9] sm:$0xff]  ;;  %v781_v54 = vmul.f32 %v780_v46, %v776_v48 }
 0x579   : > { %v790_v56 = vld [vmem:[#allocation2 + $0xa] sm:$0xff]  ;;  %v788_v58 = vmul.f32 %v787_v51, %v783_v52 }
 0x57a   : > { %v775_v53 = vadd.f32 %v774_v50, %v768_v49  ;;  %v797_v60 = vld [vmem:[#allocation2 + $0xb] sm:$0xff]  ;;  %v795_v62 = vmul.f32 %v794_v55, %v790_v56  ;;  %v915_v49 = vrot.slane %v1517_v38, %v1843_v33 }
 0x57b   : > { %v802_v0 = vmul.f32 %v801_v59, %v797_v60  ;;  %v936_v59 = vrot.slane %v1517_v38, %v1852_v47 }
 0x57c   : > { %v782_v57 = vadd.f32 %v781_v54, %v775_v53  ;;  %v922_v53 = vrot.slane %v1517_v38, %v1846_v35  ;;  %v1522_v35 = vld [vmem:[%s2133_s7 + $0x3] ss:$0 sm:$0xff] }
 0x57e   : > { %v789_v61 = vadd.f32 %v788_v58, %v782_v57  ;;  %v929_v57 = vrot.slane %v1517_v38, %v1849_v42 }
 0x580   : > { %v796_v63 = vadd.f32 %v795_v62, %v789_v61 }
 0x582   : > { %v803_v1 = vadd.f32 %v802_v0, %v796_v63 }
 0x584   : > { %v809_v3 = vpack.c.bf16 %v803_v1, %v803_v1 }
 0x586   : > { %1603 = vmatmul.mubr.msk.bf16.vlgmr.msra.gmra.mxu0 %vm454_vm0, %v809_v3 }
 0x587   : > { %1618 = vmatprep.mubr.msk.bf16.mxu0 %vm1702_vm1, %v1701_v4 }
 0x646   : > { %v854_v6 = vpop.f32.mrf.mxu0 }
 0x647   : > { %v855_v8 = vadd.f32 %v1513_v5, %v854_v6 }
 0x648   : > { %v1604_v9 = vpop.f32.mrf.mxu0 }
 0x649   : > { %v860_v11 = vmax.f32 %v855_v8, 0.0 }
 0x64a   : > { %v857_v12 = vpop.f32.mrf.mxu0 }
 0x64b   : > { %v1951_v13 = vadd.f32 %v860_v11, %v1907_v10  ;;  %v1521_v10 = vld [vmem:[%s2132_s6 + $0x78] sm:$0xff] }
 0x64c   : > { %v1605_v14 = vpop.f32.mrf.mxu0  ;;  %v946_v21 = vpack.c.bf16 %v1521_v10, %v1520_v19  ;;  %v1530_v19 = vld [vmem:[%s2136_s10 + $0x38] sm:$0xff]  ;;  %v1022_v10 = vld [vmem:[%s2136_s10] sm:$0xff] }
 0x64d   : > { %v864_v15 = vsel %vm454_vm0, %v1951_v13, 0.0 }
 0x64e   : > { %865 = vadd.xlane.f32.xlu0 %v864_v15  ;;  %1607 = vmatpush3.bf16.msra.mxu1 %v946_v21 }
 0x64f   : > { %1608 = vmatprep.subr.bf16.mxu1 %v1701_v4 }
 0x652   : > { %1609 = vmatpush3.bf16.msra.mxu1 %v945_v23  ;;  %v1528_v23 = vld [vmem:[%s2136_s10 + $0x28] sm:$0xff] }
 0x653   : > { %1622 = vmatprep.subr.bf16.mxu1 %v1701_v4 }
 0x6d7   : > { %v866_v2 = vpop.xlane.xlu0 %865 }
 0x6d8   : > { %v867_v16 = vmul.f32 0.03125, %v866_v2 }
 0x6da   : > { %v868_v17 = vsub.f32 %v1951_v13, %v867_v16 }
 0x6dc   : > { %v869_v7 = vmul.f32 %v868_v17, %v868_v17 }
 0x6de   : > { %v870_v18 = vsel %vm454_vm0, %v869_v7, 0.0  ;;  %v1529_v7 = vld [vmem:[%s2136_s10 + $0x30] sm:$0xff] }
 0x6df   : > { %871 = vadd.xlane.f32.xlu1 %v870_v18  ;;  %v1078_v21 = vpack.c.bf16 %v1530_v19, %v1529_v7 }
 0x768   : > { %v872_v24 = vpop.xlane.xlu1 %871 }
 0x769   : > { %v873_v25 = vmul.f32 0.03125, %v872_v24  ;;  %v1027_v24 = vpack.c.bf16 %v1023_v20, %v1022_v10 }
 0x76b   : > { %v874_v26 = vadd.f32 1e-05, %v873_v25  ;;  %v1077_v25 = vpack.c.bf16 %v1528_v23, %v1527_v22 }
 0x76d   : > { %1683 = vrsqrt.f32 %v874_v26 }
 0x77a   : > { %v1684_v29 = vpop.eup %1683 }
 0x77b   : > { %v876_v32 = vmul.f32 %v1684_v29, %v868_v17  ;;  %v1024_v17 = vld [vmem:[%s2136_s10 + $0x10] sm:$0xff] }
 0x77d   : > { %v881_v36 = vmul.f32 %v1515_v31, %v876_v32 }
 0x77f   : > { %v886_v37 = vadd.f32 %v1516_v34, %v881_v36  ;;  %v1524_v34 = vld [vmem:[%s2134_s8] ss:$0 sm:$0xff] }
 0x781   : > { %887 = vst.msk [vmem:[#allocation2 + $0x8] sm:$0xff] %vm454_vm0, %v886_v37  ;;  %v1525_v37 = vld [vmem:[%s2135_s9] ss:$0 sm:$0xff] }
 0x788   : > { %v890_v43 = vld [vmem:[#allocation2 + $0x5] sm:$0xff] }
 0x789   : > { %v897_v44 = vld [vmem:[#allocation2 + $0x6] sm:$0xff]  ;;  %v895_v46 = vmul.f32 %v894_v39, %v890_v43  ;;  %v1534_v39 = vld [vmem:[%s2136_s10 + $0x50] sm:$0xff] }
 0x78a   : > { %v904_v45 = vld [vmem:[#allocation2 + $0x7] sm:$0xff]  ;;  %v902_v48 = vmul.f32 %v901_v40, %v897_v44  ;;  %v1535_v40 = vld [vmem:[%s2136_s10 + $0x58] sm:$0xff] }
 0x78b   : > { %v911_v50 = vld [vmem:[#allocation2 + $0x8] sm:$0xff]  ;;  %v909_v52 = vmul.f32 %v908_v41, %v904_v45  ;;  %v1125_v43 = vpack.c.bf16 %v1535_v40, %v1534_v39  ;;  %v1532_v45 = vld [vmem:[%s2136_s10 + $0x40] sm:$0xff]  ;;  %v1546_v39 = vld [vmem:[%s2137_s11 + $0x38] sm:$0xff] }
 0x78c   : > { %v903_v51 = vadd.f32 %v902_v48, %v895_v46  ;;  %v918_v54 = vld [vmem:[#allocation2 + $0x9] sm:$0xff]  ;;  %v916_v56 = vmul.f32 %v915_v49, %v911_v50 }
 0x78d   : > { %v925_v28 = vld [vmem:[#allocation2 + $0xa] sm:$0xff]  ;;  %v923_v30 = vmul.f32 %v922_v53, %v918_v54 }
 0x78e   : > { %v910_v55 = vadd.f32 %v909_v52, %v903_v51  ;;  %v932_v60 = vld [vmem:[#allocation2 + $0xb] sm:$0xff]  ;;  %v930_v62 = vmul.f32 %v929_v57, %v925_v28 }
 0x78f   : > { %v937_v33 = vmul.f32 %v936_v59, %v932_v60  ;;  %v1533_v46 = vld [vmem:[%s2136_s10 + $0x48] sm:$0xff] }
 0x790   : > { %v917_v58 = vadd.f32 %v916_v56, %v910_v55  ;;  %v1124_v48 = vpack.c.bf16 %v1533_v46, %v1532_v45  ;;  %v1539_v46 = vld [vmem:[%s2134_s8 + $0x1] ss:$0 sm:$0xff] }
 0x792   : > { %v924_v61 = vadd.f32 %v923_v30, %v917_v58 }
 0x794   : > { %v931_v63 = vadd.f32 %v930_v62, %v924_v61 }
 0x796   : > { %v938_v0 = vadd.f32 %v937_v33, %v931_v63 }
 0x798   : > { %v944_v1 = vpack.c.bf16 %v938_v0, %v938_v0  ;;  %v1167_v0 = vld [vmem:[%s441_s29] sm:$0x1] }
 0x799   : > { %vm1216_vm3 = vcmp.gt.f32.partialorder %v1167_v0, 0.0 }
 0x79a   : > { %1611 = vmatmul.mubr.msk.bf16.vlgmr.msra.gmra.mxu1 %vm454_vm0, %v944_v1  ;;  %v1703_v1 = vmov 0  }
 0x79b   : > { %1626 = vmatprep.mubr.msk.bf16.mxu1 %vm1702_vm1, %v1701_v4  ;;  %1623 = vmatpush3.bf16.msra.mxu1 %v1078_v21 }
 0x79c   : > { %1624 = vmatprep.subr.bf16.mxu1 %v1701_v4 }
 0x79f   : > { %1625 = vmatpush3.bf16.msra.mxu1 %v1077_v25 }
 0x7a0   : > { %1638 = vmatprep.subr.bf16.mxu1 %v1701_v4 }
 0x85a   : > { %v989_v42 = vpop.f32.mrf.mxu1 }
 0x85b   : > { %v990_v3 = vadd.f32 %v1522_v35, %v989_v42  ;;  %v1217_v35 = vsel %vm1216_vm3, 1, %v1703_v1 }
 0x85c   : > { %v1612_v5 = vpop.f32.mrf.mxu1  ;;  %v1221_v42 = vrot.slane %v1217_v35, %v1832_v27 }
 0x85d   : > { %v995_v47 = vmax.f32 %v990_v3, 0.0 }
 0x85e   : > { %v992_v6 = vpop.f32.mrf.mxu1  ;;  %vm1222_vm4 = vcmp.eq.s32.totalorder %v1221_v42, 1 }
 0x85f   : > { %v1995_v8 = vadd.f32 %v995_v47, %v1951_v13  ;;  %v1025_v13 = vld [vmem:[%s2136_s10 + $0x18] sm:$0xff] }
 0x860   : > { %v1613_v9 = vpop.f32.mrf.mxu1  ;;  %v1028_v18 = vpack.c.bf16 %v1025_v13, %v1024_v17 }
 0x861   : > { %v999_v11 = vsel %vm454_vm0, %v1995_v8, 0.0 }
 0x862   : > { %1000 = vadd.xlane.f32.xlu0 %v999_v11  ;;  %1615 = vmatpush3.bf16.msra.mxu0 %v1028_v18 }
 0x863   : > { %1616 = vmatprep.subr.bf16.mxu0 %v1701_v4 }
 0x866   : > { %1617 = vmatpush3.bf16.msra.mxu0 %v1027_v24 }
 0x867   : > { %1630 = vmatprep.subr.bf16.mxu0 %v1701_v4 }
 0x8eb   : > { %v1001_v12 = vpop.xlane.xlu0 %1000 }
 0x8ec   : > { %v1002_v14 = vmul.f32 0.03125, %v1001_v12 }
 0x8ee   : > { %v1003_v15 = vsub.f32 %v1995_v8, %v1002_v14 }
 0x8f0   : > { %v1004_v2 = vmul.f32 %v1003_v15, %v1003_v15 }
 0x8f2   : > { %v1005_v16 = vsel %vm454_vm0, %v1004_v2, 0.0 }
 0x8f3   : > { %1006 = vadd.xlane.f32.xlu1 %v1005_v16 }
 0x97c   : > { %v1007_v26 = vpop.xlane.xlu1 %1006 }
 0x97d   : > { %v1008_v29 = vmul.f32 0.03125, %v1007_v26 }
 0x97f   : > { %v1009_v31 = vadd.f32 1e-05, %v1008_v29 }
 0x981   : > { %1685 = vrsqrt.f32 %v1009_v31  ;;  %v1312_v31 = vld [vmem:[%s2137_s11 + $0x10] sm:$0xff] }
 0x98e   : > { %v1686_v32 = vpop.eup %1685 }
 0x98f   : > { %v1011_v36 = vmul.f32 %v1686_v32, %v1003_v15  ;;  %v1310_v32 = vld [vmem:[%s2137_s11] sm:$0xff] }
 0x991   : > { %v1016_v38 = vmul.f32 %v1524_v34, %v1011_v36  ;;  %v1311_v36 = vld [vmem:[%s2137_s11 + $0x8] sm:$0xff] }
 0x993   : > { %v1021_v41 = vadd.f32 %v1525_v37, %v1016_v38  ;;  %v1315_v37 = vpack.c.bf16 %v1311_v36, %v1310_v32  ;;  %v1545_v38 = vld [vmem:[%s2137_s11 + $0x30] sm:$0xff] }
 0x994   : > { %v1373_v40 = vpack.c.bf16 %v1546_v39, %v1545_v38 }
 0x995   : > { %v1026_v44 = vpack.c.bf16 %v1021_v41, %v1021_v41 }
 0x997   : > { %1619 = vmatmul.mubr.msk.bf16.vlgmr.msra.gmra.mxu0 %vm454_vm0, %v1026_v44  ;;  %1627 = vmatmul.mubr.msk.bf16.vlgmr.msra.gmra.mxu1 %vm454_vm0, %v1026_v44 }
 0x998   : > { %1631 = vmatpush3.bf16.msra.mxu0 %v1125_v43  ;;  %1634 = vmatprep.mubr.msk.bf16.mxu0 %vm1702_vm1, %v1701_v4 }
 0x999   : > { %1632 = vmatprep.subr.bf16.mxu0 %v1701_v4  ;;  %1640 = vmatprep.mubr.msk.bf16.mxu1 %vm1702_vm1, %v1701_v4 }
 0x99c   : > { %1633 = vmatpush3.bf16.msra.mxu0 %v1124_v48 }
 0x99d   : > { %1644 = vmatprep.subr.bf16.mxu0 %v1701_v4 }
 0x99f   : > { %1635 = vmatmul.mubr.msk.bf16.vlgmr.msra.gmra.mxu0 %vm454_vm0, %v1026_v44 }
 0x9a0   : > { %1646 = vmatprep.mubr.msk.bf16.mxu0 %vm1702_vm1, %v1701_v4 }
 0xa57   : > { %v1066_v49 = vpop.f32.mrf.mxu0  ;;  %v1113_v50 = vpop.f32.mrf.mxu1 }
 0xa58   : > { %v1169_v51 = vpack.c.bf16 %v1066_v49, %v1066_v49  ;;  %v1237_v52 = vpack.c.bf16 %v1113_v50, %v1113_v50  ;;  %v1540_v49 = vld [vmem:[%s2135_s9 + $0x1] ss:$0 sm:$0xff] }
 0xa59   : > { %v1620_v53 = vpop.f32.mrf.mxu0  ;;  %v1628_v54 = vpop.f32.mrf.mxu1 }
 0xa5a   : > { %v1174_v55 = vsel %vm454_vm0, %v1169_v51, 0  ;;  %v1243_v56 = vsel %vm1241_vm2, %v1237_v52, 0  ;;  %v1544_v53 = vld [vmem:[%s2137_s11 + $0x28] sm:$0xff] }
 0xa5b   : > { %v1069_v57 = vpop.f32.mrf.mxu0  ;;  %v1116_v28 = vpop.f32.mrf.mxu1  ;;  %1639 = vmatpush3.bf16.xpose.msra.mxu1 %v1174_v55  ;;  %1645 = vmatpush3.bf16.msra.mxu0 %v1243_v56  ;;  %v1541_v55 = vld [vmem:[%s2138_s12] ss:$0 sm:$0xff] }
 0xa5c   : > { %1650 = vmatprep.subr.bf16.mxu1 %v1701_v4  ;;  %1658 = vmatprep.subr.bf16.mxu0 %v1701_v4 }
 0xa5d   : > { %v1621_v58 = vpop.f32.mrf.mxu0  ;;  %v1629_v30 = vpop.f32.mrf.mxu1 }
 0xa5f   : > { %v1160_v59 = vpop.f32.mrf.mxu0 }
 0xa60   : > { %v1166_v60 = vmul.f32 0.17677669, %v1160_v59 }
 0xa61   : > { %v1636_v61 = vpop.f32.mrf.mxu0 }
 0xa62   : > { %v1168_v62 = vpack.c.bf16 %v1166_v60, %v1166_v60  ;;  %v1547_v61 = vld [vmem:[%s2138_s12 + $0x1] ss:$0 sm:$0xff] }
 0xa63   : > { %v1163_v63 = vpop.f32.mrf.mxu0 }
 0xa64   : > { %1641 = vmatmul.mubr.msk.bf16.vlgmr.msra.gmra.mxu1 %vm454_vm0, %v1168_v62 }
 0xa65   : > { %v1637_v33 = vpop.f32.mrf.mxu0  ;;  %1654 = vmatprep.mubr.msk.bf16.mxu1 %vm1702_vm1, %v1701_v4 }
 0xb24   : > { %v1210_v3 = vpop.f32.mrf.mxu1 }
 0xb25   : > { %v1223_v5 = vsel %vm1222_vm4, %v1210_v3, -1e+30 }
 0xb26   : > { %v1642_v47 = vpop.f32.mrf.mxu1  ;;  %v1225_v6 = vsel %vm1224_vm5, %v1223_v5, -inf }
 0xb27   : > { %1226 = vmax.xlane.f32.xlu0 %v1225_v6 }
 0xb28   : > { %v1213_v9 = vpop.f32.mrf.mxu1 }
 0xb2a   : > { %v1643_v11 = vpop.f32.mrf.mxu1 }
 0xbb0   : > { %v1227_v12 = vpop.xlane.xlu0 %1226 }
 0xbb1   : > { %v1228_v14 = vsub.f32 %v1223_v5, %v1227_v12 }
 0xbb3   : > { %v1229_v15 = vmul.f32 1.442695, %v1228_v14 }
 0xbb5   : > { %1687 = vpow2.f32 %v1229_v15 }
 0xbc2   : > { %v1688_v2 = vpop.eup %1687 }
 0xbc3   : > { %v1231_v16 = vsel %vm1224_vm5, %v1688_v2, 0.0 }
 0xbc4   : > { %1232 = vadd.xlane.f32.xlu1 %v1231_v16 }
 0xc4d   : > { %v1233_v17 = vpop.xlane.xlu1 %1232 }
 0xc4e   : > { %1689 = vrcp.f32 %v1233_v17 }
 0xc5b   : > { %v1690_v27 = vpop.eup %1689 }
 0xc5c   : > { %v1235_v13 = vmul.f32 %v1690_v27, %v1688_v2 }
 0xc5e   : > { %v1236_v7 = vpack.c.bf16 %v1235_v13, %v1235_v13 }
 0xc60   : > { %1647 = vmatmul.mubr.msk.bf16.vlgmr.msra.gmra.mxu0 %vm1224_vm5, %v1236_v7 }
 0xc61   : > { %1662 = vmatprep.mubr.msk.bf16.mxu0 %vm1702_vm1, %v1701_v4  ;;  %1659 = vmatpush3.bf16.msra.mxu0 %v1373_v40 }
 0xc62   : > { %1660 = vmatprep.subr.bf16.mxu0 %v1701_v4 }
 0xd20   : > { %v1279_v18 = vpop.f32.mrf.mxu0 }
 0xd21   : > { %v1280_v19 = vadd.f32 %v1279_v18, %v1995_v8  ;;  %v1313_v8 = vld [vmem:[%s2137_s11 + $0x18] sm:$0xff] }
 0xd22   : > { %v1648_v10 = vpop.f32.mrf.mxu0  ;;  %v1316_v34 = vpack.c.bf16 %v1313_v8, %v1312_v31 }
 0xd23   : > { %v1287_v20 = vsel %vm454_vm0, %v1280_v19, 0.0 }
 0xd24   : > { %1288 = vadd.xlane.f32.xlu0 %v1287_v20  ;;  %v1282_v21 = vpop.f32.mrf.mxu0  ;;  %1651 = vmatpush3.bf16.msra.mxu1 %v1316_v34 }
 0xd25   : > { %1652 = vmatprep.subr.bf16.mxu1 %v1701_v4  ;;  %v1543_v4 = vld [vmem:[%s2137_s11 + $0x20] sm:$0xff] }
 0xd26   : > { %v1649_v22 = vpop.f32.mrf.mxu0  ;;  %v1372_v54 = vpack.c.bf16 %v1544_v53, %v1543_v4 }
 0xd28   : > { %1653 = vmatpush3.bf16.msra.mxu1 %v1315_v37  ;;  %1661 = vmatpush3.bf16.msra.mxu0 %v1372_v54 }
 0xdad   : > { %v1289_v23 = vpop.xlane.xlu0 %1288 }
 0xdae   : > { %v1290_v24 = vmul.f32 0.03125, %v1289_v23 }
 0xdb0   : > { %v1291_v25 = vsub.f32 %v1280_v19, %v1290_v24 }
 0xdb2   : > { %v1292_v26 = vmul.f32 %v1291_v25, %v1291_v25 }
 0xdb4   : > { %v1293_v29 = vsel %vm454_vm0, %v1292_v26, 0.0 }
 0xdb5   : > { %1294 = vadd.xlane.f32.xlu1 %v1293_v29 }
 0xe3e   : > { %v1295_v41 = vpop.xlane.xlu1 %1294 }
 0xe3f   : > { %v1296_v43 = vmul.f32 0.03125, %v1295_v41 }
 0xe41   : > { %v1297_v44 = vadd.f32 1e-05, %v1296_v43 }
 0xe43   : > { %1691 = vrsqrt.f32 %v1297_v44 }
 0xe50   : > { %v1692_v45 = vpop.eup %1691 }
 0xe51   : > { %v1299_v48 = vmul.f32 %v1692_v45, %v1291_v25 }
 0xe53   : > { %v1304_v50 = vmul.f32 %v1539_v46, %v1299_v48 }
 0xe55   : > { %v1309_v51 = vadd.f32 %v1540_v49, %v1304_v50 }
 0xe57   : > { %v1314_v52 = vpack.c.bf16 %v1309_v51, %v1309_v51 }
 0xe59   : > { %1655 = vmatmul.mubr.msk.bf16.vlgmr.msra.gmra.mxu1 %vm454_vm0, %v1314_v52 }
 0xf19   : > { %v1359_v56 = vpop.f32.mrf.mxu1 }
 0xf1a   : > { %v1360_v57 = vadd.f32 %v1541_v55, %v1359_v56 }
 0xf1b   : > { %v1656_v28 = vpop.f32.mrf.mxu1 }
 0xf1c   : > { %v1365_v58 = vmax.f32 %v1360_v57, 0.0 }
 0xf1d   : > { %v1362_v30 = vpop.f32.mrf.mxu1 }
 0xf1e   : > { %v1371_v59 = vpack.c.bf16 %v1365_v58, %v1365_v58 }
 0xf1f   : > { %v1657_v60 = vpop.f32.mrf.mxu1 }
 0xf20   : > { %1663 = vmatmul.mubr.msk.bf16.vlgmr.msra.gmra.mxu0 %vm454_vm0, %v1371_v59 }
 0xfe0   : > { %v1416_v62 = vpop.f32.mrf.mxu0 }
 0xfe1   : > { %v1417_v63 = vadd.f32 %v1547_v61, %v1416_v62 }
 0xfe2   : > { %v1664_v33 = vpop.f32.mrf.mxu0 }
 0xfe3   : > { %v1422_v0 = vadd.f32 %v1417_v63, %v1280_v19 }
 0xfe4   : > { %v1419_v1 = vpop.f32.mrf.mxu0 }
 0xfe5   : > { %1423 = vst.msk [vmem:[%s449_s28] sm:$0xff] %vm454_vm0, %v1422_v0 }
 0xfe6   : > { %v1665_v35 = vpop.f32.mrf.mxu0 }
 0xfe7 PF: > { %s23_s25 = sadd.s32 1, %s1699_s25  }
 0xfe8   : > { %p20_p4 = scmp.ge.s32.totalorder %s23_s25, 4  }
 0xfea   :  { %22 = sbr.rel (!%p20_p4) target bundleno = 1 (0x1), region = 114 }

</bundles_post_ra>
